<compile_context>
chip_gen: v7x
topology: tpu7x:2x2x1
jax: 0.10.0
libtpu: 0.0.40
codegen_flags: <defaults>
</compile_context>

<pallas_src>
import jax
import jax.numpy as jnp
from jax.experimental import pallas as pl
from jax.experimental.pallas import tpu as pltpu


def _round_up(x, m):
    return ((x + m - 1) // m) * m


def _pad_k(k):
    # K only padded to the 128-lane granule (no over-padding to the K tile).
    return _round_up(max(k, 128), 128)


def _pad_n(n):
    # N padded so a 128- or 256-wide N tile divides it exactly.
    return 128 if n <= 128 else _round_up(n, 256)


def _pick_tk(kp):
    # Largest K tile <= 1024 (multiple of 128) that divides the padded K.
    if kp <= 1024:
        return kp
    return next(c for c in range(1024, 0, -128) if kp % c == 0)


# ----------------------------------------------------------------------------
# Fused matmul + (BN scale/shift | bias) + optional residual + optional ReLU
# ----------------------------------------------------------------------------

def _make_matmul_kernel(relu, has_residual):
    def _epilogue(o_ref, s_ref, t_ref, r_ref):
        y = o_ref[...] * s_ref[...] + t_ref[...]
        if r_ref is not None:
            y = y + r_ref[...]
        if relu:
            y = jnp.maximum(y, 0.0)
        o_ref[...] = y

    if has_residual:
        def kernel(a_ref, b_ref, s_ref, t_ref, r_ref, o_ref):
            k = pl.program_id(2)

            @pl.when(k == 0)
            def _():
                o_ref[...] = jnp.zeros_like(o_ref)

            o_ref[...] += jnp.dot(a_ref[...], b_ref[...],
                                  preferred_element_type=jnp.float32)

            @pl.when(k == pl.num_programs(2) - 1)
            def _():
                _epilogue(o_ref, s_ref, t_ref, r_ref)
    else:
        def kernel(a_ref, b_ref, s_ref, t_ref, o_ref):
            k = pl.program_id(2)

            @pl.when(k == 0)
            def _():
                o_ref[...] = jnp.zeros_like(o_ref)

            o_ref[...] += jnp.dot(a_ref[...], b_ref[...],
                                  preferred_element_type=jnp.float32)

            @pl.when(k == pl.num_programs(2) - 1)
            def _():
                _epilogue(o_ref, s_ref, t_ref, None)

    return kernel


def fused_matmul(a, pack, *, relu=False, residual=None):
    """out = relu?((A @ W) * scale + shift [+ residual])  ->  (M, n) float32.

    a:    (M, K) activation (any float dtype; cast to bf16 here).
    pack: dict with pre-padded bf16 weight "w" (Kp, Np), f32 "scale"/"shift"
          of shape (1, Np), and original dims "k"/"n".
    residual: optional (M, n) float32 added before the ReLU.
    """
    M, K = a.shape
    assert K == pack["k"], (K, pack["k"])
    N = pack["n"]
    b_p, s_p, t_p = pack["w"], pack["scale"], pack["shift"]
    Kp, Np = b_p.shape

    tm = 256 if M >= 256 else _round_up(max(M, 16), 16)   # 16: bf16 sublane pack
    Mp = _round_up(M, tm)
    tn = min(256, Np)                                      # Np is a multiple of tn
    tk = _pick_tk(Kp)

    a_p = jnp.zeros((Mp, Kp), jnp.bfloat16).at[:M, :K].set(a.astype(jnp.bfloat16))

    in_specs = [
        pl.BlockSpec((tm, tk), lambda i, j, k: (i, k)),
        pl.BlockSpec((tk, tn), lambda i, j, k: (k, j)),
        pl.BlockSpec((1, tn), lambda i, j, k: (0, j)),
        pl.BlockSpec((1, tn), lambda i, j, k: (0, j)),
    ]
    args = [a_p, b_p, s_p, t_p]

    has_residual = residual is not None
    if has_residual:
        r_p = jnp.zeros((Mp, Np), jnp.float32).at[:M, :N].set(
            residual.astype(jnp.float32))
        in_specs.append(pl.BlockSpec((tm, tn), lambda i, j, k: (i, j)))
        args.append(r_p)

    out = pl.pallas_call(
        _make_matmul_kernel(relu, has_residual),
        out_shape=jax.ShapeDtypeStruct((Mp, Np), jnp.float32),
        grid_spec=pltpu.PrefetchScalarGridSpec(
            num_scalar_prefetch=0,
            grid=(Mp // tm, Np // tn, Kp // tk),
            in_specs=in_specs,
            out_specs=pl.BlockSpec((tm, tn), lambda i, j, k: (i, j)),
        ),
        compiler_params=pltpu.CompilerParams(
            dimension_semantics=("parallel", "parallel", "arbitrary"),
            vmem_limit_bytes=48 * 1024 * 1024,   # fits v7x's 64 MiB physical VMEM
        ),
    )(*args)
    return out[:M, :N]


# ----------------------------------------------------------------------------
# Remaining Pallas elementwise kernel: global average pool (tiny tensor)
# ----------------------------------------------------------------------------

def pallas_global_avg_pool(x3d):
    """x3d: (N, H*W, C) -> (N, C) mean over the spatial axis."""
    def kernel(x_ref, o_ref):
        o_ref[...] = jnp.mean(x_ref[...], axis=1)

    N, HW, C = x3d.shape
    return pl.pallas_call(
        kernel,
        out_shape=jax.ShapeDtypeStruct((N, C), x3d.dtype),
    )(x3d)


# ----------------------------------------------------------------------------
# Conv / pooling glue (im2col in plain JAX, matmul hot-path in Pallas)
# ----------------------------------------------------------------------------

def im2col(x, kh, kw, stride, pad):
    """x: NHWC (bf16) -> patches (N*Ho*Wo, kh*kw*C)."""
    # TODO(synk): avoid materializing im2col patches in HBM by gathering the
    #             (kh,kw) taps inside the kernel from an ANY-space NHWC ref.
    N, H, W, C = x.shape
    Ho = (H + 2 * pad - kh) // stride + 1
    Wo = (W + 2 * pad - kw) // stride + 1
    xp = jnp.pad(x, ((0, 0), (pad, pad), (pad, pad), (0, 0)))
    cols = []
    for i in range(kh):
        for j in range(kw):
            sl = jax.lax.slice(
                xp,
                (0, i, j, 0),
                (N, i + (Ho - 1) * stride + 1, j + (Wo - 1) * stride + 1, C),
                (1, stride, stride, 1),
            )
            cols.append(sl)
    patches = jnp.stack(cols, axis=3)  # (N, Ho, Wo, kh*kw, C)
    return patches.reshape(N * Ho * Wo, kh * kw * C), Ho, Wo


def conv_bn(x, pack, *, stride, pad, relu, residual=None):
    """Conv (no bias) + inference BatchNorm (+ residual) (+ ReLU), fused."""
    patches, Ho, Wo = im2col(x.astype(jnp.bfloat16),
                             pack["kh"], pack["kw"], stride, pad)
    out2d = fused_matmul(patches, pack, relu=relu, residual=residual)
    return out2d.reshape(x.shape[0], Ho, Wo, pack["n"])


def max_pool_3x3_s2_p1(x):
    # small pooling op; kept as plain-JAX glue
    return jax.lax.reduce_window(
        x, -jnp.inf, jax.lax.max,
        window_dimensions=(1, 3, 3, 1),
        window_strides=(1, 2, 2, 1),
        padding=((0, 0), (1, 1), (1, 1), (0, 0)),
    )


# ----------------------------------------------------------------------------
# ResNet-18 backbone + classifier head
# ----------------------------------------------------------------------------

def basic_block(x, blk):
    s = blk["stride"]
    if "down" in blk:
        identity = conv_bn(x, blk["down"], stride=s, pad=0, relu=False)
    else:
        identity = x
    out = conv_bn(x, blk["c1"], stride=s, pad=1, relu=True)
    # conv2 + BN2 + residual-add + ReLU all fused in the matmul epilogue
    out = conv_bn(out, blk["c2"], stride=1, pad=1, relu=True,
                  residual=identity.reshape(-1, identity.shape[-1]))
    return out


def backbone_forward(x_nhwc, p):
    x = conv_bn(x_nhwc, p["conv1"], stride=2, pad=3, relu=True)
    x = max_pool_3x3_s2_p1(x)
    for li in range(4):
        for blk in p[f"layer{li + 1}"]:
            x = basic_block(x, blk)
    N, H, W, C = x.shape
    return pallas_global_avg_pool(x.reshape(N, H * W, C))  # (N, 512)


def belt_alignment_classifier_forward(x_nchw, params):
    # layout: input NCHW (PyTorch) -> NHWC internally
    x = jnp.transpose(x_nchw, (0, 2, 3, 1)).astype(jnp.float32)
    feats = backbone_forward(x, params["backbone"])
    # classifier head (eval semantics: Dropout = identity)
    h = fused_matmul(feats, params["fc1"], relu=True)
    h = fused_matmul(h, params["fc2"], relu=True)
    out = fused_matmul(h, params["fc3"], relu=False)
    return out  # (N, num_classes)


# ----------------------------------------------------------------------------
# Deterministic parameter init (shapes follow torchvision resnet18 + head).
# Weights are pre-flattened, padded and cast to bf16 ONCE here; BN is pre-fused
# into per-channel (scale, shift) using running stats.
# ----------------------------------------------------------------------------

def _prep_matmul_pack(w2d, scale, shift):
    K, N = w2d.shape
    Kp, Np = _pad_k(K), _pad_n(N)
    return {
        "w": jnp.zeros((Kp, Np), jnp.bfloat16).at[:K, :N].set(
            w2d.astype(jnp.bfloat16)),
        "scale": jnp.zeros((1, Np), jnp.float32).at[0, :N].set(
            scale.astype(jnp.float32)),
        "shift": jnp.zeros((1, Np), jnp.float32).at[0, :N].set(
            shift.astype(jnp.float32)),
        "k": K, "n": N,
    }


def make_params(num_classes=4):
    keys = iter(jax.random.split(jax.random.PRNGKey(42), 64))
    eps = 1e-5

    def conv_bn_pack(kh, kw, cin, cout):
        std = (2.0 / (kh * kw * cout)) ** 0.5  # kaiming-normal fan_out (resnet)
        w = jax.random.normal(next(keys), (kh, kw, cin, cout), jnp.float32) * std
        # Fresh-init BN running stats: mean=0, var=1, gamma=1, beta=0.
        gamma = jnp.ones((cout,), jnp.float32)
        beta = jnp.zeros((cout,), jnp.float32)
        mean = jnp.zeros((cout,), jnp.float32)
        var = jnp.ones((cout,), jnp.float32)
        scale = gamma * jax.lax.rsqrt(var + eps)
        shift = beta - mean * scale
        pack = _prep_matmul_pack(w.reshape(kh * kw * cin, cout), scale, shift)
        pack.update(kh=kh, kw=kw, cin=cin)
        return pack

    def linear_pack(fin, fout):
        limit = (6.0 / (fin + fout)) ** 0.5    # xavier_uniform (_initialize_weights)
        w = jax.random.uniform(next(keys), (fin, fout), jnp.float32, -limit, limit)
        b = jnp.zeros((fout,), jnp.float32)    # bias init: constant 0
        return _prep_matmul_pack(w, jnp.ones((fout,), jnp.float32), b)

    backbone = {"conv1": conv_bn_pack(7, 7, 3, 64)}
    layer_cfg = [(64, 64, 1), (64, 128, 2), (128, 256, 2), (256, 512, 2)]
    for li, (cin, cout, stride) in enumerate(layer_cfg):
        blocks = []
        for bi in range(2):
            s = stride if bi == 0 else 1
            c_in = cin if bi == 0 else cout
            blk = {
                "stride": s,
                "c1": conv_bn_pack(3, 3, c_in, cout),
                "c2": conv_bn_pack(3, 3, cout, cout),
            }
            if s != 1 or c_in != cout:
                blk["down"] = conv_bn_pack(1, 1, c_in, cout)
            blocks.append(blk)
        backbone[f"layer{li + 1}"] = blocks

    return {
        "backbone": backbone,
        "fc1": linear_pack(512, 512),
        "fc2": linear_pack(512, 128),
        "fc3": linear_pack(128, num_classes),
    }


# ----------------------------------------------------------------------------

if __name__ == "__main__":
    params = make_params(num_classes=4)
    # Small deterministic input: batch=2, channels=3 (RGB), spatial 32x32 (NCHW)
    x = jax.random.normal(jax.random.PRNGKey(0), (2, 3, 32, 32), jnp.float32)

    # jit the whole forward so the im2col / pad / reshape glue fuses; params are
    # closed over (pre-padded bf16 weights become compile-time constants).
    forward = jax.jit(lambda inp: belt_alignment_classifier_forward(inp, params))

    out = jax.block_until_ready(forward(x))
    assert out.shape == (2, 4), out.shape
    print("KERNEL_OK")
</pallas_src>

<mosaic_0001>
module attributes {stable_mosaic.version = 11 : i64} {
  func.func @kernel(%arg0: i32, %arg1: i32, %arg2: i32, %arg3: memref<256x256xbf16, #tpu.memory_space<vmem>>, %arg4: memref<256x128xbf16, #tpu.memory_space<vmem>>, %arg5: memref<1x128xf32, #tpu.memory_space<vmem>>, %arg6: memref<1x128xf32, #tpu.memory_space<vmem>>, %arg7: memref<256x128xf32, #tpu.memory_space<vmem>>) attributes {dimension_semantics = [#tpu.dimension_semantics<parallel>, #tpu.dimension_semantics<parallel>, #tpu.dimension_semantics<arbitrary>], iteration_bounds = array<i64: 2, 1, 1>, scalar_prefetch = 0 : i64, scratch_operands = 0 : i64, tpu.core_type = #tpu.core_type<tc>, window_params = [{transform_indices = @transform_0, window_bounds = array<i64: 256, 256>}, {transform_indices = @transform_1, window_bounds = array<i64: 256, 128>}, {transform_indices = @transform_2, window_bounds = array<i64: 1, 128>}, {transform_indices = @transform_3, window_bounds = array<i64: 1, 128>}, {transform_indices = @transform_4, window_bounds = array<i64: 256, 128>}]} {
    %c0_i32 = arith.constant 0 : i32
    %0 = arith.cmpi eq, %arg2, %c0_i32 : i32
    %1 = arith.extui %0 : i1 to i32
    %c0_i32_0 = arith.constant 0 : i32
    %2 = arith.cmpi ne, %1, %c0_i32_0 : i32
    scf.if %2 {
      %cst_10 = arith.constant 0.000000e+00 : f32
      %12 = vector.broadcast %cst_10 : f32 to vector<256x128xf32>
      %c0_11 = arith.constant 0 : index
      %c0_12 = arith.constant 0 : index
      %13 = vector.load %arg7[%c0_11, %c0_12] : memref<256x128xf32, #tpu.memory_space<vmem>>, vector<256x128xf32>
      tpu.vector_store %arg7[%c0_11, %c0_12], %12 {strides = array<i32>} : memref<256x128xf32, #tpu.memory_space<vmem>>, vector<256x128xf32>,
    } else {
    }
    %c0 = arith.constant 0 : index
    %c0_1 = arith.constant 0 : index
    %3 = vector.load %arg7[%c0, %c0_1] : memref<256x128xf32, #tpu.memory_space<vmem>>, vector<256x128xf32>
    %c0_2 = arith.constant 0 : index
    %c0_3 = arith.constant 0 : index
    %4 = vector.load %arg3[%c0_2, %c0_3] : memref<256x256xbf16, #tpu.memory_space<vmem>>, vector<256x256xbf16>
    %c0_4 = arith.constant 0 : index
    %c0_5 = arith.constant 0 : index
    %5 = vector.load %arg4[%c0_4, %c0_5] : memref<256x128xbf16, #tpu.memory_space<vmem>>, vector<256x128xbf16>
    %cst = arith.constant dense<0.000000e+00> : vector<256x128xf32>
    %6 = tpu.matmul %4, %5, %cst {dimension_numbers = #tpu.dot_dimension_numbers<[1], [0], [0], [1], [0, 0, 1, 1], [], []>} : vector<256x256xbf16>, vector<256x128xbf16>, vector<256x128xf32> -> vector<256x128xf32>
    %7 = arith.addf %3, %6 : vector<256x128xf32>
    %c0_6 = arith.constant 0 : index
    %c0_7 = arith.constant 0 : index
    %8 = vector.load %arg7[%c0_6, %c0_7] : memref<256x128xf32, #tpu.memory_space<vmem>>, vector<256x128xf32>
    tpu.vector_store %arg7[%c0_6, %c0_7], %7 {strides = array<i32>} : memref<256x128xf32, #tpu.memory_space<vmem>>, vector<256x128xf32>,
    %c0_i32_8 = arith.constant 0 : i32
    %9 = arith.cmpi eq, %arg2, %c0_i32_8 : i32
    %10 = arith.extui %9 : i1 to i32
    %c0_i32_9 = arith.constant 0 : i32
    %11 = arith.cmpi ne, %10, %c0_i32_9 : i32
    scf.if %11 {
      %c0_10 = arith.constant 0 : index
      %c0_11 = arith.constant 0 : index
      %12 = vector.load %arg7[%c0_10, %c0_11] : memref<256x128xf32, #tpu.memory_space<vmem>>, vector<256x128xf32>
      %c0_12 = arith.constant 0 : index
      %c0_13 = arith.constant 0 : index
      %13 = vector.load %arg5[%c0_12, %c0_13] : memref<1x128xf32, #tpu.memory_space<vmem>>, vector<1x128xf32>
      %14 = vector.broadcast %13 : vector<1x128xf32> to vector<256x128xf32>
      %15 = arith.mulf %12, %14 : vector<256x128xf32>
      %c0_14 = arith.constant 0 : index
      %c0_15 = arith.constant 0 : index
      %16 = vector.load %arg6[%c0_14, %c0_15] : memref<1x128xf32, #tpu.memory_space<vmem>>, vector<1x128xf32>
      %17 = vector.broadcast %16 : vector<1x128xf32> to vector<256x128xf32>
      %18 = arith.addf %15, %17 : vector<256x128xf32>
      %cst_16 = arith.constant 0.000000e+00 : f32
      %19 = vector.broadcast %cst_16 : f32 to vector<256x128xf32>
      %20 = arith.maximumf %18, %19 : vector<256x128xf32>
      %c0_17 = arith.constant 0 : index
      %c0_18 = arith.constant 0 : index
      %21 = vector.load %arg7[%c0_17, %c0_18] : memref<256x128xf32, #tpu.memory_space<vmem>>, vector<256x128xf32>
      tpu.vector_store %arg7[%c0_17, %c0_18], %20 {strides = array<i32>} : memref<256x128xf32, #tpu.memory_space<vmem>>, vector<256x128xf32>,
    } else {
    }
    return
  }
  func.func @transform_0(%arg0: i32, %arg1: i32, %arg2: i32) -> (i32, i32) {
    %c0_i32 = arith.constant 0 : i32
    return %arg0, %arg2 : i32, i32
  }
  func.func @transform_1(%arg0: i32, %arg1: i32, %arg2: i32) -> (i32, i32) {
    %c0_i32 = arith.constant 0 : i32
    return %arg2, %arg1 : i32, i32
  }
  func.func @transform_2(%arg0: i32, %arg1: i32, %arg2: i32) -> (i32, i32) {
    %c0_i32 = arith.constant 0 : i32
    %c0_i32_0 = arith.constant 0 : i32
    return %c0_i32, %arg1 : i32, i32
  }
  func.func @transform_3(%arg0: i32, %arg1: i32, %arg2: i32) -> (i32, i32) {
    %c0_i32 = arith.constant 0 : i32
    %c0_i32_0 = arith.constant 0 : i32
    return %c0_i32, %arg1 : i32, i32
  }
  func.func @transform_4(%arg0: i32, %arg1: i32, %arg2: i32) -> (i32, i32) {
    %c0_i32 = arith.constant 0 : i32
    return %arg0, %arg1 : i32, i32
  }
}

module attributes {stable_mosaic.version = 11 : i64} {
  func.func @kernel(%arg0: i32, %arg1: i32, %arg2: i32, %arg3: memref<128x640xbf16, #tpu.memory_space<vmem>>, %arg4: memref<640x128xbf16, #tpu.memory_space<vmem>>, %arg5: memref<1x128xf32, #tpu.memory_space<vmem>>, %arg6: memref<1x128xf32, #tpu.memory_space<vmem>>, %arg7: memref<128x128xf32, #tpu.memory_space<vmem>>) attributes {dimension_semantics = [#tpu.dimension_semantics<parallel>, #tpu.dimension_semantics<parallel>, #tpu.dimension_semantics<arbitrary>], iteration_bounds = array<i64: 1, 1, 1>, scalar_prefetch = 0 : i64, scratch_operands = 0 : i64, tpu.core_type = #tpu.core_type<tc>, window_params = [{transform_indices = @transform_0, window_bounds = array<i64: 128, 640>}, {transform_indices = @transform_1, window_bounds = array<i64: 640, 128>}, {transform_indices = @transform_2, window_bounds = array<i64: 1, 128>}, {transform_indices = @transform_3, window_bounds = array<i64: 1, 128>}, {transform_indices = @transform_4, window_bounds = array<i64: 128, 128>}]} {
    %c0_i32 = arith.constant 0 : i32
    %0 = arith.cmpi eq, %arg2, %c0_i32 : i32
    %1 = arith.extui %0 : i1 to i32
    %c0_i32_0 = arith.constant 0 : i32
    %2 = arith.cmpi ne, %1, %c0_i32_0 : i32
    scf.if %2 {
      %cst_10 = arith.constant 0.000000e+00 : f32
      %12 = vector.broadcast %cst_10 : f32 to vector<128x128xf32>
      %c0_11 = arith.constant 0 : index
      %c0_12 = arith.constant 0 : index
      %13 = vector.load %arg7[%c0_11, %c0_12] : memref<128x128xf32, #tpu.memory_space<vmem>>, vector<128x128xf32>
      tpu.vector_store %arg7[%c0_11, %c0_12], %12 {strides = array<i32>} : memref<128x128xf32, #tpu.memory_space<vmem>>, vector<128x128xf32>,
    } else {
    }
    %c0 = arith.constant 0 : index
    %c0_1 = arith.constant 0 : index
    %3 = vector.load %arg7[%c0, %c0_1] : memref<128x128xf32, #tpu.memory_space<vmem>>, vector<128x128xf32>
    %c0_2 = arith.constant 0 : index
    %c0_3 = arith.constant 0 : index
    %4 = vector.load %arg3[%c0_2, %c0_3] : memref<128x640xbf16, #tpu.memory_space<vmem>>, vector<128x640xbf16>
    %c0_4 = arith.constant 0 : index
    %c0_5 = arith.constant 0 : index
    %5 = vector.load %arg4[%c0_4, %c0_5] : memref<640x128xbf16, #tpu.memory_space<vmem>>, vector<640x128xbf16>
    %cst = arith.constant dense<0.000000e+00> : vector<128x128xf32>
    %6 = tpu.matmul %4, %5, %cst {dimension_numbers = #tpu.dot_dimension_numbers<[1], [0], [0], [1], [0, 0, 1, 1], [], []>} : vector<128x640xbf16>, vector<640x128xbf16>, vector<128x128xf32> -> vector<128x128xf32>
    %7 = arith.addf %3, %6 : vector<128x128xf32>
    %c0_6 = arith.constant 0 : index
    %c0_7 = arith.constant 0 : index
    %8 = vector.load %arg7[%c0_6, %c0_7] : memref<128x128xf32, #tpu.memory_space<vmem>>, vector<128x128xf32>
    tpu.vector_store %arg7[%c0_6, %c0_7], %7 {strides = array<i32>} : memref<128x128xf32, #tpu.memory_space<vmem>>, vector<128x128xf32>,
    %c0_i32_8 = arith.constant 0 : i32
    %9 = arith.cmpi eq, %arg2, %c0_i32_8 : i32
    %10 = arith.extui %9 : i1 to i32
    %c0_i32_9 = arith.constant 0 : i32
    %11 = arith.cmpi ne, %10, %c0_i32_9 : i32
    scf.if %11 {
      %c0_10 = arith.constant 0 : index
      %c0_11 = arith.constant 0 : index
      %12 = vector.load %arg7[%c0_10, %c0_11] : memref<128x128xf32, #tpu.memory_space<vmem>>, vector<128x128xf32>
      %c0_12 = arith.constant 0 : index
      %c0_13 = arith.constant 0 : index
      %13 = vector.load %arg5[%c0_12, %c0_13] : memref<1x128xf32, #tpu.memory_space<vmem>>, vector<1x128xf32>
      %14 = vector.broadcast %13 : vector<1x128xf32> to vector<128x128xf32>
      %15 = arith.mulf %12, %14 : vector<128x128xf32>
      %c0_14 = arith.constant 0 : index
      %c0_15 = arith.constant 0 : index
      %16 = vector.load %arg6[%c0_14, %c0_15] : memref<1x128xf32, #tpu.memory_space<vmem>>, vector<1x128xf32>
      %17 = vector.broadcast %16 : vector<1x128xf32> to vector<128x128xf32>
      %18 = arith.addf %15, %17 : vector<128x128xf32>
      %cst_16 = arith.constant 0.000000e+00 : f32
      %19 = vector.broadcast %cst_16 : f32 to vector<128x128xf32>
      %20 = arith.maximumf %18, %19 : vector<128x128xf32>
      %c0_17 = arith.constant 0 : index
      %c0_18 = arith.constant 0 : index
      %21 = vector.load %arg7[%c0_17, %c0_18] : memref<128x128xf32, #tpu.memory_space<vmem>>, vector<128x128xf32>
      tpu.vector_store %arg7[%c0_17, %c0_18], %20 {strides = array<i32>} : memref<128x128xf32, #tpu.memory_space<vmem>>, vector<128x128xf32>,
    } else {
    }
    return
  }
  func.func @transform_0(%arg0: i32, %arg1: i32, %arg2: i32) -> (i32, i32) {
    %c0_i32 = arith.constant 0 : i32
    return %arg0, %arg2 : i32, i32
  }
  func.func @transform_1(%arg0: i32, %arg1: i32, %arg2: i32) -> (i32, i32) {
    %c0_i32 = arith.constant 0 : i32
    return %arg2, %arg1 : i32, i32
  }
  func.func @transform_2(%arg0: i32, %arg1: i32, %arg2: i32) -> (i32, i32) {
    %c0_i32 = arith.constant 0 : i32
    %c0_i32_0 = arith.constant 0 : i32
    return %c0_i32, %arg1 : i32, i32
  }
  func.func @transform_3(%arg0: i32, %arg1: i32, %arg2: i32) -> (i32, i32) {
    %c0_i32 = arith.constant 0 : i32
    %c0_i32_0 = arith.constant 0 : i32
    return %c0_i32, %arg1 : i32, i32
  }
  func.func @transform_4(%arg0: i32, %arg1: i32, %arg2: i32) -> (i32, i32) {
    %c0_i32 = arith.constant 0 : i32
    return %arg0, %arg1 : i32, i32
  }
}

module attributes {stable_mosaic.version = 11 : i64} {
  func.func @kernel(%arg0: i32, %arg1: i32, %arg2: i32, %arg3: memref<128x640xbf16, #tpu.memory_space<vmem>>, %arg4: memref<640x128xbf16, #tpu.memory_space<vmem>>, %arg5: memref<1x128xf32, #tpu.memory_space<vmem>>, %arg6: memref<1x128xf32, #tpu.memory_space<vmem>>, %arg7: memref<128x128xf32, #tpu.memory_space<vmem>>, %arg8: memref<128x128xf32, #tpu.memory_space<vmem>>) attributes {dimension_semantics = [#tpu.dimension_semantics<parallel>, #tpu.dimension_semantics<parallel>, #tpu.dimension_semantics<arbitrary>], iteration_bounds = array<i64: 1, 1, 1>, scalar_prefetch = 0 : i64, scratch_operands = 0 : i64, tpu.core_type = #tpu.core_type<tc>, window_params = [{transform_indices = @transform_0, window_bounds = array<i64: 128, 640>}, {transform_indices = @transform_1, window_bounds = array<i64: 640, 128>}, {transform_indices = @transform_2, window_bounds = array<i64: 1, 128>}, {transform_indices = @transform_3, window_bounds = array<i64: 1, 128>}, {transform_indices = @transform_4, window_bounds = array<i64: 128, 128>}, {transform_indices = @transform_5, window_bounds = array<i64: 128, 128>}]} {
    %c0_i32 = arith.constant 0 : i32
    %0 = arith.cmpi eq, %arg2, %c0_i32 : i32
    %1 = arith.extui %0 : i1 to i32
    %c0_i32_0 = arith.constant 0 : i32
    %2 = arith.cmpi ne, %1, %c0_i32_0 : i32
    scf.if %2 {
      %cst_10 = arith.constant 0.000000e+00 : f32
      %12 = vector.broadcast %cst_10 : f32 to vector<128x128xf32>
      %c0_11 = arith.constant 0 : index
      %c0_12 = arith.constant 0 : index
      %13 = vector.load %arg8[%c0_11, %c0_12] : memref<128x128xf32, #tpu.memory_space<vmem>>, vector<128x128xf32>
      tpu.vector_store %arg8[%c0_11, %c0_12], %12 {strides = array<i32>} : memref<128x128xf32, #tpu.memory_space<vmem>>, vector<128x128xf32>,
    } else {
    }
    %c0 = arith.constant 0 : index
    %c0_1 = arith.constant 0 : index
    %3 = vector.load %arg8[%c0, %c0_1] : memref<128x128xf32, #tpu.memory_space<vmem>>, vector<128x128xf32>
    %c0_2 = arith.constant 0 : index
    %c0_3 = arith.constant 0 : index
    %4 = vector.load %arg3[%c0_2, %c0_3] : memref<128x640xbf16, #tpu.memory_space<vmem>>, vector<128x640xbf16>
    %c0_4 = arith.constant 0 : index
    %c0_5 = arith.constant 0 : index
    %5 = vector.load %arg4[%c0_4, %c0_5] : memref<640x128xbf16, #tpu.memory_space<vmem>>, vector<640x128xbf16>
    %cst = arith.constant dense<0.000000e+00> : vector<128x128xf32>
    %6 = tpu.matmul %4, %5, %cst {dimension_numbers = #tpu.dot_dimension_numbers<[1], [0], [0], [1], [0, 0, 1, 1], [], []>} : vector<128x640xbf16>, vector<640x128xbf16>, vector<128x128xf32> -> vector<128x128xf32>
    %7 = arith.addf %3, %6 : vector<128x128xf32>
    %c0_6 = arith.constant 0 : index
    %c0_7 = arith.constant 0 : index
    %8 = vector.load %arg8[%c0_6, %c0_7] : memref<128x128xf32, #tpu.memory_space<vmem>>, vector<128x128xf32>
    tpu.vector_store %arg8[%c0_6, %c0_7], %7 {strides = array<i32>} : memref<128x128xf32, #tpu.memory_space<vmem>>, vector<128x128xf32>,
    %c0_i32_8 = arith.constant 0 : i32
    %9 = arith.cmpi eq, %arg2, %c0_i32_8 : i32
    %10 = arith.extui %9 : i1 to i32
    %c0_i32_9 = arith.constant 0 : i32
    %11 = arith.cmpi ne, %10, %c0_i32_9 : i32
    scf.if %11 {
      %c0_10 = arith.constant 0 : index
      %c0_11 = arith.constant 0 : index
      %12 = vector.load %arg8[%c0_10, %c0_11] : memref<128x128xf32, #tpu.memory_space<vmem>>, vector<128x128xf32>
      %c0_12 = arith.constant 0 : index
      %c0_13 = arith.constant 0 : index
      %13 = vector.load %arg5[%c0_12, %c0_13] : memref<1x128xf32, #tpu.memory_space<vmem>>, vector<1x128xf32>
      %14 = vector.broadcast %13 : vector<1x128xf32> to vector<128x128xf32>
      %15 = arith.mulf %12, %14 : vector<128x128xf32>
      %c0_14 = arith.constant 0 : index
      %c0_15 = arith.constant 0 : index
      %16 = vector.load %arg6[%c0_14, %c0_15] : memref<1x128xf32, #tpu.memory_space<vmem>>, vector<1x128xf32>
      %17 = vector.broadcast %16 : vector<1x128xf32> to vector<128x128xf32>
      %18 = arith.addf %15, %17 : vector<128x128xf32>
      %c0_16 = arith.constant 0 : index
      %c0_17 = arith.constant 0 : index
      %19 = vector.load %arg7[%c0_16, %c0_17] : memref<128x128xf32, #tpu.memory_space<vmem>>, vector<128x128xf32>
      %20 = arith.addf %18, %19 : vector<128x128xf32>
      %cst_18 = arith.constant 0.000000e+00 : f32
      %21 = vector.broadcast %cst_18 : f32 to vector<128x128xf32>
      %22 = arith.maximumf %20, %21 : vector<128x128xf32>
      %c0_19 = arith.constant 0 : index
      %c0_20 = arith.constant 0 : index
      %23 = vector.load %arg8[%c0_19, %c0_20] : memref<128x128xf32, #tpu.memory_space<vmem>>, vector<128x128xf32>
      tpu.vector_store %arg8[%c0_19, %c0_20], %22 {strides = array<i32>} : memref<128x128xf32, #tpu.memory_space<vmem>>, vector<128x128xf32>,
    } else {
    }
    return
  }
  func.func @transform_0(%arg0: i32, %arg1: i32, %arg2: i32) -> (i32, i32) {
    %c0_i32 = arith.constant 0 : i32
    return %arg0, %arg2 : i32, i32
  }
  func.func @transform_1(%arg0: i32, %arg1: i32, %arg2: i32) -> (i32, i32) {
    %c0_i32 = arith.constant 0 : i32
    return %arg2, %arg1 : i32, i32
  }
  func.func @transform_2(%arg0: i32, %arg1: i32, %arg2: i32) -> (i32, i32) {
    %c0_i32 = arith.constant 0 : i32
    %c0_i32_0 = arith.constant 0 : i32
    return %c0_i32, %arg1 : i32, i32
  }
  func.func @transform_3(%arg0: i32, %arg1: i32, %arg2: i32) -> (i32, i32) {
    %c0_i32 = arith.constant 0 : i32
    %c0_i32_0 = arith.constant 0 : i32
    return %c0_i32, %arg1 : i32, i32
  }
  func.func @transform_4(%arg0: i32, %arg1: i32, %arg2: i32) -> (i32, i32) {
    %c0_i32 = arith.constant 0 : i32
    return %arg0, %arg1 : i32, i32
  }
  func.func @transform_5(%arg0: i32, %arg1: i32, %arg2: i32) -> (i32, i32) {
    %c0_i32 = arith.constant 0 : i32
    return %arg0, %arg1 : i32, i32
  }
}

module attributes {stable_mosaic.version = 11 : i64} {
  func.func @kernel(%arg0: i32, %arg1: i32, %arg2: i32, %arg3: memref<32x640xbf16, #tpu.memory_space<vmem>>, %arg4: memref<640x128xbf16, #tpu.memory_space<vmem>>, %arg5: memref<1x128xf32, #tpu.memory_space<vmem>>, %arg6: memref<1x128xf32, #tpu.memory_space<vmem>>, %arg7: memref<32x128xf32, #tpu.memory_space<vmem>>) attributes {dimension_semantics = [#tpu.dimension_semantics<parallel>, #tpu.dimension_semantics<parallel>, #tpu.dimension_semantics<arbitrary>], iteration_bounds = array<i64: 1, 1, 1>, scalar_prefetch = 0 : i64, scratch_operands = 0 : i64, tpu.core_type = #tpu.core_type<tc>, window_params = [{transform_indices = @transform_0, window_bounds = array<i64: 32, 640>}, {transform_indices = @transform_1, window_bounds = array<i64: 640, 128>}, {transform_indices = @transform_2, window_bounds = array<i64: 1, 128>}, {transform_indices = @transform_3, window_bounds = array<i64: 1, 128>}, {transform_indices = @transform_4, window_bounds = array<i64: 32, 128>}]} {
    %c0_i32 = arith.constant 0 : i32
    %0 = arith.cmpi eq, %arg2, %c0_i32 : i32
    %1 = arith.extui %0 : i1 to i32
    %c0_i32_0 = arith.constant 0 : i32
    %2 = arith.cmpi ne, %1, %c0_i32_0 : i32
    scf.if %2 {
      %cst_10 = arith.constant 0.000000e+00 : f32
      %12 = vector.broadcast %cst_10 : f32 to vector<32x128xf32>
      %c0_11 = arith.constant 0 : index
      %c0_12 = arith.constant 0 : index
      %13 = vector.load %arg7[%c0_11, %c0_12] : memref<32x128xf32, #tpu.memory_space<vmem>>, vector<32x128xf32>
      tpu.vector_store %arg7[%c0_11, %c0_12], %12 {strides = array<i32>} : memref<32x128xf32, #tpu.memory_space<vmem>>, vector<32x128xf32>,
    } else {
    }
    %c0 = arith.constant 0 : index
    %c0_1 = arith.constant 0 : index
    %3 = vector.load %arg7[%c0, %c0_1] : memref<32x128xf32, #tpu.memory_space<vmem>>, vector<32x128xf32>
    %c0_2 = arith.constant 0 : index
    %c0_3 = arith.constant 0 : index
    %4 = vector.load %arg3[%c0_2, %c0_3] : memref<32x640xbf16, #tpu.memory_space<vmem>>, vector<32x640xbf16>
    %c0_4 = arith.constant 0 : index
    %c0_5 = arith.constant 0 : index
    %5 = vector.load %arg4[%c0_4, %c0_5] : memref<640x128xbf16, #tpu.memory_space<vmem>>, vector<640x128xbf16>
    %cst = arith.constant dense<0.000000e+00> : vector<32x128xf32>
    %6 = tpu.matmul %4, %5, %cst {dimension_numbers = #tpu.dot_dimension_numbers<[1], [0], [0], [1], [0, 0, 1, 1], [], []>} : vector<32x640xbf16>, vector<640x128xbf16>, vector<32x128xf32> -> vector<32x128xf32>
    %7 = arith.addf %3, %6 : vector<32x128xf32>
    %c0_6 = arith.constant 0 : index
    %c0_7 = arith.constant 0 : index
    %8 = vector.load %arg7[%c0_6, %c0_7] : memref<32x128xf32, #tpu.memory_space<vmem>>, vector<32x128xf32>
    tpu.vector_store %arg7[%c0_6, %c0_7], %7 {strides = array<i32>} : memref<32x128xf32, #tpu.memory_space<vmem>>, vector<32x128xf32>,
    %c0_i32_8 = arith.constant 0 : i32
    %9 = arith.cmpi eq, %arg2, %c0_i32_8 : i32
    %10 = arith.extui %9 : i1 to i32
    %c0_i32_9 = arith.constant 0 : i32
    %11 = arith.cmpi ne, %10, %c0_i32_9 : i32
    scf.if %11 {
      %c0_10 = arith.constant 0 : index
      %c0_11 = arith.constant 0 : index
      %12 = vector.load %arg7[%c0_10, %c0_11] : memref<32x128xf32, #tpu.memory_space<vmem>>, vector<32x128xf32>
      %c0_12 = arith.constant 0 : index
      %c0_13 = arith.constant 0 : index
      %13 = vector.load %arg5[%c0_12, %c0_13] : memref<1x128xf32, #tpu.memory_space<vmem>>, vector<1x128xf32>
      %14 = vector.broadcast %13 : vector<1x128xf32> to vector<32x128xf32>
      %15 = arith.mulf %12, %14 : vector<32x128xf32>
      %c0_14 = arith.constant 0 : index
      %c0_15 = arith.constant 0 : index
      %16 = vector.load %arg6[%c0_14, %c0_15] : memref<1x128xf32, #tpu.memory_space<vmem>>, vector<1x128xf32>
      %17 = vector.broadcast %16 : vector<1x128xf32> to vector<32x128xf32>
      %18 = arith.addf %15, %17 : vector<32x128xf32>
      %cst_16 = arith.constant 0.000000e+00 : f32
      %19 = vector.broadcast %cst_16 : f32 to vector<32x128xf32>
      %20 = arith.maximumf %18, %19 : vector<32x128xf32>
      %c0_17 = arith.constant 0 : index
      %c0_18 = arith.constant 0 : index
      %21 = vector.load %arg7[%c0_17, %c0_18] : memref<32x128xf32, #tpu.memory_space<vmem>>, vector<32x128xf32>
      tpu.vector_store %arg7[%c0_17, %c0_18], %20 {strides = array<i32>} : memref<32x128xf32, #tpu.memory_space<vmem>>, vector<32x128xf32>,
    } else {
    }
    return
  }
  func.func @transform_0(%arg0: i32, %arg1: i32, %arg2: i32) -> (i32, i32) {
    %c0_i32 = arith.constant 0 : i32
    return %arg0, %arg2 : i32, i32
  }
  func.func @transform_1(%arg0: i32, %arg1: i32, %arg2: i32) -> (i32, i32) {
    %c0_i32 = arith.constant 0 : i32
    return %arg2, %arg1 : i32, i32
  }
  func.func @transform_2(%arg0: i32, %arg1: i32, %arg2: i32) -> (i32, i32) {
    %c0_i32 = arith.constant 0 : i32
    %c0_i32_0 = arith.constant 0 : i32
    return %c0_i32, %arg1 : i32, i32
  }
  func.func @transform_3(%arg0: i32, %arg1: i32, %arg2: i32) -> (i32, i32) {
    %c0_i32 = arith.constant 0 : i32
    %c0_i32_0 = arith.constant 0 : i32
    return %c0_i32, %arg1 : i32, i32
  }
  func.func @transform_4(%arg0: i32, %arg1: i32, %arg2: i32) -> (i32, i32) {
    %c0_i32 = arith.constant 0 : i32
    return %arg0, %arg1 : i32, i32
  }
}

module attributes {stable_mosaic.version = 11 : i64} {
  func.func @kernel(%arg0: i32, %arg1: i32, %arg2: i32, %arg3: memref<32x128xbf16, #tpu.memory_space<vmem>>, %arg4: memref<128x128xbf16, #tpu.memory_space<vmem>>, %arg5: memref<1x128xf32, #tpu.memory_space<vmem>>, %arg6: memref<1x128xf32, #tpu.memory_space<vmem>>, %arg7: memref<32x128xf32, #tpu.memory_space<vmem>>) attributes {dimension_semantics = [#tpu.dimension_semantics<parallel>, #tpu.dimension_semantics<parallel>, #tpu.dimension_semantics<arbitrary>], iteration_bounds = array<i64: 1, 1, 1>, scalar_prefetch = 0 : i64, scratch_operands = 0 : i64, tpu.core_type = #tpu.core_type<tc>, window_params = [{transform_indices = @transform_0, window_bounds = array<i64: 32, 128>}, {transform_indices = @transform_1, window_bounds = array<i64: 128, 128>}, {transform_indices = @transform_2, window_bounds = array<i64: 1, 128>}, {transform_indices = @transform_3, window_bounds = array<i64: 1, 128>}, {transform_indices = @transform_4, window_bounds = array<i64: 32, 128>}]} {
    %c0_i32 = arith.constant 0 : i32
    %0 = arith.cmpi eq, %arg2, %c0_i32 : i32
    %1 = arith.extui %0 : i1 to i32
    %c0_i32_0 = arith.constant 0 : i32
    %2 = arith.cmpi ne, %1, %c0_i32_0 : i32
    scf.if %2 {
      %cst_10 = arith.constant 0.000000e+00 : f32
      %12 = vector.broadcast %cst_10 : f32 to vector<32x128xf32>
      %c0_11 = arith.constant 0 : index
      %c0_12 = arith.constant 0 : index
      %13 = vector.load %arg7[%c0_11, %c0_12] : memref<32x128xf32, #tpu.memory_space<vmem>>, vector<32x128xf32>
      tpu.vector_store %arg7[%c0_11, %c0_12], %12 {strides = array<i32>} : memref<32x128xf32, #tpu.memory_space<vmem>>, vector<32x128xf32>,
    } else {
    }
    %c0 = arith.constant 0 : index
    %c0_1 = arith.constant 0 : index
    %3 = vector.load %arg7[%c0, %c0_1] : memref<32x128xf32, #tpu.memory_space<vmem>>, vector<32x128xf32>
    %c0_2 = arith.constant 0 : index
    %c0_3 = arith.constant 0 : index
    %4 = vector.load %arg3[%c0_2, %c0_3] : memref<32x128xbf16, #tpu.memory_space<vmem>>, vector<32x128xbf16>
    %c0_4 = arith.constant 0 : index
    %c0_5 = arith.constant 0 : index
    %5 = vector.load %arg4[%c0_4, %c0_5] : memref<128x128xbf16, #tpu.memory_space<vmem>>, vector<128x128xbf16>
    %cst = arith.constant dense<0.000000e+00> : vector<32x128xf32>
    %6 = tpu.matmul %4, %5, %cst {dimension_numbers = #tpu.dot_dimension_numbers<[1], [0], [0], [1], [0, 0, 1, 1], [], []>} : vector<32x128xbf16>, vector<128x128xbf16>, vector<32x128xf32> -> vector<32x128xf32>
    %7 = arith.addf %3, %6 : vector<32x128xf32>
    %c0_6 = arith.constant 0 : index
    %c0_7 = arith.constant 0 : index
    %8 = vector.load %arg7[%c0_6, %c0_7] : memref<32x128xf32, #tpu.memory_space<vmem>>, vector<32x128xf32>
    tpu.vector_store %arg7[%c0_6, %c0_7], %7 {strides = array<i32>} : memref<32x128xf32, #tpu.memory_space<vmem>>, vector<32x128xf32>,
    %c0_i32_8 = arith.constant 0 : i32
    %9 = arith.cmpi eq, %arg2, %c0_i32_8 : i32
    %10 = arith.extui %9 : i1 to i32
    %c0_i32_9 = arith.constant 0 : i32
    %11 = arith.cmpi ne, %10, %c0_i32_9 : i32
    scf.if %11 {
      %c0_10 = arith.constant 0 : index
      %c0_11 = arith.constant 0 : index
      %12 = vector.load %arg7[%c0_10, %c0_11] : memref<32x128xf32, #tpu.memory_space<vmem>>, vector<32x128xf32>
      %c0_12 = arith.constant 0 : index
      %c0_13 = arith.constant 0 : index
      %13 = vector.load %arg5[%c0_12, %c0_13] : memref<1x128xf32, #tpu.memory_space<vmem>>, vector<1x128xf32>
      %14 = vector.broadcast %13 : vector<1x128xf32> to vector<32x128xf32>
      %15 = arith.mulf %12, %14 : vector<32x128xf32>
      %c0_14 = arith.constant 0 : index
      %c0_15 = arith.constant 0 : index
      %16 = vector.load %arg6[%c0_14, %c0_15] : memref<1x128xf32, #tpu.memory_space<vmem>>, vector<1x128xf32>
      %17 = vector.broadcast %16 : vector<1x128xf32> to vector<32x128xf32>
      %18 = arith.addf %15, %17 : vector<32x128xf32>
      %c0_16 = arith.constant 0 : index
      %c0_17 = arith.constant 0 : index
      %19 = vector.load %arg7[%c0_16, %c0_17] : memref<32x128xf32, #tpu.memory_space<vmem>>, vector<32x128xf32>
      tpu.vector_store %arg7[%c0_16, %c0_17], %18 {strides = array<i32>} : memref<32x128xf32, #tpu.memory_space<vmem>>, vector<32x128xf32>,
    } else {
    }
    return
  }
  func.func @transform_0(%arg0: i32, %arg1: i32, %arg2: i32) -> (i32, i32) {
    %c0_i32 = arith.constant 0 : i32
    return %arg0, %arg2 : i32, i32
  }
  func.func @transform_1(%arg0: i32, %arg1: i32, %arg2: i32) -> (i32, i32) {
    %c0_i32 = arith.constant 0 : i32
    return %arg2, %arg1 : i32, i32
  }
  func.func @transform_2(%arg0: i32, %arg1: i32, %arg2: i32) -> (i32, i32) {
    %c0_i32 = arith.constant 0 : i32
    %c0_i32_0 = arith.constant 0 : i32
    return %c0_i32, %arg1 : i32, i32
  }
  func.func @transform_3(%arg0: i32, %arg1: i32, %arg2: i32) -> (i32, i32) {
    %c0_i32 = arith.constant 0 : i32
    %c0_i32_0 = arith.constant 0 : i32
    return %c0_i32, %arg1 : i32, i32
  }
  func.func @transform_4(%arg0: i32, %arg1: i32, %arg2: i32) -> (i32, i32) {
    %c0_i32 = arith.constant 0 : i32
    return %arg0, %arg1 : i32, i32
  }
}

module attributes {stable_mosaic.version = 11 : i64} {
  func.func @kernel(%arg0: i32, %arg1: i32, %arg2: i32, %arg3: memref<32x384xbf16, #tpu.memory_space<vmem>>, %arg4: memref<384x128xbf16, #tpu.memory_space<vmem>>, %arg5: memref<1x128xf32, #tpu.memory_space<vmem>>, %arg6: memref<1x128xf32, #tpu.memory_space<vmem>>, %arg7: memref<32x128xf32, #tpu.memory_space<vmem>>, %arg8: memref<32x128xf32, #tpu.memory_space<vmem>>) attributes {dimension_semantics = [#tpu.dimension_semantics<parallel>, #tpu.dimension_semantics<parallel>, #tpu.dimension_semantics<arbitrary>], iteration_bounds = array<i64: 1, 1, 3>, scalar_prefetch = 0 : i64, scratch_operands = 0 : i64, tpu.core_type = #tpu.core_type<tc>, window_params = [{transform_indices = @transform_0, window_bounds = array<i64: 32, 384>}, {transform_indices = @transform_1, window_bounds = array<i64: 384, 128>}, {transform_indices = @transform_2, window_bounds = array<i64: 1, 128>}, {transform_indices = @transform_3, window_bounds = array<i64: 1, 128>}, {transform_indices = @transform_4, window_bounds = array<i64: 32, 128>}, {transform_indices = @transform_5, window_bounds = array<i64: 32, 128>}]} {
    %c0_i32 = arith.constant 0 : i32
    %0 = arith.cmpi eq, %arg2, %c0_i32 : i32
    %1 = arith.extui %0 : i1 to i32
    %c0_i32_0 = arith.constant 0 : i32
    %2 = arith.cmpi ne, %1, %c0_i32_0 : i32
    scf.if %2 {
      %cst_9 = arith.constant 0.000000e+00 : f32
      %12 = vector.broadcast %cst_9 : f32 to vector<32x128xf32>
      %c0_10 = arith.constant 0 : index
      %c0_11 = arith.constant 0 : index
      %13 = vector.load %arg8[%c0_10, %c0_11] : memref<32x128xf32, #tpu.memory_space<vmem>>, vector<32x128xf32>
      tpu.vector_store %arg8[%c0_10, %c0_11], %12 {strides = array<i32>} : memref<32x128xf32, #tpu.memory_space<vmem>>, vector<32x128xf32>,
    } else {
    }
    %c0 = arith.constant 0 : index
    %c0_1 = arith.constant 0 : index
    %3 = vector.load %arg8[%c0, %c0_1] : memref<32x128xf32, #tpu.memory_space<vmem>>, vector<32x128xf32>
    %c0_2 = arith.constant 0 : index
    %c0_3 = arith.constant 0 : index
    %4 = vector.load %arg3[%c0_2, %c0_3] : memref<32x384xbf16, #tpu.memory_space<vmem>>, vector<32x384xbf16>
    %c0_4 = arith.constant 0 : index
    %c0_5 = arith.constant 0 : index
    %5 = vector.load %arg4[%c0_4, %c0_5] : memref<384x128xbf16, #tpu.memory_space<vmem>>, vector<384x128xbf16>
    %cst = arith.constant dense<0.000000e+00> : vector<32x128xf32>
    %6 = tpu.matmul %4, %5, %cst {dimension_numbers = #tpu.dot_dimension_numbers<[1], [0], [0], [1], [0, 0, 1, 1], [], []>} : vector<32x384xbf16>, vector<384x128xbf16>, vector<32x128xf32> -> vector<32x128xf32>
    %7 = arith.addf %3, %6 : vector<32x128xf32>
    %c0_6 = arith.constant 0 : index
    %c0_7 = arith.constant 0 : index
    %8 = vector.load %arg8[%c0_6, %c0_7] : memref<32x128xf32, #tpu.memory_space<vmem>>, vector<32x128xf32>
    tpu.vector_store %arg8[%c0_6, %c0_7], %7 {strides = array<i32>} : memref<32x128xf32, #tpu.memory_space<vmem>>, vector<32x128xf32>,
    %c2_i32 = arith.constant 2 : i32
    %9 = arith.cmpi eq, %arg2, %c2_i32 : i32
    %10 = arith.extui %9 : i1 to i32
    %c0_i32_8 = arith.constant 0 : i32
    %11 = arith.cmpi ne, %10, %c0_i32_8 : i32
    scf.if %11 {
      %c0_9 = arith.constant 0 : index
      %c0_10 = arith.constant 0 : index
      %12 = vector.load %arg8[%c0_9, %c0_10] : memref<32x128xf32, #tpu.memory_space<vmem>>, vector<32x128xf32>
      %c0_11 = arith.constant 0 : index
      %c0_12 = arith.constant 0 : index
      %13 = vector.load %arg5[%c0_11, %c0_12] : memref<1x128xf32, #tpu.memory_space<vmem>>, vector<1x128xf32>
      %14 = vector.broadcast %13 : vector<1x128xf32> to vector<32x128xf32>
      %15 = arith.mulf %12, %14 : vector<32x128xf32>
      %c0_13 = arith.constant 0 : index
      %c0_14 = arith.constant 0 : index
      %16 = vector.load %arg6[%c0_13, %c0_14] : memref<1x128xf32, #tpu.memory_space<vmem>>, vector<1x128xf32>
      %17 = vector.broadcast %16 : vector<1x128xf32> to vector<32x128xf32>
      %18 = arith.addf %15, %17 : vector<32x128xf32>
      %c0_15 = arith.constant 0 : index
      %c0_16 = arith.constant 0 : index
      %19 = vector.load %arg7[%c0_15, %c0_16] : memref<32x128xf32, #tpu.memory_space<vmem>>, vector<32x128xf32>
      %20 = arith.addf %18, %19 : vector<32x128xf32>
      %cst_17 = arith.constant 0.000000e+00 : f32
      %21 = vector.broadcast %cst_17 : f32 to vector<32x128xf32>
      %22 = arith.maximumf %20, %21 : vector<32x128xf32>
      %c0_18 = arith.constant 0 : index
      %c0_19 = arith.constant 0 : index
      %23 = vector.load %arg8[%c0_18, %c0_19] : memref<32x128xf32, #tpu.memory_space<vmem>>, vector<32x128xf32>
      tpu.vector_store %arg8[%c0_18, %c0_19], %22 {strides = array<i32>} : memref<32x128xf32, #tpu.memory_space<vmem>>, vector<32x128xf32>,
    } else {
    }
    return
  }
  func.func @transform_0(%arg0: i32, %arg1: i32, %arg2: i32) -> (i32, i32) {
    %c0_i32 = arith.constant 0 : i32
    return %arg0, %arg2 : i32, i32
  }
  func.func @transform_1(%arg0: i32, %arg1: i32, %arg2: i32) -> (i32, i32) {
    %c0_i32 = arith.constant 0 : i32
    return %arg2, %arg1 : i32, i32
  }
  func.func @transform_2(%arg0: i32, %arg1: i32, %arg2: i32) -> (i32, i32) {
    %c0_i32 = arith.constant 0 : i32
    %c0_i32_0 = arith.constant 0 : i32
    return %c0_i32, %arg1 : i32, i32
  }
  func.func @transform_3(%arg0: i32, %arg1: i32, %arg2: i32) -> (i32, i32) {
    %c0_i32 = arith.constant 0 : i32
    %c0_i32_0 = arith.constant 0 : i32
    return %c0_i32, %arg1 : i32, i32
  }
  func.func @transform_4(%arg0: i32, %arg1: i32, %arg2: i32) -> (i32, i32) {
    %c0_i32 = arith.constant 0 : i32
    return %arg0, %arg1 : i32, i32
  }
  func.func @transform_5(%arg0: i32, %arg1: i32, %arg2: i32) -> (i32, i32) {
    %c0_i32 = arith.constant 0 : i32
    return %arg0, %arg1 : i32, i32
  }
}

module attributes {stable_mosaic.version = 11 : i64} {
  func.func @kernel(%arg0: i32, %arg1: i32, %arg2: i32, %arg3: memref<32x384xbf16, #tpu.memory_space<vmem>>, %arg4: memref<384x128xbf16, #tpu.memory_space<vmem>>, %arg5: memref<1x128xf32, #tpu.memory_space<vmem>>, %arg6: memref<1x128xf32, #tpu.memory_space<vmem>>, %arg7: memref<32x128xf32, #tpu.memory_space<vmem>>) attributes {dimension_semantics = [#tpu.dimension_semantics<parallel>, #tpu.dimension_semantics<parallel>, #tpu.dimension_semantics<arbitrary>], iteration_bounds = array<i64: 1, 1, 3>, scalar_prefetch = 0 : i64, scratch_operands = 0 : i64, tpu.core_type = #tpu.core_type<tc>, window_params = [{transform_indices = @transform_0, window_bounds = array<i64: 32, 384>}, {transform_indices = @transform_1, window_bounds = array<i64: 384, 128>}, {transform_indices = @transform_2, window_bounds = array<i64: 1, 128>}, {transform_indices = @transform_3, window_bounds = array<i64: 1, 128>}, {transform_indices = @transform_4, window_bounds = array<i64: 32, 128>}]} {
    %c0_i32 = arith.constant 0 : i32
    %0 = arith.cmpi eq, %arg2, %c0_i32 : i32
    %1 = arith.extui %0 : i1 to i32
    %c0_i32_0 = arith.constant 0 : i32
    %2 = arith.cmpi ne, %1, %c0_i32_0 : i32
    scf.if %2 {
      %cst_9 = arith.constant 0.000000e+00 : f32
      %12 = vector.broadcast %cst_9 : f32 to vector<32x128xf32>
      %c0_10 = arith.constant 0 : index
      %c0_11 = arith.constant 0 : index
      %13 = vector.load %arg7[%c0_10, %c0_11] : memref<32x128xf32, #tpu.memory_space<vmem>>, vector<32x128xf32>
      tpu.vector_store %arg7[%c0_10, %c0_11], %12 {strides = array<i32>} : memref<32x128xf32, #tpu.memory_space<vmem>>, vector<32x128xf32>,
    } else {
    }
    %c0 = arith.constant 0 : index
    %c0_1 = arith.constant 0 : index
    %3 = vector.load %arg7[%c0, %c0_1] : memref<32x128xf32, #tpu.memory_space<vmem>>, vector<32x128xf32>
    %c0_2 = arith.constant 0 : index
    %c0_3 = arith.constant 0 : index
    %4 = vector.load %arg3[%c0_2, %c0_3] : memref<32x384xbf16, #tpu.memory_space<vmem>>, vector<32x384xbf16>
    %c0_4 = arith.constant 0 : index
    %c0_5 = arith.constant 0 : index
    %5 = vector.load %arg4[%c0_4, %c0_5] : memref<384x128xbf16, #tpu.memory_space<vmem>>, vector<384x128xbf16>
    %cst = arith.constant dense<0.000000e+00> : vector<32x128xf32>
    %6 = tpu.matmul %4, %5, %cst {dimension_numbers = #tpu.dot_dimension_numbers<[1], [0], [0], [1], [0, 0, 1, 1], [], []>} : vector<32x384xbf16>, vector<384x128xbf16>, vector<32x128xf32> -> vector<32x128xf32>
    %7 = arith.addf %3, %6 : vector<32x128xf32>
    %c0_6 = arith.constant 0 : index
    %c0_7 = arith.constant 0 : index
    %8 = vector.load %arg7[%c0_6, %c0_7] : memref<32x128xf32, #tpu.memory_space<vmem>>, vector<32x128xf32>
    tpu.vector_store %arg7[%c0_6, %c0_7], %7 {strides = array<i32>} : memref<32x128xf32, #tpu.memory_space<vmem>>, vector<32x128xf32>,
    %c2_i32 = arith.constant 2 : i32
    %9 = arith.cmpi eq, %arg2, %c2_i32 : i32
    %10 = arith.extui %9 : i1 to i32
    %c0_i32_8 = arith.constant 0 : i32
    %11 = arith.cmpi ne, %10, %c0_i32_8 : i32
    scf.if %11 {
      %c0_9 = arith.constant 0 : index
      %c0_10 = arith.constant 0 : index
      %12 = vector.load %arg7[%c0_9, %c0_10] : memref<32x128xf32, #tpu.memory_space<vmem>>, vector<32x128xf32>
      %c0_11 = arith.constant 0 : index
      %c0_12 = arith.constant 0 : index
      %13 = vector.load %arg5[%c0_11, %c0_12] : memref<1x128xf32, #tpu.memory_space<vmem>>, vector<1x128xf32>
      %14 = vector.broadcast %13 : vector<1x128xf32> to vector<32x128xf32>
      %15 = arith.mulf %12, %14 : vector<32x128xf32>
      %c0_13 = arith.constant 0 : index
      %c0_14 = arith.constant 0 : index
      %16 = vector.load %arg6[%c0_13, %c0_14] : memref<1x128xf32, #tpu.memory_space<vmem>>, vector<1x128xf32>
      %17 = vector.broadcast %16 : vector<1x128xf32> to vector<32x128xf32>
      %18 = arith.addf %15, %17 : vector<32x128xf32>
      %cst_15 = arith.constant 0.000000e+00 : f32
      %19 = vector.broadcast %cst_15 : f32 to vector<32x128xf32>
      %20 = arith.maximumf %18, %19 : vector<32x128xf32>
      %c0_16 = arith.constant 0 : index
      %c0_17 = arith.constant 0 : index
      %21 = vector.load %arg7[%c0_16, %c0_17] : memref<32x128xf32, #tpu.memory_space<vmem>>, vector<32x128xf32>
      tpu.vector_store %arg7[%c0_16, %c0_17], %20 {strides = array<i32>} : memref<32x128xf32, #tpu.memory_space<vmem>>, vector<32x128xf32>,
    } else {
    }
    return
  }
  func.func @transform_0(%arg0: i32, %arg1: i32, %arg2: i32) -> (i32, i32) {
    %c0_i32 = arith.constant 0 : i32
    return %arg0, %arg2 : i32, i32
  }
  func.func @transform_1(%arg0: i32, %arg1: i32, %arg2: i32) -> (i32, i32) {
    %c0_i32 = arith.constant 0 : i32
    return %arg2, %arg1 : i32, i32
  }
  func.func @transform_2(%arg0: i32, %arg1: i32, %arg2: i32) -> (i32, i32) {
    %c0_i32 = arith.constant 0 : i32
    %c0_i32_0 = arith.constant 0 : i32
    return %c0_i32, %arg1 : i32, i32
  }
  func.func @transform_3(%arg0: i32, %arg1: i32, %arg2: i32) -> (i32, i32) {
    %c0_i32 = arith.constant 0 : i32
    %c0_i32_0 = arith.constant 0 : i32
    return %c0_i32, %arg1 : i32, i32
  }
  func.func @transform_4(%arg0: i32, %arg1: i32, %arg2: i32) -> (i32, i32) {
    %c0_i32 = arith.constant 0 : i32
    return %arg0, %arg1 : i32, i32
  }
}

module attributes {stable_mosaic.version = 11 : i64} {
  func.func @kernel(%arg0: i32, %arg1: i32, %arg2: i32, %arg3: memref<16x384xbf16, #tpu.memory_space<vmem>>, %arg4: memref<384x256xbf16, #tpu.memory_space<vmem>>, %arg5: memref<1x256xf32, #tpu.memory_space<vmem>>, %arg6: memref<1x256xf32, #tpu.memory_space<vmem>>, %arg7: memref<16x256xf32, #tpu.memory_space<vmem>>) attributes {dimension_semantics = [#tpu.dimension_semantics<parallel>, #tpu.dimension_semantics<parallel>, #tpu.dimension_semantics<arbitrary>], iteration_bounds = array<i64: 1, 1, 3>, scalar_prefetch = 0 : i64, scratch_operands = 0 : i64, tpu.core_type = #tpu.core_type<tc>, window_params = [{transform_indices = @transform_0, window_bounds = array<i64: 16, 384>}, {transform_indices = @transform_1, window_bounds = array<i64: 384, 256>}, {transform_indices = @transform_2, window_bounds = array<i64: 1, 256>}, {transform_indices = @transform_3, window_bounds = array<i64: 1, 256>}, {transform_indices = @transform_4, window_bounds = array<i64: 16, 256>}]} {
    %c0_i32 = arith.constant 0 : i32
    %0 = arith.cmpi eq, %arg2, %c0_i32 : i32
    %1 = arith.extui %0 : i1 to i32
    %c0_i32_0 = arith.constant 0 : i32
    %2 = arith.cmpi ne, %1, %c0_i32_0 : i32
    scf.if %2 {
      %cst_9 = arith.constant 0.000000e+00 : f32
      %12 = vector.broadcast %cst_9 : f32 to vector<16x256xf32>
      %c0_10 = arith.constant 0 : index
      %c0_11 = arith.constant 0 : index
      %13 = vector.load %arg7[%c0_10, %c0_11] : memref<16x256xf32, #tpu.memory_space<vmem>>, vector<16x256xf32>
      tpu.vector_store %arg7[%c0_10, %c0_11], %12 {strides = array<i32>} : memref<16x256xf32, #tpu.memory_space<vmem>>, vector<16x256xf32>,
    } else {
    }
    %c0 = arith.constant 0 : index
    %c0_1 = arith.constant 0 : index
    %3 = vector.load %arg7[%c0, %c0_1] : memref<16x256xf32, #tpu.memory_space<vmem>>, vector<16x256xf32>
    %c0_2 = arith.constant 0 : index
    %c0_3 = arith.constant 0 : index
    %4 = vector.load %arg3[%c0_2, %c0_3] : memref<16x384xbf16, #tpu.memory_space<vmem>>, vector<16x384xbf16>
    %c0_4 = arith.constant 0 : index
    %c0_5 = arith.constant 0 : index
    %5 = vector.load %arg4[%c0_4, %c0_5] : memref<384x256xbf16, #tpu.memory_space<vmem>>, vector<384x256xbf16>
    %cst = arith.constant dense<0.000000e+00> : vector<16x256xf32>
    %6 = tpu.matmul %4, %5, %cst {dimension_numbers = #tpu.dot_dimension_numbers<[1], [0], [0], [1], [0, 0, 1, 1], [], []>} : vector<16x384xbf16>, vector<384x256xbf16>, vector<16x256xf32> -> vector<16x256xf32>
    %7 = arith.addf %3, %6 : vector<16x256xf32>
    %c0_6 = arith.constant 0 : index
    %c0_7 = arith.constant 0 : index
    %8 = vector.load %arg7[%c0_6, %c0_7] : memref<16x256xf32, #tpu.memory_space<vmem>>, vector<16x256xf32>
    tpu.vector_store %arg7[%c0_6, %c0_7], %7 {strides = array<i32>} : memref<16x256xf32, #tpu.memory_space<vmem>>, vector<16x256xf32>,
    %c2_i32 = arith.constant 2 : i32
    %9 = arith.cmpi eq, %arg2, %c2_i32 : i32
    %10 = arith.extui %9 : i1 to i32
    %c0_i32_8 = arith.constant 0 : i32
    %11 = arith.cmpi ne, %10, %c0_i32_8 : i32
    scf.if %11 {
      %c0_9 = arith.constant 0 : index
      %c0_10 = arith.constant 0 : index
      %12 = vector.load %arg7[%c0_9, %c0_10] : memref<16x256xf32, #tpu.memory_space<vmem>>, vector<16x256xf32>
      %c0_11 = arith.constant 0 : index
      %c0_12 = arith.constant 0 : index
      %13 = vector.load %arg5[%c0_11, %c0_12] : memref<1x256xf32, #tpu.memory_space<vmem>>, vector<1x256xf32>
      %14 = vector.broadcast %13 : vector<1x256xf32> to vector<16x256xf32>
      %15 = arith.mulf %12, %14 : vector<16x256xf32>
      %c0_13 = arith.constant 0 : index
      %c0_14 = arith.constant 0 : index
      %16 = vector.load %arg6[%c0_13, %c0_14] : memref<1x256xf32, #tpu.memory_space<vmem>>, vector<1x256xf32>
      %17 = vector.broadcast %16 : vector<1x256xf32> to vector<16x256xf32>
      %18 = arith.addf %15, %17 : vector<16x256xf32>
      %cst_15 = arith.constant 0.000000e+00 : f32
      %19 = vector.broadcast %cst_15 : f32 to vector<16x256xf32>
      %20 = arith.maximumf %18, %19 : vector<16x256xf32>
      %c0_16 = arith.constant 0 : index
      %c0_17 = arith.constant 0 : index
      %21 = vector.load %arg7[%c0_16, %c0_17] : memref<16x256xf32, #tpu.memory_space<vmem>>, vector<16x256xf32>
      tpu.vector_store %arg7[%c0_16, %c0_17], %20 {strides = array<i32>} : memref<16x256xf32, #tpu.memory_space<vmem>>, vector<16x256xf32>,
    } else {
    }
    return
  }
  func.func @transform_0(%arg0: i32, %arg1: i32, %arg2: i32) -> (i32, i32) {
    %c0_i32 = arith.constant 0 : i32
    return %arg0, %arg2 : i32, i32
  }
  func.func @transform_1(%arg0: i32, %arg1: i32, %arg2: i32) -> (i32, i32) {
    %c0_i32 = arith.constant 0 : i32
    return %arg2, %arg1 : i32, i32
  }
  func.func @transform_2(%arg0: i32, %arg1: i32, %arg2: i32) -> (i32, i32) {
    %c0_i32 = arith.constant 0 : i32
    %c0_i32_0 = arith.constant 0 : i32
    return %c0_i32, %arg1 : i32, i32
  }
  func.func @transform_3(%arg0: i32, %arg1: i32, %arg2: i32) -> (i32, i32) {
    %c0_i32 = arith.constant 0 : i32
    %c0_i32_0 = arith.constant 0 : i32
    return %c0_i32, %arg1 : i32, i32
  }
  func.func @transform_4(%arg0: i32, %arg1: i32, %arg2: i32) -> (i32, i32) {
    %c0_i32 = arith.constant 0 : i32
    return %arg0, %arg1 : i32, i32
  }
}

module attributes {stable_mosaic.version = 11 : i64} {
  func.func @kernel(%arg0: i32, %arg1: i32, %arg2: i32, %arg3: memref<16x128xbf16, #tpu.memory_space<vmem>>, %arg4: memref<128x256xbf16, #tpu.memory_space<vmem>>, %arg5: memref<1x256xf32, #tpu.memory_space<vmem>>, %arg6: memref<1x256xf32, #tpu.memory_space<vmem>>, %arg7: memref<16x256xf32, #tpu.memory_space<vmem>>) attributes {dimension_semantics = [#tpu.dimension_semantics<parallel>, #tpu.dimension_semantics<parallel>, #tpu.dimension_semantics<arbitrary>], iteration_bounds = array<i64: 1, 1, 1>, scalar_prefetch = 0 : i64, scratch_operands = 0 : i64, tpu.core_type = #tpu.core_type<tc>, window_params = [{transform_indices = @transform_0, window_bounds = array<i64: 16, 128>}, {transform_indices = @transform_1, window_bounds = array<i64: 128, 256>}, {transform_indices = @transform_2, window_bounds = array<i64: 1, 256>}, {transform_indices = @transform_3, window_bounds = array<i64: 1, 256>}, {transform_indices = @transform_4, window_bounds = array<i64: 16, 256>}]} {
    %c0_i32 = arith.constant 0 : i32
    %0 = arith.cmpi eq, %arg2, %c0_i32 : i32
    %1 = arith.extui %0 : i1 to i32
    %c0_i32_0 = arith.constant 0 : i32
    %2 = arith.cmpi ne, %1, %c0_i32_0 : i32
    scf.if %2 {
      %cst_10 = arith.constant 0.000000e+00 : f32
      %12 = vector.broadcast %cst_10 : f32 to vector<16x256xf32>
      %c0_11 = arith.constant 0 : index
      %c0_12 = arith.constant 0 : index
      %13 = vector.load %arg7[%c0_11, %c0_12] : memref<16x256xf32, #tpu.memory_space<vmem>>, vector<16x256xf32>
      tpu.vector_store %arg7[%c0_11, %c0_12], %12 {strides = array<i32>} : memref<16x256xf32, #tpu.memory_space<vmem>>, vector<16x256xf32>,
    } else {
    }
    %c0 = arith.constant 0 : index
    %c0_1 = arith.constant 0 : index
    %3 = vector.load %arg7[%c0, %c0_1] : memref<16x256xf32, #tpu.memory_space<vmem>>, vector<16x256xf32>
    %c0_2 = arith.constant 0 : index
    %c0_3 = arith.constant 0 : index
    %4 = vector.load %arg3[%c0_2, %c0_3] : memref<16x128xbf16, #tpu.memory_space<vmem>>, vector<16x128xbf16>
    %c0_4 = arith.constant 0 : index
    %c0_5 = arith.constant 0 : index
    %5 = vector.load %arg4[%c0_4, %c0_5] : memref<128x256xbf16, #tpu.memory_space<vmem>>, vector<128x256xbf16>
    %cst = arith.constant dense<0.000000e+00> : vector<16x256xf32>
    %6 = tpu.matmul %4, %5, %cst {dimension_numbers = #tpu.dot_dimension_numbers<[1], [0], [0], [1], [0, 0, 1, 1], [], []>} : vector<16x128xbf16>, vector<128x256xbf16>, vector<16x256xf32> -> vector<16x256xf32>
    %7 = arith.addf %3, %6 : vector<16x256xf32>
    %c0_6 = arith.constant 0 : index
    %c0_7 = arith.constant 0 : index
    %8 = vector.load %arg7[%c0_6, %c0_7] : memref<16x256xf32, #tpu.memory_space<vmem>>, vector<16x256xf32>
    tpu.vector_store %arg7[%c0_6, %c0_7], %7 {strides = array<i32>} : memref<16x256xf32, #tpu.memory_space<vmem>>, vector<16x256xf32>,
    %c0_i32_8 = arith.constant 0 : i32
    %9 = arith.cmpi eq, %arg2, %c0_i32_8 : i32
    %10 = arith.extui %9 : i1 to i32
    %c0_i32_9 = arith.constant 0 : i32
    %11 = arith.cmpi ne, %10, %c0_i32_9 : i32
    scf.if %11 {
      %c0_10 = arith.constant 0 : index
      %c0_11 = arith.constant 0 : index
      %12 = vector.load %arg7[%c0_10, %c0_11] : memref<16x256xf32, #tpu.memory_space<vmem>>, vector<16x256xf32>
      %c0_12 = arith.constant 0 : index
      %c0_13 = arith.constant 0 : index
      %13 = vector.load %arg5[%c0_12, %c0_13] : memref<1x256xf32, #tpu.memory_space<vmem>>, vector<1x256xf32>
      %14 = vector.broadcast %13 : vector<1x256xf32> to vector<16x256xf32>
      %15 = arith.mulf %12, %14 : vector<16x256xf32>
      %c0_14 = arith.constant 0 : index
      %c0_15 = arith.constant 0 : index
      %16 = vector.load %arg6[%c0_14, %c0_15] : memref<1x256xf32, #tpu.memory_space<vmem>>, vector<1x256xf32>
      %17 = vector.broadcast %16 : vector<1x256xf32> to vector<16x256xf32>
      %18 = arith.addf %15, %17 : vector<16x256xf32>
      %c0_16 = arith.constant 0 : index
      %c0_17 = arith.constant 0 : index
      %19 = vector.load %arg7[%c0_16, %c0_17] : memref<16x256xf32, #tpu.memory_space<vmem>>, vector<16x256xf32>
      tpu.vector_store %arg7[%c0_16, %c0_17], %18 {strides = array<i32>} : memref<16x256xf32, #tpu.memory_space<vmem>>, vector<16x256xf32>,
    } else {
    }
    return
  }
  func.func @transform_0(%arg0: i32, %arg1: i32, %arg2: i32) -> (i32, i32) {
    %c0_i32 = arith.constant 0 : i32
    return %arg0, %arg2 : i32, i32
  }
  func.func @transform_1(%arg0: i32, %arg1: i32, %arg2: i32) -> (i32, i32) {
    %c0_i32 = arith.constant 0 : i32
    return %arg2, %arg1 : i32, i32
  }
  func.func @transform_2(%arg0: i32, %arg1: i32, %arg2: i32) -> (i32, i32) {
    %c0_i32 = arith.constant 0 : i32
    %c0_i32_0 = arith.constant 0 : i32
    return %c0_i32, %arg1 : i32, i32
  }
  func.func @transform_3(%arg0: i32, %arg1: i32, %arg2: i32) -> (i32, i32) {
    %c0_i32 = arith.constant 0 : i32
    %c0_i32_0 = arith.constant 0 : i32
    return %c0_i32, %arg1 : i32, i32
  }
  func.func @transform_4(%arg0: i32, %arg1: i32, %arg2: i32) -> (i32, i32) {
    %c0_i32 = arith.constant 0 : i32
    return %arg0, %arg1 : i32, i32
  }
}

module attributes {stable_mosaic.version = 11 : i64} {
  func.func @kernel(%arg0: i32, %arg1: i32, %arg2: i32, %arg3: memref<16x768xbf16, #tpu.memory_space<vmem>>, %arg4: memref<768x256xbf16, #tpu.memory_space<vmem>>, %arg5: memref<1x256xf32, #tpu.memory_space<vmem>>, %arg6: memref<1x256xf32, #tpu.memory_space<vmem>>, %arg7: memref<16x256xf32, #tpu.memory_space<vmem>>, %arg8: memref<16x256xf32, #tpu.memory_space<vmem>>) attributes {dimension_semantics = [#tpu.dimension_semantics<parallel>, #tpu.dimension_semantics<parallel>, #tpu.dimension_semantics<arbitrary>], iteration_bounds = array<i64: 1, 1, 3>, scalar_prefetch = 0 : i64, scratch_operands = 0 : i64, tpu.core_type = #tpu.core_type<tc>, window_params = [{transform_indices = @transform_0, window_bounds = array<i64: 16, 768>}, {transform_indices = @transform_1, window_bounds = array<i64: 768, 256>}, {transform_indices = @transform_2, window_bounds = array<i64: 1, 256>}, {transform_indices = @transform_3, window_bounds = array<i64: 1, 256>}, {transform_indices = @transform_4, window_bounds = array<i64: 16, 256>}, {transform_indices = @transform_5, window_bounds = array<i64: 16, 256>}]} {
    %c0_i32 = arith.constant 0 : i32
    %0 = arith.cmpi eq, %arg2, %c0_i32 : i32
    %1 = arith.extui %0 : i1 to i32
    %c0_i32_0 = arith.constant 0 : i32
    %2 = arith.cmpi ne, %1, %c0_i32_0 : i32
    scf.if %2 {
      %cst_9 = arith.constant 0.000000e+00 : f32
      %12 = vector.broadcast %cst_9 : f32 to vector<16x256xf32>
      %c0_10 = arith.constant 0 : index
      %c0_11 = arith.constant 0 : index
      %13 = vector.load %arg8[%c0_10, %c0_11] : memref<16x256xf32, #tpu.memory_space<vmem>>, vector<16x256xf32>
      tpu.vector_store %arg8[%c0_10, %c0_11], %12 {strides = array<i32>} : memref<16x256xf32, #tpu.memory_space<vmem>>, vector<16x256xf32>,
    } else {
    }
    %c0 = arith.constant 0 : index
    %c0_1 = arith.constant 0 : index
    %3 = vector.load %arg8[%c0, %c0_1] : memref<16x256xf32, #tpu.memory_space<vmem>>, vector<16x256xf32>
    %c0_2 = arith.constant 0 : index
    %c0_3 = arith.constant 0 : index
    %4 = vector.load %arg3[%c0_2, %c0_3] : memref<16x768xbf16, #tpu.memory_space<vmem>>, vector<16x768xbf16>
    %c0_4 = arith.constant 0 : index
    %c0_5 = arith.constant 0 : index
    %5 = vector.load %arg4[%c0_4, %c0_5] : memref<768x256xbf16, #tpu.memory_space<vmem>>, vector<768x256xbf16>
    %cst = arith.constant dense<0.000000e+00> : vector<16x256xf32>
    %6 = tpu.matmul %4, %5, %cst {dimension_numbers = #tpu.dot_dimension_numbers<[1], [0], [0], [1], [0, 0, 1, 1], [], []>} : vector<16x768xbf16>, vector<768x256xbf16>, vector<16x256xf32> -> vector<16x256xf32>
    %7 = arith.addf %3, %6 : vector<16x256xf32>
    %c0_6 = arith.constant 0 : index
    %c0_7 = arith.constant 0 : index
    %8 = vector.load %arg8[%c0_6, %c0_7] : memref<16x256xf32, #tpu.memory_space<vmem>>, vector<16x256xf32>
    tpu.vector_store %arg8[%c0_6, %c0_7], %7 {strides = array<i32>} : memref<16x256xf32, #tpu.memory_space<vmem>>, vector<16x256xf32>,
    %c2_i32 = arith.constant 2 : i32
    %9 = arith.cmpi eq, %arg2, %c2_i32 : i32
    %10 = arith.extui %9 : i1 to i32
    %c0_i32_8 = arith.constant 0 : i32
    %11 = arith.cmpi ne, %10, %c0_i32_8 : i32
    scf.if %11 {
      %c0_9 = arith.constant 0 : index
      %c0_10 = arith.constant 0 : index
      %12 = vector.load %arg8[%c0_9, %c0_10] : memref<16x256xf32, #tpu.memory_space<vmem>>, vector<16x256xf32>
      %c0_11 = arith.constant 0 : index
      %c0_12 = arith.constant 0 : index
      %13 = vector.load %arg5[%c0_11, %c0_12] : memref<1x256xf32, #tpu.memory_space<vmem>>, vector<1x256xf32>
      %14 = vector.broadcast %13 : vector<1x256xf32> to vector<16x256xf32>
      %15 = arith.mulf %12, %14 : vector<16x256xf32>
      %c0_13 = arith.constant 0 : index
      %c0_14 = arith.constant 0 : index
      %16 = vector.load %arg6[%c0_13, %c0_14] : memref<1x256xf32, #tpu.memory_space<vmem>>, vector<1x256xf32>
      %17 = vector.broadcast %16 : vector<1x256xf32> to vector<16x256xf32>
      %18 = arith.addf %15, %17 : vector<16x256xf32>
      %c0_15 = arith.constant 0 : index
      %c0_16 = arith.constant 0 : index
      %19 = vector.load %arg7[%c0_15, %c0_16] : memref<16x256xf32, #tpu.memory_space<vmem>>, vector<16x256xf32>
      %20 = arith.addf %18, %19 : vector<16x256xf32>
      %cst_17 = arith.constant 0.000000e+00 : f32
      %21 = vector.broadcast %cst_17 : f32 to vector<16x256xf32>
      %22 = arith.maximumf %20, %21 : vector<16x256xf32>
      %c0_18 = arith.constant 0 : index
      %c0_19 = arith.constant 0 : index
      %23 = vector.load %arg8[%c0_18, %c0_19] : memref<16x256xf32, #tpu.memory_space<vmem>>, vector<16x256xf32>
      tpu.vector_store %arg8[%c0_18, %c0_19], %22 {strides = array<i32>} : memref<16x256xf32, #tpu.memory_space<vmem>>, vector<16x256xf32>,
    } else {
    }
    return
  }
  func.func @transform_0(%arg0: i32, %arg1: i32, %arg2: i32) -> (i32, i32) {
    %c0_i32 = arith.constant 0 : i32
    return %arg0, %arg2 : i32, i32
  }
  func.func @transform_1(%arg0: i32, %arg1: i32, %arg2: i32) -> (i32, i32) {
    %c0_i32 = arith.constant 0 : i32
    return %arg2, %arg1 : i32, i32
  }
  func.func @transform_2(%arg0: i32, %arg1: i32, %arg2: i32) -> (i32, i32) {
    %c0_i32 = arith.constant 0 : i32
    %c0_i32_0 = arith.constant 0 : i32
    return %c0_i32, %arg1 : i32, i32
  }
  func.func @transform_3(%arg0: i32, %arg1: i32, %arg2: i32) -> (i32, i32) {
    %c0_i32 = arith.constant 0 : i32
    %c0_i32_0 = arith.constant 0 : i32
    return %c0_i32, %arg1 : i32, i32
  }
  func.func @transform_4(%arg0: i32, %arg1: i32, %arg2: i32) -> (i32, i32) {
    %c0_i32 = arith.constant 0 : i32
    return %arg0, %arg1 : i32, i32
  }
  func.func @transform_5(%arg0: i32, %arg1: i32, %arg2: i32) -> (i32, i32) {
    %c0_i32 = arith.constant 0 : i32
    return %arg0, %arg1 : i32, i32
  }
}

module attributes {stable_mosaic.version = 11 : i64} {
  func.func @kernel(%arg0: i32, %arg1: i32, %arg2: i32, %arg3: memref<16x768xbf16, #tpu.memory_space<vmem>>, %arg4: memref<768x256xbf16, #tpu.memory_space<vmem>>, %arg5: memref<1x256xf32, #tpu.memory_space<vmem>>, %arg6: memref<1x256xf32, #tpu.memory_space<vmem>>, %arg7: memref<16x256xf32, #tpu.memory_space<vmem>>) attributes {dimension_semantics = [#tpu.dimension_semantics<parallel>, #tpu.dimension_semantics<parallel>, #tpu.dimension_semantics<arbitrary>], iteration_bounds = array<i64: 1, 1, 3>, scalar_prefetch = 0 : i64, scratch_operands = 0 : i64, tpu.core_type = #tpu.core_type<tc>, window_params = [{transform_indices = @transform_0, window_bounds = array<i64: 16, 768>}, {transform_indices = @transform_1, window_bounds = array<i64: 768, 256>}, {transform_indices = @transform_2, window_bounds = array<i64: 1, 256>}, {transform_indices = @transform_3, window_bounds = array<i64: 1, 256>}, {transform_indices = @transform_4, window_bounds = array<i64: 16, 256>}]} {
    %c0_i32 = arith.constant 0 : i32
    %0 = arith.cmpi eq, %arg2, %c0_i32 : i32
    %1 = arith.extui %0 : i1 to i32
    %c0_i32_0 = arith.constant 0 : i32
    %2 = arith.cmpi ne, %1, %c0_i32_0 : i32
    scf.if %2 {
      %cst_9 = arith.constant 0.000000e+00 : f32
      %12 = vector.broadcast %cst_9 : f32 to vector<16x256xf32>
      %c0_10 = arith.constant 0 : index
      %c0_11 = arith.constant 0 : index
      %13 = vector.load %arg7[%c0_10, %c0_11] : memref<16x256xf32, #tpu.memory_space<vmem>>, vector<16x256xf32>
      tpu.vector_store %arg7[%c0_10, %c0_11], %12 {strides = array<i32>} : memref<16x256xf32, #tpu.memory_space<vmem>>, vector<16x256xf32>,
    } else {
    }
    %c0 = arith.constant 0 : index
    %c0_1 = arith.constant 0 : index
    %3 = vector.load %arg7[%c0, %c0_1] : memref<16x256xf32, #tpu.memory_space<vmem>>, vector<16x256xf32>
    %c0_2 = arith.constant 0 : index
    %c0_3 = arith.constant 0 : index
    %4 = vector.load %arg3[%c0_2, %c0_3] : memref<16x768xbf16, #tpu.memory_space<vmem>>, vector<16x768xbf16>
    %c0_4 = arith.constant 0 : index
    %c0_5 = arith.constant 0 : index
    %5 = vector.load %arg4[%c0_4, %c0_5] : memref<768x256xbf16, #tpu.memory_space<vmem>>, vector<768x256xbf16>
    %cst = arith.constant dense<0.000000e+00> : vector<16x256xf32>
    %6 = tpu.matmul %4, %5, %cst {dimension_numbers = #tpu.dot_dimension_numbers<[1], [0], [0], [1], [0, 0, 1, 1], [], []>} : vector<16x768xbf16>, vector<768x256xbf16>, vector<16x256xf32> -> vector<16x256xf32>
    %7 = arith.addf %3, %6 : vector<16x256xf32>
    %c0_6 = arith.constant 0 : index
    %c0_7 = arith.constant 0 : index
    %8 = vector.load %arg7[%c0_6, %c0_7] : memref<16x256xf32, #tpu.memory_space<vmem>>, vector<16x256xf32>
    tpu.vector_store %arg7[%c0_6, %c0_7], %7 {strides = array<i32>} : memref<16x256xf32, #tpu.memory_space<vmem>>, vector<16x256xf32>,
    %c2_i32 = arith.constant 2 : i32
    %9 = arith.cmpi eq, %arg2, %c2_i32 : i32
    %10 = arith.extui %9 : i1 to i32
    %c0_i32_8 = arith.constant 0 : i32
    %11 = arith.cmpi ne, %10, %c0_i32_8 : i32
    scf.if %11 {
      %c0_9 = arith.constant 0 : index
      %c0_10 = arith.constant 0 : index
      %12 = vector.load %arg7[%c0_9, %c0_10] : memref<16x256xf32, #tpu.memory_space<vmem>>, vector<16x256xf32>
      %c0_11 = arith.constant 0 : index
      %c0_12 = arith.constant 0 : index
      %13 = vector.load %arg5[%c0_11, %c0_12] : memref<1x256xf32, #tpu.memory_space<vmem>>, vector<1x256xf32>
      %14 = vector.broadcast %13 : vector<1x256xf32> to vector<16x256xf32>
      %15 = arith.mulf %12, %14 : vector<16x256xf32>
      %c0_13 = arith.constant 0 : index
      %c0_14 = arith.constant 0 : index
      %16 = vector.load %arg6[%c0_13, %c0_14] : memref<1x256xf32, #tpu.memory_space<vmem>>, vector<1x256xf32>
      %17 = vector.broadcast %16 : vector<1x256xf32> to vector<16x256xf32>
      %18 = arith.addf %15, %17 : vector<16x256xf32>
      %cst_15 = arith.constant 0.000000e+00 : f32
      %19 = vector.broadcast %cst_15 : f32 to vector<16x256xf32>
      %20 = arith.maximumf %18, %19 : vector<16x256xf32>
      %c0_16 = arith.constant 0 : index
      %c0_17 = arith.constant 0 : index
      %21 = vector.load %arg7[%c0_16, %c0_17] : memref<16x256xf32, #tpu.memory_space<vmem>>, vector<16x256xf32>
      tpu.vector_store %arg7[%c0_16, %c0_17], %20 {strides = array<i32>} : memref<16x256xf32, #tpu.memory_space<vmem>>, vector<16x256xf32>,
    } else {
    }
    return
  }
  func.func @transform_0(%arg0: i32, %arg1: i32, %arg2: i32) -> (i32, i32) {
    %c0_i32 = arith.constant 0 : i32
    return %arg0, %arg2 : i32, i32
  }
  func.func @transform_1(%arg0: i32, %arg1: i32, %arg2: i32) -> (i32, i32) {
    %c0_i32 = arith.constant 0 : i32
    return %arg2, %arg1 : i32, i32
  }
  func.func @transform_2(%arg0: i32, %arg1: i32, %arg2: i32) -> (i32, i32) {
    %c0_i32 = arith.constant 0 : i32
    %c0_i32_0 = arith.constant 0 : i32
    return %c0_i32, %arg1 : i32, i32
  }
  func.func @transform_3(%arg0: i32, %arg1: i32, %arg2: i32) -> (i32, i32) {
    %c0_i32 = arith.constant 0 : i32
    %c0_i32_0 = arith.constant 0 : i32
    return %c0_i32, %arg1 : i32, i32
  }
  func.func @transform_4(%arg0: i32, %arg1: i32, %arg2: i32) -> (i32, i32) {
    %c0_i32 = arith.constant 0 : i32
    return %arg0, %arg1 : i32, i32
  }
}

module attributes {stable_mosaic.version = 11 : i64} {
  func.func @kernel(%arg0: i32, %arg1: i32, %arg2: i32, %arg3: memref<16x768xbf16, #tpu.memory_space<vmem>>, %arg4: memref<768x256xbf16, #tpu.memory_space<vmem>>, %arg5: memref<1x256xf32, #tpu.memory_space<vmem>>, %arg6: memref<1x256xf32, #tpu.memory_space<vmem>>, %arg7: memref<16x256xf32, #tpu.memory_space<vmem>>) attributes {dimension_semantics = [#tpu.dimension_semantics<parallel>, #tpu.dimension_semantics<parallel>, #tpu.dimension_semantics<arbitrary>], iteration_bounds = array<i64: 1, 2, 3>, scalar_prefetch = 0 : i64, scratch_operands = 0 : i64, tpu.core_type = #tpu.core_type<tc>, window_params = [{transform_indices = @transform_0, window_bounds = array<i64: 16, 768>}, {transform_indices = @transform_1, window_bounds = array<i64: 768, 256>}, {transform_indices = @transform_2, window_bounds = array<i64: 1, 256>}, {transform_indices = @transform_3, window_bounds = array<i64: 1, 256>}, {transform_indices = @transform_4, window_bounds = array<i64: 16, 256>}]} {
    %c0_i32 = arith.constant 0 : i32
    %0 = arith.cmpi eq, %arg2, %c0_i32 : i32
    %1 = arith.extui %0 : i1 to i32
    %c0_i32_0 = arith.constant 0 : i32
    %2 = arith.cmpi ne, %1, %c0_i32_0 : i32
    scf.if %2 {
      %cst_9 = arith.constant 0.000000e+00 : f32
      %12 = vector.broadcast %cst_9 : f32 to vector<16x256xf32>
      %c0_10 = arith.constant 0 : index
      %c0_11 = arith.constant 0 : index
      %13 = vector.load %arg7[%c0_10, %c0_11] : memref<16x256xf32, #tpu.memory_space<vmem>>, vector<16x256xf32>
      tpu.vector_store %arg7[%c0_10, %c0_11], %12 {strides = array<i32>} : memref<16x256xf32, #tpu.memory_space<vmem>>, vector<16x256xf32>,
    } else {
    }
    %c0 = arith.constant 0 : index
    %c0_1 = arith.constant 0 : index
    %3 = vector.load %arg7[%c0, %c0_1] : memref<16x256xf32, #tpu.memory_space<vmem>>, vector<16x256xf32>
    %c0_2 = arith.constant 0 : index
    %c0_3 = arith.constant 0 : index
    %4 = vector.load %arg3[%c0_2, %c0_3] : memref<16x768xbf16, #tpu.memory_space<vmem>>, vector<16x768xbf16>
    %c0_4 = arith.constant 0 : index
    %c0_5 = arith.constant 0 : index
    %5 = vector.load %arg4[%c0_4, %c0_5] : memref<768x256xbf16, #tpu.memory_space<vmem>>, vector<768x256xbf16>
    %cst = arith.constant dense<0.000000e+00> : vector<16x256xf32>
    %6 = tpu.matmul %4, %5, %cst {dimension_numbers = #tpu.dot_dimension_numbers<[1], [0], [0], [1], [0, 0, 1, 1], [], []>} : vector<16x768xbf16>, vector<768x256xbf16>, vector<16x256xf32> -> vector<16x256xf32>
    %7 = arith.addf %3, %6 : vector<16x256xf32>
    %c0_6 = arith.constant 0 : index
    %c0_7 = arith.constant 0 : index
    %8 = vector.load %arg7[%c0_6, %c0_7] : memref<16x256xf32, #tpu.memory_space<vmem>>, vector<16x256xf32>
    tpu.vector_store %arg7[%c0_6, %c0_7], %7 {strides = array<i32>} : memref<16x256xf32, #tpu.memory_space<vmem>>, vector<16x256xf32>,
    %c2_i32 = arith.constant 2 : i32
    %9 = arith.cmpi eq, %arg2, %c2_i32 : i32
    %10 = arith.extui %9 : i1 to i32
    %c0_i32_8 = arith.constant 0 : i32
    %11 = arith.cmpi ne, %10, %c0_i32_8 : i32
    scf.if %11 {
      %c0_9 = arith.constant 0 : index
      %c0_10 = arith.constant 0 : index
      %12 = vector.load %arg7[%c0_9, %c0_10] : memref<16x256xf32, #tpu.memory_space<vmem>>, vector<16x256xf32>
      %c0_11 = arith.constant 0 : index
      %c0_12 = arith.constant 0 : index
      %13 = vector.load %arg5[%c0_11, %c0_12] : memref<1x256xf32, #tpu.memory_space<vmem>>, vector<1x256xf32>
      %14 = vector.broadcast %13 : vector<1x256xf32> to vector<16x256xf32>
      %15 = arith.mulf %12, %14 : vector<16x256xf32>
      %c0_13 = arith.constant 0 : index
      %c0_14 = arith.constant 0 : index
      %16 = vector.load %arg6[%c0_13, %c0_14] : memref<1x256xf32, #tpu.memory_space<vmem>>, vector<1x256xf32>
      %17 = vector.broadcast %16 : vector<1x256xf32> to vector<16x256xf32>
      %18 = arith.addf %15, %17 : vector<16x256xf32>
      %cst_15 = arith.constant 0.000000e+00 : f32
      %19 = vector.broadcast %cst_15 : f32 to vector<16x256xf32>
      %20 = arith.maximumf %18, %19 : vector<16x256xf32>
      %c0_16 = arith.constant 0 : index
      %c0_17 = arith.constant 0 : index
      %21 = vector.load %arg7[%c0_16, %c0_17] : memref<16x256xf32, #tpu.memory_space<vmem>>, vector<16x256xf32>
      tpu.vector_store %arg7[%c0_16, %c0_17], %20 {strides = array<i32>} : memref<16x256xf32, #tpu.memory_space<vmem>>, vector<16x256xf32>,
    } else {
    }
    return
  }
  func.func @transform_0(%arg0: i32, %arg1: i32, %arg2: i32) -> (i32, i32) {
    %c0_i32 = arith.constant 0 : i32
    return %arg0, %arg2 : i32, i32
  }
  func.func @transform_1(%arg0: i32, %arg1: i32, %arg2: i32) -> (i32, i32) {
    %c0_i32 = arith.constant 0 : i32
    return %arg2, %arg1 : i32, i32
  }
  func.func @transform_2(%arg0: i32, %arg1: i32, %arg2: i32) -> (i32, i32) {
    %c0_i32 = arith.constant 0 : i32
    %c0_i32_0 = arith.constant 0 : i32
    return %c0_i32, %arg1 : i32, i32
  }
  func.func @transform_3(%arg0: i32, %arg1: i32, %arg2: i32) -> (i32, i32) {
    %c0_i32 = arith.constant 0 : i32
    %c0_i32_0 = arith.constant 0 : i32
    return %c0_i32, %arg1 : i32, i32
  }
  func.func @transform_4(%arg0: i32, %arg1: i32, %arg2: i32) -> (i32, i32) {
    %c0_i32 = arith.constant 0 : i32
    return %arg0, %arg1 : i32, i32
  }
}

module attributes {stable_mosaic.version = 11 : i64} {
  func.func @kernel(%arg0: i32, %arg1: i32, %arg2: i32, %arg3: memref<16x256xbf16, #tpu.memory_space<vmem>>, %arg4: memref<256x256xbf16, #tpu.memory_space<vmem>>, %arg5: memref<1x256xf32, #tpu.memory_space<vmem>>, %arg6: memref<1x256xf32, #tpu.memory_space<vmem>>, %arg7: memref<16x256xf32, #tpu.memory_space<vmem>>) attributes {dimension_semantics = [#tpu.dimension_semantics<parallel>, #tpu.dimension_semantics<parallel>, #tpu.dimension_semantics<arbitrary>], iteration_bounds = array<i64: 1, 2, 1>, scalar_prefetch = 0 : i64, scratch_operands = 0 : i64, tpu.core_type = #tpu.core_type<tc>, window_params = [{transform_indices = @transform_0, window_bounds = array<i64: 16, 256>}, {transform_indices = @transform_1, window_bounds = array<i64: 256, 256>}, {transform_indices = @transform_2, window_bounds = array<i64: 1, 256>}, {transform_indices = @transform_3, window_bounds = array<i64: 1, 256>}, {transform_indices = @transform_4, window_bounds = array<i64: 16, 256>}]} {
    %c0_i32 = arith.constant 0 : i32
    %0 = arith.cmpi eq, %arg2, %c0_i32 : i32
    %1 = arith.extui %0 : i1 to i32
    %c0_i32_0 = arith.constant 0 : i32
    %2 = arith.cmpi ne, %1, %c0_i32_0 : i32
    scf.if %2 {
      %cst_10 = arith.constant 0.000000e+00 : f32
      %12 = vector.broadcast %cst_10 : f32 to vector<16x256xf32>
      %c0_11 = arith.constant 0 : index
      %c0_12 = arith.constant 0 : index
      %13 = vector.load %arg7[%c0_11, %c0_12] : memref<16x256xf32, #tpu.memory_space<vmem>>, vector<16x256xf32>
      tpu.vector_store %arg7[%c0_11, %c0_12], %12 {strides = array<i32>} : memref<16x256xf32, #tpu.memory_space<vmem>>, vector<16x256xf32>,
    } else {
    }
    %c0 = arith.constant 0 : index
    %c0_1 = arith.constant 0 : index
    %3 = vector.load %arg7[%c0, %c0_1] : memref<16x256xf32, #tpu.memory_space<vmem>>, vector<16x256xf32>
    %c0_2 = arith.constant 0 : index
    %c0_3 = arith.constant 0 : index
    %4 = vector.load %arg3[%c0_2, %c0_3] : memref<16x256xbf16, #tpu.memory_space<vmem>>, vector<16x256xbf16>
    %c0_4 = arith.constant 0 : index
    %c0_5 = arith.constant 0 : index
    %5 = vector.load %arg4[%c0_4, %c0_5] : memref<256x256xbf16, #tpu.memory_space<vmem>>, vector<256x256xbf16>
    %cst = arith.constant dense<0.000000e+00> : vector<16x256xf32>
    %6 = tpu.matmul %4, %5, %cst {dimension_numbers = #tpu.dot_dimension_numbers<[1], [0], [0], [1], [0, 0, 1, 1], [], []>} : vector<16x256xbf16>, vector<256x256xbf16>, vector<16x256xf32> -> vector<16x256xf32>
    %7 = arith.addf %3, %6 : vector<16x256xf32>
    %c0_6 = arith.constant 0 : index
    %c0_7 = arith.constant 0 : index
    %8 = vector.load %arg7[%c0_6, %c0_7] : memref<16x256xf32, #tpu.memory_space<vmem>>, vector<16x256xf32>
    tpu.vector_store %arg7[%c0_6, %c0_7], %7 {strides = array<i32>} : memref<16x256xf32, #tpu.memory_space<vmem>>, vector<16x256xf32>,
    %c0_i32_8 = arith.constant 0 : i32
    %9 = arith.cmpi eq, %arg2, %c0_i32_8 : i32
    %10 = arith.extui %9 : i1 to i32
    %c0_i32_9 = arith.constant 0 : i32
    %11 = arith.cmpi ne, %10, %c0_i32_9 : i32
    scf.if %11 {
      %c0_10 = arith.constant 0 : index
      %c0_11 = arith.constant 0 : index
      %12 = vector.load %arg7[%c0_10, %c0_11] : memref<16x256xf32, #tpu.memory_space<vmem>>, vector<16x256xf32>
      %c0_12 = arith.constant 0 : index
      %c0_13 = arith.constant 0 : index
      %13 = vector.load %arg5[%c0_12, %c0_13] : memref<1x256xf32, #tpu.memory_space<vmem>>, vector<1x256xf32>
      %14 = vector.broadcast %13 : vector<1x256xf32> to vector<16x256xf32>
      %15 = arith.mulf %12, %14 : vector<16x256xf32>
      %c0_14 = arith.constant 0 : index
      %c0_15 = arith.constant 0 : index
      %16 = vector.load %arg6[%c0_14, %c0_15] : memref<1x256xf32, #tpu.memory_space<vmem>>, vector<1x256xf32>
      %17 = vector.broadcast %16 : vector<1x256xf32> to vector<16x256xf32>
      %18 = arith.addf %15, %17 : vector<16x256xf32>
      %c0_16 = arith.constant 0 : index
      %c0_17 = arith.constant 0 : index
      %19 = vector.load %arg7[%c0_16, %c0_17] : memref<16x256xf32, #tpu.memory_space<vmem>>, vector<16x256xf32>
      tpu.vector_store %arg7[%c0_16, %c0_17], %18 {strides = array<i32>} : memref<16x256xf32, #tpu.memory_space<vmem>>, vector<16x256xf32>,
    } else {
    }
    return
  }
  func.func @transform_0(%arg0: i32, %arg1: i32, %arg2: i32) -> (i32, i32) {
    %c0_i32 = arith.constant 0 : i32
    return %arg0, %arg2 : i32, i32
  }
  func.func @transform_1(%arg0: i32, %arg1: i32, %arg2: i32) -> (i32, i32) {
    %c0_i32 = arith.constant 0 : i32
    return %arg2, %arg1 : i32, i32
  }
  func.func @transform_2(%arg0: i32, %arg1: i32, %arg2: i32) -> (i32, i32) {
    %c0_i32 = arith.constant 0 : i32
    %c0_i32_0 = arith.constant 0 : i32
    return %c0_i32, %arg1 : i32, i32
  }
  func.func @transform_3(%arg0: i32, %arg1: i32, %arg2: i32) -> (i32, i32) {
    %c0_i32 = arith.constant 0 : i32
    %c0_i32_0 = arith.constant 0 : i32
    return %c0_i32, %arg1 : i32, i32
  }
  func.func @transform_4(%arg0: i32, %arg1: i32, %arg2: i32) -> (i32, i32) {
    %c0_i32 = arith.constant 0 : i32
    return %arg0, %arg1 : i32, i32
  }
}

module attributes {stable_mosaic.version = 11 : i64} {
  func.func @kernel(%arg0: i32, %arg1: i32, %arg2: i32, %arg3: memref<16x768xbf16, #tpu.memory_space<vmem>>, %arg4: memref<768x256xbf16, #tpu.memory_space<vmem>>, %arg5: memref<1x256xf32, #tpu.memory_space<vmem>>, %arg6: memref<1x256xf32, #tpu.memory_space<vmem>>, %arg7: memref<16x256xf32, #tpu.memory_space<vmem>>, %arg8: memref<16x256xf32, #tpu.memory_space<vmem>>) attributes {dimension_semantics = [#tpu.dimension_semantics<parallel>, #tpu.dimension_semantics<parallel>, #tpu.dimension_semantics<arbitrary>], iteration_bounds = array<i64: 1, 2, 6>, scalar_prefetch = 0 : i64, scratch_operands = 0 : i64, tpu.core_type = #tpu.core_type<tc>, window_params = [{transform_indices = @transform_0, window_bounds = array<i64: 16, 768>}, {transform_indices = @transform_1, window_bounds = array<i64: 768, 256>}, {transform_indices = @transform_2, window_bounds = array<i64: 1, 256>}, {transform_indices = @transform_3, window_bounds = array<i64: 1, 256>}, {transform_indices = @transform_4, window_bounds = array<i64: 16, 256>}, {transform_indices = @transform_5, window_bounds = array<i64: 16, 256>}]} {
    %c0_i32 = arith.constant 0 : i32
    %0 = arith.cmpi eq, %arg2, %c0_i32 : i32
    %1 = arith.extui %0 : i1 to i32
    %c0_i32_0 = arith.constant 0 : i32
    %2 = arith.cmpi ne, %1, %c0_i32_0 : i32
    scf.if %2 {
      %cst_9 = arith.constant 0.000000e+00 : f32
      %12 = vector.broadcast %cst_9 : f32 to vector<16x256xf32>
      %c0_10 = arith.constant 0 : index
      %c0_11 = arith.constant 0 : index
      %13 = vector.load %arg8[%c0_10, %c0_11] : memref<16x256xf32, #tpu.memory_space<vmem>>, vector<16x256xf32>
      tpu.vector_store %arg8[%c0_10, %c0_11], %12 {strides = array<i32>} : memref<16x256xf32, #tpu.memory_space<vmem>>, vector<16x256xf32>,
    } else {
    }
    %c0 = arith.constant 0 : index
    %c0_1 = arith.constant 0 : index
    %3 = vector.load %arg8[%c0, %c0_1] : memref<16x256xf32, #tpu.memory_space<vmem>>, vector<16x256xf32>
    %c0_2 = arith.constant 0 : index
    %c0_3 = arith.constant 0 : index
    %4 = vector.load %arg3[%c0_2, %c0_3] : memref<16x768xbf16, #tpu.memory_space<vmem>>, vector<16x768xbf16>
    %c0_4 = arith.constant 0 : index
    %c0_5 = arith.constant 0 : index
    %5 = vector.load %arg4[%c0_4, %c0_5] : memref<768x256xbf16, #tpu.memory_space<vmem>>, vector<768x256xbf16>
    %cst = arith.constant dense<0.000000e+00> : vector<16x256xf32>
    %6 = tpu.matmul %4, %5, %cst {dimension_numbers = #tpu.dot_dimension_numbers<[1], [0], [0], [1], [0, 0, 1, 1], [], []>} : vector<16x768xbf16>, vector<768x256xbf16>, vector<16x256xf32> -> vector<16x256xf32>
    %7 = arith.addf %3, %6 : vector<16x256xf32>
    %c0_6 = arith.constant 0 : index
    %c0_7 = arith.constant 0 : index
    %8 = vector.load %arg8[%c0_6, %c0_7] : memref<16x256xf32, #tpu.memory_space<vmem>>, vector<16x256xf32>
    tpu.vector_store %arg8[%c0_6, %c0_7], %7 {strides = array<i32>} : memref<16x256xf32, #tpu.memory_space<vmem>>, vector<16x256xf32>,
    %c5_i32 = arith.constant 5 : i32
    %9 = arith.cmpi eq, %arg2, %c5_i32 : i32
    %10 = arith.extui %9 : i1 to i32
    %c0_i32_8 = arith.constant 0 : i32
    %11 = arith.cmpi ne, %10, %c0_i32_8 : i32
    scf.if %11 {
      %c0_9 = arith.constant 0 : index
      %c0_10 = arith.constant 0 : index
      %12 = vector.load %arg8[%c0_9, %c0_10] : memref<16x256xf32, #tpu.memory_space<vmem>>, vector<16x256xf32>
      %c0_11 = arith.constant 0 : index
      %c0_12 = arith.constant 0 : index
      %13 = vector.load %arg5[%c0_11, %c0_12] : memref<1x256xf32, #tpu.memory_space<vmem>>, vector<1x256xf32>
      %14 = vector.broadcast %13 : vector<1x256xf32> to vector<16x256xf32>
      %15 = arith.mulf %12, %14 : vector<16x256xf32>
      %c0_13 = arith.constant 0 : index
      %c0_14 = arith.constant 0 : index
      %16 = vector.load %arg6[%c0_13, %c0_14] : memref<1x256xf32, #tpu.memory_space<vmem>>, vector<1x256xf32>
      %17 = vector.broadcast %16 : vector<1x256xf32> to vector<16x256xf32>
      %18 = arith.addf %15, %17 : vector<16x256xf32>
      %c0_15 = arith.constant 0 : index
      %c0_16 = arith.constant 0 : index
      %19 = vector.load %arg7[%c0_15, %c0_16] : memref<16x256xf32, #tpu.memory_space<vmem>>, vector<16x256xf32>
      %20 = arith.addf %18, %19 : vector<16x256xf32>
      %cst_17 = arith.constant 0.000000e+00 : f32
      %21 = vector.broadcast %cst_17 : f32 to vector<16x256xf32>
      %22 = arith.maximumf %20, %21 : vector<16x256xf32>
      %c0_18 = arith.constant 0 : index
      %c0_19 = arith.constant 0 : index
      %23 = vector.load %arg8[%c0_18, %c0_19] : memref<16x256xf32, #tpu.memory_space<vmem>>, vector<16x256xf32>
      tpu.vector_store %arg8[%c0_18, %c0_19], %22 {strides = array<i32>} : memref<16x256xf32, #tpu.memory_space<vmem>>, vector<16x256xf32>,
    } else {
    }
    return
  }
  func.func @transform_0(%arg0: i32, %arg1: i32, %arg2: i32) -> (i32, i32) {
    %c0_i32 = arith.constant 0 : i32
    return %arg0, %arg2 : i32, i32
  }
  func.func @transform_1(%arg0: i32, %arg1: i32, %arg2: i32) -> (i32, i32) {
    %c0_i32 = arith.constant 0 : i32
    return %arg2, %arg1 : i32, i32
  }
  func.func @transform_2(%arg0: i32, %arg1: i32, %arg2: i32) -> (i32, i32) {
    %c0_i32 = arith.constant 0 : i32
    %c0_i32_0 = arith.constant 0 : i32
    return %c0_i32, %arg1 : i32, i32
  }
  func.func @transform_3(%arg0: i32, %arg1: i32, %arg2: i32) -> (i32, i32) {
    %c0_i32 = arith.constant 0 : i32
    %c0_i32_0 = arith.constant 0 : i32
    return %c0_i32, %arg1 : i32, i32
  }
  func.func @transform_4(%arg0: i32, %arg1: i32, %arg2: i32) -> (i32, i32) {
    %c0_i32 = arith.constant 0 : i32
    return %arg0, %arg1 : i32, i32
  }
  func.func @transform_5(%arg0: i32, %arg1: i32, %arg2: i32) -> (i32, i32) {
    %c0_i32 = arith.constant 0 : i32
    return %arg0, %arg1 : i32, i32
  }
}

module attributes {stable_mosaic.version = 11 : i64} {
  func.func @kernel(%arg0: i32, %arg1: i32, %arg2: i32, %arg3: memref<16x768xbf16, #tpu.memory_space<vmem>>, %arg4: memref<768x256xbf16, #tpu.memory_space<vmem>>, %arg5: memref<1x256xf32, #tpu.memory_space<vmem>>, %arg6: memref<1x256xf32, #tpu.memory_space<vmem>>, %arg7: memref<16x256xf32, #tpu.memory_space<vmem>>) attributes {dimension_semantics = [#tpu.dimension_semantics<parallel>, #tpu.dimension_semantics<parallel>, #tpu.dimension_semantics<arbitrary>], iteration_bounds = array<i64: 1, 2, 6>, scalar_prefetch = 0 : i64, scratch_operands = 0 : i64, tpu.core_type = #tpu.core_type<tc>, window_params = [{transform_indices = @transform_0, window_bounds = array<i64: 16, 768>}, {transform_indices = @transform_1, window_bounds = array<i64: 768, 256>}, {transform_indices = @transform_2, window_bounds = array<i64: 1, 256>}, {transform_indices = @transform_3, window_bounds = array<i64: 1, 256>}, {transform_indices = @transform_4, window_bounds = array<i64: 16, 256>}]} {
    %c0_i32 = arith.constant 0 : i32
    %0 = arith.cmpi eq, %arg2, %c0_i32 : i32
    %1 = arith.extui %0 : i1 to i32
    %c0_i32_0 = arith.constant 0 : i32
    %2 = arith.cmpi ne, %1, %c0_i32_0 : i32
    scf.if %2 {
      %cst_9 = arith.constant 0.000000e+00 : f32
      %12 = vector.broadcast %cst_9 : f32 to vector<16x256xf32>
      %c0_10 = arith.constant 0 : index
      %c0_11 = arith.constant 0 : index
      %13 = vector.load %arg7[%c0_10, %c0_11] : memref<16x256xf32, #tpu.memory_space<vmem>>, vector<16x256xf32>
      tpu.vector_store %arg7[%c0_10, %c0_11], %12 {strides = array<i32>} : memref<16x256xf32, #tpu.memory_space<vmem>>, vector<16x256xf32>,
    } else {
    }
    %c0 = arith.constant 0 : index
    %c0_1 = arith.constant 0 : index
    %3 = vector.load %arg7[%c0, %c0_1] : memref<16x256xf32, #tpu.memory_space<vmem>>, vector<16x256xf32>
    %c0_2 = arith.constant 0 : index
    %c0_3 = arith.constant 0 : index
    %4 = vector.load %arg3[%c0_2, %c0_3] : memref<16x768xbf16, #tpu.memory_space<vmem>>, vector<16x768xbf16>
    %c0_4 = arith.constant 0 : index
    %c0_5 = arith.constant 0 : index
    %5 = vector.load %arg4[%c0_4, %c0_5] : memref<768x256xbf16, #tpu.memory_space<vmem>>, vector<768x256xbf16>
    %cst = arith.constant dense<0.000000e+00> : vector<16x256xf32>
    %6 = tpu.matmul %4, %5, %cst {dimension_numbers = #tpu.dot_dimension_numbers<[1], [0], [0], [1], [0, 0, 1, 1], [], []>} : vector<16x768xbf16>, vector<768x256xbf16>, vector<16x256xf32> -> vector<16x256xf32>
    %7 = arith.addf %3, %6 : vector<16x256xf32>
    %c0_6 = arith.constant 0 : index
    %c0_7 = arith.constant 0 : index
    %8 = vector.load %arg7[%c0_6, %c0_7] : memref<16x256xf32, #tpu.memory_space<vmem>>, vector<16x256xf32>
    tpu.vector_store %arg7[%c0_6, %c0_7], %7 {strides = array<i32>} : memref<16x256xf32, #tpu.memory_space<vmem>>, vector<16x256xf32>,
    %c5_i32 = arith.constant 5 : i32
    %9 = arith.cmpi eq, %arg2, %c5_i32 : i32
    %10 = arith.extui %9 : i1 to i32
    %c0_i32_8 = arith.constant 0 : i32
    %11 = arith.cmpi ne, %10, %c0_i32_8 : i32
    scf.if %11 {
      %c0_9 = arith.constant 0 : index
      %c0_10 = arith.constant 0 : index
      %12 = vector.load %arg7[%c0_9, %c0_10] : memref<16x256xf32, #tpu.memory_space<vmem>>, vector<16x256xf32>
      %c0_11 = arith.constant 0 : index
      %c0_12 = arith.constant 0 : index
      %13 = vector.load %arg5[%c0_11, %c0_12] : memref<1x256xf32, #tpu.memory_space<vmem>>, vector<1x256xf32>
      %14 = vector.broadcast %13 : vector<1x256xf32> to vector<16x256xf32>
      %15 = arith.mulf %12, %14 : vector<16x256xf32>
      %c0_13 = arith.constant 0 : index
      %c0_14 = arith.constant 0 : index
      %16 = vector.load %arg6[%c0_13, %c0_14] : memref<1x256xf32, #tpu.memory_space<vmem>>, vector<1x256xf32>
      %17 = vector.broadcast %16 : vector<1x256xf32> to vector<16x256xf32>
      %18 = arith.addf %15, %17 : vector<16x256xf32>
      %cst_15 = arith.constant 0.000000e+00 : f32
      %19 = vector.broadcast %cst_15 : f32 to vector<16x256xf32>
      %20 = arith.maximumf %18, %19 : vector<16x256xf32>
      %c0_16 = arith.constant 0 : index
      %c0_17 = arith.constant 0 : index
      %21 = vector.load %arg7[%c0_16, %c0_17] : memref<16x256xf32, #tpu.memory_space<vmem>>, vector<16x256xf32>
      tpu.vector_store %arg7[%c0_16, %c0_17], %20 {strides = array<i32>} : memref<16x256xf32, #tpu.memory_space<vmem>>, vector<16x256xf32>,
    } else {
    }
    return
  }
  func.func @transform_0(%arg0: i32, %arg1: i32, %arg2: i32) -> (i32, i32) {
    %c0_i32 = arith.constant 0 : i32
    return %arg0, %arg2 : i32, i32
  }
  func.func @transform_1(%arg0: i32, %arg1: i32, %arg2: i32) -> (i32, i32) {
    %c0_i32 = arith.constant 0 : i32
    return %arg2, %arg1 : i32, i32
  }
  func.func @transform_2(%arg0: i32, %arg1: i32, %arg2: i32) -> (i32, i32) {
    %c0_i32 = arith.constant 0 : i32
    %c0_i32_0 = arith.constant 0 : i32
    return %c0_i32, %arg1 : i32, i32
  }
  func.func @transform_3(%arg0: i32, %arg1: i32, %arg2: i32) -> (i32, i32) {
    %c0_i32 = arith.constant 0 : i32
    %c0_i32_0 = arith.constant 0 : i32
    return %c0_i32, %arg1 : i32, i32
  }
  func.func @transform_4(%arg0: i32, %arg1: i32, %arg2: i32) -> (i32, i32) {
    %c0_i32 = arith.constant 0 : i32
    return %arg0, %arg1 : i32, i32
  }
}

module attributes {stable_mosaic.version = 11 : i64} {
  func.func @kernel(%arg0: memref<2x1x512xf32, #tpu.memory_space<vmem>>, %arg1: memref<2x512xf32, #tpu.memory_space<vmem>>) attributes {dimension_semantics = [], scalar_prefetch = 0 : i64, scratch_operands = 0 : i64, tpu.core_type = #tpu.core_type<tc>} {
    %c0 = arith.constant 0 : index
    %c0_0 = arith.constant 0 : index
    %c0_1 = arith.constant 0 : index
    %0 = vector.load %arg0[%c0, %c0_0, %c0_1] : memref<2x1x512xf32, #tpu.memory_space<vmem>>, vector<2x1x512xf32>
    %cst = arith.constant dense<0.000000e+00> : vector<2x512xf32>
    %1 = vector.multi_reduction <add>, %0, %cst [1] : vector<2x1x512xf32> to vector<2x512xf32>
    %cst_2 = arith.constant 1.000000e+00 : f32
    %2 = vector.broadcast %cst_2 : f32 to vector<2x512xf32>
    %3 = arith.divf %1, %2 : vector<2x512xf32>
    %c0_3 = arith.constant 0 : index
    %c0_4 = arith.constant 0 : index
    %4 = vector.load %arg1[%c0_3, %c0_4] : memref<2x512xf32, #tpu.memory_space<vmem>>, vector<2x512xf32>
    tpu.vector_store %arg1[%c0_3, %c0_4], %3 {strides = array<i32>} : memref<2x512xf32, #tpu.memory_space<vmem>>, vector<2x512xf32>,
    return
  }
}

module attributes {stable_mosaic.version = 11 : i64} {
  func.func @kernel(%arg0: i32, %arg1: i32, %arg2: i32, %arg3: memref<16x512xbf16, #tpu.memory_space<vmem>>, %arg4: memref<512x256xbf16, #tpu.memory_space<vmem>>, %arg5: memref<1x256xf32, #tpu.memory_space<vmem>>, %arg6: memref<1x256xf32, #tpu.memory_space<vmem>>, %arg7: memref<16x256xf32, #tpu.memory_space<vmem>>) attributes {dimension_semantics = [#tpu.dimension_semantics<parallel>, #tpu.dimension_semantics<parallel>, #tpu.dimension_semantics<arbitrary>], iteration_bounds = array<i64: 1, 2, 1>, scalar_prefetch = 0 : i64, scratch_operands = 0 : i64, tpu.core_type = #tpu.core_type<tc>, window_params = [{transform_indices = @transform_0, window_bounds = array<i64: 16, 512>}, {transform_indices = @transform_1, window_bounds = array<i64: 512, 256>}, {transform_indices = @transform_2, window_bounds = array<i64: 1, 256>}, {transform_indices = @transform_3, window_bounds = array<i64: 1, 256>}, {transform_indices = @transform_4, window_bounds = array<i64: 16, 256>}]} {
    %c0_i32 = arith.constant 0 : i32
    %0 = arith.cmpi eq, %arg2, %c0_i32 : i32
    %1 = arith.extui %0 : i1 to i32
    %c0_i32_0 = arith.constant 0 : i32
    %2 = arith.cmpi ne, %1, %c0_i32_0 : i32
    scf.if %2 {
      %cst_10 = arith.constant 0.000000e+00 : f32
      %12 = vector.broadcast %cst_10 : f32 to vector<16x256xf32>
      %c0_11 = arith.constant 0 : index
      %c0_12 = arith.constant 0 : index
      %13 = vector.load %arg7[%c0_11, %c0_12] : memref<16x256xf32, #tpu.memory_space<vmem>>, vector<16x256xf32>
      tpu.vector_store %arg7[%c0_11, %c0_12], %12 {strides = array<i32>} : memref<16x256xf32, #tpu.memory_space<vmem>>, vector<16x256xf32>,
    } else {
    }
    %c0 = arith.constant 0 : index
    %c0_1 = arith.constant 0 : index
    %3 = vector.load %arg7[%c0, %c0_1] : memref<16x256xf32, #tpu.memory_space<vmem>>, vector<16x256xf32>
    %c0_2 = arith.constant 0 : index
    %c0_3 = arith.constant 0 : index
    %4 = vector.load %arg3[%c0_2, %c0_3] : memref<16x512xbf16, #tpu.memory_space<vmem>>, vector<16x512xbf16>
    %c0_4 = arith.constant 0 : index
    %c0_5 = arith.constant 0 : index
    %5 = vector.load %arg4[%c0_4, %c0_5] : memref<512x256xbf16, #tpu.memory_space<vmem>>, vector<512x256xbf16>
    %cst = arith.constant dense<0.000000e+00> : vector<16x256xf32>
    %6 = tpu.matmul %4, %5, %cst {dimension_numbers = #tpu.dot_dimension_numbers<[1], [0], [0], [1], [0, 0, 1, 1], [], []>} : vector<16x512xbf16>, vector<512x256xbf16>, vector<16x256xf32> -> vector<16x256xf32>
    %7 = arith.addf %3, %6 : vector<16x256xf32>
    %c0_6 = arith.constant 0 : index
    %c0_7 = arith.constant 0 : index
    %8 = vector.load %arg7[%c0_6, %c0_7] : memref<16x256xf32, #tpu.memory_space<vmem>>, vector<16x256xf32>
    tpu.vector_store %arg7[%c0_6, %c0_7], %7 {strides = array<i32>} : memref<16x256xf32, #tpu.memory_space<vmem>>, vector<16x256xf32>,
    %c0_i32_8 = arith.constant 0 : i32
    %9 = arith.cmpi eq, %arg2, %c0_i32_8 : i32
    %10 = arith.extui %9 : i1 to i32
    %c0_i32_9 = arith.constant 0 : i32
    %11 = arith.cmpi ne, %10, %c0_i32_9 : i32
    scf.if %11 {
      %c0_10 = arith.constant 0 : index
      %c0_11 = arith.constant 0 : index
      %12 = vector.load %arg7[%c0_10, %c0_11] : memref<16x256xf32, #tpu.memory_space<vmem>>, vector<16x256xf32>
      %c0_12 = arith.constant 0 : index
      %c0_13 = arith.constant 0 : index
      %13 = vector.load %arg5[%c0_12, %c0_13] : memref<1x256xf32, #tpu.memory_space<vmem>>, vector<1x256xf32>
      %14 = vector.broadcast %13 : vector<1x256xf32> to vector<16x256xf32>
      %15 = arith.mulf %12, %14 : vector<16x256xf32>
      %c0_14 = arith.constant 0 : index
      %c0_15 = arith.constant 0 : index
      %16 = vector.load %arg6[%c0_14, %c0_15] : memref<1x256xf32, #tpu.memory_space<vmem>>, vector<1x256xf32>
      %17 = vector.broadcast %16 : vector<1x256xf32> to vector<16x256xf32>
      %18 = arith.addf %15, %17 : vector<16x256xf32>
      %cst_16 = arith.constant 0.000000e+00 : f32
      %19 = vector.broadcast %cst_16 : f32 to vector<16x256xf32>
      %20 = arith.maximumf %18, %19 : vector<16x256xf32>
      %c0_17 = arith.constant 0 : index
      %c0_18 = arith.constant 0 : index
      %21 = vector.load %arg7[%c0_17, %c0_18] : memref<16x256xf32, #tpu.memory_space<vmem>>, vector<16x256xf32>
      tpu.vector_store %arg7[%c0_17, %c0_18], %20 {strides = array<i32>} : memref<16x256xf32, #tpu.memory_space<vmem>>, vector<16x256xf32>,
    } else {
    }
    return
  }
  func.func @transform_0(%arg0: i32, %arg1: i32, %arg2: i32) -> (i32, i32) {
    %c0_i32 = arith.constant 0 : i32
    return %arg0, %arg2 : i32, i32
  }
  func.func @transform_1(%arg0: i32, %arg1: i32, %arg2: i32) -> (i32, i32) {
    %c0_i32 = arith.constant 0 : i32
    return %arg2, %arg1 : i32, i32
  }
  func.func @transform_2(%arg0: i32, %arg1: i32, %arg2: i32) -> (i32, i32) {
    %c0_i32 = arith.constant 0 : i32
    %c0_i32_0 = arith.constant 0 : i32
    return %c0_i32, %arg1 : i32, i32
  }
  func.func @transform_3(%arg0: i32, %arg1: i32, %arg2: i32) -> (i32, i32) {
    %c0_i32 = arith.constant 0 : i32
    %c0_i32_0 = arith.constant 0 : i32
    return %c0_i32, %arg1 : i32, i32
  }
  func.func @transform_4(%arg0: i32, %arg1: i32, %arg2: i32) -> (i32, i32) {
    %c0_i32 = arith.constant 0 : i32
    return %arg0, %arg1 : i32, i32
  }
}

module attributes {stable_mosaic.version = 11 : i64} {
  func.func @kernel(%arg0: i32, %arg1: i32, %arg2: i32, %arg3: memref<16x512xbf16, #tpu.memory_space<vmem>>, %arg4: memref<512x128xbf16, #tpu.memory_space<vmem>>, %arg5: memref<1x128xf32, #tpu.memory_space<vmem>>, %arg6: memref<1x128xf32, #tpu.memory_space<vmem>>, %arg7: memref<16x128xf32, #tpu.memory_space<vmem>>) attributes {dimension_semantics = [#tpu.dimension_semantics<parallel>, #tpu.dimension_semantics<parallel>, #tpu.dimension_semantics<arbitrary>], iteration_bounds = array<i64: 1, 1, 1>, scalar_prefetch = 0 : i64, scratch_operands = 0 : i64, tpu.core_type = #tpu.core_type<tc>, window_params = [{transform_indices = @transform_0, window_bounds = array<i64: 16, 512>}, {transform_indices = @transform_1, window_bounds = array<i64: 512, 128>}, {transform_indices = @transform_2, window_bounds = array<i64: 1, 128>}, {transform_indices = @transform_3, window_bounds = array<i64: 1, 128>}, {transform_indices = @transform_4, window_bounds = array<i64: 16, 128>}]} {
    %c0_i32 = arith.constant 0 : i32
    %0 = arith.cmpi eq, %arg2, %c0_i32 : i32
    %1 = arith.extui %0 : i1 to i32
    %c0_i32_0 = arith.constant 0 : i32
    %2 = arith.cmpi ne, %1, %c0_i32_0 : i32
    scf.if %2 {
      %cst_10 = arith.constant 0.000000e+00 : f32
      %12 = vector.broadcast %cst_10 : f32 to vector<16x128xf32>
      %c0_11 = arith.constant 0 : index
      %c0_12 = arith.constant 0 : index
      %13 = vector.load %arg7[%c0_11, %c0_12] : memref<16x128xf32, #tpu.memory_space<vmem>>, vector<16x128xf32>
      tpu.vector_store %arg7[%c0_11, %c0_12], %12 {strides = array<i32>} : memref<16x128xf32, #tpu.memory_space<vmem>>, vector<16x128xf32>,
    } else {
    }
    %c0 = arith.constant 0 : index
    %c0_1 = arith.constant 0 : index
    %3 = vector.load %arg7[%c0, %c0_1] : memref<16x128xf32, #tpu.memory_space<vmem>>, vector<16x128xf32>
    %c0_2 = arith.constant 0 : index
    %c0_3 = arith.constant 0 : index
    %4 = vector.load %arg3[%c0_2, %c0_3] : memref<16x512xbf16, #tpu.memory_space<vmem>>, vector<16x512xbf16>
    %c0_4 = arith.constant 0 : index
    %c0_5 = arith.constant 0 : index
    %5 = vector.load %arg4[%c0_4, %c0_5] : memref<512x128xbf16, #tpu.memory_space<vmem>>, vector<512x128xbf16>
    %cst = arith.constant dense<0.000000e+00> : vector<16x128xf32>
    %6 = tpu.matmul %4, %5, %cst {dimension_numbers = #tpu.dot_dimension_numbers<[1], [0], [0], [1], [0, 0, 1, 1], [], []>} : vector<16x512xbf16>, vector<512x128xbf16>, vector<16x128xf32> -> vector<16x128xf32>
    %7 = arith.addf %3, %6 : vector<16x128xf32>
    %c0_6 = arith.constant 0 : index
    %c0_7 = arith.constant 0 : index
    %8 = vector.load %arg7[%c0_6, %c0_7] : memref<16x128xf32, #tpu.memory_space<vmem>>, vector<16x128xf32>
    tpu.vector_store %arg7[%c0_6, %c0_7], %7 {strides = array<i32>} : memref<16x128xf32, #tpu.memory_space<vmem>>, vector<16x128xf32>,
    %c0_i32_8 = arith.constant 0 : i32
    %9 = arith.cmpi eq, %arg2, %c0_i32_8 : i32
    %10 = arith.extui %9 : i1 to i32
    %c0_i32_9 = arith.constant 0 : i32
    %11 = arith.cmpi ne, %10, %c0_i32_9 : i32
    scf.if %11 {
      %c0_10 = arith.constant 0 : index
      %c0_11 = arith.constant 0 : index
      %12 = vector.load %arg7[%c0_10, %c0_11] : memref<16x128xf32, #tpu.memory_space<vmem>>, vector<16x128xf32>
      %c0_12 = arith.constant 0 : index
      %c0_13 = arith.constant 0 : index
      %13 = vector.load %arg5[%c0_12, %c0_13] : memref<1x128xf32, #tpu.memory_space<vmem>>, vector<1x128xf32>
      %14 = vector.broadcast %13 : vector<1x128xf32> to vector<16x128xf32>
      %15 = arith.mulf %12, %14 : vector<16x128xf32>
      %c0_14 = arith.constant 0 : index
      %c0_15 = arith.constant 0 : index
      %16 = vector.load %arg6[%c0_14, %c0_15] : memref<1x128xf32, #tpu.memory_space<vmem>>, vector<1x128xf32>
      %17 = vector.broadcast %16 : vector<1x128xf32> to vector<16x128xf32>
      %18 = arith.addf %15, %17 : vector<16x128xf32>
      %cst_16 = arith.constant 0.000000e+00 : f32
      %19 = vector.broadcast %cst_16 : f32 to vector<16x128xf32>
      %20 = arith.maximumf %18, %19 : vector<16x128xf32>
      %c0_17 = arith.constant 0 : index
      %c0_18 = arith.constant 0 : index
      %21 = vector.load %arg7[%c0_17, %c0_18] : memref<16x128xf32, #tpu.memory_space<vmem>>, vector<16x128xf32>
      tpu.vector_store %arg7[%c0_17, %c0_18], %20 {strides = array<i32>} : memref<16x128xf32, #tpu.memory_space<vmem>>, vector<16x128xf32>,
    } else {
    }
    return
  }
  func.func @transform_0(%arg0: i32, %arg1: i32, %arg2: i32) -> (i32, i32) {
    %c0_i32 = arith.constant 0 : i32
    return %arg0, %arg2 : i32, i32
  }
  func.func @transform_1(%arg0: i32, %arg1: i32, %arg2: i32) -> (i32, i32) {
    %c0_i32 = arith.constant 0 : i32
    return %arg2, %arg1 : i32, i32
  }
  func.func @transform_2(%arg0: i32, %arg1: i32, %arg2: i32) -> (i32, i32) {
    %c0_i32 = arith.constant 0 : i32
    %c0_i32_0 = arith.constant 0 : i32
    return %c0_i32, %arg1 : i32, i32
  }
  func.func @transform_3(%arg0: i32, %arg1: i32, %arg2: i32) -> (i32, i32) {
    %c0_i32 = arith.constant 0 : i32
    %c0_i32_0 = arith.constant 0 : i32
    return %c0_i32, %arg1 : i32, i32
  }
  func.func @transform_4(%arg0: i32, %arg1: i32, %arg2: i32) -> (i32, i32) {
    %c0_i32 = arith.constant 0 : i32
    return %arg0, %arg1 : i32, i32
  }
}

module attributes {stable_mosaic.version = 11 : i64} {
  func.func @kernel(%arg0: i32, %arg1: i32, %arg2: i32, %arg3: memref<16x128xbf16, #tpu.memory_space<vmem>>, %arg4: memref<128x128xbf16, #tpu.memory_space<vmem>>, %arg5: memref<1x128xf32, #tpu.memory_space<vmem>>, %arg6: memref<1x128xf32, #tpu.memory_space<vmem>>, %arg7: memref<16x128xf32, #tpu.memory_space<vmem>>) attributes {dimension_semantics = [#tpu.dimension_semantics<parallel>, #tpu.dimension_semantics<parallel>, #tpu.dimension_semantics<arbitrary>], iteration_bounds = array<i64: 1, 1, 1>, scalar_prefetch = 0 : i64, scratch_operands = 0 : i64, tpu.core_type = #tpu.core_type<tc>, window_params = [{transform_indices = @transform_0, window_bounds = array<i64: 16, 128>}, {transform_indices = @transform_1, window_bounds = array<i64: 128, 128>}, {transform_indices = @transform_2, window_bounds = array<i64: 1, 128>}, {transform_indices = @transform_3, window_bounds = array<i64: 1, 128>}, {transform_indices = @transform_4, window_bounds = array<i64: 16, 128>}]} {
    %c0_i32 = arith.constant 0 : i32
    %0 = arith.cmpi eq, %arg2, %c0_i32 : i32
    %1 = arith.extui %0 : i1 to i32
    %c0_i32_0 = arith.constant 0 : i32
    %2 = arith.cmpi ne, %1, %c0_i32_0 : i32
    scf.if %2 {
      %cst_10 = arith.constant 0.000000e+00 : f32
      %12 = vector.broadcast %cst_10 : f32 to vector<16x128xf32>
      %c0_11 = arith.constant 0 : index
      %c0_12 = arith.constant 0 : index
      %13 = vector.load %arg7[%c0_11, %c0_12] : memref<16x128xf32, #tpu.memory_space<vmem>>, vector<16x128xf32>
      tpu.vector_store %arg7[%c0_11, %c0_12], %12 {strides = array<i32>} : memref<16x128xf32, #tpu.memory_space<vmem>>, vector<16x128xf32>,
    } else {
    }
    %c0 = arith.constant 0 : index
    %c0_1 = arith.constant 0 : index
    %3 = vector.load %arg7[%c0, %c0_1] : memref<16x128xf32, #tpu.memory_space<vmem>>, vector<16x128xf32>
    %c0_2 = arith.constant 0 : index
    %c0_3 = arith.constant 0 : index
    %4 = vector.load %arg3[%c0_2, %c0_3] : memref<16x128xbf16, #tpu.memory_space<vmem>>, vector<16x128xbf16>
    %c0_4 = arith.constant 0 : index
    %c0_5 = arith.constant 0 : index
    %5 = vector.load %arg4[%c0_4, %c0_5] : memref<128x128xbf16, #tpu.memory_space<vmem>>, vector<128x128xbf16>
    %cst = arith.constant dense<0.000000e+00> : vector<16x128xf32>
    %6 = tpu.matmul %4, %5, %cst {dimension_numbers = #tpu.dot_dimension_numbers<[1], [0], [0], [1], [0, 0, 1, 1], [], []>} : vector<16x128xbf16>, vector<128x128xbf16>, vector<16x128xf32> -> vector<16x128xf32>
    %7 = arith.addf %3, %6 : vector<16x128xf32>
    %c0_6 = arith.constant 0 : index
    %c0_7 = arith.constant 0 : index
    %8 = vector.load %arg7[%c0_6, %c0_7] : memref<16x128xf32, #tpu.memory_space<vmem>>, vector<16x128xf32>
    tpu.vector_store %arg7[%c0_6, %c0_7], %7 {strides = array<i32>} : memref<16x128xf32, #tpu.memory_space<vmem>>, vector<16x128xf32>,
    %c0_i32_8 = arith.constant 0 : i32
    %9 = arith.cmpi eq, %arg2, %c0_i32_8 : i32
    %10 = arith.extui %9 : i1 to i32
    %c0_i32_9 = arith.constant 0 : i32
    %11 = arith.cmpi ne, %10, %c0_i32_9 : i32
    scf.if %11 {
      %c0_10 = arith.constant 0 : index
      %c0_11 = arith.constant 0 : index
      %12 = vector.load %arg7[%c0_10, %c0_11] : memref<16x128xf32, #tpu.memory_space<vmem>>, vector<16x128xf32>
      %c0_12 = arith.constant 0 : index
      %c0_13 = arith.constant 0 : index
      %13 = vector.load %arg5[%c0_12, %c0_13] : memref<1x128xf32, #tpu.memory_space<vmem>>, vector<1x128xf32>
      %14 = vector.broadcast %13 : vector<1x128xf32> to vector<16x128xf32>
      %15 = arith.mulf %12, %14 : vector<16x128xf32>
      %c0_14 = arith.constant 0 : index
      %c0_15 = arith.constant 0 : index
      %16 = vector.load %arg6[%c0_14, %c0_15] : memref<1x128xf32, #tpu.memory_space<vmem>>, vector<1x128xf32>
      %17 = vector.broadcast %16 : vector<1x128xf32> to vector<16x128xf32>
      %18 = arith.addf %15, %17 : vector<16x128xf32>
      %c0_16 = arith.constant 0 : index
      %c0_17 = arith.constant 0 : index
      %19 = vector.load %arg7[%c0_16, %c0_17] : memref<16x128xf32, #tpu.memory_space<vmem>>, vector<16x128xf32>
      tpu.vector_store %arg7[%c0_16, %c0_17], %18 {strides = array<i32>} : memref<16x128xf32, #tpu.memory_space<vmem>>, vector<16x128xf32>,
    } else {
    }
    return
  }
  func.func @transform_0(%arg0: i32, %arg1: i32, %arg2: i32) -> (i32, i32) {
    %c0_i32 = arith.constant 0 : i32
    return %arg0, %arg2 : i32, i32
  }
  func.func @transform_1(%arg0: i32, %arg1: i32, %arg2: i32) -> (i32, i32) {
    %c0_i32 = arith.constant 0 : i32
    return %arg2, %arg1 : i32, i32
  }
  func.func @transform_2(%arg0: i32, %arg1: i32, %arg2: i32) -> (i32, i32) {
    %c0_i32 = arith.constant 0 : i32
    %c0_i32_0 = arith.constant 0 : i32
    return %c0_i32, %arg1 : i32, i32
  }
  func.func @transform_3(%arg0: i32, %arg1: i32, %arg2: i32) -> (i32, i32) {
    %c0_i32 = arith.constant 0 : i32
    %c0_i32_0 = arith.constant 0 : i32
    return %c0_i32, %arg1 : i32, i32
  }
  func.func @transform_4(%arg0: i32, %arg1: i32, %arg2: i32) -> (i32, i32) {
    %c0_i32 = arith.constant 0 : i32
    return %arg0, %arg1 : i32, i32
  }
}

</mosaic_0001>

<bundles_post_ra>
// kernel: _lambda_.24
= control target key start
LH: loop header
LB: loop body
LE: loop exit
PB: predicated region body
PF: predicated region fallthrough
CT: control target
= control target key end

     0   :  { %s1557_s15 = smov 0   ;;  %s1559_s16 = smov 0   ;;  %s1787_s0 = inlined_call_operand.vmem [shape: bf16[512,256], index: 0, kind: input, shape index: {}]   ;;  %s1788_s1 = inlined_call_operand.vmem [shape: bf16[256,128], index: 1, kind: input, shape index: {}]   ;;  %s1789_s2 = inlined_call_operand.vmem [shape: f32[1,128], index: 2, kind: input, shape index: {}]   ;;  %s1790_s3 = inlined_call_operand.vmem [shape: f32[1,128], index: 3, kind: input, shape index: {}]   ;;  %s1791_s4 = inlined_call_operand.vmem [shape: f32[512,128], index: 4, kind: output, shape index: {}]  }
   0x1   :  { %s1561_s17 = smov 0  }
   0x2 LB: > { %s33_s18 = sadd.s32 1, %s1526_s16  ;;  %p1232_p0 = scmp.ge.s32.totalorder %s1530_s17, 1  ;;  %s1530_s17 = sphi %s1561_s17, %s14_s17   ;;  %s1526_s16 = sphi %s1559_s16, %s1793_s16   ;;  %s1522_s15 = sphi %s1557_s15, %s1792_s15  }
   0x3   : > { %p35_p1 = scmp.ge.s32.totalorder %s33_s18, 2  ;;  %p224_p2 = scmp.lt.s32.totalorder %s1530_s17, 3 }
   0x5   : > { %s1795_s18 = smov (%p35_p1, %s33_s18), 0  ;;  %p225_p3 = pnand %p1232_p0, %p224_p2 }
   0x6   : > { %v1444_v0 = vld [vmem:[%s1788_s1 + $0x40] sm:$0xff] (!%p225_p3)   ;;  %s1233_s21 = sshll.u32 (!%p225_p3), %s1522_s15, 5  ;;  %v1446_v2 = vld [vmem:[%s1788_s1 + $0x48] sm:$0xff] (!%p225_p3)   ;;  %v1448_v4 = vld [vmem:[%s1788_s1 + $0x50] sm:$0xff] (!%p225_p3)  }
   0x7   : > { %228 = sbr.rel (%p225_p3) target bundleno = 319 (0x13f), region = 36  ;;  %v1445_v1 = vld [vmem:[%s1788_s1] sm:$0xff] (!%p225_p3)   ;;  %1291 = vmatprep.subr.bf16.mxu0 (!%p225_p3), %v1444_v0  ;;  %1403 = vmatprep.subr.bf16.mxu1 (!%p225_p3), %v1444_v0  ;;  %v1447_v3 = vld [vmem:[%s1788_s1 + $0x8] sm:$0xff] (!%p225_p3)   ;;  %p274_p4 = scmp.lt.s32.totalorder (!%p225_p3), %s1233_s21, 63  ;;  %v1449_v5 = vld [vmem:[%s1788_s1 + $0x10] sm:$0xff] (!%p225_p3)  }
   0x8   : > { %1292 = vmatpush3.bf16.msra.mxu0 (!%p225_p3), %v1445_v1  ;;  %1411 = vmatpush3.bf16.msra.mxu1 (!%p225_p3), %v1445_v1  ;;  %v1450_v6 = vld [vmem:[%s1788_s1 + $0x58] sm:$0xff] (!%p225_p3)   ;;  %v1452_v8 = vld [vmem:[%s1788_s1 + $0x60] sm:$0xff] (!%p225_p3)   ;;  %v1454_v10 = vld [vmem:[%s1788_s1 + $0x68] sm:$0xff] (!%p225_p3)  }
   0x9   : > { %1293 = vmatprep.subr.bf16.mxu0 (!%p225_p3), %v1446_v2  ;;  %1404 = vmatprep.subr.bf16.mxu1 (!%p225_p3), %v1446_v2  ;;  %v1451_v7 = vld [vmem:[%s1788_s1 + $0x18] sm:$0xff] (!%p225_p3)   ;;  %v1453_v9 = vld [vmem:[%s1788_s1 + $0x20] sm:$0xff] (!%p225_p3)   ;;  %v1455_v13 = vld [vmem:[%s1788_s1 + $0x28] sm:$0xff] (!%p225_p3)  }
   0xa   : > { %v1456_v14 = vld [vmem:[%s1788_s1 + $0x70] sm:$0xff] (!%p225_p3)   ;;  %v1458_v16 = vld [vmem:[%s1788_s1 + $0x78] sm:$0xff] (!%p225_p3)   ;;  %v1668_v56 = vld [vmem:[%s1789_s2] ss:$0 sm:$0xff] (!%p225_p3) }
   0xb   : > { %v1457_v15 = vld [vmem:[%s1788_s1 + $0x30] sm:$0xff] (!%p225_p3)   ;;  %v1459_v17 = vld [vmem:[%s1788_s1 + $0x38] sm:$0xff] (!%p225_p3)   ;;  %v1673_v61 = vld [vmem:[%s1790_s3] ss:$0 sm:$0xff] (!%p225_p3) }
   0xc   : > { %1294 = vmatpush3.bf16.msra.mxu0 (!%p225_p3), %v1447_v3  ;;  %1412 = vmatpush3.bf16.msra.mxu1 (!%p225_p3), %v1447_v3 }
   0xd   : > { %1295 = vmatprep.subr.bf16.mxu0 (!%p225_p3), %v1448_v4  ;;  %1405 = vmatprep.subr.bf16.mxu1 (!%p225_p3), %v1448_v4 }
   0xe   : > { %s1797_s21 = smov (!%p274_p4, %s1233_s21), 63 }
   0xf   : > { %s1290_s10 = sshll.u32 %s1797_s21, 3 }
  0x10   : > { %1296 = vmatpush3.bf16.msra.mxu0 %v1449_v5  ;;  %1413 = vmatpush3.bf16.msra.mxu1 %v1449_v5  ;;  %s1610_s15 = scalar_lea.vmem %s1787_s0, %s1290_s10 }
  0x11   : > { %1297 = vmatprep.subr.bf16.mxu0 %v1450_v6  ;;  %1406 = vmatprep.subr.bf16.mxu1 %v1450_v6  ;;  %v1462_v11 = vld [vmem:[%s1610_s15 + $0x4] ss:$8 sps:$4 sm:$0xff]   ;;  %v1460_v18 = vld [vmem:[%s1610_s15] ss:$8 sps:$4 sm:$0xff]   ;;  %v1466_v20 = vld [vmem:[%s1610_s15 + $0x14] ss:$8 sps:$4 sm:$0xff]  }
  0x12   : > { %v1465_v12 = vld [vmem:[%s1610_s15 + $0x84] ss:$8 sps:$4 sm:$0xff]   ;;  %729 = vmatprep.mubr.bf16.mxu0 %v1462_v11  ;;  %v1463_v19 = vld [vmem:[%s1610_s15 + $0x80] ss:$8 sps:$4 sm:$0xff]   ;;  %v1468_v21 = vld [vmem:[%s1610_s15 + $0x94] ss:$8 sps:$4 sm:$0xff]  }
  0x13   : > { %793 = vmatprep.mubr.bf16.mxu1 %v1465_v12  ;;  %v1470_v22 = vld [vmem:[%s1610_s15 + $0x10] ss:$8 sps:$4 sm:$0xff]   ;;  %v1472_v24 = vld [vmem:[%s1610_s15 + $0x24] ss:$8 sps:$4 sm:$0xff]   ;;  %v1476_v26 = vld [vmem:[%s1610_s15 + $0x20] ss:$8 sps:$4 sm:$0xff]  }
  0x14   : > { %1298 = vmatpush3.bf16.msra.mxu0 %v1451_v7  ;;  %1414 = vmatpush3.bf16.msra.mxu1 %v1451_v7  ;;  %v1471_v23 = vld [vmem:[%s1610_s15 + $0x90] ss:$8 sps:$4 sm:$0xff]   ;;  %v1474_v25 = vld [vmem:[%s1610_s15 + $0xa4] ss:$8 sps:$4 sm:$0xff]   ;;  %v1477_v27 = vld [vmem:[%s1610_s15 + $0xa0] ss:$8 sps:$4 sm:$0xff]  }
  0x15   : > { %1299 = vmatprep.subr.bf16.mxu0 %v1452_v8  ;;  %1407 = vmatprep.subr.bf16.mxu1 %v1452_v8  ;;  %v1478_v28 = vld [vmem:[%s1610_s15 + $0x34] ss:$8 sps:$4 sm:$0xff]   ;;  %v1482_v30 = vld [vmem:[%s1610_s15 + $0x30] ss:$8 sps:$4 sm:$0xff]   ;;  %v1484_v32 = vld [vmem:[%s1610_s15 + $0x44] ss:$8 sps:$4 sm:$0xff]  }
  0x16   : > { %v1480_v29 = vld [vmem:[%s1610_s15 + $0xb4] ss:$8 sps:$4 sm:$0xff]   ;;  %v1483_v31 = vld [vmem:[%s1610_s15 + $0xb0] ss:$8 sps:$4 sm:$0xff]   ;;  %v1486_v33 = vld [vmem:[%s1610_s15 + $0xc4] ss:$8 sps:$4 sm:$0xff]  }
  0x17   : > { %v1488_v34 = vld [vmem:[%s1610_s15 + $0x40] ss:$8 sps:$4 sm:$0xff]   ;;  %v1490_v36 = vld [vmem:[%s1610_s15 + $0x54] ss:$8 sps:$4 sm:$0xff]   ;;  %v1494_v38 = vld [vmem:[%s1610_s15 + $0x50] ss:$8 sps:$4 sm:$0xff]  }
  0x18   : > { %1300 = vmatpush3.bf16.msra.mxu0 %v1453_v9  ;;  %1415 = vmatpush3.bf16.msra.mxu1 %v1453_v9  ;;  %v1489_v35 = vld [vmem:[%s1610_s15 + $0xc0] ss:$8 sps:$4 sm:$0xff]   ;;  %v1492_v37 = vld [vmem:[%s1610_s15 + $0xd4] ss:$8 sps:$4 sm:$0xff]   ;;  %v1495_v39 = vld [vmem:[%s1610_s15 + $0xd0] ss:$8 sps:$4 sm:$0xff]  }
  0x19   : > { %1301 = vmatprep.subr.bf16.mxu0 %v1454_v10  ;;  %1408 = vmatprep.subr.bf16.mxu1 %v1454_v10  ;;  %v1496_v40 = vld [vmem:[%s1610_s15 + $0x64] ss:$8 sps:$4 sm:$0xff]   ;;  %v1500_v42 = vld [vmem:[%s1610_s15 + $0x60] ss:$8 sps:$4 sm:$0xff]   ;;  %v1502_v44 = vld [vmem:[%s1610_s15 + $0x74] ss:$8 sps:$4 sm:$0xff]  }
  0x1a   : > { %v1498_v41 = vld [vmem:[%s1610_s15 + $0xe4] ss:$8 sps:$4 sm:$0xff]   ;;  %v1501_v43 = vld [vmem:[%s1610_s15 + $0xe0] ss:$8 sps:$4 sm:$0xff]   ;;  %v1504_v45 = vld [vmem:[%s1610_s15 + $0xf4] ss:$8 sps:$4 sm:$0xff]  }
  0x1b   : > { %v1506_v46 = vld [vmem:[%s1610_s15 + $0x70] ss:$8 sps:$4 sm:$0xff]  }
  0x1c   : > { %1302 = vmatpush3.bf16.msra.mxu0 %v1455_v13  ;;  %1416 = vmatpush3.bf16.msra.mxu1 %v1455_v13  ;;  %v1507_v47 = vld [vmem:[%s1610_s15 + $0xf0] ss:$8 sps:$4 sm:$0xff]   ;;  %s1686_s15 = scalar_lea.vmem %s1791_s4, %s1290_s10 }
  0x1d   : > { %1303 = vmatprep.subr.bf16.mxu0 %v1456_v14  ;;  %1409 = vmatprep.subr.bf16.mxu1 %v1456_v14 }
  0x20   : > { %1304 = vmatpush3.bf16.msra.mxu0 %v1457_v15  ;;  %1417 = vmatpush3.bf16.msra.mxu1 %v1457_v15 }
  0x21   : > { %1305 = vmatprep.subr.bf16.mxu0 %v1458_v16  ;;  %1410 = vmatprep.subr.bf16.mxu1 %v1458_v16 }
  0x24   : > { %1306 = vmatpush3.bf16.msra.mxu0 %v1459_v17  ;;  %1418 = vmatpush3.bf16.msra.mxu1 %v1459_v17 }
  0x27   : > { %730 = vmatmul.mubr.bf16.vlgmr.msra.gmra.mrb[0].mxu0 %v1460_v18  ;;  %794 = vmatmul.mubr.bf16.vlgmr.msra.gmra.mrb[0].mxu1 %v1463_v19 }
  0x28   : > { %737 = vmatprep.mubr.bf16.mxu0 %v1466_v20  ;;  %801 = vmatprep.mubr.bf16.mxu1 %v1468_v21 }
  0x2f   : > { %738 = vmatmul.mubr.bf16.gmra.mrb[4].mxu0 %v1470_v22  ;;  %802 = vmatmul.mubr.bf16.gmra.mrb[4].mxu1 %v1471_v23 }
  0x30   : > { %745 = vmatprep.mubr.bf16.mxu0 %v1472_v24  ;;  %809 = vmatprep.mubr.bf16.mxu1 %v1474_v25 }
  0x37   : > { %746 = vmatmul.mubr.bf16.gmra.mrb[8].mxu0 %v1476_v26  ;;  %810 = vmatmul.mubr.bf16.gmra.mrb[8].mxu1 %v1477_v27 }
  0x38   : > { %753 = vmatprep.mubr.bf16.mxu0 %v1478_v28  ;;  %817 = vmatprep.mubr.bf16.mxu1 %v1480_v29 }
  0x3f   : > { %754 = vmatmul.mubr.bf16.gmra.mrb[12].mxu0 %v1482_v30  ;;  %818 = vmatmul.mubr.bf16.gmra.mrb[12].mxu1 %v1483_v31 }
  0x40   : > { %761 = vmatprep.mubr.bf16.mxu0 %v1484_v32  ;;  %825 = vmatprep.mubr.bf16.mxu1 %v1486_v33 }
  0x47   : > { %762 = vmatmul.mubr.bf16.gmra.mrb[16].mxu0 %v1488_v34  ;;  %826 = vmatmul.mubr.bf16.gmra.mrb[16].mxu1 %v1489_v35 }
  0x48   : > { %769 = vmatprep.mubr.bf16.mxu0 %v1490_v36  ;;  %833 = vmatprep.mubr.bf16.mxu1 %v1492_v37 }
  0x4f   : > { %770 = vmatmul.mubr.bf16.gmra.mrb[20].mxu0 %v1494_v38  ;;  %834 = vmatmul.mubr.bf16.gmra.mrb[20].mxu1 %v1495_v39 }
  0x50   : > { %777 = vmatprep.mubr.bf16.mxu0 %v1496_v40  ;;  %841 = vmatprep.mubr.bf16.mxu1 %v1498_v41 }
  0x57   : > { %778 = vmatmul.mubr.bf16.gmra.mrb[24].mxu0 %v1500_v42  ;;  %842 = vmatmul.mubr.bf16.gmra.mrb[24].mxu1 %v1501_v43 }
  0x58   : > { %785 = vmatprep.mubr.bf16.mxu0 %v1502_v44  ;;  %849 = vmatprep.mubr.bf16.mxu1 %v1504_v45 }
  0x5f   : > { %786 = vmatmul.mubr.bf16.gmra.mrb[28].mxu0 %v1506_v46  ;;  %850 = vmatmul.mubr.bf16.gmra.mrb[28].mxu1 %v1507_v47 }
  0xfa   : > { %v1307_v48 = vpop.f32.mrb[0].mxu0  ;;  %v1355_v49 = vpop.f32.mrb[0].mxu1 }
  0xfb   : > { %v1308_v50 = vpop.f32.mrb[1].mxu0  ;;  %v1356_v51 = vpop.f32.mrb[1].mxu1 }
  0xfc   : > { %v1309_v52 = vadd.f32 %v1308_v50, %v1307_v48  ;;  %v1357_v53 = vadd.f32 %v1356_v51, %v1355_v49  ;;  %v1310_v54 = vpop.f32.mrb[2].mxu0  ;;  %v1358_v55 = vpop.f32.mrb[2].mxu1 }
  0xfd   : > { %v1311_v57 = vpop.f32.mrb[3].mxu0  ;;  %v1359_v58 = vpop.f32.mrb[3].mxu1 }
  0xfe   : > { %v1312_v59 = vadd.f32 %v1311_v57, %v1310_v54  ;;  %v1360_v60 = vadd.f32 %v1359_v58, %v1358_v55  ;;  %v964_v62 = vmul.f32 %v1309_v52, %v1668_v56  ;;  %v980_v63 = vmul.f32 %v1357_v53, %v1668_v56 }
 0x100   : > { %v1003_v0 = vadd.f32 %v1673_v61, %v964_v62  ;;  %v1019_v1 = vadd.f32 %v1673_v61, %v980_v63  ;;  %v965_v2 = vmul.f32 %v1312_v59, %v1668_v56  ;;  %v981_v3 = vmul.f32 %v1360_v60, %v1668_v56 }
 0x102   : > { %v1313_v4 = vpop.f32.mrb[4].mxu0  ;;  %v1361_v5 = vpop.f32.mrb[4].mxu1  ;;  %v1035_v8 = vmax.f32 %v1003_v0, 0.0  ;;  %v1051_v9 = vmax.f32 %v1019_v1, 0.0  ;;  %v1004_v10 = vadd.f32 %v1673_v61, %v965_v2  ;;  %v1020_v11 = vadd.f32 %v1673_v61, %v981_v3 }
 0x103   : > { %v1314_v6 = vpop.f32.mrb[5].mxu0  ;;  %v1362_v7 = vpop.f32.mrb[5].mxu1 }
 0x104   : > { %v1316_v12 = vpop.f32.mrb[6].mxu0  ;;  %v1364_v13 = vpop.f32.mrb[6].mxu1  ;;  %v1315_v14 = vadd.f32 %v1314_v6, %v1313_v4  ;;  %v1363_v15 = vadd.f32 %v1362_v7, %v1361_v5  ;;  %1067 = vst [vmem:[%s1686_s15] sm:$0xff] %v1035_v8  ;;  %1083 = vst [vmem:[%s1686_s15 + $0x80] sm:$0xff] %v1051_v9  ;;  %v1036_v18 = vmax.f32 %v1004_v10, 0.0  ;;  %v1052_v19 = vmax.f32 %v1020_v11, 0.0 }
 0x105   : > { %v1317_v16 = vpop.f32.mrb[7].mxu0  ;;  %v1365_v17 = vpop.f32.mrb[7].mxu1 }
 0x106   : > { %v1318_v20 = vadd.f32 %v1317_v16, %v1316_v12  ;;  %v1366_v21 = vadd.f32 %v1365_v17, %v1364_v13  ;;  %1068 = vst [vmem:[%s1686_s15 + $0x8] sm:$0xff] %v1036_v18  ;;  %1084 = vst [vmem:[%s1686_s15 + $0x88] sm:$0xff] %v1052_v19  ;;  %v966_v22 = vmul.f32 %v1315_v14, %v1668_v56 }
 0x107   : > { %v982_v23 = vmul.f32 %v1363_v15, %v1668_v56 }
 0x108   : > { %v967_v24 = vmul.f32 %v1318_v20, %v1668_v56  ;;  %v983_v25 = vmul.f32 %v1366_v21, %v1668_v56  ;;  %v1005_v28 = vadd.f32 %v1673_v61, %v966_v22 }
 0x109   : > { %v1021_v29 = vadd.f32 %v1673_v61, %v982_v23 }
 0x10a   : > { %v1319_v26 = vpop.f32.mrb[8].mxu0  ;;  %v1367_v27 = vpop.f32.mrb[8].mxu1  ;;  %v1006_v32 = vadd.f32 %v1673_v61, %v967_v24  ;;  %v1022_v33 = vadd.f32 %v1673_v61, %v983_v25  ;;  %v1037_v38 = vmax.f32 %v1005_v28, 0.0 }
 0x10b   : > { %v1320_v30 = vpop.f32.mrb[9].mxu0  ;;  %v1368_v31 = vpop.f32.mrb[9].mxu1  ;;  %v1053_v39 = vmax.f32 %v1021_v29, 0.0 }
 0x10c   : > { %v1321_v34 = vadd.f32 %v1320_v30, %v1319_v26  ;;  %v1369_v35 = vadd.f32 %v1368_v31, %v1367_v27  ;;  %v1322_v36 = vpop.f32.mrb[10].mxu0  ;;  %v1370_v37 = vpop.f32.mrb[10].mxu1  ;;  %v1038_v42 = vmax.f32 %v1006_v32, 0.0  ;;  %v1054_v43 = vmax.f32 %v1022_v33, 0.0  ;;  %1069 = vst [vmem:[%s1686_s15 + $0x10] sm:$0xff] %v1037_v38 }
 0x10d   : > { %v1323_v40 = vpop.f32.mrb[11].mxu0  ;;  %v1371_v41 = vpop.f32.mrb[11].mxu1  ;;  %1085 = vst [vmem:[%s1686_s15 + $0x90] sm:$0xff] %v1053_v39 }
 0x10e   : > { %v1324_v44 = vadd.f32 %v1323_v40, %v1322_v36  ;;  %v1372_v45 = vadd.f32 %v1371_v41, %v1370_v37  ;;  %1070 = vst [vmem:[%s1686_s15 + $0x18] sm:$0xff] %v1038_v42  ;;  %1086 = vst [vmem:[%s1686_s15 + $0x98] sm:$0xff] %v1054_v43  ;;  %v968_v46 = vmul.f32 %v1321_v34, %v1668_v56 }
 0x10f   : > { %v984_v47 = vmul.f32 %v1369_v35, %v1668_v56 }
 0x110   : > { %v1007_v48 = vadd.f32 %v1673_v61, %v968_v46  ;;  %v969_v52 = vmul.f32 %v1324_v44, %v1668_v56  ;;  %v985_v53 = vmul.f32 %v1372_v45, %v1668_v56 }
 0x111   : > { %v1023_v49 = vadd.f32 %v1673_v61, %v984_v47 }
 0x112   : > { %v1325_v50 = vpop.f32.mrb[12].mxu0  ;;  %v1373_v51 = vpop.f32.mrb[12].mxu1  ;;  %v1039_v57 = vmax.f32 %v1007_v48, 0.0  ;;  %v1008_v0 = vadd.f32 %v1673_v61, %v969_v52  ;;  %v1024_v1 = vadd.f32 %v1673_v61, %v985_v53 }
 0x113   : > { %v1326_v54 = vpop.f32.mrb[13].mxu0  ;;  %v1374_v55 = vpop.f32.mrb[13].mxu1  ;;  %v1055_v58 = vmax.f32 %v1023_v49, 0.0 }
 0x114   : > { %v1327_v59 = vadd.f32 %v1326_v54, %v1325_v50  ;;  %v1375_v60 = vadd.f32 %v1374_v55, %v1373_v51  ;;  %v1328_v62 = vpop.f32.mrb[14].mxu0  ;;  %v1376_v63 = vpop.f32.mrb[14].mxu1  ;;  %1071 = vst [vmem:[%s1686_s15 + $0x20] sm:$0xff] %v1039_v57  ;;  %v1040_v6 = vmax.f32 %v1008_v0, 0.0  ;;  %v1056_v7 = vmax.f32 %v1024_v1, 0.0 }
 0x115   : > { %v1329_v2 = vpop.f32.mrb[15].mxu0  ;;  %v1377_v3 = vpop.f32.mrb[15].mxu1  ;;  %1087 = vst [vmem:[%s1686_s15 + $0xa0] sm:$0xff] %v1055_v58 }
 0x116   : > { %v1330_v4 = vadd.f32 %v1329_v2, %v1328_v62  ;;  %v1378_v5 = vadd.f32 %v1377_v3, %v1376_v63  ;;  %v970_v8 = vmul.f32 %v1327_v59, %v1668_v56  ;;  %v986_v9 = vmul.f32 %v1375_v60, %v1668_v56  ;;  %1072 = vst [vmem:[%s1686_s15 + $0x28] sm:$0xff] %v1040_v6 }
 0x117   : > { %1088 = vst [vmem:[%s1686_s15 + $0xa8] sm:$0xff] %v1056_v7 }
 0x118   : > { %v1009_v10 = vadd.f32 %v1673_v61, %v970_v8  ;;  %v1025_v11 = vadd.f32 %v1673_v61, %v986_v9  ;;  %v971_v12 = vmul.f32 %v1330_v4, %v1668_v56  ;;  %v987_v13 = vmul.f32 %v1378_v5, %v1668_v56 }
 0x11a   : > { %v1331_v14 = vpop.f32.mrb[16].mxu0  ;;  %v1379_v15 = vpop.f32.mrb[16].mxu1  ;;  %v1041_v18 = vmax.f32 %v1009_v10, 0.0  ;;  %v1057_v19 = vmax.f32 %v1025_v11, 0.0  ;;  %v1010_v20 = vadd.f32 %v1673_v61, %v971_v12  ;;  %v1026_v21 = vadd.f32 %v1673_v61, %v987_v13 }
 0x11b   : > { %v1332_v16 = vpop.f32.mrb[17].mxu0  ;;  %v1380_v17 = vpop.f32.mrb[17].mxu1 }
 0x11c   : > { %v1334_v22 = vpop.f32.mrb[18].mxu0  ;;  %v1382_v23 = vpop.f32.mrb[18].mxu1  ;;  %v1333_v24 = vadd.f32 %v1332_v16, %v1331_v14  ;;  %v1381_v25 = vadd.f32 %v1380_v17, %v1379_v15  ;;  %1073 = vst [vmem:[%s1686_s15 + $0x30] sm:$0xff] %v1041_v18  ;;  %1089 = vst [vmem:[%s1686_s15 + $0xb0] sm:$0xff] %v1057_v19  ;;  %v1042_v28 = vmax.f32 %v1010_v20, 0.0  ;;  %v1058_v29 = vmax.f32 %v1026_v21, 0.0 }
 0x11d   : > { %v1335_v26 = vpop.f32.mrb[19].mxu0  ;;  %v1383_v27 = vpop.f32.mrb[19].mxu1 }
 0x11e   : > { %v1336_v30 = vadd.f32 %v1335_v26, %v1334_v22  ;;  %v1384_v31 = vadd.f32 %v1383_v27, %v1382_v23  ;;  %1074 = vst [vmem:[%s1686_s15 + $0x38] sm:$0xff] %v1042_v28  ;;  %1090 = vst [vmem:[%s1686_s15 + $0xb8] sm:$0xff] %v1058_v29  ;;  %v972_v32 = vmul.f32 %v1333_v24, %v1668_v56 }
 0x11f   : > { %v988_v33 = vmul.f32 %v1381_v25, %v1668_v56 }
 0x120   : > { %v973_v34 = vmul.f32 %v1336_v30, %v1668_v56  ;;  %v989_v35 = vmul.f32 %v1384_v31, %v1668_v56  ;;  %v1011_v38 = vadd.f32 %v1673_v61, %v972_v32 }
 0x121   : > { %v1027_v39 = vadd.f32 %v1673_v61, %v988_v33 }
 0x122   : > { %v1337_v36 = vpop.f32.mrb[20].mxu0  ;;  %v1385_v37 = vpop.f32.mrb[20].mxu1  ;;  %v1012_v42 = vadd.f32 %v1673_v61, %v973_v34  ;;  %v1028_v43 = vadd.f32 %v1673_v61, %v989_v35  ;;  %v1043_v48 = vmax.f32 %v1011_v38, 0.0 }
 0x123   : > { %v1338_v40 = vpop.f32.mrb[21].mxu0  ;;  %v1386_v41 = vpop.f32.mrb[21].mxu1  ;;  %v1059_v49 = vmax.f32 %v1027_v39, 0.0 }
 0x124   : > { %v1339_v44 = vadd.f32 %v1338_v40, %v1337_v36  ;;  %v1387_v45 = vadd.f32 %v1386_v41, %v1385_v37  ;;  %v1340_v46 = vpop.f32.mrb[22].mxu0  ;;  %v1388_v47 = vpop.f32.mrb[22].mxu1  ;;  %v1044_v52 = vmax.f32 %v1012_v42, 0.0  ;;  %v1060_v53 = vmax.f32 %v1028_v43, 0.0  ;;  %1075 = vst [vmem:[%s1686_s15 + $0x40] sm:$0xff] %v1043_v48 }
 0x125   : > { %v1341_v50 = vpop.f32.mrb[23].mxu0  ;;  %v1389_v51 = vpop.f32.mrb[23].mxu1  ;;  %1091 = vst [vmem:[%s1686_s15 + $0xc0] sm:$0xff] %v1059_v49 }
 0x126   : > { %v1342_v54 = vadd.f32 %v1341_v50, %v1340_v46  ;;  %v1390_v55 = vadd.f32 %v1389_v51, %v1388_v47  ;;  %1076 = vst [vmem:[%s1686_s15 + $0x48] sm:$0xff] %v1044_v52  ;;  %1092 = vst [vmem:[%s1686_s15 + $0xc8] sm:$0xff] %v1060_v53  ;;  %v974_v57 = vmul.f32 %v1339_v44, %v1668_v56 }
 0x127   : > { %v990_v58 = vmul.f32 %v1387_v45, %v1668_v56 }
 0x128   : > { %v1013_v59 = vadd.f32 %v1673_v61, %v974_v57  ;;  %v975_v0 = vmul.f32 %v1342_v54, %v1668_v56  ;;  %v991_v1 = vmul.f32 %v1390_v55, %v1668_v56 }
 0x129   : > { %v1029_v60 = vadd.f32 %v1673_v61, %v990_v58 }
 0x12a   : > { %v1343_v62 = vpop.f32.mrb[24].mxu0  ;;  %v1391_v63 = vpop.f32.mrb[24].mxu1  ;;  %v1045_v4 = vmax.f32 %v1013_v59, 0.0  ;;  %v1014_v10 = vadd.f32 %v1673_v61, %v975_v0  ;;  %v1030_v11 = vadd.f32 %v1673_v61, %v991_v1 }
 0x12b   : > { %v1344_v2 = vpop.f32.mrb[25].mxu0  ;;  %v1392_v3 = vpop.f32.mrb[25].mxu1  ;;  %v1061_v5 = vmax.f32 %v1029_v60, 0.0 }
 0x12c   : > { %v1345_v6 = vadd.f32 %v1344_v2, %v1343_v62  ;;  %v1393_v7 = vadd.f32 %v1392_v3, %v1391_v63  ;;  %v1346_v8 = vpop.f32.mrb[26].mxu0  ;;  %v1394_v9 = vpop.f32.mrb[26].mxu1  ;;  %1077 = vst [vmem:[%s1686_s15 + $0x50] sm:$0xff] %v1045_v4  ;;  %v1046_v16 = vmax.f32 %v1014_v10, 0.0  ;;  %v1062_v17 = vmax.f32 %v1030_v11, 0.0 }
 0x12d   : > { %v1347_v12 = vpop.f32.mrb[27].mxu0  ;;  %v1395_v13 = vpop.f32.mrb[27].mxu1  ;;  %1093 = vst [vmem:[%s1686_s15 + $0xd0] sm:$0xff] %v1061_v5 }
 0x12e   : > { %v1348_v14 = vadd.f32 %v1347_v12, %v1346_v8  ;;  %v1396_v15 = vadd.f32 %v1395_v13, %v1394_v9  ;;  %v976_v18 = vmul.f32 %v1345_v6, %v1668_v56  ;;  %v992_v19 = vmul.f32 %v1393_v7, %v1668_v56  ;;  %1078 = vst [vmem:[%s1686_s15 + $0x58] sm:$0xff] %v1046_v16 }
 0x12f   : > { %1094 = vst [vmem:[%s1686_s15 + $0xd8] sm:$0xff] %v1062_v17 }
 0x130   : > { %v1015_v20 = vadd.f32 %v1673_v61, %v976_v18  ;;  %v1031_v21 = vadd.f32 %v1673_v61, %v992_v19  ;;  %v977_v22 = vmul.f32 %v1348_v14, %v1668_v56  ;;  %v993_v23 = vmul.f32 %v1396_v15, %v1668_v56 }
 0x132   : > { %v1349_v24 = vpop.f32.mrb[28].mxu0  ;;  %v1397_v25 = vpop.f32.mrb[28].mxu1  ;;  %v1047_v28 = vmax.f32 %v1015_v20, 0.0  ;;  %v1063_v29 = vmax.f32 %v1031_v21, 0.0  ;;  %v1016_v30 = vadd.f32 %v1673_v61, %v977_v22  ;;  %v1032_v31 = vadd.f32 %v1673_v61, %v993_v23 }
 0x133   : > { %v1350_v26 = vpop.f32.mrb[29].mxu0  ;;  %v1398_v27 = vpop.f32.mrb[29].mxu1 }
 0x134   : > { %v1352_v32 = vpop.f32.mrb[30].mxu0  ;;  %v1400_v33 = vpop.f32.mrb[30].mxu1  ;;  %v1351_v34 = vadd.f32 %v1350_v26, %v1349_v24  ;;  %v1399_v35 = vadd.f32 %v1398_v27, %v1397_v25  ;;  %1079 = vst [vmem:[%s1686_s15 + $0x60] sm:$0xff] %v1047_v28  ;;  %1095 = vst [vmem:[%s1686_s15 + $0xe0] sm:$0xff] %v1063_v29  ;;  %v1048_v38 = vmax.f32 %v1016_v30, 0.0  ;;  %v1064_v39 = vmax.f32 %v1032_v31, 0.0 }
 0x135   : > { %v1353_v36 = vpop.f32.mrb[31].mxu0  ;;  %v1401_v37 = vpop.f32.mrb[31].mxu1 }
 0x136   : > { %v1354_v40 = vadd.f32 %v1353_v36, %v1352_v32  ;;  %v1402_v41 = vadd.f32 %v1401_v37, %v1400_v33  ;;  %1080 = vst [vmem:[%s1686_s15 + $0x68] sm:$0xff] %v1048_v38  ;;  %1096 = vst [vmem:[%s1686_s15 + $0xe8] sm:$0xff] %v1064_v39  ;;  %v978_v42 = vmul.f32 %v1351_v34, %v1668_v56 }
 0x137   : > { %v994_v43 = vmul.f32 %v1399_v35, %v1668_v56 }
 0x138   : > { %v979_v44 = vmul.f32 %v1354_v40, %v1668_v56  ;;  %v995_v45 = vmul.f32 %v1402_v41, %v1668_v56  ;;  %v1017_v46 = vadd.f32 %v1673_v61, %v978_v42 }
 0x139   : > { %v1033_v47 = vadd.f32 %v1673_v61, %v994_v43 }
 0x13a   : > { %v1018_v48 = vadd.f32 %v1673_v61, %v979_v44  ;;  %v1034_v49 = vadd.f32 %v1673_v61, %v995_v45  ;;  %v1049_v50 = vmax.f32 %v1017_v46, 0.0 }
 0x13b   : > { %v1065_v51 = vmax.f32 %v1033_v47, 0.0 }
 0x13c   : > { %v1050_v52 = vmax.f32 %v1018_v48, 0.0  ;;  %v1066_v53 = vmax.f32 %v1034_v49, 0.0  ;;  %1081 = vst [vmem:[%s1686_s15 + $0x70] sm:$0xff] %v1049_v50 }
 0x13d   : > { %1097 = vst [vmem:[%s1686_s15 + $0xf0] sm:$0xff] %v1065_v51 }
 0x13e   : > { %1082 = vst [vmem:[%s1686_s15 + $0x78] sm:$0xff] %v1050_v52  ;;  %1098 = vst [vmem:[%s1686_s15 + $0xf8] sm:$0xff] %v1066_v53 }
 0x13f PF: > { %s14_s17 = sadd.s32 1, %s1530_s17   ;;  %s1792_s15 = smov %s1526_s16 }
 0x140   : > { %p11_p5 = scmp.ge.s32.totalorder %s14_s17, 4   ;;  %s1793_s16 = smov %s1795_s18 }
 0x142   :  { %13 = sbr.rel (!%p11_p5) target bundleno = 2 (0x2), region = 83 }

// kernel: _lambda_.25
= control target key start
LH: loop header
LB: loop body
LE: loop exit
PB: predicated region body
PF: predicated region fallthrough
CT: control target
= control target key end

     0   :  { %s1816_s1 = inlined_call_operand.vmem [shape: bf16[640,128], index: 1, kind: input, shape index: {}]   ;;  %s1817_s0 = inlined_call_operand.vmem [shape: bf16[128,640], index: 0, kind: input, shape index: {}]   ;;  %s1818_s2 = inlined_call_operand.vmem [shape: f32[1,128], index: 2, kind: input, shape index: {}]   ;;  %s1819_s3 = inlined_call_operand.vmem [shape: f32[1,128], index: 3, kind: input, shape index: {}]   ;;  %s1820_s4 = inlined_call_operand.vmem [shape: f32[128,128], index: 4, kind: output, shape index: {}]  }
   0x1   :  { %v1329_v0 = vld [vmem:[%s1816_s1 + $0x40] sm:$0xff]   ;;  %v1333_v4 = vld [vmem:[%s1816_s1 + $0x48] sm:$0xff]   ;;  %v1337_v8 = vld [vmem:[%s1816_s1 + $0x50] sm:$0xff]  }
   0x2   :  { %v1330_v1 = vld [vmem:[%s1816_s1 + $0xc0] sm:$0xff]   ;;  %1136 = vmatprep.subr.bf16.mxu0 %v1329_v0  ;;  %v1334_v5 = vld [vmem:[%s1816_s1 + $0xc8] sm:$0xff]   ;;  %v1338_v9 = vld [vmem:[%s1816_s1 + $0xd0] sm:$0xff]  }
   0x3   :  { %v1331_v2 = vld [vmem:[%s1816_s1] sm:$0xff]   ;;  %1200 = vmatprep.subr.bf16.mxu1 %v1330_v1  ;;  %v1335_v6 = vld [vmem:[%s1816_s1 + $0x8] sm:$0xff]   ;;  %v1339_v10 = vld [vmem:[%s1816_s1 + $0x10] sm:$0xff]  }
   0x4   :  { %v1332_v3 = vld [vmem:[%s1816_s1 + $0x80] sm:$0xff]   ;;  %1137 = vmatpush3.bf16.msra.mxu0 %v1331_v2  ;;  %v1336_v7 = vld [vmem:[%s1816_s1 + $0x88] sm:$0xff]   ;;  %v1340_v11 = vld [vmem:[%s1816_s1 + $0x90] sm:$0xff]  }
   0x5   :  { %1201 = vmatpush3.bf16.msra.mxu1 %v1332_v3  ;;  %1138 = vmatprep.subr.bf16.mxu0 %v1333_v4  ;;  %v1341_v12 = vld [vmem:[%s1816_s1 + $0x58] sm:$0xff]   ;;  %v1345_v16 = vld [vmem:[%s1816_s1 + $0x60] sm:$0xff]   ;;  %v1349_v20 = vld [vmem:[%s1816_s1 + $0x68] sm:$0xff]  }
   0x6   :  { %1202 = vmatprep.subr.bf16.mxu1 %v1334_v5  ;;  %v1342_v13 = vld [vmem:[%s1816_s1 + $0xd8] sm:$0xff]   ;;  %v1346_v17 = vld [vmem:[%s1816_s1 + $0xe0] sm:$0xff]   ;;  %v1350_v21 = vld [vmem:[%s1816_s1 + $0xe8] sm:$0xff]  }
   0x7   :  { %v1343_v14 = vld [vmem:[%s1816_s1 + $0x18] sm:$0xff]   ;;  %v1347_v18 = vld [vmem:[%s1816_s1 + $0x20] sm:$0xff]   ;;  %v1351_v22 = vld [vmem:[%s1816_s1 + $0x28] sm:$0xff]  }
   0x8   :  { %1139 = vmatpush3.bf16.msra.mxu0 %v1335_v6  ;;  %v1344_v15 = vld [vmem:[%s1816_s1 + $0x98] sm:$0xff]   ;;  %v1348_v19 = vld [vmem:[%s1816_s1 + $0xa0] sm:$0xff]   ;;  %v1352_v23 = vld [vmem:[%s1816_s1 + $0xa8] sm:$0xff]  }
   0x9   :  { %1203 = vmatpush3.bf16.msra.mxu1 %v1336_v7  ;;  %1140 = vmatprep.subr.bf16.mxu0 %v1337_v8  ;;  %v1353_v24 = vld [vmem:[%s1816_s1 + $0x70] sm:$0xff]   ;;  %v1357_v28 = vld [vmem:[%s1816_s1 + $0x78] sm:$0xff]   ;;  %v1366_v35 = vld [vmem:[%s1817_s0 + $0xc] ss:$20 sps:$4 sm:$0xff]  }
   0xa   :  { %1204 = vmatprep.subr.bf16.mxu1 %v1338_v9  ;;  %v1354_v25 = vld [vmem:[%s1816_s1 + $0xf0] sm:$0xff]   ;;  %v1358_v29 = vld [vmem:[%s1816_s1 + $0xf8] sm:$0xff]   ;;  %v1367_v36 = vld [vmem:[%s1816_s1 + $0x100] sm:$0xff]   ;;  %759 = vmatprep.mubr.bf16.mxu1 %v1366_v35 }
   0xb   :  { %v1355_v26 = vld [vmem:[%s1816_s1 + $0x30] sm:$0xff]   ;;  %v1359_v30 = vld [vmem:[%s1816_s1 + $0x38] sm:$0xff]   ;;  %v1368_v37 = vld [vmem:[%s1817_s0 + $0x2c] ss:$20 sps:$4 sm:$0xff]  }
   0xc   :  { %1141 = vmatpush3.bf16.msra.mxu0 %v1339_v10  ;;  %v1356_v27 = vld [vmem:[%s1816_s1 + $0xb0] sm:$0xff]   ;;  %v1360_v31 = vld [vmem:[%s1816_s1 + $0xb8] sm:$0xff]   ;;  %v1374_v39 = vld [vmem:[%s1816_s1 + $0x108] sm:$0xff]  }
   0xd   :  { %1205 = vmatpush3.bf16.msra.mxu1 %v1340_v11  ;;  %1142 = vmatprep.subr.bf16.mxu0 %v1341_v12  ;;  %v1361_v32 = vld [vmem:[%s1817_s0] ss:$20 sps:$4 sm:$0xff]   ;;  %v1363_v33 = vld [vmem:[%s1817_s0 + $0x4] ss:$20 sps:$4 sm:$0xff]   ;;  %v1364_v34 = vld [vmem:[%s1817_s0 + $0x8] ss:$20 sps:$4 sm:$0xff]  }
   0xe   :  { %1206 = vmatprep.subr.bf16.mxu1 %v1342_v13  ;;  %662 = vmatprep.mubr.bf16.mxu0 %v1363_v33  ;;  %v1370_v38 = vld [vmem:[%s1817_s0 + $0x34] ss:$20 sps:$4 sm:$0xff]   ;;  %v1373_v41 = vld [vmem:[%s1817_s0 + $0x30] ss:$20 sps:$4 sm:$0xff]   ;;  %v1388_v45 = vld [vmem:[%s1816_s1 + $0x118] sm:$0xff]  }
   0xf   :  { %v1372_v40 = vld [vmem:[%s1817_s0 + $0x28] ss:$20 sps:$4 sm:$0xff]   ;;  %v1381_v44 = vld [vmem:[%s1816_s1 + $0x110] sm:$0xff]   ;;  %v1380_v47 = vld [vmem:[%s1817_s0 + $0x58] ss:$20 sps:$4 sm:$0xff]  }
  0x10   :  { %1143 = vmatpush3.bf16.msra.mxu0 %v1343_v14  ;;  %v1375_v42 = vld [vmem:[%s1817_s0 + $0x54] ss:$20 sps:$4 sm:$0xff]   ;;  %v1377_v43 = vld [vmem:[%s1817_s0 + $0x5c] ss:$20 sps:$4 sm:$0xff]   ;;  %v1384_v49 = vld [vmem:[%s1817_s0 + $0x84] ss:$20 sps:$4 sm:$0xff]  }
  0x11   :  { %1207 = vmatpush3.bf16.msra.mxu1 %v1344_v15  ;;  %1144 = vmatprep.subr.bf16.mxu0 %v1345_v16  ;;  %v1379_v46 = vld [vmem:[%s1817_s0 + $0x50] ss:$20 sps:$4 sm:$0xff]   ;;  %v1402_v51 = vld [vmem:[%s1816_s1 + $0x128] sm:$0xff]   ;;  %v1387_v53 = vld [vmem:[%s1817_s0 + $0x80] ss:$20 sps:$4 sm:$0xff]  }
  0x12   :  { %1208 = vmatprep.subr.bf16.mxu1 %v1346_v17  ;;  %v1382_v48 = vld [vmem:[%s1817_s0 + $0x7c] ss:$20 sps:$4 sm:$0xff]   ;;  %v1395_v50 = vld [vmem:[%s1816_s1 + $0x120] sm:$0xff]   ;;  %v1386_v52 = vld [vmem:[%s1817_s0 + $0x78] ss:$20 sps:$4 sm:$0xff]  }
  0x13   :  { %v1389_v54 = vld [vmem:[%s1817_s0 + $0xa4] ss:$20 sps:$4 sm:$0xff]   ;;  %v1409_v55 = vld [vmem:[%s1816_s1 + $0x130] sm:$0xff]   ;;  %v1391_v56 = vld [vmem:[%s1817_s0 + $0xac] ss:$20 sps:$4 sm:$0xff]  }
  0x14   :  { %1145 = vmatpush3.bf16.msra.mxu0 %v1347_v18  ;;  %v1416_v57 = vld [vmem:[%s1816_s1 + $0x138] sm:$0xff]   ;;  %v1393_v58 = vld [vmem:[%s1817_s0 + $0xa0] ss:$20 sps:$4 sm:$0xff]   ;;  %v1401_v63 = vld [vmem:[%s1817_s0 + $0xd0] ss:$20 sps:$4 sm:$0xff]  }
  0x15   :  { %1209 = vmatpush3.bf16.msra.mxu1 %v1348_v19  ;;  %1146 = vmatprep.subr.bf16.mxu0 %v1349_v20  ;;  %v1394_v59 = vld [vmem:[%s1817_s0 + $0xa8] ss:$20 sps:$4 sm:$0xff]   ;;  %v1396_v60 = vld [vmem:[%s1817_s0 + $0xcc] ss:$20 sps:$4 sm:$0xff]   ;;  %v1407_v2 = vld [vmem:[%s1817_s0 + $0xf0] ss:$20 sps:$4 sm:$0xff]  }
  0x16   :  { %1210 = vmatprep.subr.bf16.mxu1 %v1350_v21  ;;  %v1398_v61 = vld [vmem:[%s1817_s0 + $0xd4] ss:$20 sps:$4 sm:$0xff]   ;;  %v1405_v1 = vld [vmem:[%s1817_s0 + $0xfc] ss:$20 sps:$4 sm:$0xff]   ;;  %v1408_v3 = vld [vmem:[%s1817_s0 + $0xf8] ss:$20 sps:$4 sm:$0xff]  }
  0x17   :  { %v1400_v62 = vld [vmem:[%s1817_s0 + $0xc8] ss:$20 sps:$4 sm:$0xff]   ;;  %v1412_v5 = vld [vmem:[%s1817_s0 + $0x124] ss:$20 sps:$4 sm:$0xff]   ;;  %v1415_v7 = vld [vmem:[%s1817_s0 + $0x120] ss:$20 sps:$4 sm:$0xff]  }
  0x18   :  { %1147 = vmatpush3.bf16.msra.mxu0 %v1351_v22  ;;  %v1403_v0 = vld [vmem:[%s1817_s0 + $0xf4] ss:$20 sps:$4 sm:$0xff]   ;;  %v1410_v4 = vld [vmem:[%s1817_s0 + $0x11c] ss:$20 sps:$4 sm:$0xff]   ;;  %v1414_v6 = vld [vmem:[%s1817_s0 + $0x118] ss:$20 sps:$4 sm:$0xff]  }
  0x19   :  { %1211 = vmatpush3.bf16.msra.mxu1 %v1352_v23  ;;  %1148 = vmatprep.subr.bf16.mxu0 %v1353_v24  ;;  %v1417_v8 = vld [vmem:[%s1817_s0 + $0x10] ss:$20 sps:$4 sm:$0xff]   ;;  %v1419_v10 = vld [vmem:[%s1817_s0 + $0x38] ss:$20 sps:$4 sm:$0xff]   ;;  %v1421_v12 = vld [vmem:[%s1817_s0 + $0x60] ss:$20 sps:$4 sm:$0xff]  }
  0x1a   :  { %1212 = vmatprep.subr.bf16.mxu1 %v1354_v25  ;;  %v1418_v9 = vld [vmem:[%s1817_s0 + $0xb0] ss:$20 sps:$4 sm:$0xff]   ;;  %v1420_v11 = vld [vmem:[%s1817_s0 + $0xd8] ss:$20 sps:$4 sm:$0xff]   ;;  %v1422_v13 = vld [vmem:[%s1817_s0 + $0x100] ss:$20 sps:$4 sm:$0xff]  }
  0x1b   :  { %v1423_v14 = vld [vmem:[%s1817_s0 + $0x88] ss:$20 sps:$4 sm:$0xff]  }
  0x1c   :  { %1149 = vmatpush3.bf16.msra.mxu0 %v1355_v26  ;;  %v1424_v15 = vld [vmem:[%s1817_s0 + $0x128] ss:$20 sps:$4 sm:$0xff]  }
  0x1d   :  { %1213 = vmatpush3.bf16.msra.mxu1 %v1356_v27  ;;  %1150 = vmatprep.subr.bf16.mxu0 %v1357_v28 }
  0x1e   :  { %1214 = vmatprep.subr.bf16.mxu1 %v1358_v29 }
  0x20   :  { %1151 = vmatpush3.bf16.msra.mxu0 %v1359_v30 }
  0x21   :  { %1215 = vmatpush3.bf16.msra.mxu1 %v1360_v31  ;;  %1280 = vmatprep.subr.bf16.mxu0 %v1367_v36 }
  0x22   :  { %1312 = vmatprep.subr.bf16.mxu1 %v1367_v36 }
  0x23   :  { %663 = vmatmul.mubr.bf16.vlgmr.msra.gmra.mrb[0].mxu0 %v1361_v32 }
  0x24   :  { %760 = vmatmul.mubr.bf16.vlgmr.msra.gmra.mrb[0].mxu1 %v1364_v34  ;;  %1281 = vmatpush3.bf16.msra.mxu0 %v1367_v36 }
  0x25   :  { %1320 = vmatpush3.bf16.msra.mxu1 %v1367_v36  ;;  %670 = vmatprep.mubr.bf16.mxu0 %v1368_v37 }
  0x26   :  { %767 = vmatprep.mubr.bf16.mxu1 %v1370_v38  ;;  %1282 = vmatprep.subr.bf16.mxu0 %v1374_v39 }
  0x27   :  { %1313 = vmatprep.subr.bf16.mxu1 %v1374_v39 }
  0x28   :  { %1283 = vmatpush3.bf16.msra.mxu0 %v1374_v39 }
  0x29   :  { %1321 = vmatpush3.bf16.msra.mxu1 %v1374_v39  ;;  %1284 = vmatprep.subr.bf16.mxu0 %v1381_v44 }
  0x2a   :  { %1314 = vmatprep.subr.bf16.mxu1 %v1381_v44 }
  0x2b   :  { %671 = vmatmul.mubr.bf16.gmra.mrb[4].mxu0 %v1372_v40 }
  0x2c   :  { %768 = vmatmul.mubr.bf16.gmra.mrb[4].mxu1 %v1373_v41  ;;  %678 = vmatprep.mubr.bf16.mxu0 %v1375_v42 }
  0x2d   :  { %775 = vmatprep.mubr.bf16.mxu1 %v1377_v43  ;;  %1285 = vmatpush3.bf16.msra.mxu0 %v1381_v44 }
  0x2e   :  { %1322 = vmatpush3.bf16.msra.mxu1 %v1381_v44  ;;  %1286 = vmatprep.subr.bf16.mxu0 %v1388_v45 }
  0x2f   :  { %1315 = vmatprep.subr.bf16.mxu1 %v1388_v45 }
  0x31   :  { %1287 = vmatpush3.bf16.msra.mxu0 %v1388_v45 }
  0x32   :  { %1323 = vmatpush3.bf16.msra.mxu1 %v1388_v45  ;;  %1288 = vmatprep.subr.bf16.mxu0 %v1395_v50 }
  0x33   :  { %679 = vmatmul.mubr.bf16.gmra.mrb[8].mxu0 %v1379_v46  ;;  %1316 = vmatprep.subr.bf16.mxu1 %v1395_v50 }
  0x34   :  { %776 = vmatmul.mubr.bf16.gmra.mrb[8].mxu1 %v1380_v47  ;;  %686 = vmatprep.mubr.bf16.mxu0 %v1382_v48 }
  0x35   :  { %783 = vmatprep.mubr.bf16.mxu1 %v1384_v49  ;;  %1289 = vmatpush3.bf16.msra.mxu0 %v1395_v50 }
  0x36   :  { %1324 = vmatpush3.bf16.msra.mxu1 %v1395_v50  ;;  %1290 = vmatprep.subr.bf16.mxu0 %v1402_v51 }
  0x37   :  { %1317 = vmatprep.subr.bf16.mxu1 %v1402_v51 }
  0x39   :  { %1291 = vmatpush3.bf16.msra.mxu0 %v1402_v51 }
  0x3a   :  { %1325 = vmatpush3.bf16.msra.mxu1 %v1402_v51  ;;  %1292 = vmatprep.subr.bf16.mxu0 %v1409_v55 }
  0x3b   :  { %687 = vmatmul.mubr.bf16.gmra.mrb[12].mxu0 %v1386_v52  ;;  %1318 = vmatprep.subr.bf16.mxu1 %v1409_v55 }
  0x3c   :  { %784 = vmatmul.mubr.bf16.gmra.mrb[12].mxu1 %v1387_v53  ;;  %694 = vmatprep.mubr.bf16.mxu0 %v1389_v54 }
  0x3d   :  { %791 = vmatprep.mubr.bf16.mxu1 %v1391_v56  ;;  %1293 = vmatpush3.bf16.msra.mxu0 %v1409_v55 }
  0x3e   :  { %1326 = vmatpush3.bf16.msra.mxu1 %v1409_v55  ;;  %1294 = vmatprep.subr.bf16.mxu0 %v1416_v57 }
  0x3f   :  { %1319 = vmatprep.subr.bf16.mxu1 %v1416_v57 }
  0x41   :  { %1295 = vmatpush3.bf16.msra.mxu0 %v1416_v57 }
  0x42   :  { %1327 = vmatpush3.bf16.msra.mxu1 %v1416_v57 }
  0x43   :  { %695 = vmatmul.mubr.bf16.gmra.mrb[16].mxu0 %v1393_v58 }
  0x44   :  { %792 = vmatmul.mubr.bf16.gmra.mrb[16].mxu1 %v1394_v59  ;;  %702 = vmatprep.mubr.bf16.mxu0 %v1396_v60 }
  0x45   :  { %799 = vmatprep.mubr.bf16.mxu1 %v1398_v61 }
  0x4b   :  { %703 = vmatmul.mubr.bf16.gmra.mrb[20].mxu0 %v1400_v62 }
  0x4c   :  { %800 = vmatmul.mubr.bf16.gmra.mrb[20].mxu1 %v1401_v63  ;;  %710 = vmatprep.mubr.bf16.mxu0 %v1403_v0 }
  0x4d   :  { %807 = vmatprep.mubr.bf16.mxu1 %v1405_v1 }
  0x53   :  { %711 = vmatmul.mubr.bf16.gmra.mrb[24].mxu0 %v1407_v2 }
  0x54   :  { %808 = vmatmul.mubr.bf16.gmra.mrb[24].mxu1 %v1408_v3  ;;  %718 = vmatprep.mubr.bf16.mxu0 %v1410_v4 }
  0x55   :  { %815 = vmatprep.mubr.bf16.mxu1 %v1412_v5 }
  0x5b   :  { %719 = vmatmul.mubr.bf16.gmra.mrb[28].mxu0 %v1414_v6 }
  0x5c   :  { %816 = vmatmul.mubr.bf16.gmra.mrb[28].mxu1 %v1415_v7  ;;  %1296 = vmatprep.mubr.bf16.mxu0 %v1417_v8 }
  0x5d   :  { %1304 = vmatprep.mubr.bf16.mxu1 %v1418_v9 }
  0x63   :  { %1297 = vmatmul.mubr.bf16.vlgmr.msra.gmra.mrb[32].mxu0 %v1419_v10 }
  0x64   :  { %1305 = vmatmul.mubr.bf16.vlgmr.msra.gmra.mrb[32].mxu1 %v1420_v11  ;;  %1300 = vmatprep.mubr.bf16.mxu0 %v1421_v12 }
  0x65   :  { %1308 = vmatprep.mubr.bf16.mxu1 %v1422_v13 }
  0x6b   :  { %1301 = vmatmul.mubr.bf16.gmra.mrb[36].mxu0 %v1423_v14 }
  0x6c   :  { %1309 = vmatmul.mubr.bf16.gmra.mrb[36].mxu1 %v1424_v15 }
  0xf6   :  { %v1152_v16 = vpop.f32.mrb[0].mxu0 }
  0xf7   :  { %v1216_v17 = vpop.f32.mrb[0].mxu1  ;;  %v1153_v18 = vpop.f32.mrb[1].mxu0 }
  0xf8   :  { %v1154_v19 = vadd.f32 %v1153_v18, %v1152_v16  ;;  %v1217_v20 = vpop.f32.mrb[1].mxu1  ;;  %v1155_v21 = vpop.f32.mrb[2].mxu0 }
  0xf9   :  { %v1218_v22 = vadd.f32 %v1217_v20, %v1216_v17  ;;  %v1219_v23 = vpop.f32.mrb[2].mxu1  ;;  %v1156_v24 = vpop.f32.mrb[3].mxu0 }
  0xfa   :  { %v1157_v25 = vadd.f32 %v1156_v24, %v1155_v21  ;;  %v1220_v26 = vpop.f32.mrb[3].mxu1 }
  0xfb   :  { %v1221_v27 = vadd.f32 %v1220_v26, %v1219_v23  ;;  %v1690_v28 = vadd.f32 %v1218_v22, %v1154_v19 }
  0xfd   :  { %v1692_v29 = vadd.f32 %v1221_v27, %v1157_v25 }
  0xfe   :  { %v1158_v30 = vpop.f32.mrb[4].mxu0 }
  0xff   :  { %v1222_v31 = vpop.f32.mrb[4].mxu1  ;;  %v1159_v32 = vpop.f32.mrb[5].mxu0 }
 0x100   :  { %v1160_v33 = vadd.f32 %v1159_v32, %v1158_v30  ;;  %v1223_v34 = vpop.f32.mrb[5].mxu1  ;;  %v1161_v35 = vpop.f32.mrb[6].mxu0 }
 0x101   :  { %v1224_v36 = vadd.f32 %v1223_v34, %v1222_v31  ;;  %v1225_v37 = vpop.f32.mrb[6].mxu1  ;;  %v1162_v38 = vpop.f32.mrb[7].mxu0 }
 0x102   :  { %v1163_v39 = vadd.f32 %v1162_v38, %v1161_v35  ;;  %v1226_v40 = vpop.f32.mrb[7].mxu1 }
 0x103   :  { %v1227_v41 = vadd.f32 %v1226_v40, %v1225_v37  ;;  %v1694_v42 = vadd.f32 %v1224_v36, %v1160_v33 }
 0x105   :  { %v1696_v43 = vadd.f32 %v1227_v41, %v1163_v39 }
 0x106   :  { %v1164_v44 = vpop.f32.mrb[8].mxu0 }
 0x107   :  { %v1228_v45 = vpop.f32.mrb[8].mxu1  ;;  %v1165_v46 = vpop.f32.mrb[9].mxu0 }
 0x108   :  { %v1166_v47 = vadd.f32 %v1165_v46, %v1164_v44  ;;  %v1229_v48 = vpop.f32.mrb[9].mxu1  ;;  %v1167_v49 = vpop.f32.mrb[10].mxu0 }
 0x109   :  { %v1230_v50 = vadd.f32 %v1229_v48, %v1228_v45  ;;  %v1231_v51 = vpop.f32.mrb[10].mxu1  ;;  %v1168_v52 = vpop.f32.mrb[11].mxu0 }
 0x10a   :  { %v1169_v53 = vadd.f32 %v1168_v52, %v1167_v49  ;;  %v1232_v54 = vpop.f32.mrb[11].mxu1 }
 0x10b   :  { %v1233_v55 = vadd.f32 %v1232_v54, %v1231_v51  ;;  %v1698_v56 = vadd.f32 %v1230_v50, %v1166_v47 }
 0x10d   :  { %v1700_v57 = vadd.f32 %v1233_v55, %v1169_v53 }
 0x10e   :  { %v1170_v58 = vpop.f32.mrb[12].mxu0 }
 0x10f   :  { %v1234_v59 = vpop.f32.mrb[12].mxu1  ;;  %v1171_v60 = vpop.f32.mrb[13].mxu0 }
 0x110   :  { %v1172_v61 = vadd.f32 %v1171_v60, %v1170_v58  ;;  %v1235_v62 = vpop.f32.mrb[13].mxu1  ;;  %v1173_v63 = vpop.f32.mrb[14].mxu0 }
 0x111   :  { %v1236_v0 = vadd.f32 %v1235_v62, %v1234_v59  ;;  %v1237_v1 = vpop.f32.mrb[14].mxu1  ;;  %v1174_v2 = vpop.f32.mrb[15].mxu0 }
 0x112   :  { %v1175_v3 = vadd.f32 %v1174_v2, %v1173_v63  ;;  %v1238_v4 = vpop.f32.mrb[15].mxu1 }
 0x113   :  { %v1239_v5 = vadd.f32 %v1238_v4, %v1237_v1  ;;  %v1702_v6 = vadd.f32 %v1236_v0, %v1172_v61 }
 0x115   :  { %v1704_v7 = vadd.f32 %v1239_v5, %v1175_v3 }
 0x116   :  { %v1176_v8 = vpop.f32.mrb[16].mxu0 }
 0x117   :  { %v1240_v9 = vpop.f32.mrb[16].mxu1  ;;  %v1177_v10 = vpop.f32.mrb[17].mxu0 }
 0x118   :  { %v1178_v11 = vadd.f32 %v1177_v10, %v1176_v8  ;;  %v1241_v12 = vpop.f32.mrb[17].mxu1  ;;  %v1179_v13 = vpop.f32.mrb[18].mxu0 }
 0x119   :  { %v1242_v14 = vadd.f32 %v1241_v12, %v1240_v9  ;;  %v1243_v15 = vpop.f32.mrb[18].mxu1  ;;  %v1180_v16 = vpop.f32.mrb[19].mxu0  ;;  %v1718_v12 = vld [vmem:[%s1818_s2] ss:$0 sm:$0xff] }
 0x11a   :  { %v1181_v17 = vadd.f32 %v1180_v16, %v1179_v13  ;;  %v1244_v18 = vpop.f32.mrb[19].mxu1 }
 0x11b   :  { %v1245_v19 = vadd.f32 %v1244_v18, %v1243_v15  ;;  %v794_v20 = vadd.f32 %v1242_v14, %v1178_v11 }
 0x11d   :  { %v1706_v21 = vadd.f32 %v1245_v19, %v1181_v17 }
 0x11e   :  { %v1182_v22 = vpop.f32.mrb[20].mxu0 }
 0x11f   :  { %v1246_v23 = vpop.f32.mrb[20].mxu1  ;;  %v1183_v24 = vpop.f32.mrb[21].mxu0 }
 0x120   :  { %v1184_v25 = vadd.f32 %v1183_v24, %v1182_v22  ;;  %v1247_v26 = vpop.f32.mrb[21].mxu1  ;;  %v1185_v27 = vpop.f32.mrb[22].mxu0 }
 0x121   :  { %v1248_v30 = vadd.f32 %v1247_v26, %v1246_v23  ;;  %v1249_v31 = vpop.f32.mrb[22].mxu1  ;;  %v1186_v32 = vpop.f32.mrb[23].mxu0 }
 0x122   :  { %v1187_v33 = vadd.f32 %v1186_v32, %v1185_v27  ;;  %v1250_v34 = vpop.f32.mrb[23].mxu1 }
 0x123   :  { %v1251_v35 = vadd.f32 %v1250_v34, %v1249_v31  ;;  %v802_v36 = vadd.f32 %v1248_v30, %v1184_v25 }
 0x125   :  { %v805_v37 = vadd.f32 %v1251_v35, %v1187_v33 }
 0x126   :  { %v1188_v38 = vpop.f32.mrb[24].mxu0 }
 0x127   :  { %v1252_v39 = vpop.f32.mrb[24].mxu1  ;;  %v1189_v40 = vpop.f32.mrb[25].mxu0 }
 0x128   :  { %v1190_v41 = vadd.f32 %v1189_v40, %v1188_v38  ;;  %v1253_v44 = vpop.f32.mrb[25].mxu1  ;;  %v1191_v45 = vpop.f32.mrb[26].mxu0 }
 0x129   :  { %v1254_v46 = vadd.f32 %v1253_v44, %v1252_v39  ;;  %v1255_v47 = vpop.f32.mrb[26].mxu1  ;;  %v1192_v48 = vpop.f32.mrb[27].mxu0 }
 0x12a   :  { %v1193_v49 = vadd.f32 %v1192_v48, %v1191_v45  ;;  %v1256_v50 = vpop.f32.mrb[27].mxu1 }
 0x12b   :  { %v1257_v51 = vadd.f32 %v1256_v50, %v1255_v47  ;;  %v1708_v52 = vadd.f32 %v1254_v46, %v1190_v41 }
 0x12d   :  { %v1710_v53 = vadd.f32 %v1257_v51, %v1193_v49 }
 0x12e   :  { %v1194_v54 = vpop.f32.mrb[28].mxu0 }
 0x12f   :  { %v1258_v55 = vpop.f32.mrb[28].mxu1  ;;  %v1195_v58 = vpop.f32.mrb[29].mxu0 }
 0x130   :  { %v1196_v59 = vadd.f32 %v1195_v58, %v1194_v54  ;;  %v1259_v60 = vpop.f32.mrb[29].mxu1  ;;  %v1197_v61 = vpop.f32.mrb[30].mxu0 }
 0x131   :  { %v1260_v62 = vadd.f32 %v1259_v60, %v1258_v55  ;;  %v1261_v63 = vpop.f32.mrb[30].mxu1  ;;  %v1198_v0 = vpop.f32.mrb[31].mxu0 }
 0x132   :  { %v1199_v1 = vadd.f32 %v1198_v0, %v1197_v61  ;;  %v1262_v2 = vpop.f32.mrb[31].mxu1 }
 0x133   :  { %v1263_v3 = vadd.f32 %v1262_v2, %v1261_v63  ;;  %v818_v4 = vadd.f32 %v1260_v62, %v1196_v59 }
 0x135   :  { %v1712_v5 = vadd.f32 %v1263_v3, %v1199_v1 }
 0x136   :  { %v1298_v8 = vpop.f32.mrb[32].mxu0 }
 0x137   :  { %v867_v9 = vadd.f32 %v1298_v8, %v1694_v42  ;;  %v1306_v10 = vpop.f32.mrb[32].mxu1  ;;  %v858_v11 = vpop.f32.mrb[33].mxu0  ;;  %v1725_v42 = vld [vmem:[%s1819_s3] ss:$0 sm:$0xff] }
 0x138   :  { %v899_v13 = vadd.f32 %v1306_v10, %v802_v36  ;;  %v859_v14 = vadd.f32 %v858_v11, %v1690_v28  ;;  %v890_v15 = vpop.f32.mrb[33].mxu1  ;;  %v1299_v16 = vpop.f32.mrb[34].mxu0 }
 0x139   :  { %v891_v17 = vadd.f32 %v890_v15, %v794_v20  ;;  %v870_v18 = vadd.f32 %v1299_v16, %v1696_v43  ;;  %v1307_v19 = vpop.f32.mrb[34].mxu1  ;;  %v861_v22 = vpop.f32.mrb[35].mxu0  ;;  %v981_v26 = vmul.f32 %v1718_v12, %v867_v9 }
 0x13a   :  { %v902_v23 = vadd.f32 %v1307_v19, %v805_v37  ;;  %v862_v24 = vadd.f32 %v861_v22, %v1692_v29  ;;  %v893_v25 = vpop.f32.mrb[35].mxu1  ;;  %v989_v27 = vmul.f32 %v1718_v12, %v899_v13  ;;  %v979_v20 = vmul.f32 %v1718_v12, %v859_v14 }
 0x13b   :  { %v894_v28 = vadd.f32 %v893_v25, %v1706_v21  ;;  %v1004_v43 = vadd.f32 %v1725_v42, %v981_v26  ;;  %v987_v30 = vmul.f32 %v1718_v12, %v891_v17  ;;  %v982_v31 = vmul.f32 %v1718_v12, %v870_v18 }
 0x13c   :  { %v1012_v32 = vadd.f32 %v1725_v42, %v989_v27  ;;  %v1002_v33 = vadd.f32 %v1725_v42, %v979_v20  ;;  %v990_v29 = vmul.f32 %v1718_v12, %v902_v23  ;;  %v980_v34 = vmul.f32 %v1718_v12, %v862_v24 }
 0x13d   :  { %v1020_v21 = vmax.f32 %v1004_v43, 0.0  ;;  %v1010_v36 = vadd.f32 %v1725_v42, %v987_v30  ;;  %v1005_v37 = vadd.f32 %v1725_v42, %v982_v31  ;;  %v988_v38 = vmul.f32 %v1718_v12, %v894_v28 }
 0x13e   :  { %v1302_v35 = vpop.f32.mrb[36].mxu0  ;;  %v1028_v41 = vmax.f32 %v1012_v32, 0.0  ;;  %v1018_v44 = vmax.f32 %v1002_v33, 0.0  ;;  %v1013_v45 = vadd.f32 %v1725_v42, %v990_v29  ;;  %v1003_v46 = vadd.f32 %v1725_v42, %v980_v34 }
 0x13f   :  { %v1310_v39 = vpop.f32.mrb[36].mxu1  ;;  %v874_v40 = vpop.f32.mrb[37].mxu0  ;;  %1036 = vst [vmem:[%s1820_s4 + $0x10] sm:$0xff] %v1020_v21  ;;  %v1026_v49 = vmax.f32 %v1010_v36, 0.0  ;;  %v1021_v50 = vmax.f32 %v1005_v37, 0.0  ;;  %v1011_v51 = vadd.f32 %v1725_v42, %v988_v38  ;;  %v883_v54 = vadd.f32 %v1302_v35, %v1702_v6 }
 0x140   :  { %v906_v47 = vpop.f32.mrb[37].mxu1  ;;  %v1303_v48 = vpop.f32.mrb[38].mxu0  ;;  %1044 = vst [vmem:[%s1820_s4 + $0x50] sm:$0xff] %v1028_v41  ;;  %1034 = vst [vmem:[%s1820_s4] sm:$0xff] %v1018_v44  ;;  %v1029_v59 = vmax.f32 %v1013_v45, 0.0  ;;  %v1019_v60 = vmax.f32 %v1003_v46, 0.0  ;;  %v915_v61 = vadd.f32 %v1310_v39, %v818_v4  ;;  %v875_v62 = vadd.f32 %v874_v40, %v1698_v56 }
 0x141   :  { %v1311_v55 = vpop.f32.mrb[38].mxu1  ;;  %v877_v58 = vpop.f32.mrb[39].mxu0  ;;  %1042 = vst [vmem:[%s1820_s4 + $0x40] sm:$0xff] %v1026_v49  ;;  %1037 = vst [vmem:[%s1820_s4 + $0x18] sm:$0xff] %v1021_v50  ;;  %v1027_v6 = vmax.f32 %v1011_v51, 0.0  ;;  %v907_v0 = vadd.f32 %v906_v47, %v1708_v52  ;;  %v886_v1 = vadd.f32 %v1303_v48, %v1704_v7  ;;  %v985_v52 = vmul.f32 %v1718_v12, %v883_v54 }
 0x142   :  { %v909_v63 = vpop.f32.mrb[39].mxu1  ;;  %1045 = vst [vmem:[%s1820_s4 + $0x58] sm:$0xff] %v1029_v59  ;;  %1035 = vst [vmem:[%s1820_s4 + $0x8] sm:$0xff] %v1019_v60  ;;  %v918_v56 = vadd.f32 %v1311_v55, %v1712_v5  ;;  %v878_v2 = vadd.f32 %v877_v58, %v1700_v57  ;;  %v993_v3 = vmul.f32 %v1718_v12, %v915_v61 }
 0x143   :  { %1043 = vst [vmem:[%s1820_s4 + $0x48] sm:$0xff] %v1027_v6  ;;  %v910_v7 = vadd.f32 %v909_v63, %v1710_v53  ;;  %v983_v4 = vmul.f32 %v1718_v12, %v875_v62  ;;  %v1008_v8 = vadd.f32 %v1725_v42, %v985_v52  ;;  %v991_v9 = vmul.f32 %v1718_v12, %v907_v0 }
 0x144   :  { %v986_v5 = vmul.f32 %v1718_v12, %v886_v1  ;;  %v1016_v57 = vadd.f32 %v1725_v42, %v993_v3  ;;  %v994_v11 = vmul.f32 %v1718_v12, %v918_v56  ;;  %v984_v13 = vmul.f32 %v1718_v12, %v878_v2 }
 0x145   :  { %v1006_v10 = vadd.f32 %v1725_v42, %v983_v4  ;;  %v1024_v14 = vmax.f32 %v1008_v8, 0.0  ;;  %v1014_v53 = vadd.f32 %v1725_v42, %v991_v9  ;;  %v992_v16 = vmul.f32 %v1718_v12, %v910_v7 }
 0x146   :  { %v1009_v15 = vadd.f32 %v1725_v42, %v986_v5  ;;  %v1032_v17 = vmax.f32 %v1016_v57, 0.0  ;;  %v1017_v19 = vadd.f32 %v1725_v42, %v994_v11  ;;  %v1007_v22 = vadd.f32 %v1725_v42, %v984_v13 }
 0x147   :  { %v1022_v18 = vmax.f32 %v1006_v10, 0.0  ;;  %1040 = vst [vmem:[%s1820_s4 + $0x30] sm:$0xff] %v1024_v14  ;;  %v1030_v23 = vmax.f32 %v1014_v53, 0.0  ;;  %v1015_v25 = vadd.f32 %v1725_v42, %v992_v16 }
 0x148   :  { %v1025_v24 = vmax.f32 %v1009_v15, 0.0  ;;  %1048 = vst [vmem:[%s1820_s4 + $0x70] sm:$0xff] %v1032_v17  ;;  %v1033_v12 = vmax.f32 %v1017_v19, 0.0  ;;  %v1023_v26 = vmax.f32 %v1007_v22, 0.0 }
 0x149   :  { %1038 = vst [vmem:[%s1820_s4 + $0x20] sm:$0xff] %v1022_v18  ;;  %1046 = vst [vmem:[%s1820_s4 + $0x60] sm:$0xff] %v1030_v23  ;;  %v1031_v28 = vmax.f32 %v1015_v25, 0.0 }
 0x14a   :  { %1041 = vst [vmem:[%s1820_s4 + $0x38] sm:$0xff] %v1025_v24  ;;  %1049 = vst [vmem:[%s1820_s4 + $0x78] sm:$0xff] %v1033_v12 }
 0x14b   :  { %1039 = vst [vmem:[%s1820_s4 + $0x28] sm:$0xff] %v1023_v26  ;;  %1047 = vst [vmem:[%s1820_s4 + $0x68] sm:$0xff] %v1031_v28 }

// kernel: _lambda_.26
= control target key start
LH: loop header
LB: loop body
LE: loop exit
PB: predicated region body
PF: predicated region fallthrough
CT: control target
= control target key end

     0   :  { %s1907_s1 = inlined_call_operand.vmem [shape: bf16[640,128], index: 1, kind: input, shape index: {}]   ;;  %s1908_s0 = inlined_call_operand.vmem [shape: bf16[128,640], index: 0, kind: input, shape index: {}]   ;;  %s1909_s2 = inlined_call_operand.vmem [shape: f32[1,128], index: 2, kind: input, shape index: {}]   ;;  %s1910_s3 = inlined_call_operand.vmem [shape: f32[1,128], index: 3, kind: input, shape index: {}]   ;;  %s1911_s4 = inlined_call_operand.vmem [shape: f32[128,128], index: 4, kind: input, shape index: {}]   ;;  %s1912_s5 = inlined_call_operand.vmem [shape: f32[128,128], index: 5, kind: output, shape index: {}]  }
   0x1   :  { %v1364_v0 = vld [vmem:[%s1907_s1 + $0x40] sm:$0xff]   ;;  %v1368_v4 = vld [vmem:[%s1907_s1 + $0x48] sm:$0xff]   ;;  %v1372_v8 = vld [vmem:[%s1907_s1 + $0x50] sm:$0xff]  }
   0x2   :  { %v1365_v1 = vld [vmem:[%s1907_s1 + $0xc0] sm:$0xff]   ;;  %1171 = vmatprep.subr.bf16.mxu0 %v1364_v0  ;;  %v1369_v5 = vld [vmem:[%s1907_s1 + $0xc8] sm:$0xff]   ;;  %v1373_v9 = vld [vmem:[%s1907_s1 + $0xd0] sm:$0xff]  }
   0x3   :  { %v1366_v2 = vld [vmem:[%s1907_s1] sm:$0xff]   ;;  %1235 = vmatprep.subr.bf16.mxu1 %v1365_v1  ;;  %v1370_v6 = vld [vmem:[%s1907_s1 + $0x8] sm:$0xff]   ;;  %v1374_v10 = vld [vmem:[%s1907_s1 + $0x10] sm:$0xff]  }
   0x4   :  { %v1367_v3 = vld [vmem:[%s1907_s1 + $0x80] sm:$0xff]   ;;  %1172 = vmatpush3.bf16.msra.mxu0 %v1366_v2  ;;  %v1371_v7 = vld [vmem:[%s1907_s1 + $0x88] sm:$0xff]   ;;  %v1375_v11 = vld [vmem:[%s1907_s1 + $0x90] sm:$0xff]  }
   0x5   :  { %1236 = vmatpush3.bf16.msra.mxu1 %v1367_v3  ;;  %1173 = vmatprep.subr.bf16.mxu0 %v1368_v4  ;;  %v1376_v12 = vld [vmem:[%s1907_s1 + $0x58] sm:$0xff]   ;;  %v1380_v16 = vld [vmem:[%s1907_s1 + $0x60] sm:$0xff]   ;;  %v1384_v20 = vld [vmem:[%s1907_s1 + $0x68] sm:$0xff]  }
   0x6   :  { %1237 = vmatprep.subr.bf16.mxu1 %v1369_v5  ;;  %v1377_v13 = vld [vmem:[%s1907_s1 + $0xd8] sm:$0xff]   ;;  %v1381_v17 = vld [vmem:[%s1907_s1 + $0xe0] sm:$0xff]   ;;  %v1385_v21 = vld [vmem:[%s1907_s1 + $0xe8] sm:$0xff]  }
   0x7   :  { %v1378_v14 = vld [vmem:[%s1907_s1 + $0x18] sm:$0xff]   ;;  %v1382_v18 = vld [vmem:[%s1907_s1 + $0x20] sm:$0xff]   ;;  %v1386_v22 = vld [vmem:[%s1907_s1 + $0x28] sm:$0xff]  }
   0x8   :  { %1174 = vmatpush3.bf16.msra.mxu0 %v1370_v6  ;;  %v1379_v15 = vld [vmem:[%s1907_s1 + $0x98] sm:$0xff]   ;;  %v1383_v19 = vld [vmem:[%s1907_s1 + $0xa0] sm:$0xff]   ;;  %v1387_v23 = vld [vmem:[%s1907_s1 + $0xa8] sm:$0xff]  }
   0x9   :  { %1238 = vmatpush3.bf16.msra.mxu1 %v1371_v7  ;;  %1175 = vmatprep.subr.bf16.mxu0 %v1372_v8  ;;  %v1388_v24 = vld [vmem:[%s1907_s1 + $0x70] sm:$0xff]   ;;  %v1392_v28 = vld [vmem:[%s1907_s1 + $0x78] sm:$0xff]   ;;  %v1401_v35 = vld [vmem:[%s1908_s0 + $0xc] ss:$20 sps:$4 sm:$0xff]  }
   0xa   :  { %1239 = vmatprep.subr.bf16.mxu1 %v1373_v9  ;;  %v1389_v25 = vld [vmem:[%s1907_s1 + $0xf0] sm:$0xff]   ;;  %v1393_v29 = vld [vmem:[%s1907_s1 + $0xf8] sm:$0xff]   ;;  %v1402_v36 = vld [vmem:[%s1907_s1 + $0x100] sm:$0xff]   ;;  %762 = vmatprep.mubr.bf16.mxu1 %v1401_v35 }
   0xb   :  { %v1390_v26 = vld [vmem:[%s1907_s1 + $0x30] sm:$0xff]   ;;  %v1394_v30 = vld [vmem:[%s1907_s1 + $0x38] sm:$0xff]   ;;  %v1403_v37 = vld [vmem:[%s1908_s0 + $0x2c] ss:$20 sps:$4 sm:$0xff]  }
   0xc   :  { %1176 = vmatpush3.bf16.msra.mxu0 %v1374_v10  ;;  %v1391_v27 = vld [vmem:[%s1907_s1 + $0xb0] sm:$0xff]   ;;  %v1395_v31 = vld [vmem:[%s1907_s1 + $0xb8] sm:$0xff]   ;;  %v1409_v39 = vld [vmem:[%s1907_s1 + $0x108] sm:$0xff]  }
   0xd   :  { %1240 = vmatpush3.bf16.msra.mxu1 %v1375_v11  ;;  %1177 = vmatprep.subr.bf16.mxu0 %v1376_v12  ;;  %v1396_v32 = vld [vmem:[%s1908_s0] ss:$20 sps:$4 sm:$0xff]   ;;  %v1398_v33 = vld [vmem:[%s1908_s0 + $0x4] ss:$20 sps:$4 sm:$0xff]   ;;  %v1399_v34 = vld [vmem:[%s1908_s0 + $0x8] ss:$20 sps:$4 sm:$0xff]  }
   0xe   :  { %1241 = vmatprep.subr.bf16.mxu1 %v1377_v13  ;;  %665 = vmatprep.mubr.bf16.mxu0 %v1398_v33  ;;  %v1405_v38 = vld [vmem:[%s1908_s0 + $0x34] ss:$20 sps:$4 sm:$0xff]   ;;  %v1408_v41 = vld [vmem:[%s1908_s0 + $0x30] ss:$20 sps:$4 sm:$0xff]   ;;  %v1423_v45 = vld [vmem:[%s1907_s1 + $0x118] sm:$0xff]  }
   0xf   :  { %v1407_v40 = vld [vmem:[%s1908_s0 + $0x28] ss:$20 sps:$4 sm:$0xff]   ;;  %v1416_v44 = vld [vmem:[%s1907_s1 + $0x110] sm:$0xff]   ;;  %v1415_v47 = vld [vmem:[%s1908_s0 + $0x58] ss:$20 sps:$4 sm:$0xff]  }
  0x10   :  { %1178 = vmatpush3.bf16.msra.mxu0 %v1378_v14  ;;  %v1410_v42 = vld [vmem:[%s1908_s0 + $0x54] ss:$20 sps:$4 sm:$0xff]   ;;  %v1412_v43 = vld [vmem:[%s1908_s0 + $0x5c] ss:$20 sps:$4 sm:$0xff]   ;;  %v1419_v49 = vld [vmem:[%s1908_s0 + $0x84] ss:$20 sps:$4 sm:$0xff]  }
  0x11   :  { %1242 = vmatpush3.bf16.msra.mxu1 %v1379_v15  ;;  %1179 = vmatprep.subr.bf16.mxu0 %v1380_v16  ;;  %v1414_v46 = vld [vmem:[%s1908_s0 + $0x50] ss:$20 sps:$4 sm:$0xff]   ;;  %v1437_v51 = vld [vmem:[%s1907_s1 + $0x128] sm:$0xff]   ;;  %v1422_v53 = vld [vmem:[%s1908_s0 + $0x80] ss:$20 sps:$4 sm:$0xff]  }
  0x12   :  { %1243 = vmatprep.subr.bf16.mxu1 %v1381_v17  ;;  %v1417_v48 = vld [vmem:[%s1908_s0 + $0x7c] ss:$20 sps:$4 sm:$0xff]   ;;  %v1430_v50 = vld [vmem:[%s1907_s1 + $0x120] sm:$0xff]   ;;  %v1421_v52 = vld [vmem:[%s1908_s0 + $0x78] ss:$20 sps:$4 sm:$0xff]  }
  0x13   :  { %v1424_v54 = vld [vmem:[%s1908_s0 + $0xa4] ss:$20 sps:$4 sm:$0xff]   ;;  %v1444_v55 = vld [vmem:[%s1907_s1 + $0x130] sm:$0xff]   ;;  %v1426_v56 = vld [vmem:[%s1908_s0 + $0xac] ss:$20 sps:$4 sm:$0xff]  }
  0x14   :  { %1180 = vmatpush3.bf16.msra.mxu0 %v1382_v18  ;;  %v1451_v57 = vld [vmem:[%s1907_s1 + $0x138] sm:$0xff]   ;;  %v1428_v58 = vld [vmem:[%s1908_s0 + $0xa0] ss:$20 sps:$4 sm:$0xff]   ;;  %v1436_v63 = vld [vmem:[%s1908_s0 + $0xd0] ss:$20 sps:$4 sm:$0xff]  }
  0x15   :  { %1244 = vmatpush3.bf16.msra.mxu1 %v1383_v19  ;;  %1181 = vmatprep.subr.bf16.mxu0 %v1384_v20  ;;  %v1429_v59 = vld [vmem:[%s1908_s0 + $0xa8] ss:$20 sps:$4 sm:$0xff]   ;;  %v1431_v60 = vld [vmem:[%s1908_s0 + $0xcc] ss:$20 sps:$4 sm:$0xff]   ;;  %v1442_v2 = vld [vmem:[%s1908_s0 + $0xf0] ss:$20 sps:$4 sm:$0xff]  }
  0x16   :  { %1245 = vmatprep.subr.bf16.mxu1 %v1385_v21  ;;  %v1433_v61 = vld [vmem:[%s1908_s0 + $0xd4] ss:$20 sps:$4 sm:$0xff]   ;;  %v1440_v1 = vld [vmem:[%s1908_s0 + $0xfc] ss:$20 sps:$4 sm:$0xff]   ;;  %v1443_v3 = vld [vmem:[%s1908_s0 + $0xf8] ss:$20 sps:$4 sm:$0xff]  }
  0x17   :  { %v1435_v62 = vld [vmem:[%s1908_s0 + $0xc8] ss:$20 sps:$4 sm:$0xff]   ;;  %v1447_v5 = vld [vmem:[%s1908_s0 + $0x124] ss:$20 sps:$4 sm:$0xff]   ;;  %v1450_v7 = vld [vmem:[%s1908_s0 + $0x120] ss:$20 sps:$4 sm:$0xff]  }
  0x18   :  { %1182 = vmatpush3.bf16.msra.mxu0 %v1386_v22  ;;  %v1438_v0 = vld [vmem:[%s1908_s0 + $0xf4] ss:$20 sps:$4 sm:$0xff]   ;;  %v1445_v4 = vld [vmem:[%s1908_s0 + $0x11c] ss:$20 sps:$4 sm:$0xff]   ;;  %v1449_v6 = vld [vmem:[%s1908_s0 + $0x118] ss:$20 sps:$4 sm:$0xff]  }
  0x19   :  { %1246 = vmatpush3.bf16.msra.mxu1 %v1387_v23  ;;  %1183 = vmatprep.subr.bf16.mxu0 %v1388_v24  ;;  %v1452_v8 = vld [vmem:[%s1908_s0 + $0x10] ss:$20 sps:$4 sm:$0xff]   ;;  %v1454_v10 = vld [vmem:[%s1908_s0 + $0x38] ss:$20 sps:$4 sm:$0xff]   ;;  %v1456_v12 = vld [vmem:[%s1908_s0 + $0x60] ss:$20 sps:$4 sm:$0xff]  }
  0x1a   :  { %1247 = vmatprep.subr.bf16.mxu1 %v1389_v25  ;;  %v1453_v9 = vld [vmem:[%s1908_s0 + $0xb0] ss:$20 sps:$4 sm:$0xff]   ;;  %v1455_v11 = vld [vmem:[%s1908_s0 + $0xd8] ss:$20 sps:$4 sm:$0xff]   ;;  %v1457_v13 = vld [vmem:[%s1908_s0 + $0x100] ss:$20 sps:$4 sm:$0xff]  }
  0x1b   :  { %v1458_v14 = vld [vmem:[%s1908_s0 + $0x88] ss:$20 sps:$4 sm:$0xff]  }
  0x1c   :  { %1184 = vmatpush3.bf16.msra.mxu0 %v1390_v26  ;;  %v1459_v15 = vld [vmem:[%s1908_s0 + $0x128] ss:$20 sps:$4 sm:$0xff]  }
  0x1d   :  { %1248 = vmatpush3.bf16.msra.mxu1 %v1391_v27  ;;  %1185 = vmatprep.subr.bf16.mxu0 %v1392_v28 }
  0x1e   :  { %1249 = vmatprep.subr.bf16.mxu1 %v1393_v29 }
  0x20   :  { %1186 = vmatpush3.bf16.msra.mxu0 %v1394_v30 }
  0x21   :  { %1250 = vmatpush3.bf16.msra.mxu1 %v1395_v31  ;;  %1315 = vmatprep.subr.bf16.mxu0 %v1402_v36 }
  0x22   :  { %1347 = vmatprep.subr.bf16.mxu1 %v1402_v36 }
  0x23   :  { %666 = vmatmul.mubr.bf16.vlgmr.msra.gmra.mrb[0].mxu0 %v1396_v32 }
  0x24   :  { %763 = vmatmul.mubr.bf16.vlgmr.msra.gmra.mrb[0].mxu1 %v1399_v34  ;;  %1316 = vmatpush3.bf16.msra.mxu0 %v1402_v36 }
  0x25   :  { %1355 = vmatpush3.bf16.msra.mxu1 %v1402_v36  ;;  %673 = vmatprep.mubr.bf16.mxu0 %v1403_v37 }
  0x26   :  { %770 = vmatprep.mubr.bf16.mxu1 %v1405_v38  ;;  %1317 = vmatprep.subr.bf16.mxu0 %v1409_v39 }
  0x27   :  { %1348 = vmatprep.subr.bf16.mxu1 %v1409_v39 }
  0x28   :  { %1318 = vmatpush3.bf16.msra.mxu0 %v1409_v39 }
  0x29   :  { %1356 = vmatpush3.bf16.msra.mxu1 %v1409_v39  ;;  %1319 = vmatprep.subr.bf16.mxu0 %v1416_v44 }
  0x2a   :  { %1349 = vmatprep.subr.bf16.mxu1 %v1416_v44 }
  0x2b   :  { %674 = vmatmul.mubr.bf16.gmra.mrb[4].mxu0 %v1407_v40 }
  0x2c   :  { %771 = vmatmul.mubr.bf16.gmra.mrb[4].mxu1 %v1408_v41  ;;  %681 = vmatprep.mubr.bf16.mxu0 %v1410_v42 }
  0x2d   :  { %778 = vmatprep.mubr.bf16.mxu1 %v1412_v43  ;;  %1320 = vmatpush3.bf16.msra.mxu0 %v1416_v44 }
  0x2e   :  { %1357 = vmatpush3.bf16.msra.mxu1 %v1416_v44  ;;  %1321 = vmatprep.subr.bf16.mxu0 %v1423_v45 }
  0x2f   :  { %1350 = vmatprep.subr.bf16.mxu1 %v1423_v45 }
  0x31   :  { %1322 = vmatpush3.bf16.msra.mxu0 %v1423_v45 }
  0x32   :  { %1358 = vmatpush3.bf16.msra.mxu1 %v1423_v45  ;;  %1323 = vmatprep.subr.bf16.mxu0 %v1430_v50 }
  0x33   :  { %682 = vmatmul.mubr.bf16.gmra.mrb[8].mxu0 %v1414_v46  ;;  %1351 = vmatprep.subr.bf16.mxu1 %v1430_v50 }
  0x34   :  { %779 = vmatmul.mubr.bf16.gmra.mrb[8].mxu1 %v1415_v47  ;;  %689 = vmatprep.mubr.bf16.mxu0 %v1417_v48 }
  0x35   :  { %786 = vmatprep.mubr.bf16.mxu1 %v1419_v49  ;;  %1324 = vmatpush3.bf16.msra.mxu0 %v1430_v50 }
  0x36   :  { %1359 = vmatpush3.bf16.msra.mxu1 %v1430_v50  ;;  %1325 = vmatprep.subr.bf16.mxu0 %v1437_v51 }
  0x37   :  { %1352 = vmatprep.subr.bf16.mxu1 %v1437_v51 }
  0x39   :  { %1326 = vmatpush3.bf16.msra.mxu0 %v1437_v51 }
  0x3a   :  { %1360 = vmatpush3.bf16.msra.mxu1 %v1437_v51  ;;  %1327 = vmatprep.subr.bf16.mxu0 %v1444_v55 }
  0x3b   :  { %690 = vmatmul.mubr.bf16.gmra.mrb[12].mxu0 %v1421_v52  ;;  %1353 = vmatprep.subr.bf16.mxu1 %v1444_v55 }
  0x3c   :  { %787 = vmatmul.mubr.bf16.gmra.mrb[12].mxu1 %v1422_v53  ;;  %697 = vmatprep.mubr.bf16.mxu0 %v1424_v54 }
  0x3d   :  { %794 = vmatprep.mubr.bf16.mxu1 %v1426_v56  ;;  %1328 = vmatpush3.bf16.msra.mxu0 %v1444_v55 }
  0x3e   :  { %1361 = vmatpush3.bf16.msra.mxu1 %v1444_v55  ;;  %1329 = vmatprep.subr.bf16.mxu0 %v1451_v57 }
  0x3f   :  { %1354 = vmatprep.subr.bf16.mxu1 %v1451_v57 }
  0x41   :  { %1330 = vmatpush3.bf16.msra.mxu0 %v1451_v57 }
  0x42   :  { %1362 = vmatpush3.bf16.msra.mxu1 %v1451_v57 }
  0x43   :  { %698 = vmatmul.mubr.bf16.gmra.mrb[16].mxu0 %v1428_v58 }
  0x44   :  { %795 = vmatmul.mubr.bf16.gmra.mrb[16].mxu1 %v1429_v59  ;;  %705 = vmatprep.mubr.bf16.mxu0 %v1431_v60 }
  0x45   :  { %802 = vmatprep.mubr.bf16.mxu1 %v1433_v61 }
  0x4b   :  { %706 = vmatmul.mubr.bf16.gmra.mrb[20].mxu0 %v1435_v62 }
  0x4c   :  { %803 = vmatmul.mubr.bf16.gmra.mrb[20].mxu1 %v1436_v63  ;;  %713 = vmatprep.mubr.bf16.mxu0 %v1438_v0 }
  0x4d   :  { %810 = vmatprep.mubr.bf16.mxu1 %v1440_v1 }
  0x53   :  { %714 = vmatmul.mubr.bf16.gmra.mrb[24].mxu0 %v1442_v2 }
  0x54   :  { %811 = vmatmul.mubr.bf16.gmra.mrb[24].mxu1 %v1443_v3  ;;  %721 = vmatprep.mubr.bf16.mxu0 %v1445_v4 }
  0x55   :  { %818 = vmatprep.mubr.bf16.mxu1 %v1447_v5 }
  0x5b   :  { %722 = vmatmul.mubr.bf16.gmra.mrb[28].mxu0 %v1449_v6 }
  0x5c   :  { %819 = vmatmul.mubr.bf16.gmra.mrb[28].mxu1 %v1450_v7  ;;  %1331 = vmatprep.mubr.bf16.mxu0 %v1452_v8 }
  0x5d   :  { %1339 = vmatprep.mubr.bf16.mxu1 %v1453_v9 }
  0x63   :  { %1332 = vmatmul.mubr.bf16.vlgmr.msra.gmra.mrb[32].mxu0 %v1454_v10 }
  0x64   :  { %1340 = vmatmul.mubr.bf16.vlgmr.msra.gmra.mrb[32].mxu1 %v1455_v11  ;;  %1335 = vmatprep.mubr.bf16.mxu0 %v1456_v12 }
  0x65   :  { %1343 = vmatprep.mubr.bf16.mxu1 %v1457_v13 }
  0x6b   :  { %1336 = vmatmul.mubr.bf16.gmra.mrb[36].mxu0 %v1458_v14 }
  0x6c   :  { %1344 = vmatmul.mubr.bf16.gmra.mrb[36].mxu1 %v1459_v15 }
  0xf6   :  { %v1187_v16 = vpop.f32.mrb[0].mxu0 }
  0xf7   :  { %v1251_v17 = vpop.f32.mrb[0].mxu1  ;;  %v1188_v18 = vpop.f32.mrb[1].mxu0 }
  0xf8   :  { %v1189_v19 = vadd.f32 %v1188_v18, %v1187_v16  ;;  %v1252_v20 = vpop.f32.mrb[1].mxu1  ;;  %v1190_v21 = vpop.f32.mrb[2].mxu0 }
  0xf9   :  { %v1253_v22 = vadd.f32 %v1252_v20, %v1251_v17  ;;  %v1254_v23 = vpop.f32.mrb[2].mxu1  ;;  %v1191_v24 = vpop.f32.mrb[3].mxu0 }
  0xfa   :  { %v1192_v25 = vadd.f32 %v1191_v24, %v1190_v21  ;;  %v1255_v26 = vpop.f32.mrb[3].mxu1 }
  0xfb   :  { %v1256_v27 = vadd.f32 %v1255_v26, %v1254_v23  ;;  %v1730_v28 = vadd.f32 %v1253_v22, %v1189_v19 }
  0xfd   :  { %v1732_v29 = vadd.f32 %v1256_v27, %v1192_v25 }
  0xfe   :  { %v1193_v30 = vpop.f32.mrb[4].mxu0 }
  0xff   :  { %v1257_v31 = vpop.f32.mrb[4].mxu1  ;;  %v1194_v32 = vpop.f32.mrb[5].mxu0 }
 0x100   :  { %v1195_v33 = vadd.f32 %v1194_v32, %v1193_v30  ;;  %v1258_v34 = vpop.f32.mrb[5].mxu1  ;;  %v1196_v35 = vpop.f32.mrb[6].mxu0 }
 0x101   :  { %v1259_v36 = vadd.f32 %v1258_v34, %v1257_v31  ;;  %v1260_v37 = vpop.f32.mrb[6].mxu1  ;;  %v1197_v38 = vpop.f32.mrb[7].mxu0 }
 0x102   :  { %v1198_v39 = vadd.f32 %v1197_v38, %v1196_v35  ;;  %v1261_v40 = vpop.f32.mrb[7].mxu1 }
 0x103   :  { %v1262_v41 = vadd.f32 %v1261_v40, %v1260_v37  ;;  %v1734_v42 = vadd.f32 %v1259_v36, %v1195_v33 }
 0x105   :  { %v1736_v43 = vadd.f32 %v1262_v41, %v1198_v39 }
 0x106   :  { %v1199_v44 = vpop.f32.mrb[8].mxu0 }
 0x107   :  { %v1263_v45 = vpop.f32.mrb[8].mxu1  ;;  %v1200_v46 = vpop.f32.mrb[9].mxu0 }
 0x108   :  { %v1201_v47 = vadd.f32 %v1200_v46, %v1199_v44  ;;  %v1264_v48 = vpop.f32.mrb[9].mxu1  ;;  %v1202_v49 = vpop.f32.mrb[10].mxu0 }
 0x109   :  { %v1265_v50 = vadd.f32 %v1264_v48, %v1263_v45  ;;  %v1266_v51 = vpop.f32.mrb[10].mxu1  ;;  %v1203_v52 = vpop.f32.mrb[11].mxu0 }
 0x10a   :  { %v1204_v53 = vadd.f32 %v1203_v52, %v1202_v49  ;;  %v1267_v54 = vpop.f32.mrb[11].mxu1 }
 0x10b   :  { %v1268_v55 = vadd.f32 %v1267_v54, %v1266_v51  ;;  %v1738_v56 = vadd.f32 %v1265_v50, %v1201_v47 }
 0x10d   :  { %v1740_v57 = vadd.f32 %v1268_v55, %v1204_v53 }
 0x10e   :  { %v1205_v58 = vpop.f32.mrb[12].mxu0 }
 0x10f   :  { %v1269_v59 = vpop.f32.mrb[12].mxu1  ;;  %v1206_v60 = vpop.f32.mrb[13].mxu0 }
 0x110   :  { %v1207_v61 = vadd.f32 %v1206_v60, %v1205_v58  ;;  %v1270_v62 = vpop.f32.mrb[13].mxu1  ;;  %v1208_v63 = vpop.f32.mrb[14].mxu0 }
 0x111   :  { %v1271_v0 = vadd.f32 %v1270_v62, %v1269_v59  ;;  %v1272_v1 = vpop.f32.mrb[14].mxu1  ;;  %v1209_v2 = vpop.f32.mrb[15].mxu0 }
 0x112   :  { %v1210_v3 = vadd.f32 %v1209_v2, %v1208_v63  ;;  %v1273_v4 = vpop.f32.mrb[15].mxu1 }
 0x113   :  { %v1274_v5 = vadd.f32 %v1273_v4, %v1272_v1  ;;  %v1742_v6 = vadd.f32 %v1271_v0, %v1207_v61 }
 0x115   :  { %v1744_v7 = vadd.f32 %v1274_v5, %v1210_v3 }
 0x116   :  { %v1211_v8 = vpop.f32.mrb[16].mxu0 }
 0x117   :  { %v1275_v9 = vpop.f32.mrb[16].mxu1  ;;  %v1212_v10 = vpop.f32.mrb[17].mxu0 }
 0x118   :  { %v1213_v11 = vadd.f32 %v1212_v10, %v1211_v8  ;;  %v1276_v12 = vpop.f32.mrb[17].mxu1  ;;  %v1214_v13 = vpop.f32.mrb[18].mxu0 }
 0x119   :  { %v1277_v14 = vadd.f32 %v1276_v12, %v1275_v9  ;;  %v1278_v15 = vpop.f32.mrb[18].mxu1  ;;  %v1215_v16 = vpop.f32.mrb[19].mxu0  ;;  %v1760_v12 = vld [vmem:[%s1909_s2] ss:$0 sm:$0xff] }
 0x11a   :  { %v1216_v17 = vadd.f32 %v1215_v16, %v1214_v13  ;;  %v1279_v18 = vpop.f32.mrb[19].mxu1 }
 0x11b   :  { %v1280_v19 = vadd.f32 %v1279_v18, %v1278_v15  ;;  %v797_v20 = vadd.f32 %v1277_v14, %v1213_v11 }
 0x11d   :  { %v1746_v21 = vadd.f32 %v1280_v19, %v1216_v17 }
 0x11e   :  { %v1217_v22 = vpop.f32.mrb[20].mxu0 }
 0x11f   :  { %v1281_v23 = vpop.f32.mrb[20].mxu1  ;;  %v1218_v24 = vpop.f32.mrb[21].mxu0 }
 0x120   :  { %v1219_v25 = vadd.f32 %v1218_v24, %v1217_v22  ;;  %v1282_v26 = vpop.f32.mrb[21].mxu1  ;;  %v1220_v27 = vpop.f32.mrb[22].mxu0 }
 0x121   :  { %v1283_v30 = vadd.f32 %v1282_v26, %v1281_v23  ;;  %v1284_v31 = vpop.f32.mrb[22].mxu1  ;;  %v1221_v32 = vpop.f32.mrb[23].mxu0 }
 0x122   :  { %v1222_v33 = vadd.f32 %v1221_v32, %v1220_v27  ;;  %v1285_v34 = vpop.f32.mrb[23].mxu1 }
 0x123   :  { %v1286_v35 = vadd.f32 %v1285_v34, %v1284_v31  ;;  %v805_v36 = vadd.f32 %v1283_v30, %v1219_v25  ;;  %v1031_v31 = vld [vmem:[%s1911_s4 + $0x50] sm:$0xff] }
 0x125   :  { %v808_v37 = vadd.f32 %v1286_v35, %v1222_v33  ;;  %v1029_v35 = vld [vmem:[%s1911_s4 + $0x40] sm:$0xff] }
 0x126   :  { %v1223_v38 = vpop.f32.mrb[24].mxu0 }
 0x127   :  { %v1287_v39 = vpop.f32.mrb[24].mxu1  ;;  %v1224_v40 = vpop.f32.mrb[25].mxu0 }
 0x128   :  { %v1225_v41 = vadd.f32 %v1224_v40, %v1223_v38  ;;  %v1288_v44 = vpop.f32.mrb[25].mxu1  ;;  %v1226_v45 = vpop.f32.mrb[26].mxu0 }
 0x129   :  { %v1289_v46 = vadd.f32 %v1288_v44, %v1287_v39  ;;  %v1290_v47 = vpop.f32.mrb[26].mxu1  ;;  %v1227_v48 = vpop.f32.mrb[27].mxu0 }
 0x12a   :  { %v1228_v49 = vadd.f32 %v1227_v48, %v1226_v45  ;;  %v1291_v50 = vpop.f32.mrb[27].mxu1  ;;  %v1032_v45 = vld [vmem:[%s1911_s4 + $0x58] sm:$0xff] }
 0x12b   :  { %v1292_v51 = vadd.f32 %v1291_v50, %v1290_v47  ;;  %v1748_v52 = vadd.f32 %v1289_v46, %v1225_v41  ;;  %v1022_v46 = vld [vmem:[%s1911_s4 + $0x8] sm:$0xff] }
 0x12d   :  { %v1750_v53 = vadd.f32 %v1292_v51, %v1228_v49 }
 0x12e   :  { %v1229_v54 = vpop.f32.mrb[28].mxu0 }
 0x12f   :  { %v1293_v55 = vpop.f32.mrb[28].mxu1  ;;  %v1230_v58 = vpop.f32.mrb[29].mxu0 }
 0x130   :  { %v1231_v59 = vadd.f32 %v1230_v58, %v1229_v54  ;;  %v1294_v60 = vpop.f32.mrb[29].mxu1  ;;  %v1232_v61 = vpop.f32.mrb[30].mxu0  ;;  %v1030_v58 = vld [vmem:[%s1911_s4 + $0x48] sm:$0xff] }
 0x131   :  { %v1295_v62 = vadd.f32 %v1294_v60, %v1293_v55  ;;  %v1296_v63 = vpop.f32.mrb[30].mxu1  ;;  %v1233_v0 = vpop.f32.mrb[31].mxu0 }
 0x132   :  { %v1234_v1 = vadd.f32 %v1233_v0, %v1232_v61  ;;  %v1297_v2 = vpop.f32.mrb[31].mxu1 }
 0x133   :  { %v1298_v3 = vadd.f32 %v1297_v2, %v1296_v63  ;;  %v1752_v4 = vadd.f32 %v1295_v62, %v1231_v59 }
 0x135   :  { %v1754_v5 = vadd.f32 %v1298_v3, %v1234_v1 }
 0x136   :  { %v1333_v8 = vpop.f32.mrb[32].mxu0 }
 0x137   :  { %v870_v9 = vadd.f32 %v1333_v8, %v1734_v42  ;;  %v1341_v10 = vpop.f32.mrb[32].mxu1  ;;  %v861_v11 = vpop.f32.mrb[33].mxu0  ;;  %v1767_v42 = vld [vmem:[%s1910_s3] ss:$0 sm:$0xff] }
 0x138   :  { %v902_v13 = vadd.f32 %v1341_v10, %v805_v36  ;;  %v862_v14 = vadd.f32 %v861_v11, %v1730_v28  ;;  %v893_v15 = vpop.f32.mrb[33].mxu1  ;;  %v1334_v16 = vpop.f32.mrb[34].mxu0  ;;  %v1024_v36 = vld [vmem:[%s1911_s4 + $0x18] sm:$0xff] }
 0x139   :  { %v894_v17 = vadd.f32 %v893_v15, %v797_v20  ;;  %v873_v18 = vadd.f32 %v1334_v16, %v1736_v43  ;;  %v1342_v19 = vpop.f32.mrb[34].mxu1  ;;  %v864_v22 = vpop.f32.mrb[35].mxu0  ;;  %v984_v26 = vmul.f32 %v1760_v12, %v870_v9  ;;  %v1023_v20 = vld [vmem:[%s1911_s4 + $0x10] sm:$0xff] }
 0x13a   :  { %v905_v23 = vadd.f32 %v1342_v19, %v808_v37  ;;  %v865_v24 = vadd.f32 %v864_v22, %v1732_v29  ;;  %v896_v25 = vpop.f32.mrb[35].mxu1  ;;  %v992_v43 = vmul.f32 %v1760_v12, %v902_v13  ;;  %v982_v27 = vmul.f32 %v1760_v12, %v862_v14  ;;  %v1021_v29 = vld [vmem:[%s1911_s4] sm:$0xff] }
 0x13b   :  { %v897_v28 = vadd.f32 %v896_v25, %v1746_v21  ;;  %v1007_v30 = vadd.f32 %v1767_v42, %v984_v26  ;;  %v990_v21 = vmul.f32 %v1760_v12, %v894_v17  ;;  %v985_v32 = vmul.f32 %v1760_v12, %v873_v18  ;;  %v1027_v25 = vld [vmem:[%s1911_s4 + $0x30] sm:$0xff] }
 0x13c   :  { %v1015_v33 = vadd.f32 %v1767_v42, %v992_v43  ;;  %v1005_v34 = vadd.f32 %v1767_v42, %v982_v27  ;;  %v993_v37 = vmul.f32 %v1760_v12, %v905_v23  ;;  %v983_v38 = vmul.f32 %v1760_v12, %v865_v24 }
 0x13d   :  { %v1039_v40 = vadd.f32 %v1023_v20, %v1007_v30  ;;  %v1013_v41 = vadd.f32 %v1767_v42, %v990_v21  ;;  %v1008_v44 = vadd.f32 %v1767_v42, %v985_v32  ;;  %v991_v47 = vmul.f32 %v1760_v12, %v897_v28  ;;  %v1025_v20 = vld [vmem:[%s1911_s4 + $0x20] sm:$0xff] }
 0x13e   :  { %v1337_v39 = vpop.f32.mrb[36].mxu0  ;;  %v1047_v50 = vadd.f32 %v1031_v31, %v1015_v33  ;;  %v1037_v51 = vadd.f32 %v1021_v29, %v1005_v34  ;;  %v1016_v54 = vadd.f32 %v1767_v42, %v993_v37  ;;  %v1006_v55 = vadd.f32 %v1767_v42, %v983_v38  ;;  %v1033_v31 = vld [vmem:[%s1911_s4 + $0x60] sm:$0xff]  ;;  %v1028_v29 = vld [vmem:[%s1911_s4 + $0x38] sm:$0xff]  ;;  %v1026_v37 = vld [vmem:[%s1911_s4 + $0x28] sm:$0xff] }
 0x13f   :  { %v1345_v48 = vpop.f32.mrb[36].mxu1  ;;  %v877_v49 = vpop.f32.mrb[37].mxu0  ;;  %v1055_v61 = vmax.f32 %v1039_v40, 0.0  ;;  %v1045_v62 = vadd.f32 %v1029_v35, %v1013_v41  ;;  %v1040_v63 = vadd.f32 %v1024_v36, %v1008_v44  ;;  %v1014_v0 = vadd.f32 %v1767_v42, %v991_v47  ;;  %v1036_v36 = vld [vmem:[%s1911_s4 + $0x78] sm:$0xff] }
 0x140   :  { %v909_v59 = vpop.f32.mrb[37].mxu1  ;;  %v1338_v60 = vpop.f32.mrb[38].mxu0  ;;  %v1063_v3 = vmax.f32 %v1047_v50, 0.0  ;;  %v1053_v8 = vmax.f32 %v1037_v51, 0.0  ;;  %v1048_v9 = vadd.f32 %v1032_v45, %v1016_v54  ;;  %v1038_v10 = vadd.f32 %v1022_v46, %v1006_v55  ;;  %v1034_v45 = vld [vmem:[%s1911_s4 + $0x68] sm:$0xff] }
 0x141   :  { %v1346_v1 = vpop.f32.mrb[38].mxu1  ;;  %v880_v2 = vpop.f32.mrb[39].mxu0  ;;  %1071 = vst [vmem:[%s1912_s5 + $0x10] sm:$0xff] %v1055_v61  ;;  %v1061_v13 = vmax.f32 %v1045_v62, 0.0  ;;  %v1056_v14 = vmax.f32 %v1040_v63, 0.0  ;;  %v1046_v15 = vadd.f32 %v1030_v58, %v1014_v0  ;;  %v886_v16 = vadd.f32 %v1337_v39, %v1742_v6 }
 0x142   :  { %v912_v11 = vpop.f32.mrb[39].mxu1  ;;  %1079 = vst [vmem:[%s1912_s5 + $0x50] sm:$0xff] %v1063_v3  ;;  %1069 = vst [vmem:[%s1912_s5] sm:$0xff] %v1053_v8  ;;  %v1064_v17 = vmax.f32 %v1048_v9, 0.0  ;;  %v1054_v18 = vmax.f32 %v1038_v10, 0.0  ;;  %v918_v19 = vadd.f32 %v1345_v48, %v1752_v4  ;;  %v878_v22 = vadd.f32 %v877_v49, %v1738_v56 }
 0x143   :  { %1077 = vst [vmem:[%s1912_s5 + $0x40] sm:$0xff] %v1061_v13  ;;  %1072 = vst [vmem:[%s1912_s5 + $0x18] sm:$0xff] %v1056_v14  ;;  %v1062_v6 = vmax.f32 %v1046_v15, 0.0  ;;  %v910_v23 = vadd.f32 %v909_v59, %v1748_v52  ;;  %v889_v24 = vadd.f32 %v1338_v60, %v1744_v7  ;;  %v921_v56 = vadd.f32 %v1346_v1, %v1754_v5 }
 0x144   :  { %1080 = vst [vmem:[%s1912_s5 + $0x58] sm:$0xff] %v1064_v17  ;;  %1070 = vst [vmem:[%s1912_s5 + $0x8] sm:$0xff] %v1054_v18  ;;  %v881_v4 = vadd.f32 %v880_v2, %v1740_v57  ;;  %v988_v52 = vmul.f32 %v1760_v12, %v886_v16  ;;  %v913_v7 = vadd.f32 %v912_v11, %v1750_v53  ;;  %v1035_v57 = vld [vmem:[%s1911_s4 + $0x70] sm:$0xff] }
 0x145   :  { %1078 = vst [vmem:[%s1912_s5 + $0x48] sm:$0xff] %v1062_v6  ;;  %v996_v26 = vmul.f32 %v1760_v12, %v918_v19  ;;  %v986_v28 = vmul.f32 %v1760_v12, %v878_v22  ;;  %v994_v53 = vmul.f32 %v1760_v12, %v910_v23  ;;  %v989_v43 = vmul.f32 %v1760_v12, %v889_v24 }
 0x146   :  { %v1011_v5 = vadd.f32 %v1767_v42, %v988_v52  ;;  %v997_v21 = vmul.f32 %v1760_v12, %v921_v56  ;;  %v987_v32 = vmul.f32 %v1760_v12, %v881_v4  ;;  %v995_v38 = vmul.f32 %v1760_v12, %v913_v7 }
 0x147   :  { %v1019_v27 = vadd.f32 %v1767_v42, %v996_v26  ;;  %v1009_v30 = vadd.f32 %v1767_v42, %v986_v28  ;;  %v1017_v34 = vadd.f32 %v1767_v42, %v994_v53  ;;  %v1012_v35 = vadd.f32 %v1767_v42, %v989_v43 }
 0x148   :  { %v1043_v33 = vadd.f32 %v1027_v25, %v1011_v5  ;;  %v1020_v41 = vadd.f32 %v1767_v42, %v997_v21  ;;  %v1010_v44 = vadd.f32 %v1767_v42, %v987_v32  ;;  %v1018_v49 = vadd.f32 %v1767_v42, %v995_v38 }
 0x149   :  { %v1051_v39 = vadd.f32 %v1035_v57, %v1019_v27  ;;  %v1041_v40 = vadd.f32 %v1025_v20, %v1009_v30  ;;  %v1049_v47 = vadd.f32 %v1033_v31, %v1017_v34  ;;  %v1044_v48 = vadd.f32 %v1028_v29, %v1012_v35 }
 0x14a   :  { %v1059_v46 = vmax.f32 %v1043_v33, 0.0  ;;  %v1052_v54 = vadd.f32 %v1036_v36, %v1020_v41  ;;  %v1042_v55 = vadd.f32 %v1026_v37, %v1010_v44  ;;  %v1050_v59 = vadd.f32 %v1034_v45, %v1018_v49 }
 0x14b   :  { %v1067_v50 = vmax.f32 %v1051_v39, 0.0  ;;  %v1057_v51 = vmax.f32 %v1041_v40, 0.0  ;;  %v1065_v12 = vmax.f32 %v1049_v47, 0.0  ;;  %v1060_v58 = vmax.f32 %v1044_v48, 0.0 }
 0x14c   :  { %1075 = vst [vmem:[%s1912_s5 + $0x30] sm:$0xff] %v1059_v46  ;;  %v1068_v42 = vmax.f32 %v1052_v54, 0.0  ;;  %v1058_v60 = vmax.f32 %v1042_v55, 0.0  ;;  %v1066_v61 = vmax.f32 %v1050_v59, 0.0 }
 0x14d   :  { %1083 = vst [vmem:[%s1912_s5 + $0x70] sm:$0xff] %v1067_v50  ;;  %1073 = vst [vmem:[%s1912_s5 + $0x20] sm:$0xff] %v1057_v51 }
 0x14e   :  { %1081 = vst [vmem:[%s1912_s5 + $0x60] sm:$0xff] %v1065_v12  ;;  %1076 = vst [vmem:[%s1912_s5 + $0x38] sm:$0xff] %v1060_v58 }
 0x14f   :  { %1084 = vst [vmem:[%s1912_s5 + $0x78] sm:$0xff] %v1068_v42  ;;  %1074 = vst [vmem:[%s1912_s5 + $0x28] sm:$0xff] %v1058_v60 }
 0x150   :  { %1082 = vst [vmem:[%s1912_s5 + $0x68] sm:$0xff] %v1066_v61 }

// kernel: _lambda_.30
= control target key start
LH: loop header
LB: loop body
LE: loop exit
PB: predicated region body
PF: predicated region fallthrough
CT: control target
= control target key end

     0   :  { %s996_s1 = inlined_call_operand.vmem [shape: bf16[640,128], index: 1, kind: input, shape index: {}]   ;;  %s997_s0 = inlined_call_operand.vmem [shape: bf16[32,640], index: 0, kind: input, shape index: {}]   ;;  %s998_s2 = inlined_call_operand.vmem [shape: f32[1,128], index: 2, kind: input, shape index: {}]   ;;  %s999_s3 = inlined_call_operand.vmem [shape: f32[1,128], index: 3, kind: input, shape index: {}]   ;;  %s1000_s4 = inlined_call_operand.vmem [shape: f32[32,128], index: 4, kind: output, shape index: {}]  }
   0x1   :  { %v749_v0 = vld [vmem:[%s996_s1 + $0x40] sm:$0xff]   ;;  %v753_v4 = vld [vmem:[%s996_s1 + $0x48] sm:$0xff]   ;;  %v757_v8 = vld [vmem:[%s996_s1 + $0x50] sm:$0xff]  }
   0x2   :  { %v750_v1 = vld [vmem:[%s996_s1 + $0xc0] sm:$0xff]   ;;  %662 = vmatprep.subr.bf16.mxu0 %v749_v0  ;;  %v754_v5 = vld [vmem:[%s996_s1 + $0xc8] sm:$0xff]   ;;  %v758_v9 = vld [vmem:[%s996_s1 + $0xd0] sm:$0xff]  }
   0x3   :  { %v751_v2 = vld [vmem:[%s996_s1] sm:$0xff]   ;;  %690 = vmatprep.subr.bf16.mxu1 %v750_v1  ;;  %v755_v6 = vld [vmem:[%s996_s1 + $0x8] sm:$0xff]   ;;  %v759_v10 = vld [vmem:[%s996_s1 + $0x10] sm:$0xff]  }
   0x4   :  { %v752_v3 = vld [vmem:[%s996_s1 + $0x80] sm:$0xff]   ;;  %663 = vmatpush3.bf16.msra.mxu0 %v751_v2  ;;  %v756_v7 = vld [vmem:[%s996_s1 + $0x88] sm:$0xff]   ;;  %v760_v11 = vld [vmem:[%s996_s1 + $0x90] sm:$0xff]  }
   0x5   :  { %691 = vmatpush3.bf16.msra.mxu1 %v752_v3  ;;  %664 = vmatprep.subr.bf16.mxu0 %v753_v4  ;;  %v761_v12 = vld [vmem:[%s996_s1 + $0x58] sm:$0xff]   ;;  %v765_v16 = vld [vmem:[%s996_s1 + $0x60] sm:$0xff]   ;;  %v769_v20 = vld [vmem:[%s996_s1 + $0x68] sm:$0xff]  }
   0x6   :  { %692 = vmatprep.subr.bf16.mxu1 %v754_v5  ;;  %v762_v13 = vld [vmem:[%s996_s1 + $0xd8] sm:$0xff]   ;;  %v766_v17 = vld [vmem:[%s996_s1 + $0xe0] sm:$0xff]   ;;  %v770_v21 = vld [vmem:[%s996_s1 + $0xe8] sm:$0xff]  }
   0x7   :  { %v763_v14 = vld [vmem:[%s996_s1 + $0x18] sm:$0xff]   ;;  %v767_v18 = vld [vmem:[%s996_s1 + $0x20] sm:$0xff]   ;;  %v771_v22 = vld [vmem:[%s996_s1 + $0x28] sm:$0xff]  }
   0x8   :  { %665 = vmatpush3.bf16.msra.mxu0 %v755_v6  ;;  %v764_v15 = vld [vmem:[%s996_s1 + $0x98] sm:$0xff]   ;;  %v768_v19 = vld [vmem:[%s996_s1 + $0xa0] sm:$0xff]   ;;  %v772_v23 = vld [vmem:[%s996_s1 + $0xa8] sm:$0xff]  }
   0x9   :  { %693 = vmatpush3.bf16.msra.mxu1 %v756_v7  ;;  %666 = vmatprep.subr.bf16.mxu0 %v757_v8  ;;  %v773_v24 = vld [vmem:[%s996_s1 + $0x70] sm:$0xff]   ;;  %v777_v28 = vld [vmem:[%s996_s1 + $0x78] sm:$0xff]   ;;  %v786_v35 = vld [vmem:[%s997_s0 + $0xc] ss:$20 sps:$4 sm:$0xff]  }
   0xa   :  { %694 = vmatprep.subr.bf16.mxu1 %v758_v9  ;;  %v774_v25 = vld [vmem:[%s996_s1 + $0xf0] sm:$0xff]   ;;  %v778_v29 = vld [vmem:[%s996_s1 + $0xf8] sm:$0xff]   ;;  %v787_v36 = vld [vmem:[%s996_s1 + $0x100] sm:$0xff]   ;;  %495 = vmatprep.mubr.bf16.mxu1 %v786_v35 }
   0xb   :  { %v775_v26 = vld [vmem:[%s996_s1 + $0x30] sm:$0xff]   ;;  %v779_v30 = vld [vmem:[%s996_s1 + $0x38] sm:$0xff]   ;;  %v788_v37 = vld [vmem:[%s996_s1 + $0x108] sm:$0xff]  }
   0xc   :  { %667 = vmatpush3.bf16.msra.mxu0 %v759_v10  ;;  %v776_v27 = vld [vmem:[%s996_s1 + $0xb0] sm:$0xff]   ;;  %v780_v31 = vld [vmem:[%s996_s1 + $0xb8] sm:$0xff]   ;;  %v792_v39 = vld [vmem:[%s997_s0 + $0x2c] ss:$20 sps:$4 sm:$0xff]  }
   0xd   :  { %695 = vmatpush3.bf16.msra.mxu1 %v760_v11  ;;  %668 = vmatprep.subr.bf16.mxu0 %v761_v12  ;;  %v781_v32 = vld [vmem:[%s997_s0] ss:$20 sps:$4 sm:$0xff]   ;;  %v783_v33 = vld [vmem:[%s997_s0 + $0x4] ss:$20 sps:$4 sm:$0xff]   ;;  %v784_v34 = vld [vmem:[%s997_s0 + $0x8] ss:$20 sps:$4 sm:$0xff]  }
   0xe   :  { %696 = vmatprep.subr.bf16.mxu1 %v762_v13  ;;  %446 = vmatprep.mubr.bf16.mxu0 %v783_v33  ;;  %v789_v38 = vld [vmem:[%s996_s1 + $0x110] sm:$0xff]   ;;  %v790_v41 = vld [vmem:[%s996_s1 + $0x118] sm:$0xff]   ;;  %v791_v45 = vld [vmem:[%s996_s1 + $0x120] sm:$0xff]  }
   0xf   :  { %v794_v40 = vld [vmem:[%s997_s0 + $0x34] ss:$20 sps:$4 sm:$0xff]   ;;  %v798_v43 = vld [vmem:[%s997_s0 + $0x30] ss:$20 sps:$4 sm:$0xff]   ;;  %v800_v48 = vld [vmem:[%s996_s1 + $0x138] sm:$0xff]  }
  0x10   :  { %669 = vmatpush3.bf16.msra.mxu0 %v763_v14  ;;  %v797_v42 = vld [vmem:[%s997_s0 + $0x28] ss:$20 sps:$4 sm:$0xff]   ;;  %v801_v44 = vld [vmem:[%s997_s0 + $0x10] ss:$20 sps:$4 sm:$0xff]   ;;  %v802_v49 = vld [vmem:[%s997_s0 + $0x38] ss:$20 sps:$4 sm:$0xff]  }
  0x11   :  { %697 = vmatpush3.bf16.msra.mxu1 %v764_v15  ;;  %670 = vmatprep.subr.bf16.mxu0 %v765_v16  ;;  %v796_v46 = vld [vmem:[%s996_s1 + $0x128] sm:$0xff]   ;;  %v799_v47 = vld [vmem:[%s996_s1 + $0x130] sm:$0xff]  }
  0x12   :  { %698 = vmatprep.subr.bf16.mxu1 %v766_v17  ;;  %v660_v17 = vld [vmem:[%s998_s2] ss:$0 sm:$0xff] }
  0x14   :  { %671 = vmatpush3.bf16.msra.mxu0 %v767_v18 }
  0x15   :  { %699 = vmatpush3.bf16.msra.mxu1 %v768_v19  ;;  %672 = vmatprep.subr.bf16.mxu0 %v769_v20 }
  0x16   :  { %700 = vmatprep.subr.bf16.mxu1 %v770_v21 }
  0x18   :  { %673 = vmatpush3.bf16.msra.mxu0 %v771_v22  ;;  %v661_v22 = vld [vmem:[%s999_s3] ss:$0 sm:$0xff] }
  0x19   :  { %701 = vmatpush3.bf16.msra.mxu1 %v772_v23  ;;  %674 = vmatprep.subr.bf16.mxu0 %v773_v24 }
  0x1a   :  { %702 = vmatprep.subr.bf16.mxu1 %v774_v25 }
  0x1c   :  { %675 = vmatpush3.bf16.msra.mxu0 %v775_v26 }
  0x1d   :  { %703 = vmatpush3.bf16.msra.mxu1 %v776_v27  ;;  %676 = vmatprep.subr.bf16.mxu0 %v777_v28 }
  0x1e   :  { %704 = vmatprep.subr.bf16.mxu1 %v778_v29 }
  0x20   :  { %677 = vmatpush3.bf16.msra.mxu0 %v779_v30 }
  0x21   :  { %705 = vmatpush3.bf16.msra.mxu1 %v780_v31  ;;  %728 = vmatprep.subr.bf16.mxu0 %v787_v36 }
  0x23   :  { %447 = vmatmul.mubr.bf16.vlgmr.msra.gmra.mrb[0].mxu0 %v781_v32 }
  0x24   :  { %496 = vmatmul.mubr.bf16.vlgmr.msra.gmra.mrb[0].mxu1 %v784_v34  ;;  %729 = vmatpush3.bf16.msra.mxu0 %v787_v36 }
  0x25   :  { %730 = vmatprep.subr.bf16.mxu0 %v788_v37  ;;  %454 = vmatprep.mubr.bf16.mxu0 %v792_v39 }
  0x26   :  { %503 = vmatprep.mubr.bf16.mxu1 %v794_v40 }
  0x28   :  { %731 = vmatpush3.bf16.msra.mxu0 %v788_v37 }
  0x29   :  { %732 = vmatprep.subr.bf16.mxu0 %v789_v38 }
  0x2b   :  { %455 = vmatmul.mubr.bf16.gmra.mrb[4].mxu0 %v797_v42 }
  0x2c   :  { %504 = vmatmul.mubr.bf16.gmra.mrb[4].mxu1 %v798_v43  ;;  %733 = vmatpush3.bf16.msra.mxu0 %v789_v38 }
  0x2d   :  { %734 = vmatprep.subr.bf16.mxu0 %v790_v41  ;;  %744 = vmatprep.mubr.bf16.mxu0 %v801_v44 }
  0x30   :  { %735 = vmatpush3.bf16.msra.mxu0 %v790_v41 }
  0x31   :  { %736 = vmatprep.subr.bf16.mxu0 %v791_v45 }
  0x34   :  { %737 = vmatpush3.bf16.msra.mxu0 %v791_v45 }
  0x35   :  { %738 = vmatprep.subr.bf16.mxu0 %v796_v46 }
  0x38   :  { %739 = vmatpush3.bf16.msra.mxu0 %v796_v46 }
  0x39   :  { %740 = vmatprep.subr.bf16.mxu0 %v799_v47 }
  0x3c   :  { %741 = vmatpush3.bf16.msra.mxu0 %v799_v47 }
  0x3d   :  { %742 = vmatprep.subr.bf16.mxu0 %v800_v48 }
  0x40   :  { %743 = vmatpush3.bf16.msra.mxu0 %v800_v48 }
  0x43   :  { %745 = vmatmul.mubr.bf16.vlgmr.msra.gmra.mrb[8].mxu0 %v802_v49 }
  0xf6   :  { %v678_v50 = vpop.f32.mrb[0].mxu0 }
  0xf7   :  { %v706_v51 = vpop.f32.mrb[0].mxu1  ;;  %v679_v52 = vpop.f32.mrb[1].mxu0 }
  0xf8   :  { %v680_v53 = vadd.f32 %v679_v52, %v678_v50  ;;  %v707_v54 = vpop.f32.mrb[1].mxu1  ;;  %v681_v55 = vpop.f32.mrb[2].mxu0 }
  0xf9   :  { %v708_v56 = vadd.f32 %v707_v54, %v706_v51  ;;  %v709_v57 = vpop.f32.mrb[2].mxu1  ;;  %v682_v58 = vpop.f32.mrb[3].mxu0 }
  0xfa   :  { %v683_v59 = vadd.f32 %v682_v58, %v681_v55  ;;  %v710_v60 = vpop.f32.mrb[3].mxu1 }
  0xfb   :  { %v711_v61 = vadd.f32 %v710_v60, %v709_v57  ;;  %v498_v62 = vadd.f32 %v708_v56, %v680_v53 }
  0xfd   :  { %v501_v63 = vadd.f32 %v711_v61, %v683_v59 }
  0xfe   :  { %v684_v0 = vpop.f32.mrb[4].mxu0 }
  0xff   :  { %v712_v1 = vpop.f32.mrb[4].mxu1  ;;  %v685_v2 = vpop.f32.mrb[5].mxu0 }
 0x100   :  { %v686_v3 = vadd.f32 %v685_v2, %v684_v0  ;;  %v713_v4 = vpop.f32.mrb[5].mxu1  ;;  %v687_v5 = vpop.f32.mrb[6].mxu0 }
 0x101   :  { %v714_v6 = vadd.f32 %v713_v4, %v712_v1  ;;  %v715_v7 = vpop.f32.mrb[6].mxu1  ;;  %v688_v8 = vpop.f32.mrb[7].mxu0 }
 0x102   :  { %v689_v9 = vadd.f32 %v688_v8, %v687_v5  ;;  %v716_v10 = vpop.f32.mrb[7].mxu1 }
 0x103   :  { %v717_v11 = vadd.f32 %v716_v10, %v715_v7  ;;  %v506_v12 = vadd.f32 %v714_v6, %v686_v3 }
 0x105   :  { %v509_v13 = vadd.f32 %v717_v11, %v689_v9 }
 0x116   :  { %v746_v14 = vpop.f32.mrb[8].mxu0 }
 0x117   :  { %v555_v15 = vadd.f32 %v746_v14, %v506_v12  ;;  %v546_v16 = vpop.f32.mrb[9].mxu0 }
 0x118   :  { %v547_v18 = vadd.f32 %v546_v16, %v498_v62  ;;  %v747_v19 = vpop.f32.mrb[10].mxu0 }
 0x119   :  { %v558_v20 = vadd.f32 %v747_v19, %v509_v13  ;;  %v549_v21 = vpop.f32.mrb[11].mxu0  ;;  %v585_v24 = vmul.f32 %v660_v17, %v555_v15 }
 0x11a   :  { %v550_v23 = vadd.f32 %v549_v21, %v501_v63  ;;  %v583_v25 = vmul.f32 %v660_v17, %v547_v18 }
 0x11b   :  { %v596_v26 = vadd.f32 %v661_v22, %v585_v24  ;;  %v586_v27 = vmul.f32 %v660_v17, %v558_v20 }
 0x11c   :  { %v594_v28 = vadd.f32 %v661_v22, %v583_v25  ;;  %v584_v29 = vmul.f32 %v660_v17, %v550_v23 }
 0x11d   :  { %v600_v30 = vmax.f32 %v596_v26, 0.0  ;;  %v597_v31 = vadd.f32 %v661_v22, %v586_v27 }
 0x11e   :  { %v598_v32 = vmax.f32 %v594_v28, 0.0  ;;  %v595_v33 = vadd.f32 %v661_v22, %v584_v29 }
 0x11f   :  { %604 = vst [vmem:[%s1000_s4 + $0x10] sm:$0xff] %v600_v30  ;;  %v601_v34 = vmax.f32 %v597_v31, 0.0 }
 0x120   :  { %602 = vst [vmem:[%s1000_s4] sm:$0xff] %v598_v32  ;;  %v599_v35 = vmax.f32 %v595_v33, 0.0 }
 0x121   :  { %605 = vst [vmem:[%s1000_s4 + $0x18] sm:$0xff] %v601_v34 }
 0x122   :  { %603 = vst [vmem:[%s1000_s4 + $0x8] sm:$0xff] %v599_v35 }

// kernel: _lambda_.29
= control target key start
LH: loop header
LB: loop body
LE: loop exit
PB: predicated region body
PF: predicated region fallthrough
CT: control target
= control target key end

     0   :  { %s330_s1 = inlined_call_operand.vmem [shape: bf16[128,128], index: 1, kind: input, shape index: {}]   ;;  %s331_s0 = inlined_call_operand.vmem [shape: bf16[32,128], index: 0, kind: input, shape index: {}]   ;;  %s332_s2 = inlined_call_operand.vmem [shape: f32[1,128], index: 2, kind: input, shape index: {}]   ;;  %s333_s3 = inlined_call_operand.vmem [shape: f32[1,128], index: 3, kind: input, shape index: {}]   ;;  %s334_s4 = inlined_call_operand.vmem [shape: f32[32,128], index: 4, kind: output, shape index: {}]  }
   0x1   :  { %v247_v0 = vld [vmem:[%s330_s1] sm:$0xff]   ;;  %v248_v1 = vld [vmem:[%s330_s1 + $0x8] sm:$0xff]   ;;  %v249_v2 = vld [vmem:[%s330_s1 + $0x10] sm:$0xff]  }
   0x2   :  { %226 = vmatprep.subr.bf16.mxu0 %v247_v0  ;;  %v250_v3 = vld [vmem:[%s330_s1 + $0x18] sm:$0xff]   ;;  %v255_v4 = vld [vmem:[%s331_s0] sm:$0xff]   ;;  %v252_v6 = vld [vmem:[%s330_s1 + $0x28] sm:$0xff]  }
   0x3   :  { %227 = vmatpush3.bf16.msra.mxu0 %v247_v0  ;;  %242 = vmatprep.mubr.bf16.mxu0 %v255_v4  ;;  %v251_v5 = vld [vmem:[%s330_s1 + $0x20] sm:$0xff]   ;;  %v253_v7 = vld [vmem:[%s330_s1 + $0x30] sm:$0xff]   ;;  %v254_v8 = vld [vmem:[%s330_s1 + $0x38] sm:$0xff]  }
   0x4   :  { %228 = vmatprep.subr.bf16.mxu0 %v248_v1  ;;  %v256_v9 = vld [vmem:[%s331_s0 + $0x8] sm:$0xff]   ;;  %v214_v11 = vld [vmem:[%s332_s2] ss:$0 sm:$0xff] }
   0x5   :  { %v215_v13 = vld [vmem:[%s333_s3] ss:$0 sm:$0xff] }
   0x7   :  { %229 = vmatpush3.bf16.msra.mxu0 %v248_v1 }
   0x8   :  { %230 = vmatprep.subr.bf16.mxu0 %v249_v2 }
   0xb   :  { %231 = vmatpush3.bf16.msra.mxu0 %v249_v2 }
   0xc   :  { %232 = vmatprep.subr.bf16.mxu0 %v250_v3 }
   0xf   :  { %233 = vmatpush3.bf16.msra.mxu0 %v250_v3 }
  0x10   :  { %234 = vmatprep.subr.bf16.mxu0 %v251_v5 }
  0x13   :  { %235 = vmatpush3.bf16.msra.mxu0 %v251_v5 }
  0x14   :  { %236 = vmatprep.subr.bf16.mxu0 %v252_v6 }
  0x17   :  { %237 = vmatpush3.bf16.msra.mxu0 %v252_v6 }
  0x18   :  { %238 = vmatprep.subr.bf16.mxu0 %v253_v7 }
  0x1b   :  { %239 = vmatpush3.bf16.msra.mxu0 %v253_v7 }
  0x1c   :  { %240 = vmatprep.subr.bf16.mxu0 %v254_v8 }
  0x1f   :  { %241 = vmatpush3.bf16.msra.mxu0 %v254_v8 }
  0x22   :  { %243 = vmatmul.mubr.bf16.vlgmr.msra.gmra.mrb[0].mxu0 %v256_v9 }
  0xf5   :  { %v244_v10 = vpop.f32.mrb[0].mxu0 }
  0xf6   :  { %v144_v12 = vpop.f32.mrb[1].mxu0  ;;  %v183_v15 = vmul.f32 %v244_v10, %v214_v11 }
  0xf7   :  { %v245_v14 = vpop.f32.mrb[2].mxu0  ;;  %v181_v17 = vmul.f32 %v214_v11, %v144_v12 }
  0xf8   :  { %v147_v16 = vpop.f32.mrb[3].mxu0  ;;  %v194_v18 = vadd.f32 %v215_v13, %v183_v15  ;;  %v184_v19 = vmul.f32 %v245_v14, %v214_v11 }
  0xf9   :  { %v192_v20 = vadd.f32 %v215_v13, %v181_v17  ;;  %v182_v21 = vmul.f32 %v214_v11, %v147_v16 }
  0xfa   :  { %198 = vst [vmem:[%s334_s4 + $0x10] sm:$0xff] %v194_v18  ;;  %v195_v22 = vadd.f32 %v215_v13, %v184_v19 }
  0xfb   :  { %196 = vst [vmem:[%s334_s4] sm:$0xff] %v192_v20  ;;  %v193_v23 = vadd.f32 %v215_v13, %v182_v21 }
  0xfc   :  { %199 = vst [vmem:[%s334_s4 + $0x18] sm:$0xff] %v195_v22 }
  0xfd   :  { %197 = vst [vmem:[%s334_s4 + $0x8] sm:$0xff] %v193_v23 }

// kernel: _lambda_.31
= control target key start
LH: loop header
LB: loop body
LE: loop exit
PB: predicated region body
PF: predicated region fallthrough
CT: control target
= control target key end

     0   :  { %s1199_s18 = smov 0   ;;  %s1201_s19 = smov 0   ;;  %s1378_s0 = inlined_call_operand.vmem [shape: bf16[32,1152], index: 0, kind: input, shape index: {}]   ;;  %s1379_s1 = inlined_call_operand.vmem [shape: bf16[1152,128], index: 1, kind: input, shape index: {}]   ;;  %s1380_s2 = inlined_call_operand.vmem [shape: f32[1,128], index: 2, kind: input, shape index: {}]   ;;  %s1381_s3 = inlined_call_operand.vmem [shape: f32[1,128], index: 3, kind: input, shape index: {}]   ;;  %s1382_s4 = inlined_call_operand.vmem [shape: f32[32,128], index: 4, kind: input, shape index: {}]   ;;  %s1383_s5 = inlined_call_operand.vmem [shape: f32[32,128], index: 5, kind: output, shape index: {}]  }
   0x1   :  { %s1203_s20 = smov 0   ;;  %s1205_s21 = smov 0  }
   0x2   :  { %s1207_s22 = smov 0  }
   0x3 LB: > { %s27_s23 = sadd.s32 1, %s1162_s21  ;;  %p50_p1 = scmp.ne.s32.totalorder %s1154_s19, %s1150_s18  ;;  %s1166_s22 = sphi %s1207_s22, %s15_s22   ;;  %s1162_s21 = sphi %s1205_s21, %s1387_s21   ;;  %s1158_s20 = sphi %s1203_s20, %s1386_s20   ;;  %s1154_s19 = sphi %s1201_s19, %s1385_s19   ;;  %s1150_s18 = sphi %s1199_s18, %s1384_s18  }
   0x4   : > { %p28_p0 = scmp.ge.s32.totalorder %s27_s23, 3  ;;  %p51_p2 = scmp.eq.s32.totalorder %s1166_s22, 0 }
   0x5   : > { %s43_s25 = sadd.s32 1, %s1154_s19  ;;  %p944_p5 = scmp.ge.s32.totalorder %s1166_s22, 3 }
   0x6   : > { %s1389_s23 = smov (%p28_p0, %s27_s23), 0  ;;  %p52_p3 = por %p51_p2, %p50_p1 }
   0x7   : > { %s39_s24 = ssub.s32 %s1162_s21, %s1389_s23  ;;  %236 = sbr.rel (%p944_p5) target bundleno = 23 (0x17), region = 28 }
   0x8   : > { %p41_p4 = scmp.eq.s32.totalorder %s39_s24, 0 }
   0xa   : > { %s1234_s26 = scalar_select %p41_p4, %s1154_s19, %s43_s25  }
   0xe   : > { %239 = sbr.rel (!%p52_p3) target bundleno = 23 (0x17), region = 32  ;;  %s241_s27 = sand.u32 (%p52_p3), 1, %s1154_s19  }
   0xf   : > { %s994_s28 = smul.u32 (%p52_p3), 12, %s1162_s21 }
  0x10   : > { %s1053_s29 = smul.u32 (%p52_p3), 48, %s241_s27 }
  0x11   : > { %s249_s7 = scalar_lea.vmem (%p52_p3), %s1378_s0, %s994_s28 }
  0x12   : > { %v264_v0 = vld [vmem:[%s249_s7] sm:$0xff] (%p52_p3)  ;;  %v268_v2 = vld [vmem:[%s249_s7 + $0x48] sm:$0xff] (%p52_p3)  ;;  %s243_s8 = scalar_lea.vmem (%p52_p3), [#allocation2], %s1053_s29  ;;  %v950_v6 = vld [vmem:[%s249_s7 + $0x50] sm:$0xf] (%p52_p3) }
  0x13   : > { %v266_v1 = vld [vmem:[%s249_s7 + $0x24] sm:$0xff] (%p52_p3)  ;;  %265 = vst [vmem:[%s243_s8] sm:$0xff] (%p52_p3), %v264_v0  ;;  %269 = vst [vmem:[%s243_s8 + $0x18] sm:$0xff] (%p52_p3), %v268_v2  ;;  %v270_v3 = vld [vmem:[%s249_s7 + $0x6c] sm:$0xff] (%p52_p3) }
  0x14   : > { %267 = vst [vmem:[%s243_s8 + $0xc] sm:$0xff] (%p52_p3), %v266_v1  ;;  %v946_v4 = vld [vmem:[%s249_s7 + $0x8] sm:$0xf] (%p52_p3)  ;;  %v948_v5 = vld [vmem:[%s249_s7 + $0x2c] sm:$0xf] (%p52_p3)  ;;  %271 = vst [vmem:[%s243_s8 + $0x24] sm:$0xff] (%p52_p3), %v270_v3 }
  0x15   : > { %947 = vst [vmem:[%s243_s8 + $0x8] sm:$0xf] %v946_v4  ;;  %949 = vst [vmem:[%s243_s8 + $0x14] sm:$0xf] %v948_v5  ;;  %v952_v7 = vld [vmem:[%s249_s7 + $0x74] sm:$0xf] }
  0x16   : > { %951 = vst [vmem:[%s243_s8 + $0x20] sm:$0xf] %v950_v6  ;;  %953 = vst [vmem:[%s243_s8 + $0x2c] sm:$0xf] %v952_v7 }
  0x17 PF: > { %p954_p6 = scmp.ge.s32.totalorder %s1166_s22, 1  ;;  %p303_p7 = scmp.lt.s32.totalorder %s1166_s22, 4 }
  0x19   : > { %p304_p8 = pnand %p954_p6, %p303_p7 }
  0x1a   : > { %s310_s9 = sand.u32 (!%p304_p8), 1, %s1150_s18   ;;  %s364_s10 = smul.u32 (!%p304_p8), 48, %s1158_s20 }
  0x1b   : > { %307 = sbr.rel (%p304_p8) target bundleno = 320 (0x140), region = 62  ;;  %p956_p10 = scmp.ne.s32.totalorder (!%p304_p8), %s1158_s20, 0 }
  0x1c   : > { %s1054_s11 = smul.u32 (!%p304_p8), 48, %s310_s9  ;;  %p365_p9 = scmp.lt.s32.totalorder (!%p304_p8), %s364_s10, 143 }
  0x1e   : > { %s1251_s16 = scalar_lea.vmem (!%p304_p8), [#allocation2], %s1054_s11 }
  0x22   : > { %s1391_s10 = smov (!%p365_p9, %s364_s10), 143  ;;  %401 = sbr.rel (%p956_p10) target bundleno = 41 (0x29), region = 70 }
  0x23   : > { %s955_s12 = sshll.u32 %s1391_s10, 2  ;;  %v1168_v8 = vmov (!%p956_p10), 0.0  }
  0x24   : > { %s1249_s15 = scalar_lea.vmem %s1379_s1, %s955_s12  ;;  %402 = vst [vmem:[%s1383_s5] sm:$0xff] (!%p956_p10), %v1168_v8  ;;  %403 = vst [vmem:[%s1383_s5 + $0x8] sm:$0xff] (!%p956_p10), %v1168_v8 }
  0x25   : > { %404 = vst [vmem:[%s1383_s5 + $0x10] sm:$0xff] (!%p956_p10), %v1168_v8  ;;  %405 = vst [vmem:[%s1383_s5 + $0x18] sm:$0xff] (!%p956_p10), %v1168_v8 }
  0x29 PF: > { %v1096_v9 = vld [vmem:[%s1249_s15 + $0x40] sm:$0xff]   ;;  %v1099_v12 = vld [vmem:[%s1249_s15 + $0x48] sm:$0xff]   ;;  %v1102_v15 = vld [vmem:[%s1249_s15 + $0x50] sm:$0xff]   ;;  %p987_p11 = scmp.ne.s32.totalorder %s1158_s20, 2 }
  0x2a   : > { %v1097_v10 = vld [vmem:[%s1249_s15] sm:$0xff]   ;;  %995 = vmatprep.subr.bf16.mxu0 %v1096_v9  ;;  %v1100_v13 = vld [vmem:[%s1249_s15 + $0x8] sm:$0xff]   ;;  %v1103_v16 = vld [vmem:[%s1249_s15 + $0x10] sm:$0xff]  }
  0x2b   : > { %v1098_v11 = vld [vmem:[%s1249_s15 + $0x80] sm:$0xff]   ;;  %996 = vmatpush3.bf16.msra.mxu0 %v1097_v10  ;;  %v1101_v14 = vld [vmem:[%s1249_s15 + $0x88] sm:$0xff]   ;;  %v1104_v17 = vld [vmem:[%s1249_s15 + $0x90] sm:$0xff]  }
  0x2c   : > { %1033 = vmatprep.subr.bf16.mxu1 %v1098_v11  ;;  %997 = vmatprep.subr.bf16.mxu0 %v1099_v12  ;;  %v1105_v18 = vld [vmem:[%s1249_s15 + $0x58] sm:$0xff]   ;;  %v1108_v21 = vld [vmem:[%s1249_s15 + $0x60] sm:$0xff]   ;;  %v1111_v24 = vld [vmem:[%s1249_s15 + $0x68] sm:$0xff]  }
  0x2d   : > { %1034 = vmatpush3.bf16.msra.mxu1 %v1098_v11  ;;  %v1106_v19 = vld [vmem:[%s1249_s15 + $0x18] sm:$0xff]   ;;  %v1110_v22 = vld [vmem:[%s1249_s15 + $0xa0] sm:$0xff]   ;;  %v1113_v25 = vld [vmem:[%s1249_s15 + $0xa8] sm:$0xff]  }
  0x2e   : > { %1035 = vmatprep.subr.bf16.mxu1 %v1101_v14  ;;  %v1107_v20 = vld [vmem:[%s1249_s15 + $0x98] sm:$0xff]   ;;  %v1109_v23 = vld [vmem:[%s1249_s15 + $0x20] sm:$0xff]   ;;  %v1112_v26 = vld [vmem:[%s1249_s15 + $0x28] sm:$0xff]  }
  0x2f   : > { %998 = vmatpush3.bf16.msra.mxu0 %v1100_v13  ;;  %v1114_v27 = vld [vmem:[%s1249_s15 + $0x70] sm:$0xff]   ;;  %v1117_v30 = vld [vmem:[%s1249_s15 + $0x78] sm:$0xff]   ;;  %v406_v45 = vld [vmem:[%s1383_s5] sm:$0xff] }
  0x30   : > { %999 = vmatprep.subr.bf16.mxu0 %v1102_v15  ;;  %v1115_v28 = vld [vmem:[%s1249_s15 + $0x30] sm:$0xff]   ;;  %v1119_v31 = vld [vmem:[%s1249_s15 + $0xb8] sm:$0xff]   ;;  %v407_v50 = vld [vmem:[%s1383_s5 + $0x8] sm:$0xff] }
  0x31   : > { %1036 = vmatpush3.bf16.msra.mxu1 %v1101_v14  ;;  %v1116_v29 = vld [vmem:[%s1249_s15 + $0xb0] sm:$0xff]   ;;  %v1118_v34 = vld [vmem:[%s1249_s15 + $0x38] sm:$0xff]   ;;  %v988_v4 = vld [vmem:[%s1380_s2] ss:$0 sm:$0xff] (!%p987_p11) }
  0x32   : > { %1037 = vmatprep.subr.bf16.mxu1 %v1104_v17  ;;  %v1122_v32 = vld [vmem:[%s1251_s16 + $0x4] ss:$12 sps:$4 sm:$0xff]   ;;  %v1123_v33 = vld [vmem:[%s1251_s16 + $0x8] ss:$12 sps:$4 sm:$0xff]   ;;  %v1120_v35 = vld [vmem:[%s1251_s16] ss:$12 sps:$4 sm:$0xff]  }
  0x33   : > { %1000 = vmatpush3.bf16.msra.mxu0 %v1103_v16  ;;  %674 = vmatprep.mubr.bf16.mxu0 %v1122_v32  ;;  %v1125_v36 = vld [vmem:[%s1251_s16 + $0x1c] ss:$12 sps:$4 sm:$0xff]   ;;  %v1124_v37 = vld [vmem:[%s1251_s16 + $0x20] ss:$12 sps:$4 sm:$0xff]   ;;  %v1127_v38 = vld [vmem:[%s1251_s16 + $0x18] ss:$12 sps:$4 sm:$0xff]  }
  0x34   : > { %1001 = vmatprep.subr.bf16.mxu0 %v1105_v18  ;;  %1049 = vmatprep.mubr.bf16.mxu1 %v1123_v33  ;;  %v408_v59 = vld [vmem:[%s1383_s5 + $0x10] sm:$0xff]  ;;  %v409_v63 = vld [vmem:[%s1383_s5 + $0x18] sm:$0xff]  ;;  %v989_v5 = vld [vmem:[%s1381_s3] ss:$0 sm:$0xff] (!%p987_p11) }
  0x35   : > { %1038 = vmatpush3.bf16.msra.mxu1 %v1104_v17  ;;  %v778_v8 = vld [vmem:[%s1382_s4] sm:$0xff] (!%p987_p11)  ;;  %v779_v13 = vld [vmem:[%s1382_s4 + $0x8] sm:$0xff] (!%p987_p11)  ;;  %v780_v17 = vld [vmem:[%s1382_s4 + $0x10] sm:$0xff] (!%p987_p11) }
  0x36   : > { %1039 = vmatprep.subr.bf16.mxu1 %v1107_v20  ;;  %v781_v18 = vld [vmem:[%s1382_s4 + $0x18] sm:$0xff] (!%p987_p11) }
  0x37   : > { %1002 = vmatpush3.bf16.msra.mxu0 %v1106_v19 }
  0x38   : > { %1003 = vmatprep.subr.bf16.mxu0 %v1108_v21 }
  0x39   : > { %1040 = vmatpush3.bf16.msra.mxu1 %v1107_v20 }
  0x3a   : > { %1041 = vmatprep.subr.bf16.mxu1 %v1110_v22 }
  0x3b   : > { %1004 = vmatpush3.bf16.msra.mxu0 %v1109_v23 }
  0x3c   : > { %1005 = vmatprep.subr.bf16.mxu0 %v1111_v24 }
  0x3d   : > { %1042 = vmatpush3.bf16.msra.mxu1 %v1110_v22 }
  0x3e   : > { %1043 = vmatprep.subr.bf16.mxu1 %v1113_v25 }
  0x3f   : > { %1006 = vmatpush3.bf16.msra.mxu0 %v1112_v26 }
  0x40   : > { %1007 = vmatprep.subr.bf16.mxu0 %v1114_v27 }
  0x41   : > { %1044 = vmatpush3.bf16.msra.mxu1 %v1113_v25 }
  0x42   : > { %1045 = vmatprep.subr.bf16.mxu1 %v1116_v29 }
  0x43   : > { %1008 = vmatpush3.bf16.msra.mxu0 %v1115_v28 }
  0x44   : > { %1009 = vmatprep.subr.bf16.mxu0 %v1117_v30 }
  0x45   : > { %1046 = vmatpush3.bf16.msra.mxu1 %v1116_v29 }
  0x46   : > { %1047 = vmatprep.subr.bf16.mxu1 %v1119_v31 }
  0x47   : > { %1010 = vmatpush3.bf16.msra.mxu0 %v1118_v34 }
  0x49   : > { %1048 = vmatpush3.bf16.msra.mxu1 %v1119_v31 }
  0x4a   : > { %675 = vmatmul.mubr.bf16.vlgmr.msra.gmra.mrb[0].mxu0 %v1120_v35 }
  0x4b   : > { %682 = vmatprep.mubr.bf16.mxu0 %v1125_v36 }
  0x4c   : > { %1050 = vmatmul.mubr.bf16.vlgmr.msra.gmra.mrb[0].mxu1 %v1124_v37 }
  0x52   : > { %683 = vmatmul.mubr.bf16.gmra.mrb[4].mxu0 %v1127_v38 }
 0x11d   : > { %v1011_v39 = vpop.f32.mrb[0].mxu0 }
 0x11e   : > { %v1012_v40 = vpop.f32.mrb[1].mxu0 }
 0x11f   : > { %v1013_v41 = vadd.f32 %v1012_v40, %v1011_v39  ;;  %v1014_v42 = vpop.f32.mrb[2].mxu0  ;;  %v1051_v43 = vpop.f32.mrb[0].mxu1 }
 0x120   : > { %v1015_v44 = vpop.f32.mrb[3].mxu0  ;;  %v725_v46 = vpop.f32.mrb[1].mxu1 }
 0x121   : > { %v1016_v47 = vadd.f32 %v1015_v44, %v1014_v42  ;;  %v726_v48 = vadd.f32 %v1013_v41, %v725_v46  ;;  %v1052_v49 = vpop.f32.mrb[2].mxu1 }
 0x122   : > { %v728_v51 = vpop.f32.mrb[3].mxu1 }
 0x123   : > { %v740_v52 = vadd.f32 %v726_v48, %v406_v45  ;;  %v729_v53 = vadd.f32 %v1016_v47, %v728_v51 }
 0x125   : > { %744 = vst [vmem:[%s1383_s5] sm:$0xff] %v740_v52  ;;  %v741_v54 = vadd.f32 %v729_v53, %v407_v50  ;;  %v1017_v55 = vpop.f32.mrb[4].mxu0 }
 0x126   : > { %v1018_v56 = vpop.f32.mrb[5].mxu0 }
 0x127   : > { %745 = vst [vmem:[%s1383_s5 + $0x8] sm:$0xff] %v741_v54  ;;  %v1019_v57 = vadd.f32 %v1018_v56, %v1017_v55  ;;  %v1020_v58 = vpop.f32.mrb[6].mxu0 }
 0x128   : > { %v1021_v60 = vpop.f32.mrb[7].mxu0 }
 0x129   : > { %v734_v61 = vadd.f32 %v1051_v43, %v1019_v57  ;;  %v1022_v62 = vadd.f32 %v1021_v60, %v1020_v58  ;;  %751 = sbr.rel (%p987_p11) target bundleno = 320 (0x140), region = 74 }
 0x12b   : > { %v742_v0 = vadd.f32 %v734_v61, %v408_v59  ;;  %v737_v1 = vadd.f32 %v1052_v49, %v1022_v62 }
 0x12c   : > { %v752_v3 = vld [vmem:[%s1383_s5] sm:$0xff] (!%p987_p11) }
 0x12d   : > { %746 = vst [vmem:[%s1383_s5 + $0x10] sm:$0xff] %v742_v0  ;;  %v743_v2 = vadd.f32 %v737_v1, %v409_v63  ;;  %v763_v6 = vmul.f32 (!%p987_p11), %v988_v4, %v752_v3 }
 0x12e   : > { %v753_v7 = vld [vmem:[%s1383_s5 + $0x8] sm:$0xff] (!%p987_p11) }
 0x12f   : > { %747 = vst [vmem:[%s1383_s5 + $0x18] sm:$0xff] %v743_v2  ;;  %v764_v9 = vmul.f32 (!%p987_p11), %v988_v4, %v753_v7  ;;  %v774_v12 = vadd.f32 (!%p987_p11), %v989_v5, %v763_v6 }
 0x131   : > { %v775_v16 = vadd.f32 %v989_v5, %v764_v9  ;;  %v782_v19 = vadd.f32 %v778_v8, %v774_v12 }
 0x133   : > { %v783_v22 = vadd.f32 %v779_v13, %v775_v16  ;;  %v786_v23 = vmax.f32 %v782_v19, 0.0 }
 0x134   : > { %v754_v10 = vld [vmem:[%s1383_s5 + $0x10] sm:$0xff] }
 0x135   : > { %v765_v14 = vmul.f32 %v988_v4, %v754_v10  ;;  %v787_v26 = vmax.f32 %v783_v22, 0.0  ;;  %790 = vst [vmem:[%s1383_s5] sm:$0xff] %v786_v23 }
 0x136   : > { %v755_v11 = vld [vmem:[%s1383_s5 + $0x18] sm:$0xff] }
 0x137   : > { %v766_v15 = vmul.f32 %v988_v4, %v755_v11  ;;  %v776_v20 = vadd.f32 %v989_v5, %v765_v14  ;;  %791 = vst [vmem:[%s1383_s5 + $0x8] sm:$0xff] %v787_v26 }
 0x139   : > { %v777_v21 = vadd.f32 %v989_v5, %v766_v15  ;;  %v784_v24 = vadd.f32 %v780_v17, %v776_v20 }
 0x13b   : > { %v785_v25 = vadd.f32 %v781_v18, %v777_v21  ;;  %v788_v27 = vmax.f32 %v784_v24, 0.0 }
 0x13d   : > { %v789_v28 = vmax.f32 %v785_v25, 0.0  ;;  %792 = vst [vmem:[%s1383_s5 + $0x10] sm:$0xff] %v788_v27 }
 0x13f   : > { %793 = vst [vmem:[%s1383_s5 + $0x18] sm:$0xff] %v789_v28 }
 0x140 PF: > { %s15_s22 = sadd.s32 1, %s1166_s22   ;;  %s1384_s18 = smov %s1154_s19 }
 0x141   : > { %p12_p12 = scmp.ge.s32.totalorder %s15_s22, 5   ;;  %s1385_s19 = smov %s1234_s26 }
 0x142   : > { %s1386_s20 = smov %s1162_s21  ;;  %s1387_s21 = smov %s1389_s23 }
 0x143   :  { %14 = sbr.rel (!%p12_p12) target bundleno = 3 (0x3), region = 127 }

// kernel: _lambda_.32
= control target key start
LH: loop header
LB: loop body
LE: loop exit
PB: predicated region body
PF: predicated region fallthrough
CT: control target
= control target key end

     0   :  { %s1107_s15 = smov 0   ;;  %s1109_s16 = smov 0   ;;  %s1274_s0 = inlined_call_operand.vmem [shape: bf16[32,1152], index: 0, kind: input, shape index: {}]   ;;  %s1275_s1 = inlined_call_operand.vmem [shape: bf16[1152,128], index: 1, kind: input, shape index: {}]   ;;  %s1276_s2 = inlined_call_operand.vmem [shape: f32[1,128], index: 2, kind: input, shape index: {}]   ;;  %s1277_s3 = inlined_call_operand.vmem [shape: f32[1,128], index: 3, kind: input, shape index: {}]   ;;  %s1278_s4 = inlined_call_operand.vmem [shape: f32[32,128], index: 4, kind: output, shape index: {}]  }
   0x1   :  { %s1111_s17 = smov 0   ;;  %s1113_s18 = smov 0  }
   0x2   :  { %s1115_s19 = smov 0  }
   0x3 LB: > { %s26_s20 = sadd.s32 1, %s1075_s18  ;;  %p49_p1 = scmp.ne.s32.totalorder %s1067_s16, %s1063_s15  ;;  %s1079_s19 = sphi %s1115_s19, %s14_s19   ;;  %s1075_s18 = sphi %s1113_s18, %s1282_s18   ;;  %s1071_s17 = sphi %s1111_s17, %s1281_s17   ;;  %s1067_s16 = sphi %s1109_s16, %s1280_s16   ;;  %s1063_s15 = sphi %s1107_s15, %s1279_s15  }
   0x4   : > { %p27_p0 = scmp.ge.s32.totalorder %s26_s20, 3  ;;  %p50_p2 = scmp.eq.s32.totalorder %s1079_s19, 0 }
   0x5   : > { %s42_s22 = sadd.s32 1, %s1067_s16  ;;  %p857_p5 = scmp.ge.s32.totalorder %s1079_s19, 3 }
   0x6   : > { %s1284_s20 = smov (%p27_p0, %s26_s20), 0  ;;  %p51_p3 = por %p50_p2, %p49_p1 }
   0x7   : > { %s38_s21 = ssub.s32 %s1075_s18, %s1284_s20  ;;  %195 = sbr.rel (%p857_p5) target bundleno = 23 (0x17), region = 24 }
   0x8   : > { %p40_p4 = scmp.eq.s32.totalorder %s38_s21, 0 }
   0xa   : > { %s1142_s23 = scalar_select %p40_p4, %s1067_s16, %s42_s22  }
   0xe   : > { %198 = sbr.rel (!%p51_p3) target bundleno = 23 (0x17), region = 28  ;;  %s200_s24 = sand.u32 (%p51_p3), 1, %s1067_s16  }
   0xf   : > { %s907_s25 = smul.u32 (%p51_p3), 12, %s1075_s18 }
  0x10   : > { %s966_s26 = smul.u32 (%p51_p3), 48, %s200_s24 }
  0x11   : > { %s208_s29 = scalar_lea.vmem (%p51_p3), %s1274_s0, %s907_s25 }
  0x12   : > { %v223_v0 = vld [vmem:[%s208_s29] sm:$0xff] (%p51_p3)  ;;  %v227_v2 = vld [vmem:[%s208_s29 + $0x48] sm:$0xff] (%p51_p3)  ;;  %s202_s30 = scalar_lea.vmem (%p51_p3), [#allocation2], %s966_s26  ;;  %v863_v6 = vld [vmem:[%s208_s29 + $0x50] sm:$0xf] (%p51_p3) }
  0x13   : > { %v225_v1 = vld [vmem:[%s208_s29 + $0x24] sm:$0xff] (%p51_p3)  ;;  %224 = vst [vmem:[%s202_s30] sm:$0xff] (%p51_p3), %v223_v0  ;;  %228 = vst [vmem:[%s202_s30 + $0x18] sm:$0xff] (%p51_p3), %v227_v2  ;;  %v229_v3 = vld [vmem:[%s208_s29 + $0x6c] sm:$0xff] (%p51_p3) }
  0x14   : > { %226 = vst [vmem:[%s202_s30 + $0xc] sm:$0xff] (%p51_p3), %v225_v1  ;;  %v859_v4 = vld [vmem:[%s208_s29 + $0x8] sm:$0xf] (%p51_p3)  ;;  %v861_v5 = vld [vmem:[%s208_s29 + $0x2c] sm:$0xf] (%p51_p3)  ;;  %230 = vst [vmem:[%s202_s30 + $0x24] sm:$0xff] (%p51_p3), %v229_v3 }
  0x15   : > { %860 = vst [vmem:[%s202_s30 + $0x8] sm:$0xf] %v859_v4  ;;  %862 = vst [vmem:[%s202_s30 + $0x14] sm:$0xf] %v861_v5  ;;  %v865_v7 = vld [vmem:[%s208_s29 + $0x74] sm:$0xf] }
  0x16   : > { %864 = vst [vmem:[%s202_s30 + $0x20] sm:$0xf] %v863_v6  ;;  %866 = vst [vmem:[%s202_s30 + $0x2c] sm:$0xf] %v865_v7 }
  0x17 PF: > { %p867_p6 = scmp.ge.s32.totalorder %s1079_s19, 1  ;;  %p262_p7 = scmp.lt.s32.totalorder %s1079_s19, 4 }
  0x19   : > { %p263_p8 = pnand %p867_p6, %p262_p7 }
  0x1a   : > { %s269_s5 = sand.u32 (!%p263_p8), 1, %s1063_s15   ;;  %s313_s6 = smul.u32 (!%p263_p8), 48, %s1071_s17 }
  0x1b   : > { %266 = sbr.rel (%p263_p8) target bundleno = 318 (0x13e), region = 58  ;;  %p869_p10 = scmp.ne.s32.totalorder (!%p263_p8), %s1071_s17, 0 }
  0x1c   : > { %s967_s7 = smul.u32 (!%p263_p8), 48, %s269_s5  ;;  %p314_p9 = scmp.lt.s32.totalorder (!%p263_p8), %s313_s6, 143 }
  0x1e   : > { %s1159_s12 = scalar_lea.vmem (!%p263_p8), [#allocation2], %s967_s7 }
  0x22   : > { %s1286_s6 = smov (!%p314_p9, %s313_s6), 143  ;;  %341 = sbr.rel (%p869_p10) target bundleno = 41 (0x29), region = 66 }
  0x23   : > { %s868_s8 = sshll.u32 %s1286_s6, 2  ;;  %v1081_v8 = vmov (!%p869_p10), 0.0  }
  0x24   : > { %s1157_s11 = scalar_lea.vmem %s1275_s1, %s868_s8  ;;  %342 = vst [vmem:[%s1278_s4] sm:$0xff] (!%p869_p10), %v1081_v8  ;;  %343 = vst [vmem:[%s1278_s4 + $0x8] sm:$0xff] (!%p869_p10), %v1081_v8 }
  0x25   : > { %344 = vst [vmem:[%s1278_s4 + $0x10] sm:$0xff] (!%p869_p10), %v1081_v8  ;;  %345 = vst [vmem:[%s1278_s4 + $0x18] sm:$0xff] (!%p869_p10), %v1081_v8 }
  0x29 PF: > { %v1009_v9 = vld [vmem:[%s1157_s11 + $0x40] sm:$0xff]   ;;  %v1012_v12 = vld [vmem:[%s1157_s11 + $0x48] sm:$0xff]   ;;  %v1015_v15 = vld [vmem:[%s1157_s11 + $0x50] sm:$0xff]   ;;  %p900_p11 = scmp.ne.s32.totalorder %s1071_s17, 2 }
  0x2a   : > { %v1010_v10 = vld [vmem:[%s1157_s11] sm:$0xff]   ;;  %908 = vmatprep.subr.bf16.mxu0 %v1009_v9  ;;  %v1013_v13 = vld [vmem:[%s1157_s11 + $0x8] sm:$0xff]   ;;  %v1016_v16 = vld [vmem:[%s1157_s11 + $0x10] sm:$0xff]  }
  0x2b   : > { %v1011_v11 = vld [vmem:[%s1157_s11 + $0x80] sm:$0xff]   ;;  %909 = vmatpush3.bf16.msra.mxu0 %v1010_v10  ;;  %v1014_v14 = vld [vmem:[%s1157_s11 + $0x88] sm:$0xff]   ;;  %v1017_v17 = vld [vmem:[%s1157_s11 + $0x90] sm:$0xff]  }
  0x2c   : > { %946 = vmatprep.subr.bf16.mxu1 %v1011_v11  ;;  %910 = vmatprep.subr.bf16.mxu0 %v1012_v12  ;;  %v1018_v18 = vld [vmem:[%s1157_s11 + $0x58] sm:$0xff]   ;;  %v1021_v21 = vld [vmem:[%s1157_s11 + $0x60] sm:$0xff]   ;;  %v1024_v24 = vld [vmem:[%s1157_s11 + $0x68] sm:$0xff]  }
  0x2d   : > { %947 = vmatpush3.bf16.msra.mxu1 %v1011_v11  ;;  %v1019_v19 = vld [vmem:[%s1157_s11 + $0x18] sm:$0xff]   ;;  %v1023_v22 = vld [vmem:[%s1157_s11 + $0xa0] sm:$0xff]   ;;  %v1026_v25 = vld [vmem:[%s1157_s11 + $0xa8] sm:$0xff]  }
  0x2e   : > { %948 = vmatprep.subr.bf16.mxu1 %v1014_v14  ;;  %v1020_v20 = vld [vmem:[%s1157_s11 + $0x98] sm:$0xff]   ;;  %v1022_v23 = vld [vmem:[%s1157_s11 + $0x20] sm:$0xff]   ;;  %v1025_v26 = vld [vmem:[%s1157_s11 + $0x28] sm:$0xff]  }
  0x2f   : > { %911 = vmatpush3.bf16.msra.mxu0 %v1013_v13  ;;  %v1027_v27 = vld [vmem:[%s1157_s11 + $0x70] sm:$0xff]   ;;  %v1030_v30 = vld [vmem:[%s1157_s11 + $0x78] sm:$0xff]   ;;  %v346_v45 = vld [vmem:[%s1278_s4] sm:$0xff] }
  0x30   : > { %912 = vmatprep.subr.bf16.mxu0 %v1015_v15  ;;  %v1028_v28 = vld [vmem:[%s1157_s11 + $0x30] sm:$0xff]   ;;  %v1032_v31 = vld [vmem:[%s1157_s11 + $0xb8] sm:$0xff]   ;;  %v347_v50 = vld [vmem:[%s1278_s4 + $0x8] sm:$0xff] }
  0x31   : > { %949 = vmatpush3.bf16.msra.mxu1 %v1014_v14  ;;  %v1029_v29 = vld [vmem:[%s1157_s11 + $0xb0] sm:$0xff]   ;;  %v1031_v34 = vld [vmem:[%s1157_s11 + $0x38] sm:$0xff]   ;;  %v901_v4 = vld [vmem:[%s1276_s2] ss:$0 sm:$0xff] (!%p900_p11) }
  0x32   : > { %950 = vmatprep.subr.bf16.mxu1 %v1017_v17  ;;  %v1035_v32 = vld [vmem:[%s1159_s12 + $0x4] ss:$12 sps:$4 sm:$0xff]   ;;  %v1036_v33 = vld [vmem:[%s1159_s12 + $0x8] ss:$12 sps:$4 sm:$0xff]   ;;  %v1033_v35 = vld [vmem:[%s1159_s12] ss:$12 sps:$4 sm:$0xff]  }
  0x33   : > { %913 = vmatpush3.bf16.msra.mxu0 %v1016_v16  ;;  %614 = vmatprep.mubr.bf16.mxu0 %v1035_v32  ;;  %v1038_v36 = vld [vmem:[%s1159_s12 + $0x1c] ss:$12 sps:$4 sm:$0xff]   ;;  %v1037_v37 = vld [vmem:[%s1159_s12 + $0x20] ss:$12 sps:$4 sm:$0xff]   ;;  %v1040_v38 = vld [vmem:[%s1159_s12 + $0x18] ss:$12 sps:$4 sm:$0xff]  }
  0x34   : > { %914 = vmatprep.subr.bf16.mxu0 %v1018_v18  ;;  %962 = vmatprep.mubr.bf16.mxu1 %v1036_v33  ;;  %v348_v59 = vld [vmem:[%s1278_s4 + $0x10] sm:$0xff]  ;;  %v349_v63 = vld [vmem:[%s1278_s4 + $0x18] sm:$0xff]  ;;  %v902_v5 = vld [vmem:[%s1277_s3] ss:$0 sm:$0xff] (!%p900_p11) }
  0x35   : > { %951 = vmatpush3.bf16.msra.mxu1 %v1017_v17 }
  0x36   : > { %952 = vmatprep.subr.bf16.mxu1 %v1020_v20 }
  0x37   : > { %915 = vmatpush3.bf16.msra.mxu0 %v1019_v19 }
  0x38   : > { %916 = vmatprep.subr.bf16.mxu0 %v1021_v21 }
  0x39   : > { %953 = vmatpush3.bf16.msra.mxu1 %v1020_v20 }
  0x3a   : > { %954 = vmatprep.subr.bf16.mxu1 %v1023_v22 }
  0x3b   : > { %917 = vmatpush3.bf16.msra.mxu0 %v1022_v23 }
  0x3c   : > { %918 = vmatprep.subr.bf16.mxu0 %v1024_v24 }
  0x3d   : > { %955 = vmatpush3.bf16.msra.mxu1 %v1023_v22 }
  0x3e   : > { %956 = vmatprep.subr.bf16.mxu1 %v1026_v25 }
  0x3f   : > { %919 = vmatpush3.bf16.msra.mxu0 %v1025_v26 }
  0x40   : > { %920 = vmatprep.subr.bf16.mxu0 %v1027_v27 }
  0x41   : > { %957 = vmatpush3.bf16.msra.mxu1 %v1026_v25 }
  0x42   : > { %958 = vmatprep.subr.bf16.mxu1 %v1029_v29 }
  0x43   : > { %921 = vmatpush3.bf16.msra.mxu0 %v1028_v28 }
  0x44   : > { %922 = vmatprep.subr.bf16.mxu0 %v1030_v30 }
  0x45   : > { %959 = vmatpush3.bf16.msra.mxu1 %v1029_v29 }
  0x46   : > { %960 = vmatprep.subr.bf16.mxu1 %v1032_v31 }
  0x47   : > { %923 = vmatpush3.bf16.msra.mxu0 %v1031_v34 }
  0x49   : > { %961 = vmatpush3.bf16.msra.mxu1 %v1032_v31 }
  0x4a   : > { %615 = vmatmul.mubr.bf16.vlgmr.msra.gmra.mrb[0].mxu0 %v1033_v35 }
  0x4b   : > { %622 = vmatprep.mubr.bf16.mxu0 %v1038_v36 }
  0x4c   : > { %963 = vmatmul.mubr.bf16.vlgmr.msra.gmra.mrb[0].mxu1 %v1037_v37 }
  0x52   : > { %623 = vmatmul.mubr.bf16.gmra.mrb[4].mxu0 %v1040_v38 }
 0x11d   : > { %v924_v39 = vpop.f32.mrb[0].mxu0 }
 0x11e   : > { %v925_v40 = vpop.f32.mrb[1].mxu0 }
 0x11f   : > { %v926_v41 = vadd.f32 %v925_v40, %v924_v39  ;;  %v927_v42 = vpop.f32.mrb[2].mxu0  ;;  %v964_v43 = vpop.f32.mrb[0].mxu1 }
 0x120   : > { %v928_v44 = vpop.f32.mrb[3].mxu0  ;;  %v665_v46 = vpop.f32.mrb[1].mxu1 }
 0x121   : > { %v929_v47 = vadd.f32 %v928_v44, %v927_v42  ;;  %v666_v48 = vadd.f32 %v926_v41, %v665_v46  ;;  %v965_v49 = vpop.f32.mrb[2].mxu1 }
 0x122   : > { %v668_v51 = vpop.f32.mrb[3].mxu1 }
 0x123   : > { %v680_v52 = vadd.f32 %v666_v48, %v346_v45  ;;  %v669_v53 = vadd.f32 %v929_v47, %v668_v51 }
 0x125   : > { %684 = vst [vmem:[%s1278_s4] sm:$0xff] %v680_v52  ;;  %v681_v54 = vadd.f32 %v669_v53, %v347_v50  ;;  %v930_v55 = vpop.f32.mrb[4].mxu0 }
 0x126   : > { %v931_v56 = vpop.f32.mrb[5].mxu0 }
 0x127   : > { %685 = vst [vmem:[%s1278_s4 + $0x8] sm:$0xff] %v681_v54  ;;  %v932_v57 = vadd.f32 %v931_v56, %v930_v55  ;;  %v933_v58 = vpop.f32.mrb[6].mxu0 }
 0x128   : > { %v934_v60 = vpop.f32.mrb[7].mxu0 }
 0x129   : > { %v674_v61 = vadd.f32 %v964_v43, %v932_v57  ;;  %v935_v62 = vadd.f32 %v934_v60, %v933_v58  ;;  %691 = sbr.rel (%p900_p11) target bundleno = 318 (0x13e), region = 70 }
 0x12b   : > { %v682_v0 = vadd.f32 %v674_v61, %v348_v59  ;;  %v677_v1 = vadd.f32 %v965_v49, %v935_v62 }
 0x12c   : > { %v692_v3 = vld [vmem:[%s1278_s4] sm:$0xff] (!%p900_p11) }
 0x12d   : > { %686 = vst [vmem:[%s1278_s4 + $0x10] sm:$0xff] %v682_v0  ;;  %v683_v2 = vadd.f32 %v677_v1, %v349_v63  ;;  %v703_v6 = vmul.f32 (!%p900_p11), %v901_v4, %v692_v3 }
 0x12e   : > { %v693_v7 = vld [vmem:[%s1278_s4 + $0x8] sm:$0xff] (!%p900_p11) }
 0x12f   : > { %687 = vst [vmem:[%s1278_s4 + $0x18] sm:$0xff] %v683_v2  ;;  %v704_v10 = vmul.f32 (!%p900_p11), %v901_v4, %v693_v7  ;;  %v714_v13 = vadd.f32 (!%p900_p11), %v902_v5, %v703_v6 }
 0x131   : > { %v715_v14 = vadd.f32 %v902_v5, %v704_v10  ;;  %v718_v17 = vmax.f32 %v714_v13, 0.0 }
 0x133   : > { %v719_v18 = vmax.f32 %v715_v14, 0.0  ;;  %722 = vst [vmem:[%s1278_s4] sm:$0xff] %v718_v17 }
 0x134   : > { %v694_v8 = vld [vmem:[%s1278_s4 + $0x10] sm:$0xff] }
 0x135   : > { %v705_v11 = vmul.f32 %v901_v4, %v694_v8  ;;  %723 = vst [vmem:[%s1278_s4 + $0x8] sm:$0xff] %v719_v18 }
 0x136   : > { %v695_v9 = vld [vmem:[%s1278_s4 + $0x18] sm:$0xff] }
 0x137   : > { %v706_v12 = vmul.f32 %v901_v4, %v695_v9  ;;  %v716_v15 = vadd.f32 %v902_v5, %v705_v11 }
 0x139   : > { %v717_v16 = vadd.f32 %v902_v5, %v706_v12  ;;  %v720_v19 = vmax.f32 %v716_v15, 0.0 }
 0x13b   : > { %v721_v20 = vmax.f32 %v717_v16, 0.0  ;;  %724 = vst [vmem:[%s1278_s4 + $0x10] sm:$0xff] %v720_v19 }
 0x13d   : > { %725 = vst [vmem:[%s1278_s4 + $0x18] sm:$0xff] %v721_v20 }
 0x13e PF: > { %s14_s19 = sadd.s32 1, %s1079_s19   ;;  %s1279_s15 = smov %s1067_s16 }
 0x13f   : > { %p11_p12 = scmp.ge.s32.totalorder %s14_s19, 5   ;;  %s1280_s16 = smov %s1142_s23 }
 0x140   : > { %s1281_s17 = smov %s1075_s18  ;;  %s1282_s18 = smov %s1284_s20 }
 0x141   :  { %13 = sbr.rel (!%p11_p12) target bundleno = 3 (0x3), region = 120 }

// kernel: _lambda_.35
= control target key start
LH: loop header
LB: loop body
LE: loop exit
PB: predicated region body
PF: predicated region fallthrough
CT: control target
= control target key end

     0   :  { %s1217_s15 = smov 0   ;;  %s1219_s16 = smov 0   ;;  %s1405_s0 = inlined_call_operand.vmem [shape: bf16[16,1152], index: 0, kind: input, shape index: {}]   ;;  %s1406_s1 = inlined_call_operand.vmem [shape: bf16[1152,256], index: 1, kind: input, shape index: {}]   ;;  %s1407_s2 = inlined_call_operand.vmem [shape: f32[1,256], index: 2, kind: input, shape index: {}]   ;;  %s1408_s3 = inlined_call_operand.vmem [shape: f32[1,256], index: 3, kind: input, shape index: {}]   ;;  %s1409_s4 = inlined_call_operand.vmem [shape: f32[16,256], index: 4, kind: output, shape index: {}]  }
   0x1   :  { %s1221_s17 = smov 0   ;;  %s1223_s18 = smov 0  }
   0x2   :  { %s1225_s19 = smov 0  }
   0x3 LB: > { %s26_s20 = sadd.s32 1, %s1184_s18  ;;  %p49_p1 = scmp.ne.s32.totalorder %s1176_s16, %s1172_s15  ;;  %s1188_s19 = sphi %s1225_s19, %s14_s19   ;;  %s1184_s18 = sphi %s1223_s18, %s1413_s18   ;;  %s1180_s17 = sphi %s1221_s17, %s1412_s17   ;;  %s1176_s16 = sphi %s1219_s16, %s1411_s16   ;;  %s1172_s15 = sphi %s1217_s15, %s1410_s15  }
   0x4   : > { %p27_p0 = scmp.ge.s32.totalorder %s26_s20, 3  ;;  %p50_p2 = scmp.eq.s32.totalorder %s1188_s19, 0 }
   0x5   : > { %s42_s22 = sadd.s32 1, %s1176_s16  ;;  %p958_p5 = scmp.ge.s32.totalorder %s1188_s19, 3 }
   0x6   : > { %s1415_s20 = smov (%p27_p0, %s26_s20), 0  ;;  %p51_p3 = por %p50_p2, %p49_p1 }
   0x7   : > { %s38_s21 = ssub.s32 %s1184_s18, %s1415_s20  ;;  %199 = sbr.rel (%p958_p5) target bundleno = 21 (0x15), region = 24 }
   0x8   : > { %p40_p4 = scmp.eq.s32.totalorder %s38_s21, 0 }
   0xa   : > { %s1252_s23 = scalar_select %p40_p4, %s1176_s16, %s42_s22  }
   0xe   : > { %202 = sbr.rel (!%p51_p3) target bundleno = 21 (0x15), region = 28  ;;  %s204_s24 = sand.u32 (%p51_p3), 1, %s1176_s16  }
   0xf   : > { %s1024_s25 = smul.u32 (%p51_p3), 12, %s1184_s18 }
  0x10   : > { %s1030_s26 = smul.u32 (%p51_p3), 24, %s204_s24 }
  0x11   : > { %s212_s29 = scalar_lea.vmem (%p51_p3), %s1405_s0, %s1024_s25 }
  0x12   : > { %v227_v0 = vld [vmem:[%s212_s29] sm:$0xff] (%p51_p3)  ;;  %v960_v2 = vld [vmem:[%s212_s29 + $0x8] sm:$0xf] (%p51_p3)  ;;  %s206_s30 = scalar_lea.vmem (%p51_p3), [#allocation2], %s1030_s26  ;;  %v962_v3 = vld [vmem:[%s212_s29 + $0x2c] sm:$0xf] (%p51_p3) }
  0x13   : > { %v229_v1 = vld [vmem:[%s212_s29 + $0x24] sm:$0xff] (%p51_p3)  ;;  %228 = vst [vmem:[%s206_s30] sm:$0xff] (%p51_p3), %v227_v0  ;;  %961 = vst [vmem:[%s206_s30 + $0x8] sm:$0xf] (%p51_p3), %v960_v2 }
  0x14   : > { %230 = vst [vmem:[%s206_s30 + $0xc] sm:$0xff] (%p51_p3), %v229_v1  ;;  %963 = vst [vmem:[%s206_s30 + $0x14] sm:$0xf] (%p51_p3), %v962_v3 }
  0x15 PF: > { %p964_p6 = scmp.ge.s32.totalorder %s1188_s19, 1  ;;  %p261_p7 = scmp.lt.s32.totalorder %s1188_s19, 4 }
  0x17   : > { %p262_p8 = pnand %p964_p6, %p261_p7 }
  0x18   : > { %s268_s5 = sand.u32 (!%p262_p8), 1, %s1172_s15   ;;  %s318_s6 = smul.u32 (!%p262_p8), 48, %s1180_s17 }
  0x19   : > { %265 = sbr.rel (%p262_p8) target bundleno = 338 (0x152), region = 58  ;;  %p967_p10 = scmp.ne.s32.totalorder (!%p262_p8), %s1180_s17, 0 }
  0x1a   : > { %s1031_s7 = smul.u32 (!%p262_p8), 24, %s268_s5  ;;  %p320_p9 = scmp.lt.s32.totalorder (!%p262_p8), %s318_s6, 143 }
  0x1c   : > { %s1269_s12 = scalar_lea.vmem (!%p262_p8), [#allocation2], %s1031_s7 }
  0x20   : > { %s1417_s6 = smov (!%p320_p9, %s318_s6), 143  ;;  %356 = sbr.rel (%p967_p10) target bundleno = 39 (0x27), region = 66 }
  0x21   : > { %s1025_s8 = sshll.u32 %s1417_s6, 3  ;;  %v1190_v4 = vmov (!%p967_p10), 0.0  }
  0x22   : > { %s1267_s11 = scalar_lea.vmem %s1406_s1, %s1025_s8  ;;  %357 = vst [vmem:[%s1409_s4] sm:$0xff] (!%p967_p10), %v1190_v4  ;;  %358 = vst [vmem:[%s1409_s4 + $0x8] sm:$0xff] (!%p967_p10), %v1190_v4 }
  0x23   : > { %359 = vst [vmem:[%s1409_s4 + $0x10] sm:$0xff] (!%p967_p10), %v1190_v4  ;;  %360 = vst [vmem:[%s1409_s4 + $0x18] sm:$0xff] (!%p967_p10), %v1190_v4 }
  0x27 PF: > { %v1074_v5 = vld [vmem:[%s1267_s11 + $0x4] ss:$8 sps:$4 sm:$0xff]   ;;  %v1076_v6 = vld [vmem:[%s1267_s11] ss:$8 sps:$4 sm:$0xff]   ;;  %v1191_v7 = vmov 0   ;;  %p1019_p11 = scmp.ne.s32.totalorder %s1180_s17, 2 }
  0x28   : > { %748 = vmatprep.mubr.bf16.mxu0 %v1191_v7  ;;  %673 = vmatprep.subr.bf16.mxu1 %v1074_v5  ;;  %v1077_v8 = vld [vmem:[%s1267_s11 + $0x14] ss:$8 sps:$4 sm:$0xff]   ;;  %v1079_v9 = vld [vmem:[%s1267_s11 + $0x10] ss:$8 sps:$4 sm:$0xff]   ;;  %v1080_v10 = vld [vmem:[%s1267_s11 + $0x24] ss:$8 sps:$4 sm:$0xff]  }
  0x29   : > { %674 = vmatpush1.bf16.msra.mxu1 %v1076_v6  ;;  %v1082_v11 = vld [vmem:[%s1267_s11 + $0x20] ss:$8 sps:$4 sm:$0xff]   ;;  %v1083_v12 = vld [vmem:[%s1267_s11 + $0x34] ss:$8 sps:$4 sm:$0xff]   ;;  %v1085_v13 = vld [vmem:[%s1267_s11 + $0x30] ss:$8 sps:$4 sm:$0xff]  }
  0x2a   : > { %675 = vmatprep.subr.bf16.mxu1 %v1077_v8  ;;  %v1098_v14 = vld [vmem:[%s1267_s11 + $0x104] ss:$8 sps:$4 sm:$0xff]   ;;  %v1100_v15 = vld [vmem:[%s1267_s11 + $0x100] ss:$8 sps:$4 sm:$0xff]   ;;  %v1104_v17 = vld [vmem:[%s1267_s11 + $0x114] ss:$8 sps:$4 sm:$0xff]  }
  0x2b   : > { %v1086_v16 = vld [vmem:[%s1267_s11 + $0x44] ss:$8 sps:$4 sm:$0xff]   ;;  %716 = vmatprep.subr.bf16.mxu0 %v1098_v14  ;;  %v1106_v18 = vld [vmem:[%s1267_s11 + $0x110] ss:$8 sps:$4 sm:$0xff]   ;;  %v1088_v19 = vld [vmem:[%s1267_s11 + $0x40] ss:$8 sps:$4 sm:$0xff]  }
  0x2c   : > { %717 = vmatpush1.bf16.msra.mxu0 %v1100_v15  ;;  %v1089_v20 = vld [vmem:[%s1267_s11 + $0x54] ss:$8 sps:$4 sm:$0xff]   ;;  %v1110_v21 = vld [vmem:[%s1267_s11 + $0x124] ss:$8 sps:$4 sm:$0xff]   ;;  %v1112_v22 = vld [vmem:[%s1267_s11 + $0x120] ss:$8 sps:$4 sm:$0xff]  }
  0x2d   : > { %676 = vmatpush1.bf16.msra.mxu1 %v1079_v9  ;;  %718 = vmatprep.subr.bf16.mxu0 %v1104_v17  ;;  %v1091_v23 = vld [vmem:[%s1267_s11 + $0x50] ss:$8 sps:$4 sm:$0xff]   ;;  %v1116_v24 = vld [vmem:[%s1267_s11 + $0x134] ss:$8 sps:$4 sm:$0xff]   ;;  %v1092_v25 = vld [vmem:[%s1267_s11 + $0x64] ss:$8 sps:$4 sm:$0xff]  }
  0x2e   : > { %677 = vmatprep.subr.bf16.mxu1 %v1080_v10  ;;  %v1118_v26 = vld [vmem:[%s1267_s11 + $0x130] ss:$8 sps:$4 sm:$0xff]   ;;  %v1094_v27 = vld [vmem:[%s1267_s11 + $0x60] ss:$8 sps:$4 sm:$0xff]   ;;  %v1122_v28 = vld [vmem:[%s1267_s11 + $0x144] ss:$8 sps:$4 sm:$0xff]  }
  0x2f   : > { %v1095_v29 = vld [vmem:[%s1267_s11 + $0x74] ss:$8 sps:$4 sm:$0xff]   ;;  %v1124_v30 = vld [vmem:[%s1267_s11 + $0x140] ss:$8 sps:$4 sm:$0xff]   ;;  %v1097_v31 = vld [vmem:[%s1267_s11 + $0x70] ss:$8 sps:$4 sm:$0xff]  }
  0x30   : > { %719 = vmatpush1.bf16.msra.mxu0 %v1106_v18  ;;  %v1128_v32 = vld [vmem:[%s1267_s11 + $0x154] ss:$8 sps:$4 sm:$0xff]   ;;  %v1101_v33 = vld [vmem:[%s1267_s11 + $0x84] ss:$8 sps:$4 sm:$0xff]   ;;  %v1130_v34 = vld [vmem:[%s1267_s11 + $0x150] ss:$8 sps:$4 sm:$0xff]  }
  0x31   : > { %678 = vmatpush1.bf16.msra.mxu1 %v1082_v11  ;;  %720 = vmatprep.subr.bf16.mxu0 %v1110_v21  ;;  %v1103_v35 = vld [vmem:[%s1267_s11 + $0x80] ss:$8 sps:$4 sm:$0xff]   ;;  %v1134_v36 = vld [vmem:[%s1267_s11 + $0x164] ss:$8 sps:$4 sm:$0xff]   ;;  %v1107_v37 = vld [vmem:[%s1267_s11 + $0x94] ss:$8 sps:$4 sm:$0xff]  }
  0x32   : > { %679 = vmatprep.subr.bf16.mxu1 %v1083_v12  ;;  %v1136_v38 = vld [vmem:[%s1267_s11 + $0x160] ss:$8 sps:$4 sm:$0xff]   ;;  %v1109_v40 = vld [vmem:[%s1267_s11 + $0x90] ss:$8 sps:$4 sm:$0xff]   ;;  %v1140_v41 = vld [vmem:[%s1267_s11 + $0x174] ss:$8 sps:$4 sm:$0xff]  }
  0x33   : > { %v1149_v39 = vld [vmem:[%s1269_s12 + $0x4] ss:$12 sps:$4 sm:$0xff]   ;;  %v1146_v46 = vld [vmem:[%s1269_s12 + $0x8] ss:$12 sps:$4 sm:$0xff]   ;;  %v1147_v56 = vld [vmem:[%s1269_s12] ss:$12 sps:$4 sm:$0xff]  }
  0x34   : > { %721 = vmatpush1.bf16.msra.mxu0 %v1112_v22  ;;  %v1113_v42 = vld [vmem:[%s1267_s11 + $0xa4] ss:$8 sps:$4 sm:$0xff]   ;;  %705 = vmatprep.mubr.bf16.mxu1 %v1149_v39  ;;  %v1142_v43 = vld [vmem:[%s1267_s11 + $0x170] ss:$8 sps:$4 sm:$0xff]   ;;  %v1115_v44 = vld [vmem:[%s1267_s11 + $0xa0] ss:$8 sps:$4 sm:$0xff]  }
  0x35   : > { %680 = vmatpush1.bf16.msra.mxu1 %v1085_v13  ;;  %722 = vmatprep.subr.bf16.mxu0 %v1116_v24  ;;  %v1119_v45 = vld [vmem:[%s1267_s11 + $0xb4] ss:$8 sps:$4 sm:$0xff]   ;;  %v1121_v47 = vld [vmem:[%s1267_s11 + $0xb0] ss:$8 sps:$4 sm:$0xff]   ;;  %v1125_v48 = vld [vmem:[%s1267_s11 + $0xc4] ss:$8 sps:$4 sm:$0xff]   ;;  %v777_v13 = vlaneseq (!%p1019_p11) }
  0x36   : > { %681 = vmatprep.subr.bf16.mxu1 %v1086_v16  ;;  %v1127_v49 = vld [vmem:[%s1267_s11 + $0xc0] ss:$8 sps:$4 sm:$0xff]   ;;  %v1131_v50 = vld [vmem:[%s1267_s11 + $0xd4] ss:$8 sps:$4 sm:$0xff]   ;;  %v1133_v51 = vld [vmem:[%s1267_s11 + $0xd0] ss:$8 sps:$4 sm:$0xff]  }
  0x37   : > { %v1137_v52 = vld [vmem:[%s1267_s11 + $0xe4] ss:$8 sps:$4 sm:$0xff]   ;;  %v1139_v53 = vld [vmem:[%s1267_s11 + $0xe0] ss:$8 sps:$4 sm:$0xff]   ;;  %v1143_v54 = vld [vmem:[%s1267_s11 + $0xf4] ss:$8 sps:$4 sm:$0xff]  }
  0x38   : > { %723 = vmatpush1.bf16.msra.mxu0 %v1118_v26  ;;  %v1145_v55 = vld [vmem:[%s1267_s11 + $0xf0] ss:$8 sps:$4 sm:$0xff]   ;;  %v361_v61 = vld [vmem:[%s1409_s4] sm:$0xff]  ;;  %v362_v0 = vld [vmem:[%s1409_s4 + $0x8] sm:$0xff]  ;;  %v778_v14 = vshrl.u32 (!%p1019_p11), %v777_v13, 7 }
  0x39   : > { %682 = vmatpush1.bf16.msra.mxu1 %v1088_v19  ;;  %724 = vmatprep.subr.bf16.mxu0 %v1122_v28  ;;  %v363_v3 = vld [vmem:[%s1409_s4 + $0x10] sm:$0xff]  ;;  %v364_v7 = vld [vmem:[%s1409_s4 + $0x18] sm:$0xff]  ;;  %v775_v15 = vld [vmem:[%s1407_s2] sm:$0x3] (!%p1019_p11) }
  0x3a   : > { %683 = vmatprep.subr.bf16.mxu1 %v1089_v20  ;;  %v791_v16 = vld [vmem:[%s1408_s3] sm:$0x3] (!%p1019_p11)  ;;  %v779_v18 = vsub.s32 (!%p1019_p11), 0, %v778_v14  ;;  %v783_v19 = vsub.s32 (!%p1019_p11), 1, %v778_v14 }
  0x3c   : > { %725 = vmatpush1.bf16.msra.mxu0 %v1124_v30  ;;  %v796_v24 = vrot.slane (!%p1019_p11), %v791_v16, %v779_v18  ;;  %v800_v26 = vrot.slane (!%p1019_p11), %v791_v16, %v783_v19 }
  0x3d   : > { %684 = vmatpush1.bf16.msra.mxu1 %v1091_v23  ;;  %726 = vmatprep.subr.bf16.mxu0 %v1128_v32  ;;  %v780_v23 = vrot.slane (!%p1019_p11), %v775_v15, %v779_v18 }
  0x3e   : > { %685 = vmatprep.subr.bf16.mxu1 %v1092_v25  ;;  %v784_v25 = vrot.slane (!%p1019_p11), %v775_v15, %v783_v19 }
  0x40   : > { %727 = vmatpush1.bf16.msra.mxu0 %v1130_v34 }
  0x41   : > { %686 = vmatpush1.bf16.msra.mxu1 %v1094_v27  ;;  %728 = vmatprep.subr.bf16.mxu0 %v1134_v36 }
  0x42   : > { %687 = vmatprep.subr.bf16.mxu1 %v1095_v29 }
  0x44   : > { %729 = vmatpush1.bf16.msra.mxu0 %v1136_v38 }
  0x45   : > { %688 = vmatpush1.bf16.msra.mxu1 %v1097_v31  ;;  %730 = vmatprep.subr.bf16.mxu0 %v1140_v41 }
  0x46   : > { %689 = vmatprep.subr.bf16.mxu1 %v1101_v33 }
  0x48   : > { %731 = vmatpush1.bf16.msra.mxu0 %v1142_v43 }
  0x49   : > { %690 = vmatpush1.bf16.msra.mxu1 %v1103_v35 }
  0x4a   : > { %691 = vmatprep.subr.bf16.mxu1 %v1107_v37 }
  0x4b   : > { %749 = vmatmul.mubr.bf16.vlgmr.msra.gmra.mrb[0].mxu0 %v1146_v46 }
  0x4d   : > { %692 = vmatpush1.bf16.msra.mxu1 %v1109_v40 }
  0x4e   : > { %693 = vmatprep.subr.bf16.mxu1 %v1113_v42 }
  0x51   : > { %694 = vmatpush1.bf16.msra.mxu1 %v1115_v44 }
  0x52   : > { %695 = vmatprep.subr.bf16.mxu1 %v1119_v45 }
  0x55   : > { %696 = vmatpush1.bf16.msra.mxu1 %v1121_v47 }
  0x56   : > { %697 = vmatprep.subr.bf16.mxu1 %v1125_v48 }
  0x59   : > { %698 = vmatpush1.bf16.msra.mxu1 %v1127_v49 }
  0x5a   : > { %699 = vmatprep.subr.bf16.mxu1 %v1131_v50 }
  0x5d   : > { %700 = vmatpush1.bf16.msra.mxu1 %v1133_v51 }
  0x5e   : > { %701 = vmatprep.subr.bf16.mxu1 %v1137_v52 }
  0x61   : > { %702 = vmatpush1.bf16.msra.mxu1 %v1139_v53 }
  0x62   : > { %703 = vmatprep.subr.bf16.mxu1 %v1143_v54 }
  0x65   : > { %704 = vmatpush1.bf16.msra.mxu1 %v1145_v55 }
  0x68   : > { %706 = vmatmul.mubr.bf16.vlgmr.msra.gmra.mrb[0].mxu1 %v1147_v56 }
 0x11e   : > { %v750_v57 = vpop.f32.mrb[0].mxu0 }
 0x11f   : > { %v752_v58 = vpop.f32.mrb[1].mxu0 }
 0x120   : > { %v754_v59 = vpop.f32.mrb[2].mxu0 }
 0x121   : > { %v756_v60 = vpop.f32.mrb[3].mxu0 }
 0x13b   : > { %v707_v62 = vpop.f32.mrb[0].mxu1 }
 0x13c   : > { %v751_v63 = vadd.f32 %v750_v57, %v707_v62  ;;  %v709_v1 = vpop.f32.mrb[1].mxu1 }
 0x13d   : > { %v753_v2 = vadd.f32 %v752_v58, %v709_v1  ;;  %v711_v4 = vpop.f32.mrb[2].mxu1  ;;  %770 = sbr.rel (%p1019_p11) target bundleno = 338 (0x152), region = 70 }
 0x13e   : > { %v759_v5 = vadd.f32 %v751_v63, %v361_v61  ;;  %v755_v6 = vadd.f32 %v754_v59, %v711_v4  ;;  %v713_v8 = vpop.f32.mrb[3].mxu1 }
 0x13f   : > { %v760_v9 = vadd.f32 %v753_v2, %v362_v0  ;;  %v757_v10 = vadd.f32 %v756_v60, %v713_v8 }
 0x140   : > { %763 = vst [vmem:[%s1409_s4] sm:$0xff] %v759_v5  ;;  %v761_v11 = vadd.f32 %v755_v6, %v363_v3 }
 0x141   : > { %764 = vst [vmem:[%s1409_s4 + $0x8] sm:$0xff] %v760_v9  ;;  %v762_v12 = vadd.f32 %v757_v10, %v364_v7 }
 0x142   : > { %765 = vst [vmem:[%s1409_s4 + $0x10] sm:$0xff] %v761_v11 }
 0x143   : > { %766 = vst [vmem:[%s1409_s4 + $0x18] sm:$0xff] %v762_v12 }
 0x147   : > { %v771_v17 = vld [vmem:[%s1409_s4] sm:$0xff] }
 0x148   : > { %v772_v20 = vld [vmem:[%s1409_s4 + $0x8] sm:$0xff]  ;;  %v787_v27 = vmul.f32 %v780_v23, %v771_v17 }
 0x149   : > { %v773_v21 = vld [vmem:[%s1409_s4 + $0x10] sm:$0xff]  ;;  %v788_v28 = vmul.f32 %v784_v25, %v772_v20 }
 0x14a   : > { %v774_v22 = vld [vmem:[%s1409_s4 + $0x18] sm:$0xff]  ;;  %v789_v29 = vmul.f32 %v780_v23, %v773_v21  ;;  %v803_v31 = vadd.f32 %v796_v24, %v787_v27 }
 0x14b   : > { %v790_v30 = vmul.f32 %v784_v25, %v774_v22  ;;  %v804_v32 = vadd.f32 %v800_v26, %v788_v28 }
 0x14c   : > { %v805_v33 = vadd.f32 %v796_v24, %v789_v29  ;;  %v807_v35 = vmax.f32 %v803_v31, 0.0 }
 0x14d   : > { %v806_v34 = vadd.f32 %v800_v26, %v790_v30  ;;  %v808_v36 = vmax.f32 %v804_v32, 0.0 }
 0x14e   : > { %v809_v37 = vmax.f32 %v805_v33, 0.0  ;;  %811 = vst [vmem:[%s1409_s4] sm:$0xff] %v807_v35 }
 0x14f   : > { %v810_v38 = vmax.f32 %v806_v34, 0.0  ;;  %812 = vst [vmem:[%s1409_s4 + $0x8] sm:$0xff] %v808_v36 }
 0x150   : > { %813 = vst [vmem:[%s1409_s4 + $0x10] sm:$0xff] %v809_v37 }
 0x151   : > { %814 = vst [vmem:[%s1409_s4 + $0x18] sm:$0xff] %v810_v38 }
 0x152 PF: > { %s14_s19 = sadd.s32 1, %s1188_s19   ;;  %s1410_s15 = smov %s1176_s16 }
 0x153   : > { %p11_p12 = scmp.ge.s32.totalorder %s14_s19, 5   ;;  %s1411_s16 = smov %s1252_s23 }
 0x154   : > { %s1412_s17 = smov %s1184_s18  ;;  %s1413_s18 = smov %s1415_s20 }
 0x155   :  { %13 = sbr.rel (!%p11_p12) target bundleno = 3 (0x3), region = 120 }

// kernel: _lambda_.34
= control target key start
LH: loop header
LB: loop body
LE: loop exit
PB: predicated region body
PF: predicated region fallthrough
CT: control target
= control target key end

     0   :  { %v276_v1 = vmov 0   ;;  %v194_v18 = vlaneseq  ;;  %s371_s1 = inlined_call_operand.vmem [shape: bf16[128,256], index: 1, kind: input, shape index: {}]   ;;  %s372_s0 = inlined_call_operand.vmem [shape: bf16[16,128], index: 0, kind: input, shape index: {}]   ;;  %s373_s2 = inlined_call_operand.vmem [shape: f32[1,256], index: 2, kind: input, shape index: {}]   ;;  %s374_s3 = inlined_call_operand.vmem [shape: f32[1,256], index: 3, kind: input, shape index: {}]   ;;  %s375_s4 = inlined_call_operand.vmem [shape: f32[16,256], index: 4, kind: output, shape index: {}]  }
   0x1   :  { %v251_v0 = vld [vmem:[%s371_s1 + $0x4] ss:$8 sps:$4 sm:$0xff]   ;;  %166 = vmatprep.mubr.bf16.mxu0 %v276_v1  ;;  %v253_v2 = vld [vmem:[%s371_s1] ss:$8 sps:$4 sm:$0xff]   ;;  %v254_v3 = vld [vmem:[%s371_s1 + $0x14] ss:$8 sps:$4 sm:$0xff]  }
   0x2   :  { %134 = vmatprep.subr.bf16.mxu0 %v251_v0  ;;  %v256_v4 = vld [vmem:[%s371_s1 + $0x10] ss:$8 sps:$4 sm:$0xff]   ;;  %v257_v5 = vld [vmem:[%s371_s1 + $0x24] ss:$8 sps:$4 sm:$0xff]   ;;  %v259_v6 = vld [vmem:[%s371_s1 + $0x20] ss:$8 sps:$4 sm:$0xff]  }
   0x3   :  { %135 = vmatpush1.bf16.msra.mxu0 %v253_v2  ;;  %v260_v7 = vld [vmem:[%s371_s1 + $0x34] ss:$8 sps:$4 sm:$0xff]   ;;  %v262_v8 = vld [vmem:[%s371_s1 + $0x30] ss:$8 sps:$4 sm:$0xff]   ;;  %v263_v9 = vld [vmem:[%s371_s1 + $0x44] ss:$8 sps:$4 sm:$0xff]  }
   0x4   :  { %136 = vmatprep.subr.bf16.mxu0 %v254_v3  ;;  %v265_v10 = vld [vmem:[%s371_s1 + $0x40] ss:$8 sps:$4 sm:$0xff]   ;;  %v266_v11 = vld [vmem:[%s371_s1 + $0x54] ss:$8 sps:$4 sm:$0xff]   ;;  %v268_v12 = vld [vmem:[%s371_s1 + $0x50] ss:$8 sps:$4 sm:$0xff]  }
   0x5   :  { %v269_v13 = vld [vmem:[%s371_s1 + $0x64] ss:$8 sps:$4 sm:$0xff]   ;;  %v271_v14 = vld [vmem:[%s371_s1 + $0x60] ss:$8 sps:$4 sm:$0xff]   ;;  %v272_v15 = vld [vmem:[%s371_s1 + $0x74] ss:$8 sps:$4 sm:$0xff]  }
   0x6   :  { %v274_v16 = vld [vmem:[%s371_s1 + $0x70] ss:$8 sps:$4 sm:$0xff]   ;;  %v275_v17 = vld [vmem:[%s372_s0] sm:$0xff]   ;;  %v195_v19 = vshrl.u32 %v194_v18, 7 }
   0x7   :  { %137 = vmatpush1.bf16.msra.mxu0 %v256_v4  ;;  %v192_v21 = vld [vmem:[%s373_s2] sm:$0x3] }
   0x8   :  { %138 = vmatprep.subr.bf16.mxu0 %v257_v5  ;;  %v196_v20 = vsub.s32 0, %v195_v19  ;;  %v200_v22 = vsub.s32 1, %v195_v19  ;;  %v208_v23 = vld [vmem:[%s374_s3] sm:$0x3] }
   0xa   :  { %v197_v24 = vrot.slane %v192_v21, %v196_v20  ;;  %v201_v26 = vrot.slane %v192_v21, %v200_v22  ;;  %v213_v27 = vrot.slane %v208_v23, %v196_v20  ;;  %v217_v29 = vrot.slane %v208_v23, %v200_v22 }
   0xb   :  { %139 = vmatpush1.bf16.msra.mxu0 %v259_v6 }
   0xc   :  { %140 = vmatprep.subr.bf16.mxu0 %v260_v7 }
   0xf   :  { %141 = vmatpush1.bf16.msra.mxu0 %v262_v8 }
  0x10   :  { %142 = vmatprep.subr.bf16.mxu0 %v263_v9 }
  0x13   :  { %143 = vmatpush1.bf16.msra.mxu0 %v265_v10 }
  0x14   :  { %144 = vmatprep.subr.bf16.mxu0 %v266_v11 }
  0x17   :  { %145 = vmatpush1.bf16.msra.mxu0 %v268_v12 }
  0x18   :  { %146 = vmatprep.subr.bf16.mxu0 %v269_v13 }
  0x1b   :  { %147 = vmatpush1.bf16.msra.mxu0 %v271_v14 }
  0x1c   :  { %148 = vmatprep.subr.bf16.mxu0 %v272_v15 }
  0x1f   :  { %149 = vmatpush1.bf16.msra.mxu0 %v274_v16 }
  0x22   :  { %167 = vmatmul.mubr.bf16.vlgmr.msra.gmra.mrb[0].mxu0 %v275_v17 }
  0xf5   :  { %v168_v25 = vpop.f32.mrb[0].mxu0 }
  0xf6   :  { %v170_v28 = vpop.f32.mrb[1].mxu0  ;;  %v204_v31 = vmul.f32 %v197_v24, %v168_v25 }
  0xf7   :  { %v172_v30 = vpop.f32.mrb[2].mxu0  ;;  %v205_v33 = vmul.f32 %v201_v26, %v170_v28 }
  0xf8   :  { %v174_v32 = vpop.f32.mrb[3].mxu0  ;;  %v220_v34 = vadd.f32 %v213_v27, %v204_v31  ;;  %v206_v35 = vmul.f32 %v197_v24, %v172_v30 }
  0xf9   :  { %v221_v36 = vadd.f32 %v217_v29, %v205_v33  ;;  %v207_v37 = vmul.f32 %v201_v26, %v174_v32 }
  0xfa   :  { %224 = vst [vmem:[%s375_s4] sm:$0xff] %v220_v34  ;;  %v222_v38 = vadd.f32 %v213_v27, %v206_v35 }
  0xfb   :  { %225 = vst [vmem:[%s375_s4 + $0x8] sm:$0xff] %v221_v36  ;;  %v223_v39 = vadd.f32 %v217_v29, %v207_v37 }
  0xfc   :  { %226 = vst [vmem:[%s375_s4 + $0x10] sm:$0xff] %v222_v38 }
  0xfd   :  { %227 = vst [vmem:[%s375_s4 + $0x18] sm:$0xff] %v223_v39 }

// kernel: _lambda_.36
= control target key start
LH: loop header
LB: loop body
LE: loop exit
PB: predicated region body
PF: predicated region fallthrough
CT: control target
= control target key end

     0   :  { %s1783_s18 = smov 0   ;;  %s1785_s19 = smov 0   ;;  %s2034_s0 = inlined_call_operand.vmem [shape: bf16[16,2304], index: 0, kind: input, shape index: {}]   ;;  %s2035_s1 = inlined_call_operand.vmem [shape: bf16[2304,256], index: 1, kind: input, shape index: {}]   ;;  %s2036_s2 = inlined_call_operand.vmem [shape: f32[1,256], index: 2, kind: input, shape index: {}]   ;;  %s2037_s3 = inlined_call_operand.vmem [shape: f32[1,256], index: 3, kind: input, shape index: {}]   ;;  %s2038_s4 = inlined_call_operand.vmem [shape: f32[16,256], index: 4, kind: input, shape index: {}]   ;;  %s2039_s5 = inlined_call_operand.vmem [shape: f32[16,256], index: 5, kind: output, shape index: {}]  }
   0x1   :  { %s1787_s20 = smov 0   ;;  %s1789_s21 = smov 0  }
   0x2   :  { %s1791_s22 = smov 0  }
   0x3 LB: > { %s27_s23 = sadd.s32 1, %s1746_s21  ;;  %p50_p1 = scmp.ne.s32.totalorder %s1738_s19, %s1734_s18  ;;  %s1750_s22 = sphi %s1791_s22, %s15_s22   ;;  %s1746_s21 = sphi %s1789_s21, %s2043_s21   ;;  %s1742_s20 = sphi %s1787_s20, %s2042_s20   ;;  %s1738_s19 = sphi %s1785_s19, %s2041_s19   ;;  %s1734_s18 = sphi %s1783_s18, %s2040_s18  }
   0x4   : > { %p28_p0 = scmp.ge.s32.totalorder %s27_s23, 3  ;;  %p51_p2 = scmp.eq.s32.totalorder %s1750_s22, 0 }
   0x5   : > { %s43_s25 = sadd.s32 1, %s1738_s19  ;;  %p1393_p5 = scmp.ge.s32.totalorder %s1750_s22, 3 }
   0x6   : > { %s2045_s23 = smov (%p28_p0, %s27_s23), 0  ;;  %p52_p3 = por %p51_p2, %p50_p1 }
   0x7   : > { %s39_s24 = ssub.s32 %s1746_s21, %s2045_s23  ;;  %243 = sbr.rel (%p1393_p5) target bundleno = 22 (0x16), region = 28 }
   0x8   : > { %p41_p4 = scmp.eq.s32.totalorder %s39_s24, 0 }
   0xa   : > { %s1818_s26 = scalar_select %p41_p4, %s1738_s19, %s43_s25  }
   0xe   : > { %246 = sbr.rel (!%p52_p3) target bundleno = 22 (0x16), region = 32  ;;  %s248_s27 = sand.u32 (%p52_p3), 1, %s1738_s19  }
   0xf   : > { %s1506_s28 = smul.u32 (%p52_p3), 24, %s1746_s21 }
  0x10   : > { %s1516_s29 = smul.u32 (%p52_p3), 48, %s248_s27 }
  0x11   : > { %s256_s7 = scalar_lea.vmem (%p52_p3), %s2034_s0, %s1506_s28 }
  0x12   : > { %v269_v0 = vld [vmem:[%s256_s7] sm:$0xff] (%p52_p3)  ;;  %v271_v1 = vld [vmem:[%s256_s7 + $0x8] sm:$0xff] (%p52_p3)  ;;  %v273_v2 = vld [vmem:[%s256_s7 + $0x10] sm:$0xff] (%p52_p3)  ;;  %s250_s8 = scalar_lea.vmem (%p52_p3), [#allocation2], %s1516_s29 }
  0x13   : > { %270 = vst [vmem:[%s250_s8] sm:$0xff] (%p52_p3), %v269_v0  ;;  %272 = vst [vmem:[%s250_s8 + $0x8] sm:$0xff] (%p52_p3), %v271_v1  ;;  %v275_v3 = vld [vmem:[%s256_s7 + $0x48] sm:$0xff] (%p52_p3)  ;;  %v277_v4 = vld [vmem:[%s256_s7 + $0x50] sm:$0xff] (%p52_p3) }
  0x14   : > { %274 = vst [vmem:[%s250_s8 + $0x10] sm:$0xff] (%p52_p3), %v273_v2  ;;  %v279_v5 = vld [vmem:[%s256_s7 + $0x58] sm:$0xff] (%p52_p3)  ;;  %276 = vst [vmem:[%s250_s8 + $0x18] sm:$0xff] (%p52_p3), %v275_v3 }
  0x15   : > { %278 = vst [vmem:[%s250_s8 + $0x20] sm:$0xff] %v277_v4  ;;  %280 = vst [vmem:[%s250_s8 + $0x28] sm:$0xff] %v279_v5 }
  0x16 PF: > { %p1395_p6 = scmp.ge.s32.totalorder %s1750_s22, 1  ;;  %p300_p7 = scmp.lt.s32.totalorder %s1750_s22, 4 }
  0x18   : > { %p301_p8 = pnand %p1395_p6, %p300_p7 }
  0x19   : > { %s307_s9 = sand.u32 (!%p301_p8), 1, %s1734_s18   ;;  %s369_s10 = smul.u32 (!%p301_p8), 96, %s1742_s20 }
  0x1a   : > { %304 = sbr.rel (%p301_p8) target bundleno = 405 (0x195), region = 59  ;;  %p1398_p10 = scmp.ne.s32.totalorder (!%p301_p8), %s1742_s20, 0 }
  0x1b   : > { %s1517_s11 = smul.u32 (!%p301_p8), 48, %s307_s9  ;;  %p371_p9 = scmp.lt.s32.totalorder (!%p301_p8), %s369_s10, 287 }
  0x1d   : > { %s1835_s16 = scalar_lea.vmem (!%p301_p8), [#allocation2], %s1517_s11 }
  0x21   : > { %s2047_s10 = smov (!%p371_p9, %s369_s10), 287  ;;  %418 = sbr.rel (%p1398_p10) target bundleno = 40 (0x28), region = 67 }
  0x22   : > { %s1507_s12 = sshll.u32 %s2047_s10, 3  ;;  %v1752_v6 = vmov (!%p1398_p10), 0.0  }
  0x23   : > { %s1833_s15 = scalar_lea.vmem %s2035_s1, %s1507_s12  ;;  %419 = vst [vmem:[%s2039_s5] sm:$0xff] (!%p1398_p10), %v1752_v6  ;;  %420 = vst [vmem:[%s2039_s5 + $0x8] sm:$0xff] (!%p1398_p10), %v1752_v6 }
  0x24   : > { %421 = vst [vmem:[%s2039_s5 + $0x10] sm:$0xff] (!%p1398_p10), %v1752_v6  ;;  %422 = vst [vmem:[%s2039_s5 + $0x18] sm:$0xff] (!%p1398_p10), %v1752_v6 }
  0x28 PF: > { %v1559_v7 = vld [vmem:[%s1833_s15 + $0x104] ss:$8 sps:$4 sm:$0xff]   ;;  %v1561_v8 = vld [vmem:[%s1833_s15 + $0x100] ss:$8 sps:$4 sm:$0xff]   ;;  %v1562_v9 = vld [vmem:[%s1833_s15 + $0x114] ss:$8 sps:$4 sm:$0xff]  }
  0x29   : > { %1082 = vmatprep.subr.bf16.mxu0 %v1559_v7  ;;  %v1564_v10 = vld [vmem:[%s1833_s15 + $0x110] ss:$8 sps:$4 sm:$0xff]   ;;  %v1565_v11 = vld [vmem:[%s1833_s15 + $0x124] ss:$8 sps:$4 sm:$0xff]   ;;  %v1567_v12 = vld [vmem:[%s1833_s15 + $0x120] ss:$8 sps:$4 sm:$0xff]  }
  0x2a   : > { %1083 = vmatpush1.bf16.msra.mxu0 %v1561_v8  ;;  %v1568_v13 = vld [vmem:[%s1833_s15 + $0x134] ss:$8 sps:$4 sm:$0xff]   ;;  %v1570_v14 = vld [vmem:[%s1833_s15 + $0x130] ss:$8 sps:$4 sm:$0xff]   ;;  %v1571_v15 = vld [vmem:[%s1833_s15 + $0x144] ss:$8 sps:$4 sm:$0xff]  }
  0x2b   : > { %1084 = vmatprep.subr.bf16.mxu0 %v1562_v9  ;;  %v1573_v16 = vld [vmem:[%s1833_s15 + $0x140] ss:$8 sps:$4 sm:$0xff]   ;;  %v1574_v17 = vld [vmem:[%s1833_s15 + $0x154] ss:$8 sps:$4 sm:$0xff]   ;;  %v1576_v18 = vld [vmem:[%s1833_s15 + $0x150] ss:$8 sps:$4 sm:$0xff]  }
  0x2c   : > { %v1577_v19 = vld [vmem:[%s1833_s15 + $0x164] ss:$8 sps:$4 sm:$0xff]   ;;  %v1609_v21 = vld [vmem:[%s1833_s15] ss:$8 sps:$4 sm:$0xff]   ;;  %v1580_v24 = vld [vmem:[%s1833_s15 + $0x174] ss:$8 sps:$4 sm:$0xff]  }
  0x2d   : > { %v1606_v20 = vld [vmem:[%s1833_s15 + $0x4] ss:$8 sps:$4 sm:$0xff]   ;;  %v1579_v22 = vld [vmem:[%s1833_s15 + $0x160] ss:$8 sps:$4 sm:$0xff]   ;;  %v1616_v25 = vld [vmem:[%s1833_s15 + $0x14] ss:$8 sps:$4 sm:$0xff]  }
  0x2e   : > { %1085 = vmatpush1.bf16.msra.mxu0 %v1564_v10  ;;  %1039 = vmatprep.subr.bf16.mxu1 %v1606_v20  ;;  %v1612_v23 = vld [vmem:[%s1835_s16 + $0xc] ss:$24 sps:$4 sm:$0xff]   ;;  %v1618_v26 = vld [vmem:[%s1833_s15 + $0x10] ss:$8 sps:$4 sm:$0xff]   ;;  %v1624_v30 = vld [vmem:[%s1833_s15 + $0x20] ss:$8 sps:$4 sm:$0xff]  }
  0x2f   : > { %1086 = vmatprep.subr.bf16.mxu0 %v1565_v11  ;;  %1040 = vmatpush1.bf16.msra.mxu1 %v1609_v21  ;;  %v1582_v27 = vld [vmem:[%s1833_s15 + $0x170] ss:$8 sps:$4 sm:$0xff]   ;;  %v1583_v28 = vld [vmem:[%s1833_s15 + $0x184] ss:$8 sps:$4 sm:$0xff]   ;;  %v1585_v31 = vld [vmem:[%s1833_s15 + $0x180] ss:$8 sps:$4 sm:$0xff]  }
  0x30   : > { %1114 = vmatprep.mubr.bf16.mxu0 %v1612_v23  ;;  %1041 = vmatprep.subr.bf16.mxu1 %v1616_v25  ;;  %v1622_v29 = vld [vmem:[%s1833_s15 + $0x24] ss:$8 sps:$4 sm:$0xff]   ;;  %v1628_v32 = vld [vmem:[%s1833_s15 + $0x34] ss:$8 sps:$4 sm:$0xff]   ;;  %v1630_v34 = vld [vmem:[%s1833_s15 + $0x30] ss:$8 sps:$4 sm:$0xff]  }
  0x31   : > { %v1586_v33 = vld [vmem:[%s1833_s15 + $0x194] ss:$8 sps:$4 sm:$0xff]   ;;  %v1634_v35 = vld [vmem:[%s1833_s15 + $0x44] ss:$8 sps:$4 sm:$0xff]   ;;  %v1588_v36 = vld [vmem:[%s1833_s15 + $0x190] ss:$8 sps:$4 sm:$0xff]  }
  0x32   : > { %1087 = vmatpush1.bf16.msra.mxu0 %v1567_v12  ;;  %v1589_v37 = vld [vmem:[%s1833_s15 + $0x1a4] ss:$8 sps:$4 sm:$0xff]   ;;  %v1636_v38 = vld [vmem:[%s1833_s15 + $0x40] ss:$8 sps:$4 sm:$0xff]   ;;  %v1640_v39 = vld [vmem:[%s1833_s15 + $0x54] ss:$8 sps:$4 sm:$0xff]  }
  0x33   : > { %1088 = vmatprep.subr.bf16.mxu0 %v1568_v13  ;;  %1042 = vmatpush1.bf16.msra.mxu1 %v1618_v26  ;;  %v1591_v40 = vld [vmem:[%s1833_s15 + $0x1a0] ss:$8 sps:$4 sm:$0xff]   ;;  %v1592_v41 = vld [vmem:[%s1833_s15 + $0x1b4] ss:$8 sps:$4 sm:$0xff]   ;;  %v1642_v42 = vld [vmem:[%s1833_s15 + $0x50] ss:$8 sps:$4 sm:$0xff]  }
  0x34   : > { %1043 = vmatprep.subr.bf16.mxu1 %v1622_v29  ;;  %v1646_v43 = vld [vmem:[%s1833_s15 + $0x64] ss:$8 sps:$4 sm:$0xff]   ;;  %v1594_v44 = vld [vmem:[%s1833_s15 + $0x1b0] ss:$8 sps:$4 sm:$0xff]   ;;  %v1648_v46 = vld [vmem:[%s1833_s15 + $0x60] ss:$8 sps:$4 sm:$0xff]  }
  0x35   : > { %v1595_v45 = vld [vmem:[%s1833_s15 + $0x1c4] ss:$8 sps:$4 sm:$0xff]   ;;  %v1652_v47 = vld [vmem:[%s1833_s15 + $0x74] ss:$8 sps:$4 sm:$0xff]   ;;  %v1597_v48 = vld [vmem:[%s1833_s15 + $0x1c0] ss:$8 sps:$4 sm:$0xff]  }
  0x36   : > { %1089 = vmatpush1.bf16.msra.mxu0 %v1570_v14  ;;  %v1598_v49 = vld [vmem:[%s1833_s15 + $0x1d4] ss:$8 sps:$4 sm:$0xff]   ;;  %v1654_v50 = vld [vmem:[%s1833_s15 + $0x70] ss:$8 sps:$4 sm:$0xff]   ;;  %v1658_v51 = vld [vmem:[%s1833_s15 + $0x84] ss:$8 sps:$4 sm:$0xff]  }
  0x37   : > { %1090 = vmatprep.subr.bf16.mxu0 %v1571_v15  ;;  %1044 = vmatpush1.bf16.msra.mxu1 %v1624_v30  ;;  %v1600_v52 = vld [vmem:[%s1833_s15 + $0x1d0] ss:$8 sps:$4 sm:$0xff]   ;;  %v1601_v53 = vld [vmem:[%s1833_s15 + $0x1e4] ss:$8 sps:$4 sm:$0xff]   ;;  %v1660_v54 = vld [vmem:[%s1833_s15 + $0x80] ss:$8 sps:$4 sm:$0xff]  }
  0x38   : > { %1045 = vmatprep.subr.bf16.mxu1 %v1628_v32  ;;  %v1664_v55 = vld [vmem:[%s1833_s15 + $0x94] ss:$8 sps:$4 sm:$0xff]   ;;  %v1603_v56 = vld [vmem:[%s1833_s15 + $0x1e0] ss:$8 sps:$4 sm:$0xff]   ;;  %v1666_v58 = vld [vmem:[%s1833_s15 + $0x90] ss:$8 sps:$4 sm:$0xff]  }
  0x39   : > { %v1604_v57 = vld [vmem:[%s1833_s15 + $0x1f4] ss:$8 sps:$4 sm:$0xff]   ;;  %v1670_v59 = vld [vmem:[%s1833_s15 + $0xa4] ss:$8 sps:$4 sm:$0xff]   ;;  %v1608_v60 = vld [vmem:[%s1833_s15 + $0x1f0] ss:$8 sps:$4 sm:$0xff]  }
  0x3a   : > { %1091 = vmatpush1.bf16.msra.mxu0 %v1573_v16  ;;  %v1615_v61 = vld [vmem:[%s1833_s15 + $0x204] ss:$8 sps:$4 sm:$0xff]   ;;  %v1672_v62 = vld [vmem:[%s1833_s15 + $0xa0] ss:$8 sps:$4 sm:$0xff]   ;;  %v1676_v0 = vld [vmem:[%s1833_s15 + $0xb4] ss:$8 sps:$4 sm:$0xff]  }
  0x3b   : > { %1092 = vmatprep.subr.bf16.mxu0 %v1574_v17  ;;  %1046 = vmatpush1.bf16.msra.mxu1 %v1630_v34  ;;  %v1610_v63 = vld [vmem:[%s1835_s16 + $0x8] ss:$24 sps:$4 sm:$0xff]   ;;  %v1621_v2 = vld [vmem:[%s1833_s15 + $0x214] ss:$8 sps:$4 sm:$0xff]   ;;  %v1682_v5 = vld [vmem:[%s1833_s15 + $0xc4] ss:$8 sps:$4 sm:$0xff]  }
  0x3c   : > { %1047 = vmatprep.subr.bf16.mxu1 %v1634_v35  ;;  %v1613_v1 = vld [vmem:[%s1833_s15 + $0x200] ss:$8 sps:$4 sm:$0xff]   ;;  %v1678_v3 = vld [vmem:[%s1833_s15 + $0xb0] ss:$8 sps:$4 sm:$0xff]   ;;  %v1705_v4 = vld [vmem:[%s1835_s16 + $0x4] ss:$24 sps:$4 sm:$0xff]  }
  0x3d   : > { %v1619_v6 = vld [vmem:[%s1833_s15 + $0x210] ss:$8 sps:$4 sm:$0xff]   ;;  %1071 = vmatprep.mubr.bf16.mxu1 %v1705_v4  ;;  %v1711_v7 = vld [vmem:[%s1835_s16 + $0x14] ss:$24 sps:$4 sm:$0xff]   ;;  %v1684_v9 = vld [vmem:[%s1833_s15 + $0xc0] ss:$8 sps:$4 sm:$0xff]  }
  0x3e   : > { %1093 = vmatpush1.bf16.msra.mxu0 %v1576_v18  ;;  %v1627_v8 = vld [vmem:[%s1833_s15 + $0x224] ss:$8 sps:$4 sm:$0xff]   ;;  %v1688_v10 = vld [vmem:[%s1833_s15 + $0xd4] ss:$8 sps:$4 sm:$0xff]   ;;  %v1625_v11 = vld [vmem:[%s1833_s15 + $0x220] ss:$8 sps:$4 sm:$0xff]  }
  0x3f   : > { %1094 = vmatprep.subr.bf16.mxu0 %v1577_v19  ;;  %1048 = vmatpush1.bf16.msra.mxu1 %v1636_v38  ;;  %v1633_v12 = vld [vmem:[%s1833_s15 + $0x234] ss:$8 sps:$4 sm:$0xff]   ;;  %v1690_v13 = vld [vmem:[%s1833_s15 + $0xd0] ss:$8 sps:$4 sm:$0xff]   ;;  %v1694_v14 = vld [vmem:[%s1833_s15 + $0xe4] ss:$8 sps:$4 sm:$0xff]  }
  0x40   : > { %1049 = vmatprep.subr.bf16.mxu1 %v1640_v39  ;;  %v1631_v15 = vld [vmem:[%s1833_s15 + $0x230] ss:$8 sps:$4 sm:$0xff]   ;;  %v1639_v16 = vld [vmem:[%s1833_s15 + $0x244] ss:$8 sps:$4 sm:$0xff]   ;;  %v1696_v17 = vld [vmem:[%s1833_s15 + $0xe0] ss:$8 sps:$4 sm:$0xff]  }
  0x41   : > { %v1700_v18 = vld [vmem:[%s1833_s15 + $0xf4] ss:$8 sps:$4 sm:$0xff]   ;;  %v1637_v19 = vld [vmem:[%s1833_s15 + $0x240] ss:$8 sps:$4 sm:$0xff]   ;;  %v1702_v21 = vld [vmem:[%s1833_s15 + $0xf0] ss:$8 sps:$4 sm:$0xff]  }
  0x42   : > { %1095 = vmatpush1.bf16.msra.mxu0 %v1579_v22  ;;  %v1645_v20 = vld [vmem:[%s1833_s15 + $0x254] ss:$8 sps:$4 sm:$0xff]   ;;  %v1643_v22 = vld [vmem:[%s1833_s15 + $0x250] ss:$8 sps:$4 sm:$0xff]   ;;  %v1651_v23 = vld [vmem:[%s1833_s15 + $0x264] ss:$8 sps:$4 sm:$0xff]  }
  0x43   : > { %1096 = vmatprep.subr.bf16.mxu0 %v1580_v24  ;;  %1050 = vmatpush1.bf16.msra.mxu1 %v1642_v42  ;;  %v1703_v24 = vld [vmem:[%s1835_s16] ss:$24 sps:$4 sm:$0xff]   ;;  %v1657_v26 = vld [vmem:[%s1833_s15 + $0x274] ss:$8 sps:$4 sm:$0xff]   ;;  %v1675_v32 = vld [vmem:[%s1833_s15 + $0x2a4] ss:$8 sps:$4 sm:$0xff]  }
  0x44   : > { %1051 = vmatprep.subr.bf16.mxu1 %v1646_v43  ;;  %v1649_v25 = vld [vmem:[%s1833_s15 + $0x260] ss:$8 sps:$4 sm:$0xff]   ;;  %v1669_v30 = vld [vmem:[%s1833_s15 + $0x294] ss:$8 sps:$4 sm:$0xff]   ;;  %v1679_v35 = vld [vmem:[%s1833_s15 + $0x2b0] ss:$8 sps:$4 sm:$0xff]  }
  0x45   : > { %v1661_v29 = vld [vmem:[%s1833_s15 + $0x280] ss:$8 sps:$4 sm:$0xff]   ;;  %v1681_v34 = vld [vmem:[%s1833_s15 + $0x2b4] ss:$8 sps:$4 sm:$0xff]   ;;  %v1691_v39 = vld [vmem:[%s1833_s15 + $0x2d0] ss:$8 sps:$4 sm:$0xff]  }
  0x46   : > { %1097 = vmatpush1.bf16.msra.mxu0 %v1582_v27  ;;  %v1655_v27 = vld [vmem:[%s1833_s15 + $0x270] ss:$8 sps:$4 sm:$0xff]   ;;  %v1693_v38 = vld [vmem:[%s1833_s15 + $0x2d4] ss:$8 sps:$4 sm:$0xff]   ;;  %p1501_p11 = scmp.ne.s32.totalorder %s1742_s20, 2 }
  0x47   : > { %1098 = vmatprep.subr.bf16.mxu0 %v1583_v28  ;;  %1052 = vmatpush1.bf16.msra.mxu1 %v1648_v46  ;;  %v1663_v28 = vld [vmem:[%s1833_s15 + $0x284] ss:$8 sps:$4 sm:$0xff]   ;;  %v1708_v42 = vld [vmem:[%s1833_s15 + $0x2f4] ss:$8 sps:$4 sm:$0xff]   ;;  %v1706_v43 = vld [vmem:[%s1833_s15 + $0x2f0] ss:$8 sps:$4 sm:$0xff]  }
  0x48   : > { %1053 = vmatprep.subr.bf16.mxu1 %v1652_v47  ;;  %v1200_v4 = vld [vmem:[%s2037_s3] sm:$0x3] (!%p1501_p11) }
  0x4a   : > { %1099 = vmatpush1.bf16.msra.mxu0 %v1585_v31  ;;  %v1667_v31 = vld [vmem:[%s1833_s15 + $0x290] ss:$8 sps:$4 sm:$0xff]  }
  0x4b   : > { %1100 = vmatprep.subr.bf16.mxu0 %v1586_v33  ;;  %1054 = vmatpush1.bf16.msra.mxu1 %v1654_v50  ;;  %v1673_v33 = vld [vmem:[%s1833_s15 + $0x2a0] ss:$8 sps:$4 sm:$0xff]  }
  0x4c   : > { %1055 = vmatprep.subr.bf16.mxu1 %v1658_v51 }
  0x4e   : > { %1101 = vmatpush1.bf16.msra.mxu0 %v1588_v36  ;;  %v1687_v36 = vld [vmem:[%s1833_s15 + $0x2c4] ss:$8 sps:$4 sm:$0xff]  }
  0x4f   : > { %1102 = vmatprep.subr.bf16.mxu0 %v1589_v37  ;;  %1056 = vmatpush1.bf16.msra.mxu1 %v1660_v54  ;;  %v1685_v37 = vld [vmem:[%s1833_s15 + $0x2c0] ss:$8 sps:$4 sm:$0xff]  }
  0x50   : > { %1057 = vmatprep.subr.bf16.mxu1 %v1664_v55  ;;  %v425_v55 = vld [vmem:[%s2039_s5 + $0x10] sm:$0xff] }
  0x52   : > { %1103 = vmatpush1.bf16.msra.mxu0 %v1591_v40  ;;  %v1699_v40 = vld [vmem:[%s1833_s15 + $0x2e4] ss:$8 sps:$4 sm:$0xff]  }
  0x53   : > { %1104 = vmatprep.subr.bf16.mxu0 %v1592_v41  ;;  %1058 = vmatpush1.bf16.msra.mxu1 %v1666_v58  ;;  %v1697_v41 = vld [vmem:[%s1833_s15 + $0x2e0] ss:$8 sps:$4 sm:$0xff]  }
  0x54   : > { %1059 = vmatprep.subr.bf16.mxu1 %v1670_v59  ;;  %v426_v59 = vld [vmem:[%s2039_s5 + $0x18] sm:$0xff] }
  0x56   : > { %1105 = vmatpush1.bf16.msra.mxu0 %v1594_v44  ;;  %v1709_v44 = vld [vmem:[%s1835_s16 + $0x10] ss:$24 sps:$4 sm:$0xff]  }
  0x57   : > { %1106 = vmatprep.subr.bf16.mxu0 %v1595_v45  ;;  %1060 = vmatpush1.bf16.msra.mxu1 %v1672_v62 }
  0x58   : > { %1061 = vmatprep.subr.bf16.mxu1 %v1676_v0 }
  0x5a   : > { %1107 = vmatpush1.bf16.msra.mxu0 %v1597_v48 }
  0x5b   : > { %1108 = vmatprep.subr.bf16.mxu0 %v1598_v49  ;;  %1062 = vmatpush1.bf16.msra.mxu1 %v1678_v3  ;;  %v423_v49 = vld [vmem:[%s2039_s5] sm:$0xff] }
  0x5c   : > { %1063 = vmatprep.subr.bf16.mxu1 %v1682_v5  ;;  %v1184_v3 = vld [vmem:[%s2036_s2] sm:$0x3] (!%p1501_p11) }
  0x5e   : > { %1109 = vmatpush1.bf16.msra.mxu0 %v1600_v52  ;;  %v424_v52 = vld [vmem:[%s2039_s5 + $0x8] sm:$0xff] }
  0x5f   : > { %1110 = vmatprep.subr.bf16.mxu0 %v1601_v53  ;;  %1064 = vmatpush1.bf16.msra.mxu1 %v1684_v9 }
  0x60   : > { %1065 = vmatprep.subr.bf16.mxu1 %v1688_v10 }
  0x62   : > { %1111 = vmatpush1.bf16.msra.mxu0 %v1603_v56 }
  0x63   : > { %1112 = vmatprep.subr.bf16.mxu0 %v1604_v57  ;;  %1066 = vmatpush1.bf16.msra.mxu1 %v1690_v13 }
  0x64   : > { %1067 = vmatprep.subr.bf16.mxu1 %v1694_v14 }
  0x66   : > { %1113 = vmatpush1.bf16.msra.mxu0 %v1608_v60 }
  0x67   : > { %1125 = vmatprep.subr.bf16.mxu0 %v1615_v61  ;;  %1068 = vmatpush1.bf16.msra.mxu1 %v1696_v17 }
  0x68   : > { %1069 = vmatprep.subr.bf16.mxu1 %v1700_v18 }
  0x69   : > { %1115 = vmatmul.mubr.bf16.vlgmr.msra.gmra.mrb[0].mxu0 %v1610_v63 }
  0x6a   : > { %1126 = vmatpush1.bf16.msra.mxu0 %v1613_v1  ;;  %1157 = vmatprep.mubr.bf16.mxu0 %v1711_v7  ;;  %v1186_v1 = vlaneseq (!%p1501_p11) }
  0x6b   : > { %1127 = vmatprep.subr.bf16.mxu0 %v1621_v2  ;;  %1070 = vmatpush1.bf16.msra.mxu1 %v1702_v21  ;;  %v1218_v21 = vld [vmem:[%s2038_s4 + $0x10] sm:$0xff] (!%p1501_p11) }
  0x6c   : > { %v1187_v2 = vshrl.u32 (!%p1501_p11), %v1186_v1, 7 }
  0x6e   : > { %1128 = vmatpush1.bf16.msra.mxu0 %v1619_v6  ;;  %1072 = vmatmul.mubr.bf16.vlgmr.msra.gmra.mrb[0].mxu1 %v1703_v24  ;;  %v1188_v6 = vsub.s32 (!%p1501_p11), 0, %v1187_v2  ;;  %v1192_v7 = vsub.s32 (!%p1501_p11), 1, %v1187_v2 }
  0x6f   : > { %1129 = vmatprep.subr.bf16.mxu0 %v1627_v8 }
  0x70   : > { %v1193_v13 = vrot.slane (!%p1501_p11), %v1184_v3, %v1192_v7  ;;  %v1209_v14 = vrot.slane (!%p1501_p11), %v1200_v4, %v1192_v7 }
  0x72   : > { %1130 = vmatpush1.bf16.msra.mxu0 %v1625_v11  ;;  %v1189_v11 = vrot.slane (!%p1501_p11), %v1184_v3, %v1188_v6 }
  0x73   : > { %1131 = vmatprep.subr.bf16.mxu0 %v1633_v12  ;;  %v1205_v12 = vrot.slane (!%p1501_p11), %v1200_v4, %v1188_v6 }
  0x76   : > { %1132 = vmatpush1.bf16.msra.mxu0 %v1631_v15 }
  0x77   : > { %1133 = vmatprep.subr.bf16.mxu0 %v1639_v16  ;;  %v1216_v16 = vld [vmem:[%s2038_s4] sm:$0xff] (!%p1501_p11) }
  0x7a   : > { %1134 = vmatpush1.bf16.msra.mxu0 %v1637_v19 }
  0x7b   : > { %1135 = vmatprep.subr.bf16.mxu0 %v1645_v20  ;;  %v1217_v20 = vld [vmem:[%s2038_s4 + $0x8] sm:$0xff] (!%p1501_p11) }
  0x7e   : > { %1136 = vmatpush1.bf16.msra.mxu0 %v1643_v22  ;;  %v1219_v22 = vld [vmem:[%s2038_s4 + $0x18] sm:$0xff] (!%p1501_p11) }
  0x7f   : > { %1137 = vmatprep.subr.bf16.mxu0 %v1651_v23 }
  0x82   : > { %1138 = vmatpush1.bf16.msra.mxu0 %v1649_v25 }
  0x83   : > { %1139 = vmatprep.subr.bf16.mxu0 %v1657_v26 }
  0x86   : > { %1140 = vmatpush1.bf16.msra.mxu0 %v1655_v27 }
  0x87   : > { %1141 = vmatprep.subr.bf16.mxu0 %v1663_v28 }
  0x8a   : > { %1142 = vmatpush1.bf16.msra.mxu0 %v1661_v29 }
  0x8b   : > { %1143 = vmatprep.subr.bf16.mxu0 %v1669_v30 }
  0x8e   : > { %1144 = vmatpush1.bf16.msra.mxu0 %v1667_v31 }
  0x8f   : > { %1145 = vmatprep.subr.bf16.mxu0 %v1675_v32 }
  0x92   : > { %1146 = vmatpush1.bf16.msra.mxu0 %v1673_v33 }
  0x93   : > { %1147 = vmatprep.subr.bf16.mxu0 %v1681_v34 }
  0x96   : > { %1148 = vmatpush1.bf16.msra.mxu0 %v1679_v35 }
  0x97   : > { %1149 = vmatprep.subr.bf16.mxu0 %v1687_v36 }
  0x9a   : > { %1150 = vmatpush1.bf16.msra.mxu0 %v1685_v37 }
  0x9b   : > { %1151 = vmatprep.subr.bf16.mxu0 %v1693_v38 }
  0x9e   : > { %1152 = vmatpush1.bf16.msra.mxu0 %v1691_v39 }
  0x9f   : > { %1153 = vmatprep.subr.bf16.mxu0 %v1699_v40 }
  0xa2   : > { %1154 = vmatpush1.bf16.msra.mxu0 %v1697_v41 }
  0xa3   : > { %1155 = vmatprep.subr.bf16.mxu0 %v1708_v42 }
  0xa6   : > { %1156 = vmatpush1.bf16.msra.mxu0 %v1706_v43 }
  0xa9   : > { %1158 = vmatmul.mubr.bf16.vlgmr.msra.gmra.mrb[0].mxu0 %v1709_v44 }
 0x141   : > { %v1073_v45 = vpop.f32.mrb[0].mxu1 }
 0x142   : > { %v1075_v46 = vpop.f32.mrb[1].mxu1 }
 0x143   : > { %v1077_v47 = vpop.f32.mrb[2].mxu1 }
 0x144   : > { %v1079_v48 = vpop.f32.mrb[3].mxu1 }
 0x17c   : > { %v1159_v50 = vpop.f32.mrb[0].mxu0 }
 0x17d   : > { %v1508_v51 = vadd.f32 %v1159_v50, %v1073_v45  ;;  %v1161_v53 = vpop.f32.mrb[1].mxu0 }
 0x17e   : > { %v1509_v54 = vadd.f32 %v1161_v53, %v1075_v46  ;;  %v1163_v56 = vpop.f32.mrb[2].mxu0  ;;  %1179 = sbr.rel (%p1501_p11) target bundleno = 405 (0x195), region = 71 }
 0x17f   : > { %v1168_v57 = vadd.f32 %v1508_v51, %v423_v49  ;;  %v1510_v58 = vadd.f32 %v1163_v56, %v1077_v47  ;;  %v1165_v60 = vpop.f32.mrb[3].mxu0 }
 0x180   : > { %v1169_v61 = vadd.f32 %v1509_v54, %v424_v52  ;;  %v1511_v62 = vadd.f32 %v1165_v60, %v1079_v48 }
 0x181   : > { %1172 = vst [vmem:[%s2039_s5] sm:$0xff] %v1168_v57  ;;  %v1170_v63 = vadd.f32 %v1510_v58, %v425_v55 }
 0x182   : > { %1173 = vst [vmem:[%s2039_s5 + $0x8] sm:$0xff] %v1169_v61  ;;  %v1171_v0 = vadd.f32 %v1511_v62, %v426_v59 }
 0x183   : > { %1174 = vst [vmem:[%s2039_s5 + $0x10] sm:$0xff] %v1170_v63 }
 0x184   : > { %1175 = vst [vmem:[%s2039_s5 + $0x18] sm:$0xff] %v1171_v0 }
 0x188   : > { %v1180_v5 = vld [vmem:[%s2039_s5] sm:$0xff] }
 0x189   : > { %v1181_v8 = vld [vmem:[%s2039_s5 + $0x8] sm:$0xff]  ;;  %v1196_v15 = vmul.f32 %v1189_v11, %v1180_v5 }
 0x18a   : > { %v1182_v9 = vld [vmem:[%s2039_s5 + $0x10] sm:$0xff]  ;;  %v1197_v17 = vmul.f32 %v1193_v13, %v1181_v8 }
 0x18b   : > { %v1183_v10 = vld [vmem:[%s2039_s5 + $0x18] sm:$0xff]  ;;  %v1198_v18 = vmul.f32 %v1189_v11, %v1182_v9  ;;  %v1212_v23 = vadd.f32 %v1205_v12, %v1196_v15 }
 0x18c   : > { %v1199_v19 = vmul.f32 %v1193_v13, %v1183_v10  ;;  %v1213_v24 = vadd.f32 %v1209_v14, %v1197_v17 }
 0x18d   : > { %v1214_v25 = vadd.f32 %v1205_v12, %v1198_v18  ;;  %v1220_v27 = vadd.f32 %v1216_v16, %v1212_v23 }
 0x18e   : > { %v1215_v26 = vadd.f32 %v1209_v14, %v1199_v19  ;;  %v1221_v28 = vadd.f32 %v1217_v20, %v1213_v24 }
 0x18f   : > { %v1222_v29 = vadd.f32 %v1218_v21, %v1214_v25  ;;  %v1224_v31 = vmax.f32 %v1220_v27, 0.0 }
 0x190   : > { %v1223_v30 = vadd.f32 %v1219_v22, %v1215_v26  ;;  %v1225_v32 = vmax.f32 %v1221_v28, 0.0 }
 0x191   : > { %v1226_v33 = vmax.f32 %v1222_v29, 0.0  ;;  %1228 = vst [vmem:[%s2039_s5] sm:$0xff] %v1224_v31 }
 0x192   : > { %v1227_v34 = vmax.f32 %v1223_v30, 0.0  ;;  %1229 = vst [vmem:[%s2039_s5 + $0x8] sm:$0xff] %v1225_v32 }
 0x193   : > { %1230 = vst [vmem:[%s2039_s5 + $0x10] sm:$0xff] %v1226_v33 }
 0x194   : > { %1231 = vst [vmem:[%s2039_s5 + $0x18] sm:$0xff] %v1227_v34 }
 0x195 PF: > { %s15_s22 = sadd.s32 1, %s1750_s22   ;;  %s2040_s18 = smov %s1738_s19 }
 0x196   : > { %p12_p12 = scmp.ge.s32.totalorder %s15_s22, 5   ;;  %s2041_s19 = smov %s1818_s26 }
 0x197   : > { %s2042_s20 = smov %s1746_s21  ;;  %s2043_s21 = smov %s2045_s23 }
 0x198   :  { %14 = sbr.rel (!%p12_p12) target bundleno = 3 (0x3), region = 118 }

// kernel: _lambda_.37
= control target key start
LH: loop header
LB: loop body
LE: loop exit
PB: predicated region body
PF: predicated region fallthrough
CT: control target
= control target key end

     0   :  { %s1680_s15 = smov 0   ;;  %s1682_s16 = smov 0   ;;  %s1919_s0 = inlined_call_operand.vmem [shape: bf16[16,2304], index: 0, kind: input, shape index: {}]   ;;  %s1920_s1 = inlined_call_operand.vmem [shape: bf16[2304,256], index: 1, kind: input, shape index: {}]   ;;  %s1921_s2 = inlined_call_operand.vmem [shape: f32[1,256], index: 2, kind: input, shape index: {}]   ;;  %s1922_s3 = inlined_call_operand.vmem [shape: f32[1,256], index: 3, kind: input, shape index: {}]   ;;  %s1923_s4 = inlined_call_operand.vmem [shape: f32[16,256], index: 4, kind: output, shape index: {}]  }
   0x1   :  { %s1684_s17 = smov 0   ;;  %s1686_s18 = smov 0  }
   0x2   :  { %s1688_s19 = smov 0  }
   0x3 LB: > { %s26_s20 = sadd.s32 1, %s1648_s18  ;;  %p49_p1 = scmp.ne.s32.totalorder %s1640_s16, %s1636_s15  ;;  %s1652_s19 = sphi %s1688_s19, %s14_s19   ;;  %s1648_s18 = sphi %s1686_s18, %s1927_s18   ;;  %s1644_s17 = sphi %s1684_s17, %s1926_s17   ;;  %s1640_s16 = sphi %s1682_s16, %s1925_s16   ;;  %s1636_s15 = sphi %s1680_s15, %s1924_s15  }
   0x4   : > { %p27_p0 = scmp.ge.s32.totalorder %s26_s20, 3  ;;  %p50_p2 = scmp.eq.s32.totalorder %s1652_s19, 0 }
   0x5   : > { %s42_s22 = sadd.s32 1, %s1640_s16  ;;  %p1295_p5 = scmp.ge.s32.totalorder %s1652_s19, 3 }
   0x6   : > { %s1929_s20 = smov (%p27_p0, %s26_s20), 0  ;;  %p51_p3 = por %p50_p2, %p49_p1 }
   0x7   : > { %s38_s21 = ssub.s32 %s1648_s18, %s1929_s20  ;;  %199 = sbr.rel (%p1295_p5) target bundleno = 22 (0x16), region = 24 }
   0x8   : > { %p40_p4 = scmp.eq.s32.totalorder %s38_s21, 0 }
   0xa   : > { %s1715_s23 = scalar_select %p40_p4, %s1640_s16, %s42_s22  }
   0xe   : > { %202 = sbr.rel (!%p51_p3) target bundleno = 22 (0x16), region = 28  ;;  %s204_s24 = sand.u32 (%p51_p3), 1, %s1640_s16  }
   0xf   : > { %s1408_s25 = smul.u32 (%p51_p3), 24, %s1648_s18 }
  0x10   : > { %s1418_s26 = smul.u32 (%p51_p3), 48, %s204_s24 }
  0x11   : > { %s212_s29 = scalar_lea.vmem (%p51_p3), %s1919_s0, %s1408_s25 }
  0x12   : > { %v225_v0 = vld [vmem:[%s212_s29] sm:$0xff] (%p51_p3)  ;;  %v227_v1 = vld [vmem:[%s212_s29 + $0x8] sm:$0xff] (%p51_p3)  ;;  %v229_v2 = vld [vmem:[%s212_s29 + $0x10] sm:$0xff] (%p51_p3)  ;;  %s206_s30 = scalar_lea.vmem (%p51_p3), [#allocation2], %s1418_s26 }
  0x13   : > { %226 = vst [vmem:[%s206_s30] sm:$0xff] (%p51_p3), %v225_v0  ;;  %228 = vst [vmem:[%s206_s30 + $0x8] sm:$0xff] (%p51_p3), %v227_v1  ;;  %v231_v3 = vld [vmem:[%s212_s29 + $0x48] sm:$0xff] (%p51_p3)  ;;  %v233_v4 = vld [vmem:[%s212_s29 + $0x50] sm:$0xff] (%p51_p3) }
  0x14   : > { %230 = vst [vmem:[%s206_s30 + $0x10] sm:$0xff] (%p51_p3), %v229_v2  ;;  %v235_v5 = vld [vmem:[%s212_s29 + $0x58] sm:$0xff] (%p51_p3)  ;;  %232 = vst [vmem:[%s206_s30 + $0x18] sm:$0xff] (%p51_p3), %v231_v3 }
  0x15   : > { %234 = vst [vmem:[%s206_s30 + $0x20] sm:$0xff] %v233_v4  ;;  %236 = vst [vmem:[%s206_s30 + $0x28] sm:$0xff] %v235_v5 }
  0x16 PF: > { %p1297_p6 = scmp.ge.s32.totalorder %s1652_s19, 1  ;;  %p256_p7 = scmp.lt.s32.totalorder %s1652_s19, 4 }
  0x18   : > { %p257_p8 = pnand %p1297_p6, %p256_p7 }
  0x19   : > { %s263_s5 = sand.u32 (!%p257_p8), 1, %s1636_s15   ;;  %s313_s6 = smul.u32 (!%p257_p8), 96, %s1644_s17 }
  0x1a   : > { %260 = sbr.rel (%p257_p8) target bundleno = 403 (0x193), region = 55  ;;  %p1300_p10 = scmp.ne.s32.totalorder (!%p257_p8), %s1644_s17, 0 }
  0x1b   : > { %s1419_s7 = smul.u32 (!%p257_p8), 48, %s263_s5  ;;  %p315_p9 = scmp.lt.s32.totalorder (!%p257_p8), %s313_s6, 287 }
  0x1d   : > { %s1732_s12 = scalar_lea.vmem (!%p257_p8), [#allocation2], %s1419_s7 }
  0x21   : > { %s1931_s6 = smov (!%p315_p9, %s313_s6), 287  ;;  %350 = sbr.rel (%p1300_p10) target bundleno = 40 (0x28), region = 63 }
  0x22   : > { %s1409_s8 = sshll.u32 %s1931_s6, 3  ;;  %v1654_v6 = vmov (!%p1300_p10), 0.0  }
  0x23   : > { %s1730_s11 = scalar_lea.vmem %s1920_s1, %s1409_s8  ;;  %351 = vst [vmem:[%s1923_s4] sm:$0xff] (!%p1300_p10), %v1654_v6  ;;  %352 = vst [vmem:[%s1923_s4 + $0x8] sm:$0xff] (!%p1300_p10), %v1654_v6 }
  0x24   : > { %353 = vst [vmem:[%s1923_s4 + $0x10] sm:$0xff] (!%p1300_p10), %v1654_v6  ;;  %354 = vst [vmem:[%s1923_s4 + $0x18] sm:$0xff] (!%p1300_p10), %v1654_v6 }
  0x28 PF: > { %v1461_v7 = vld [vmem:[%s1730_s11 + $0x104] ss:$8 sps:$4 sm:$0xff]   ;;  %v1463_v8 = vld [vmem:[%s1730_s11 + $0x100] ss:$8 sps:$4 sm:$0xff]   ;;  %v1464_v9 = vld [vmem:[%s1730_s11 + $0x114] ss:$8 sps:$4 sm:$0xff]  }
  0x29   : > { %1014 = vmatprep.subr.bf16.mxu0 %v1461_v7  ;;  %v1466_v10 = vld [vmem:[%s1730_s11 + $0x110] ss:$8 sps:$4 sm:$0xff]   ;;  %v1467_v11 = vld [vmem:[%s1730_s11 + $0x124] ss:$8 sps:$4 sm:$0xff]   ;;  %v1469_v12 = vld [vmem:[%s1730_s11 + $0x120] ss:$8 sps:$4 sm:$0xff]  }
  0x2a   : > { %1015 = vmatpush1.bf16.msra.mxu0 %v1463_v8  ;;  %v1470_v13 = vld [vmem:[%s1730_s11 + $0x134] ss:$8 sps:$4 sm:$0xff]   ;;  %v1472_v14 = vld [vmem:[%s1730_s11 + $0x130] ss:$8 sps:$4 sm:$0xff]   ;;  %v1473_v15 = vld [vmem:[%s1730_s11 + $0x144] ss:$8 sps:$4 sm:$0xff]  }
  0x2b   : > { %1016 = vmatprep.subr.bf16.mxu0 %v1464_v9  ;;  %v1475_v16 = vld [vmem:[%s1730_s11 + $0x140] ss:$8 sps:$4 sm:$0xff]   ;;  %v1476_v17 = vld [vmem:[%s1730_s11 + $0x154] ss:$8 sps:$4 sm:$0xff]   ;;  %v1478_v18 = vld [vmem:[%s1730_s11 + $0x150] ss:$8 sps:$4 sm:$0xff]  }
  0x2c   : > { %v1479_v19 = vld [vmem:[%s1730_s11 + $0x164] ss:$8 sps:$4 sm:$0xff]   ;;  %v1511_v21 = vld [vmem:[%s1730_s11] ss:$8 sps:$4 sm:$0xff]   ;;  %v1482_v24 = vld [vmem:[%s1730_s11 + $0x174] ss:$8 sps:$4 sm:$0xff]  }
  0x2d   : > { %v1508_v20 = vld [vmem:[%s1730_s11 + $0x4] ss:$8 sps:$4 sm:$0xff]   ;;  %v1481_v22 = vld [vmem:[%s1730_s11 + $0x160] ss:$8 sps:$4 sm:$0xff]   ;;  %v1518_v25 = vld [vmem:[%s1730_s11 + $0x14] ss:$8 sps:$4 sm:$0xff]  }
  0x2e   : > { %1017 = vmatpush1.bf16.msra.mxu0 %v1466_v10  ;;  %971 = vmatprep.subr.bf16.mxu1 %v1508_v20  ;;  %v1514_v23 = vld [vmem:[%s1732_s12 + $0xc] ss:$24 sps:$4 sm:$0xff]   ;;  %v1520_v26 = vld [vmem:[%s1730_s11 + $0x10] ss:$8 sps:$4 sm:$0xff]   ;;  %v1526_v30 = vld [vmem:[%s1730_s11 + $0x20] ss:$8 sps:$4 sm:$0xff]  }
  0x2f   : > { %1018 = vmatprep.subr.bf16.mxu0 %v1467_v11  ;;  %972 = vmatpush1.bf16.msra.mxu1 %v1511_v21  ;;  %v1484_v27 = vld [vmem:[%s1730_s11 + $0x170] ss:$8 sps:$4 sm:$0xff]   ;;  %v1485_v28 = vld [vmem:[%s1730_s11 + $0x184] ss:$8 sps:$4 sm:$0xff]   ;;  %v1487_v31 = vld [vmem:[%s1730_s11 + $0x180] ss:$8 sps:$4 sm:$0xff]  }
  0x30   : > { %1046 = vmatprep.mubr.bf16.mxu0 %v1514_v23  ;;  %973 = vmatprep.subr.bf16.mxu1 %v1518_v25  ;;  %v1524_v29 = vld [vmem:[%s1730_s11 + $0x24] ss:$8 sps:$4 sm:$0xff]   ;;  %v1530_v32 = vld [vmem:[%s1730_s11 + $0x34] ss:$8 sps:$4 sm:$0xff]   ;;  %v1532_v34 = vld [vmem:[%s1730_s11 + $0x30] ss:$8 sps:$4 sm:$0xff]  }
  0x31   : > { %v1488_v33 = vld [vmem:[%s1730_s11 + $0x194] ss:$8 sps:$4 sm:$0xff]   ;;  %v1536_v35 = vld [vmem:[%s1730_s11 + $0x44] ss:$8 sps:$4 sm:$0xff]   ;;  %v1490_v36 = vld [vmem:[%s1730_s11 + $0x190] ss:$8 sps:$4 sm:$0xff]  }
  0x32   : > { %1019 = vmatpush1.bf16.msra.mxu0 %v1469_v12  ;;  %v1491_v37 = vld [vmem:[%s1730_s11 + $0x1a4] ss:$8 sps:$4 sm:$0xff]   ;;  %v1538_v38 = vld [vmem:[%s1730_s11 + $0x40] ss:$8 sps:$4 sm:$0xff]   ;;  %v1542_v39 = vld [vmem:[%s1730_s11 + $0x54] ss:$8 sps:$4 sm:$0xff]  }
  0x33   : > { %1020 = vmatprep.subr.bf16.mxu0 %v1470_v13  ;;  %974 = vmatpush1.bf16.msra.mxu1 %v1520_v26  ;;  %v1493_v40 = vld [vmem:[%s1730_s11 + $0x1a0] ss:$8 sps:$4 sm:$0xff]   ;;  %v1494_v41 = vld [vmem:[%s1730_s11 + $0x1b4] ss:$8 sps:$4 sm:$0xff]   ;;  %v1544_v42 = vld [vmem:[%s1730_s11 + $0x50] ss:$8 sps:$4 sm:$0xff]  }
  0x34   : > { %975 = vmatprep.subr.bf16.mxu1 %v1524_v29  ;;  %v1548_v43 = vld [vmem:[%s1730_s11 + $0x64] ss:$8 sps:$4 sm:$0xff]   ;;  %v1496_v44 = vld [vmem:[%s1730_s11 + $0x1b0] ss:$8 sps:$4 sm:$0xff]   ;;  %v1550_v46 = vld [vmem:[%s1730_s11 + $0x60] ss:$8 sps:$4 sm:$0xff]  }
  0x35   : > { %v1497_v45 = vld [vmem:[%s1730_s11 + $0x1c4] ss:$8 sps:$4 sm:$0xff]   ;;  %v1554_v47 = vld [vmem:[%s1730_s11 + $0x74] ss:$8 sps:$4 sm:$0xff]   ;;  %v1499_v48 = vld [vmem:[%s1730_s11 + $0x1c0] ss:$8 sps:$4 sm:$0xff]  }
  0x36   : > { %1021 = vmatpush1.bf16.msra.mxu0 %v1472_v14  ;;  %v1500_v49 = vld [vmem:[%s1730_s11 + $0x1d4] ss:$8 sps:$4 sm:$0xff]   ;;  %v1556_v50 = vld [vmem:[%s1730_s11 + $0x70] ss:$8 sps:$4 sm:$0xff]   ;;  %v1560_v51 = vld [vmem:[%s1730_s11 + $0x84] ss:$8 sps:$4 sm:$0xff]  }
  0x37   : > { %1022 = vmatprep.subr.bf16.mxu0 %v1473_v15  ;;  %976 = vmatpush1.bf16.msra.mxu1 %v1526_v30  ;;  %v1502_v52 = vld [vmem:[%s1730_s11 + $0x1d0] ss:$8 sps:$4 sm:$0xff]   ;;  %v1503_v53 = vld [vmem:[%s1730_s11 + $0x1e4] ss:$8 sps:$4 sm:$0xff]   ;;  %v1562_v54 = vld [vmem:[%s1730_s11 + $0x80] ss:$8 sps:$4 sm:$0xff]  }
  0x38   : > { %977 = vmatprep.subr.bf16.mxu1 %v1530_v32  ;;  %v1566_v55 = vld [vmem:[%s1730_s11 + $0x94] ss:$8 sps:$4 sm:$0xff]   ;;  %v1505_v56 = vld [vmem:[%s1730_s11 + $0x1e0] ss:$8 sps:$4 sm:$0xff]   ;;  %v1568_v58 = vld [vmem:[%s1730_s11 + $0x90] ss:$8 sps:$4 sm:$0xff]  }
  0x39   : > { %v1506_v57 = vld [vmem:[%s1730_s11 + $0x1f4] ss:$8 sps:$4 sm:$0xff]   ;;  %v1572_v59 = vld [vmem:[%s1730_s11 + $0xa4] ss:$8 sps:$4 sm:$0xff]   ;;  %v1510_v60 = vld [vmem:[%s1730_s11 + $0x1f0] ss:$8 sps:$4 sm:$0xff]  }
  0x3a   : > { %1023 = vmatpush1.bf16.msra.mxu0 %v1475_v16  ;;  %v1517_v61 = vld [vmem:[%s1730_s11 + $0x204] ss:$8 sps:$4 sm:$0xff]   ;;  %v1574_v62 = vld [vmem:[%s1730_s11 + $0xa0] ss:$8 sps:$4 sm:$0xff]   ;;  %v1578_v0 = vld [vmem:[%s1730_s11 + $0xb4] ss:$8 sps:$4 sm:$0xff]  }
  0x3b   : > { %1024 = vmatprep.subr.bf16.mxu0 %v1476_v17  ;;  %978 = vmatpush1.bf16.msra.mxu1 %v1532_v34  ;;  %v1512_v63 = vld [vmem:[%s1732_s12 + $0x8] ss:$24 sps:$4 sm:$0xff]   ;;  %v1523_v2 = vld [vmem:[%s1730_s11 + $0x214] ss:$8 sps:$4 sm:$0xff]   ;;  %v1584_v5 = vld [vmem:[%s1730_s11 + $0xc4] ss:$8 sps:$4 sm:$0xff]  }
  0x3c   : > { %979 = vmatprep.subr.bf16.mxu1 %v1536_v35  ;;  %v1515_v1 = vld [vmem:[%s1730_s11 + $0x200] ss:$8 sps:$4 sm:$0xff]   ;;  %v1580_v3 = vld [vmem:[%s1730_s11 + $0xb0] ss:$8 sps:$4 sm:$0xff]   ;;  %v1607_v4 = vld [vmem:[%s1732_s12 + $0x4] ss:$24 sps:$4 sm:$0xff]  }
  0x3d   : > { %v1521_v6 = vld [vmem:[%s1730_s11 + $0x210] ss:$8 sps:$4 sm:$0xff]   ;;  %1003 = vmatprep.mubr.bf16.mxu1 %v1607_v4  ;;  %v1613_v7 = vld [vmem:[%s1732_s12 + $0x14] ss:$24 sps:$4 sm:$0xff]   ;;  %v1586_v9 = vld [vmem:[%s1730_s11 + $0xc0] ss:$8 sps:$4 sm:$0xff]  }
  0x3e   : > { %1025 = vmatpush1.bf16.msra.mxu0 %v1478_v18  ;;  %v1529_v8 = vld [vmem:[%s1730_s11 + $0x224] ss:$8 sps:$4 sm:$0xff]   ;;  %v1590_v10 = vld [vmem:[%s1730_s11 + $0xd4] ss:$8 sps:$4 sm:$0xff]   ;;  %v1527_v11 = vld [vmem:[%s1730_s11 + $0x220] ss:$8 sps:$4 sm:$0xff]  }
  0x3f   : > { %1026 = vmatprep.subr.bf16.mxu0 %v1479_v19  ;;  %980 = vmatpush1.bf16.msra.mxu1 %v1538_v38  ;;  %v1535_v12 = vld [vmem:[%s1730_s11 + $0x234] ss:$8 sps:$4 sm:$0xff]   ;;  %v1592_v13 = vld [vmem:[%s1730_s11 + $0xd0] ss:$8 sps:$4 sm:$0xff]   ;;  %v1596_v14 = vld [vmem:[%s1730_s11 + $0xe4] ss:$8 sps:$4 sm:$0xff]  }
  0x40   : > { %981 = vmatprep.subr.bf16.mxu1 %v1542_v39  ;;  %v1533_v15 = vld [vmem:[%s1730_s11 + $0x230] ss:$8 sps:$4 sm:$0xff]   ;;  %v1541_v16 = vld [vmem:[%s1730_s11 + $0x244] ss:$8 sps:$4 sm:$0xff]   ;;  %v1598_v17 = vld [vmem:[%s1730_s11 + $0xe0] ss:$8 sps:$4 sm:$0xff]  }
  0x41   : > { %v1602_v18 = vld [vmem:[%s1730_s11 + $0xf4] ss:$8 sps:$4 sm:$0xff]   ;;  %v1539_v19 = vld [vmem:[%s1730_s11 + $0x240] ss:$8 sps:$4 sm:$0xff]   ;;  %v1604_v21 = vld [vmem:[%s1730_s11 + $0xf0] ss:$8 sps:$4 sm:$0xff]  }
  0x42   : > { %1027 = vmatpush1.bf16.msra.mxu0 %v1481_v22  ;;  %v1547_v20 = vld [vmem:[%s1730_s11 + $0x254] ss:$8 sps:$4 sm:$0xff]   ;;  %v1545_v22 = vld [vmem:[%s1730_s11 + $0x250] ss:$8 sps:$4 sm:$0xff]   ;;  %v1553_v23 = vld [vmem:[%s1730_s11 + $0x264] ss:$8 sps:$4 sm:$0xff]  }
  0x43   : > { %1028 = vmatprep.subr.bf16.mxu0 %v1482_v24  ;;  %982 = vmatpush1.bf16.msra.mxu1 %v1544_v42  ;;  %v1605_v24 = vld [vmem:[%s1732_s12] ss:$24 sps:$4 sm:$0xff]   ;;  %v1559_v26 = vld [vmem:[%s1730_s11 + $0x274] ss:$8 sps:$4 sm:$0xff]   ;;  %v1577_v32 = vld [vmem:[%s1730_s11 + $0x2a4] ss:$8 sps:$4 sm:$0xff]  }
  0x44   : > { %983 = vmatprep.subr.bf16.mxu1 %v1548_v43  ;;  %v1551_v25 = vld [vmem:[%s1730_s11 + $0x260] ss:$8 sps:$4 sm:$0xff]   ;;  %v1571_v30 = vld [vmem:[%s1730_s11 + $0x294] ss:$8 sps:$4 sm:$0xff]   ;;  %v1581_v35 = vld [vmem:[%s1730_s11 + $0x2b0] ss:$8 sps:$4 sm:$0xff]  }
  0x45   : > { %v1563_v29 = vld [vmem:[%s1730_s11 + $0x280] ss:$8 sps:$4 sm:$0xff]   ;;  %v1583_v34 = vld [vmem:[%s1730_s11 + $0x2b4] ss:$8 sps:$4 sm:$0xff]   ;;  %v1593_v39 = vld [vmem:[%s1730_s11 + $0x2d0] ss:$8 sps:$4 sm:$0xff]  }
  0x46   : > { %1029 = vmatpush1.bf16.msra.mxu0 %v1484_v27  ;;  %v1557_v27 = vld [vmem:[%s1730_s11 + $0x270] ss:$8 sps:$4 sm:$0xff]   ;;  %v1595_v38 = vld [vmem:[%s1730_s11 + $0x2d4] ss:$8 sps:$4 sm:$0xff]   ;;  %p1403_p11 = scmp.ne.s32.totalorder %s1644_s17, 2 }
  0x47   : > { %1030 = vmatprep.subr.bf16.mxu0 %v1485_v28  ;;  %984 = vmatpush1.bf16.msra.mxu1 %v1550_v46  ;;  %v1565_v28 = vld [vmem:[%s1730_s11 + $0x284] ss:$8 sps:$4 sm:$0xff]   ;;  %v1610_v42 = vld [vmem:[%s1730_s11 + $0x2f4] ss:$8 sps:$4 sm:$0xff]   ;;  %v1608_v43 = vld [vmem:[%s1730_s11 + $0x2f0] ss:$8 sps:$4 sm:$0xff]  }
  0x48   : > { %985 = vmatprep.subr.bf16.mxu1 %v1554_v47  ;;  %v1132_v4 = vld [vmem:[%s1922_s3] sm:$0x3] (!%p1403_p11) }
  0x4a   : > { %1031 = vmatpush1.bf16.msra.mxu0 %v1487_v31  ;;  %v1569_v31 = vld [vmem:[%s1730_s11 + $0x290] ss:$8 sps:$4 sm:$0xff]  }
  0x4b   : > { %1032 = vmatprep.subr.bf16.mxu0 %v1488_v33  ;;  %986 = vmatpush1.bf16.msra.mxu1 %v1556_v50  ;;  %v1575_v33 = vld [vmem:[%s1730_s11 + $0x2a0] ss:$8 sps:$4 sm:$0xff]  }
  0x4c   : > { %987 = vmatprep.subr.bf16.mxu1 %v1560_v51 }
  0x4e   : > { %1033 = vmatpush1.bf16.msra.mxu0 %v1490_v36  ;;  %v1589_v36 = vld [vmem:[%s1730_s11 + $0x2c4] ss:$8 sps:$4 sm:$0xff]  }
  0x4f   : > { %1034 = vmatprep.subr.bf16.mxu0 %v1491_v37  ;;  %988 = vmatpush1.bf16.msra.mxu1 %v1562_v54  ;;  %v1587_v37 = vld [vmem:[%s1730_s11 + $0x2c0] ss:$8 sps:$4 sm:$0xff]  }
  0x50   : > { %989 = vmatprep.subr.bf16.mxu1 %v1566_v55  ;;  %v357_v55 = vld [vmem:[%s1923_s4 + $0x10] sm:$0xff] }
  0x52   : > { %1035 = vmatpush1.bf16.msra.mxu0 %v1493_v40  ;;  %v1601_v40 = vld [vmem:[%s1730_s11 + $0x2e4] ss:$8 sps:$4 sm:$0xff]  }
  0x53   : > { %1036 = vmatprep.subr.bf16.mxu0 %v1494_v41  ;;  %990 = vmatpush1.bf16.msra.mxu1 %v1568_v58  ;;  %v1599_v41 = vld [vmem:[%s1730_s11 + $0x2e0] ss:$8 sps:$4 sm:$0xff]  }
  0x54   : > { %991 = vmatprep.subr.bf16.mxu1 %v1572_v59  ;;  %v358_v59 = vld [vmem:[%s1923_s4 + $0x18] sm:$0xff] }
  0x56   : > { %1037 = vmatpush1.bf16.msra.mxu0 %v1496_v44  ;;  %v1611_v44 = vld [vmem:[%s1732_s12 + $0x10] ss:$24 sps:$4 sm:$0xff]  }
  0x57   : > { %1038 = vmatprep.subr.bf16.mxu0 %v1497_v45  ;;  %992 = vmatpush1.bf16.msra.mxu1 %v1574_v62 }
  0x58   : > { %993 = vmatprep.subr.bf16.mxu1 %v1578_v0 }
  0x5a   : > { %1039 = vmatpush1.bf16.msra.mxu0 %v1499_v48 }
  0x5b   : > { %1040 = vmatprep.subr.bf16.mxu0 %v1500_v49  ;;  %994 = vmatpush1.bf16.msra.mxu1 %v1580_v3  ;;  %v355_v49 = vld [vmem:[%s1923_s4] sm:$0xff] }
  0x5c   : > { %995 = vmatprep.subr.bf16.mxu1 %v1584_v5  ;;  %v1116_v3 = vld [vmem:[%s1921_s2] sm:$0x3] (!%p1403_p11) }
  0x5e   : > { %1041 = vmatpush1.bf16.msra.mxu0 %v1502_v52  ;;  %v356_v52 = vld [vmem:[%s1923_s4 + $0x8] sm:$0xff] }
  0x5f   : > { %1042 = vmatprep.subr.bf16.mxu0 %v1503_v53  ;;  %996 = vmatpush1.bf16.msra.mxu1 %v1586_v9 }
  0x60   : > { %997 = vmatprep.subr.bf16.mxu1 %v1590_v10 }
  0x62   : > { %1043 = vmatpush1.bf16.msra.mxu0 %v1505_v56 }
  0x63   : > { %1044 = vmatprep.subr.bf16.mxu0 %v1506_v57  ;;  %998 = vmatpush1.bf16.msra.mxu1 %v1592_v13 }
  0x64   : > { %999 = vmatprep.subr.bf16.mxu1 %v1596_v14 }
  0x66   : > { %1045 = vmatpush1.bf16.msra.mxu0 %v1510_v60 }
  0x67   : > { %1057 = vmatprep.subr.bf16.mxu0 %v1517_v61  ;;  %1000 = vmatpush1.bf16.msra.mxu1 %v1598_v17 }
  0x68   : > { %1001 = vmatprep.subr.bf16.mxu1 %v1602_v18 }
  0x69   : > { %1047 = vmatmul.mubr.bf16.vlgmr.msra.gmra.mrb[0].mxu0 %v1512_v63 }
  0x6a   : > { %1058 = vmatpush1.bf16.msra.mxu0 %v1515_v1  ;;  %1089 = vmatprep.mubr.bf16.mxu0 %v1613_v7  ;;  %v1118_v1 = vlaneseq (!%p1403_p11) }
  0x6b   : > { %1059 = vmatprep.subr.bf16.mxu0 %v1523_v2  ;;  %1002 = vmatpush1.bf16.msra.mxu1 %v1604_v21 }
  0x6c   : > { %v1119_v2 = vshrl.u32 (!%p1403_p11), %v1118_v1, 7 }
  0x6e   : > { %1060 = vmatpush1.bf16.msra.mxu0 %v1521_v6  ;;  %1004 = vmatmul.mubr.bf16.vlgmr.msra.gmra.mrb[0].mxu1 %v1605_v24  ;;  %v1120_v6 = vsub.s32 (!%p1403_p11), 0, %v1119_v2  ;;  %v1124_v7 = vsub.s32 (!%p1403_p11), 1, %v1119_v2 }
  0x6f   : > { %1061 = vmatprep.subr.bf16.mxu0 %v1529_v8 }
  0x70   : > { %v1125_v13 = vrot.slane (!%p1403_p11), %v1116_v3, %v1124_v7  ;;  %v1141_v14 = vrot.slane (!%p1403_p11), %v1132_v4, %v1124_v7 }
  0x72   : > { %1062 = vmatpush1.bf16.msra.mxu0 %v1527_v11  ;;  %v1121_v11 = vrot.slane (!%p1403_p11), %v1116_v3, %v1120_v6 }
  0x73   : > { %1063 = vmatprep.subr.bf16.mxu0 %v1535_v12  ;;  %v1137_v12 = vrot.slane (!%p1403_p11), %v1132_v4, %v1120_v6 }
  0x76   : > { %1064 = vmatpush1.bf16.msra.mxu0 %v1533_v15 }
  0x77   : > { %1065 = vmatprep.subr.bf16.mxu0 %v1541_v16 }
  0x7a   : > { %1066 = vmatpush1.bf16.msra.mxu0 %v1539_v19 }
  0x7b   : > { %1067 = vmatprep.subr.bf16.mxu0 %v1547_v20 }
  0x7e   : > { %1068 = vmatpush1.bf16.msra.mxu0 %v1545_v22 }
  0x7f   : > { %1069 = vmatprep.subr.bf16.mxu0 %v1553_v23 }
  0x82   : > { %1070 = vmatpush1.bf16.msra.mxu0 %v1551_v25 }
  0x83   : > { %1071 = vmatprep.subr.bf16.mxu0 %v1559_v26 }
  0x86   : > { %1072 = vmatpush1.bf16.msra.mxu0 %v1557_v27 }
  0x87   : > { %1073 = vmatprep.subr.bf16.mxu0 %v1565_v28 }
  0x8a   : > { %1074 = vmatpush1.bf16.msra.mxu0 %v1563_v29 }
  0x8b   : > { %1075 = vmatprep.subr.bf16.mxu0 %v1571_v30 }
  0x8e   : > { %1076 = vmatpush1.bf16.msra.mxu0 %v1569_v31 }
  0x8f   : > { %1077 = vmatprep.subr.bf16.mxu0 %v1577_v32 }
  0x92   : > { %1078 = vmatpush1.bf16.msra.mxu0 %v1575_v33 }
  0x93   : > { %1079 = vmatprep.subr.bf16.mxu0 %v1583_v34 }
  0x96   : > { %1080 = vmatpush1.bf16.msra.mxu0 %v1581_v35 }
  0x97   : > { %1081 = vmatprep.subr.bf16.mxu0 %v1589_v36 }
  0x9a   : > { %1082 = vmatpush1.bf16.msra.mxu0 %v1587_v37 }
  0x9b   : > { %1083 = vmatprep.subr.bf16.mxu0 %v1595_v38 }
  0x9e   : > { %1084 = vmatpush1.bf16.msra.mxu0 %v1593_v39 }
  0x9f   : > { %1085 = vmatprep.subr.bf16.mxu0 %v1601_v40 }
  0xa2   : > { %1086 = vmatpush1.bf16.msra.mxu0 %v1599_v41 }
  0xa3   : > { %1087 = vmatprep.subr.bf16.mxu0 %v1610_v42 }
  0xa6   : > { %1088 = vmatpush1.bf16.msra.mxu0 %v1608_v43 }
  0xa9   : > { %1090 = vmatmul.mubr.bf16.vlgmr.msra.gmra.mrb[0].mxu0 %v1611_v44 }
 0x141   : > { %v1005_v45 = vpop.f32.mrb[0].mxu1 }
 0x142   : > { %v1007_v46 = vpop.f32.mrb[1].mxu1 }
 0x143   : > { %v1009_v47 = vpop.f32.mrb[2].mxu1 }
 0x144   : > { %v1011_v48 = vpop.f32.mrb[3].mxu1 }
 0x17c   : > { %v1091_v50 = vpop.f32.mrb[0].mxu0 }
 0x17d   : > { %v1410_v51 = vadd.f32 %v1091_v50, %v1005_v45  ;;  %v1093_v53 = vpop.f32.mrb[1].mxu0 }
 0x17e   : > { %v1411_v54 = vadd.f32 %v1093_v53, %v1007_v46  ;;  %v1095_v56 = vpop.f32.mrb[2].mxu0  ;;  %1111 = sbr.rel (%p1403_p11) target bundleno = 403 (0x193), region = 67 }
 0x17f   : > { %v1100_v57 = vadd.f32 %v1410_v51, %v355_v49  ;;  %v1412_v58 = vadd.f32 %v1095_v56, %v1009_v47  ;;  %v1097_v60 = vpop.f32.mrb[3].mxu0 }
 0x180   : > { %v1101_v61 = vadd.f32 %v1411_v54, %v356_v52  ;;  %v1413_v62 = vadd.f32 %v1097_v60, %v1011_v48 }
 0x181   : > { %1104 = vst [vmem:[%s1923_s4] sm:$0xff] %v1100_v57  ;;  %v1102_v63 = vadd.f32 %v1412_v58, %v357_v55 }
 0x182   : > { %1105 = vst [vmem:[%s1923_s4 + $0x8] sm:$0xff] %v1101_v61  ;;  %v1103_v0 = vadd.f32 %v1413_v62, %v358_v59 }
 0x183   : > { %1106 = vst [vmem:[%s1923_s4 + $0x10] sm:$0xff] %v1102_v63 }
 0x184   : > { %1107 = vst [vmem:[%s1923_s4 + $0x18] sm:$0xff] %v1103_v0 }
 0x188   : > { %v1112_v5 = vld [vmem:[%s1923_s4] sm:$0xff] }
 0x189   : > { %v1113_v8 = vld [vmem:[%s1923_s4 + $0x8] sm:$0xff]  ;;  %v1128_v15 = vmul.f32 %v1121_v11, %v1112_v5 }
 0x18a   : > { %v1114_v9 = vld [vmem:[%s1923_s4 + $0x10] sm:$0xff]  ;;  %v1129_v16 = vmul.f32 %v1125_v13, %v1113_v8 }
 0x18b   : > { %v1115_v10 = vld [vmem:[%s1923_s4 + $0x18] sm:$0xff]  ;;  %v1130_v17 = vmul.f32 %v1121_v11, %v1114_v9  ;;  %v1144_v19 = vadd.f32 %v1137_v12, %v1128_v15 }
 0x18c   : > { %v1131_v18 = vmul.f32 %v1125_v13, %v1115_v10  ;;  %v1145_v20 = vadd.f32 %v1141_v14, %v1129_v16 }
 0x18d   : > { %v1146_v21 = vadd.f32 %v1137_v12, %v1130_v17  ;;  %v1148_v23 = vmax.f32 %v1144_v19, 0.0 }
 0x18e   : > { %v1147_v22 = vadd.f32 %v1141_v14, %v1131_v18  ;;  %v1149_v24 = vmax.f32 %v1145_v20, 0.0 }
 0x18f   : > { %v1150_v25 = vmax.f32 %v1146_v21, 0.0  ;;  %1152 = vst [vmem:[%s1923_s4] sm:$0xff] %v1148_v23 }
 0x190   : > { %v1151_v26 = vmax.f32 %v1147_v22, 0.0  ;;  %1153 = vst [vmem:[%s1923_s4 + $0x8] sm:$0xff] %v1149_v24 }
 0x191   : > { %1154 = vst [vmem:[%s1923_s4 + $0x10] sm:$0xff] %v1150_v25 }
 0x192   : > { %1155 = vst [vmem:[%s1923_s4 + $0x18] sm:$0xff] %v1151_v26 }
 0x193 PF: > { %s14_s19 = sadd.s32 1, %s1652_s19   ;;  %s1924_s15 = smov %s1640_s16 }
 0x194   : > { %p11_p12 = scmp.ge.s32.totalorder %s14_s19, 5   ;;  %s1925_s16 = smov %s1715_s23 }
 0x195   : > { %s1926_s17 = smov %s1648_s18  ;;  %s1927_s18 = smov %s1929_s20 }
 0x196   :  { %13 = sbr.rel (!%p11_p12) target bundleno = 3 (0x3), region = 111 }

// kernel: _lambda_.40
= control target key start
LH: loop header
LB: loop body
LE: loop exit
PB: predicated region body
PF: predicated region fallthrough
CT: control target
= control target key end

     0   :  { %s2694_s0 = inlined_call_operand.vmem [shape: bf16[16,2304], index: 0, kind: input, shape index: {}]   ;;  %s2695_s1 = inlined_call_operand.vmem [shape: bf16[2304,512], index: 1, kind: input, shape index: {}]   ;;  %s2696_s2 = inlined_call_operand.vmem [shape: f32[1,512], index: 2, kind: input, shape index: {}]   ;;  %s2697_s3 = inlined_call_operand.vmem [shape: f32[1,512], index: 3, kind: input, shape index: {}]   ;;  %s2698_s4 = inlined_call_operand.vmem [shape: f32[16,512], index: 4, kind: output, shape index: {}]  }
   0x1   :  { %2701 = sst [smem:[#allocation7_spill]] %s2694_s0 }
   0x2   :  { %2702 = sst [smem:[#allocation8_spill]] %s2695_s1 }
   0x3   :  { %s2185_s15 = smov 0   ;;  %s2187_s16 = smov 0  }
   0x4   :  { %s2189_s17 = smov 0   ;;  %s2191_s18 = smov 0  }
   0x5   :  { %s2193_s19 = smov 0   ;;  %s2195_s20 = smov 0  }
   0x6   :  { %s2197_s21 = smov 0   ;;  %s2199_s22 = smov 0  }
   0x7   :  { %s2201_s23 = smov 0   ;;  %s2203_s24 = smov 0  }
   0x8   :  { %s2205_s25 = smov 0  }
   0x9 LB: > { %s1693_s26 = sadd.s32 4294967295, %s2157_s25   ;;  %s26_s27 = sadd.s32 1, %s2149_s23  ;;  %s2157_s25 = sphi %s2205_s25, %s14_s25   ;;  %s2153_s24 = sphi %s2203_s24, %s2721_s24   ;;  %s2149_s23 = sphi %s2201_s23, %s2720_s23   ;;  %s2145_s22 = sphi %s2199_s22, %s2719_s22   ;;  %s2141_s21 = sphi %s2197_s21, %s2718_s21   ;;  %s2137_s20 = sphi %s2195_s20, %s2717_s20   ;;  %s2133_s19 = sphi %s2193_s19, %s2716_s19   ;;  %s2129_s18 = sphi %s2191_s18, %s2715_s18   ;;  %s2125_s17 = sphi %s2189_s17, %s2714_s17   ;;  %s2121_s16 = sphi %s2187_s16, %s2713_s16   ;;  %s2117_s15 = sphi %s2185_s15, %s2712_s15  }
   0xa   : > { %p27_p0 = scmp.ge.s32.totalorder %s26_s27, 3  ;;  %s29_s28 = sadd.s32 1, %s2153_s24 }
   0xb   : > { %s42_s29 = sadd.s32 1, %s2137_s20  ;;  %p49_p1 = scmp.ne.s32.totalorder %s2137_s20, %s2133_s19 }
   0xc   : > { %s2723_s27 = smov (%p27_p0, %s26_s27), 0  ;;  %s2725_s28 = smov (!%p27_p0, %s29_s28), %s2153_s24 }
   0xd   : > { %2703 = sst [smem:[#allocation5_spill]] %s2723_s27  ;;  %s38_s30 = ssub.s32 %s2149_s23, %s2723_s27 }
   0xe   : > { %p50_p2 = scmp.eq.s32.totalorder %s2157_s25, 0  ;;  %p31_p3 = scmp.ge.s32.totalorder %s2725_s28, 2 }
   0xf   : > { %p40_p4 = scmp.eq.s32.totalorder %s38_s30, 0  ;;  %s70_s6 = sadd.s32 1, %s2129_s18 }
  0x10   : > { %p2252_p5 = por %p50_p2, %p49_p1  ;;  %s2727_s28 = smov (%p31_p3, %s2725_s28), 0 }
  0x11   : > { %2705 = sst [smem:[#allocation6_spill]] %s2727_s28  ;;  %s66_s8 = ssub.s32 %s2153_s24, %s2727_s28 }
  0x12   : > { %s2260_s7 = scalar_select %p40_p4, %s2137_s20, %s42_s29  }
  0x13   : > { %p77_p6 = scmp.ne.s32.totalorder %s2129_s18, %s2125_s17  ;;  %s67_s9 = sor.u32 %s66_s8, %s38_s30 }
  0x14   : > { %p148_p7 = scmp.eq.s32.totalorder %s66_s8, 0  ;;  %p68_p8 = scmp.eq.s32.totalorder %s67_s9, 0 }
  0x15   : > { %p2266_p9 = por %p77_p6, %p50_p2  ;;  %s150_s11 = sadd.s32 1, %s2121_s16 }
  0x16   : > { %p160_p10 = scmp.ne.s32.totalorder %s2121_s16, %s2117_s15  ;;  %p161_p11 = scmp.eq.s32.totalorder %s1693_s26, 5 }
  0x17   : > { %s2274_s12 = scalar_select %p68_p8, %s2129_s18, %s70_s6  }
  0x18   : > { %s2277_s13 = scalar_select %p148_p7, %s2121_s16, %s150_s11  }
  0x19   : > { %p2279_p12 = por %p161_p11, %p160_p10  ;;  %p1696_p13 = scmp.ge.s32.totalorder %s2157_s25, 6 }
  0x1b   : > { %183 = sbr.rel (%p1696_p13) target bundleno = 104 (0x68), region = 16 }
  0x22   : > { %186 = sbr.rel (!%p2252_p5) target bundleno = 46 (0x2e), region = 20  ;;  %s188_s29 = sand.u32 (%p2252_p5), 1, %s2137_s20  }
  0x23   : > { %s1814_s30 = smul.u32 (%p2252_p5), 24, %s2149_s23  ;;  %s2708_s0 = sld [smem:[#allocation7_spill]] (%p2252_p5) }
  0x24   : > { %s1825_s8 = smul.u32 (%p2252_p5), 48, %s188_s29 }
  0x26   : > { %s190_s26 = scalar_lea.vmem (%p2252_p5), [#allocation2], %s1825_s8 }
  0x29   : > { %s196_s11 = scalar_lea.vmem %s2708_s0, %s1814_s30 }
  0x2a   : > { %v209_v0 = vld [vmem:[%s196_s11] sm:$0xff]  ;;  %v211_v1 = vld [vmem:[%s196_s11 + $0x8] sm:$0xff]  ;;  %v213_v2 = vld [vmem:[%s196_s11 + $0x10] sm:$0xff] }
  0x2b   : > { %210 = vst [vmem:[%s190_s26] sm:$0xff] %v209_v0  ;;  %212 = vst [vmem:[%s190_s26 + $0x8] sm:$0xff] %v211_v1  ;;  %v215_v3 = vld [vmem:[%s196_s11 + $0x48] sm:$0xff]  ;;  %v217_v4 = vld [vmem:[%s196_s11 + $0x50] sm:$0xff] }
  0x2c   : > { %214 = vst [vmem:[%s190_s26 + $0x10] sm:$0xff] %v213_v2  ;;  %v219_v5 = vld [vmem:[%s196_s11 + $0x58] sm:$0xff]  ;;  %216 = vst [vmem:[%s190_s26 + $0x18] sm:$0xff] %v215_v3 }
  0x2d   : > { %218 = vst [vmem:[%s190_s26 + $0x20] sm:$0xff] %v217_v4  ;;  %220 = vst [vmem:[%s190_s26 + $0x28] sm:$0xff] %v219_v5 }
  0x2e PF: > { %226 = sbr.rel (!%p2266_p9) target bundleno = 104 (0x68), region = 43  ;;  %s228_s5 = sand.u32 (%p2266_p9), 1, %s2129_s18  }
  0x2f   : > { %s1826_s29 = smul.u32 (%p2266_p9), 768, %s228_s5  ;;  %s1698_s30 = sshll.u32 (%p2266_p9), %s2153_s24, 1 }
  0x30   : > { %s1815_s8 = smul.u32 (%p2266_p9), 384, %s2149_s23  ;;  %s2709_s1 = sld [smem:[#allocation8_spill]] (%p2266_p9) }
  0x31   : > { %s2304_s10 = scalar_lea.vmem (%p2266_p9), [#allocation3], %s1826_s29 }
  0x32   : > { %s234_s6 = sadd.s32 (%p2266_p9), %s1815_s8, %s1698_s30 }
  0x33   : > { %s1700_s9 = sshll.u32 (%p2266_p9), %s234_s6, 2 }
  0x36   : > { %s2299_s11 = scalar_lea.vmem %s2709_s1, %s1700_s9 }
  0x37   : > { %v454_v6 = vld [vmem:[%s2299_s11] sm:$0xff]  ;;  %v456_v7 = vld [vmem:[%s2299_s11 + $0x10] sm:$0xff] }
  0x38   : > { %v458_v8 = vld [vmem:[%s2299_s11 + $0x20] sm:$0xff]  ;;  %455 = vst [vmem:[%s2304_s10] sm:$0xff] %v454_v6  ;;  %457 = vst [vmem:[%s2304_s10 + $0x8] sm:$0xff] %v456_v7  ;;  %v460_v9 = vld [vmem:[%s2299_s11 + $0x30] sm:$0xff] }
  0x39   : > { %459 = vst [vmem:[%s2304_s10 + $0x10] sm:$0xff] %v458_v8  ;;  %v462_v10 = vld [vmem:[%s2299_s11 + $0x40] sm:$0xff]  ;;  %v464_v11 = vld [vmem:[%s2299_s11 + $0x50] sm:$0xff]  ;;  %461 = vst [vmem:[%s2304_s10 + $0x18] sm:$0xff] %v460_v9 }
  0x3a   : > { %463 = vst [vmem:[%s2304_s10 + $0x20] sm:$0xff] %v462_v10  ;;  %465 = vst [vmem:[%s2304_s10 + $0x28] sm:$0xff] %v464_v11  ;;  %v466_v12 = vld [vmem:[%s2299_s11 + $0x60] sm:$0xff]  ;;  %v468_v13 = vld [vmem:[%s2299_s11 + $0x70] sm:$0xff] }
  0x3b   : > { %v470_v14 = vld [vmem:[%s2299_s11 + $0x80] sm:$0xff]  ;;  %467 = vst [vmem:[%s2304_s10 + $0x30] sm:$0xff] %v466_v12  ;;  %469 = vst [vmem:[%s2304_s10 + $0x38] sm:$0xff] %v468_v13  ;;  %v472_v15 = vld [vmem:[%s2299_s11 + $0x90] sm:$0xff] }
  0x3c   : > { %471 = vst [vmem:[%s2304_s10 + $0x40] sm:$0xff] %v470_v14  ;;  %v474_v16 = vld [vmem:[%s2299_s11 + $0xa0] sm:$0xff]  ;;  %v476_v17 = vld [vmem:[%s2299_s11 + $0xb0] sm:$0xff]  ;;  %473 = vst [vmem:[%s2304_s10 + $0x48] sm:$0xff] %v472_v15 }
  0x3d   : > { %475 = vst [vmem:[%s2304_s10 + $0x50] sm:$0xff] %v474_v16  ;;  %477 = vst [vmem:[%s2304_s10 + $0x58] sm:$0xff] %v476_v17  ;;  %v478_v18 = vld [vmem:[%s2299_s11 + $0xc0] sm:$0xff]  ;;  %v480_v19 = vld [vmem:[%s2299_s11 + $0xd0] sm:$0xff] }
  0x3e   : > { %v482_v20 = vld [vmem:[%s2299_s11 + $0xe0] sm:$0xff]  ;;  %479 = vst [vmem:[%s2304_s10 + $0x60] sm:$0xff] %v478_v18  ;;  %481 = vst [vmem:[%s2304_s10 + $0x68] sm:$0xff] %v480_v19  ;;  %v484_v21 = vld [vmem:[%s2299_s11 + $0xf0] sm:$0xff] }
  0x3f   : > { %483 = vst [vmem:[%s2304_s10 + $0x70] sm:$0xff] %v482_v20  ;;  %v486_v22 = vld [vmem:[%s2299_s11 + $0x100] sm:$0xff]  ;;  %v488_v23 = vld [vmem:[%s2299_s11 + $0x110] sm:$0xff]  ;;  %485 = vst [vmem:[%s2304_s10 + $0x78] sm:$0xff] %v484_v21 }
  0x40   : > { %487 = vst [vmem:[%s2304_s10 + $0x80] sm:$0xff] %v486_v22  ;;  %489 = vst [vmem:[%s2304_s10 + $0x88] sm:$0xff] %v488_v23  ;;  %v490_v24 = vld [vmem:[%s2299_s11 + $0x120] sm:$0xff]  ;;  %v492_v25 = vld [vmem:[%s2299_s11 + $0x130] sm:$0xff] }
  0x41   : > { %v494_v26 = vld [vmem:[%s2299_s11 + $0x140] sm:$0xff]  ;;  %491 = vst [vmem:[%s2304_s10 + $0x90] sm:$0xff] %v490_v24  ;;  %493 = vst [vmem:[%s2304_s10 + $0x98] sm:$0xff] %v492_v25  ;;  %v496_v27 = vld [vmem:[%s2299_s11 + $0x150] sm:$0xff] }
  0x42   : > { %495 = vst [vmem:[%s2304_s10 + $0xa0] sm:$0xff] %v494_v26  ;;  %v498_v28 = vld [vmem:[%s2299_s11 + $0x160] sm:$0xff]  ;;  %v500_v29 = vld [vmem:[%s2299_s11 + $0x170] sm:$0xff]  ;;  %497 = vst [vmem:[%s2304_s10 + $0xa8] sm:$0xff] %v496_v27 }
  0x43   : > { %499 = vst [vmem:[%s2304_s10 + $0xb0] sm:$0xff] %v498_v28  ;;  %501 = vst [vmem:[%s2304_s10 + $0xb8] sm:$0xff] %v500_v29  ;;  %v502_v30 = vld [vmem:[%s2299_s11 + $0x180] sm:$0xff]  ;;  %v504_v31 = vld [vmem:[%s2299_s11 + $0x190] sm:$0xff] }
  0x44   : > { %v506_v32 = vld [vmem:[%s2299_s11 + $0x1a0] sm:$0xff]  ;;  %503 = vst [vmem:[%s2304_s10 + $0xc0] sm:$0xff] %v502_v30  ;;  %505 = vst [vmem:[%s2304_s10 + $0xc8] sm:$0xff] %v504_v31  ;;  %v508_v33 = vld [vmem:[%s2299_s11 + $0x1b0] sm:$0xff] }
  0x45   : > { %507 = vst [vmem:[%s2304_s10 + $0xd0] sm:$0xff] %v506_v32  ;;  %v510_v34 = vld [vmem:[%s2299_s11 + $0x1c0] sm:$0xff]  ;;  %v512_v35 = vld [vmem:[%s2299_s11 + $0x1d0] sm:$0xff]  ;;  %509 = vst [vmem:[%s2304_s10 + $0xd8] sm:$0xff] %v508_v33 }
  0x46   : > { %511 = vst [vmem:[%s2304_s10 + $0xe0] sm:$0xff] %v510_v34  ;;  %513 = vst [vmem:[%s2304_s10 + $0xe8] sm:$0xff] %v512_v35  ;;  %v514_v36 = vld [vmem:[%s2299_s11 + $0x1e0] sm:$0xff]  ;;  %v516_v37 = vld [vmem:[%s2299_s11 + $0x1f0] sm:$0xff] }
  0x47   : > { %v518_v38 = vld [vmem:[%s2299_s11 + $0x200] sm:$0xff]  ;;  %515 = vst [vmem:[%s2304_s10 + $0xf0] sm:$0xff] %v514_v36  ;;  %517 = vst [vmem:[%s2304_s10 + $0xf8] sm:$0xff] %v516_v37  ;;  %v520_v39 = vld [vmem:[%s2299_s11 + $0x210] sm:$0xff] }
  0x48   : > { %519 = vst [vmem:[%s2304_s10 + $0x100] sm:$0xff] %v518_v38  ;;  %v522_v40 = vld [vmem:[%s2299_s11 + $0x220] sm:$0xff]  ;;  %v524_v41 = vld [vmem:[%s2299_s11 + $0x230] sm:$0xff]  ;;  %521 = vst [vmem:[%s2304_s10 + $0x108] sm:$0xff] %v520_v39 }
  0x49   : > { %523 = vst [vmem:[%s2304_s10 + $0x110] sm:$0xff] %v522_v40  ;;  %525 = vst [vmem:[%s2304_s10 + $0x118] sm:$0xff] %v524_v41  ;;  %v526_v42 = vld [vmem:[%s2299_s11 + $0x240] sm:$0xff]  ;;  %v528_v43 = vld [vmem:[%s2299_s11 + $0x250] sm:$0xff] }
  0x4a   : > { %v530_v44 = vld [vmem:[%s2299_s11 + $0x260] sm:$0xff]  ;;  %527 = vst [vmem:[%s2304_s10 + $0x120] sm:$0xff] %v526_v42  ;;  %529 = vst [vmem:[%s2304_s10 + $0x128] sm:$0xff] %v528_v43  ;;  %v532_v45 = vld [vmem:[%s2299_s11 + $0x270] sm:$0xff] }
  0x4b   : > { %531 = vst [vmem:[%s2304_s10 + $0x130] sm:$0xff] %v530_v44  ;;  %v534_v46 = vld [vmem:[%s2299_s11 + $0x280] sm:$0xff]  ;;  %v536_v47 = vld [vmem:[%s2299_s11 + $0x290] sm:$0xff]  ;;  %533 = vst [vmem:[%s2304_s10 + $0x138] sm:$0xff] %v532_v45 }
  0x4c   : > { %535 = vst [vmem:[%s2304_s10 + $0x140] sm:$0xff] %v534_v46  ;;  %537 = vst [vmem:[%s2304_s10 + $0x148] sm:$0xff] %v536_v47  ;;  %v538_v48 = vld [vmem:[%s2299_s11 + $0x2a0] sm:$0xff]  ;;  %v540_v49 = vld [vmem:[%s2299_s11 + $0x2b0] sm:$0xff] }
  0x4d   : > { %v542_v50 = vld [vmem:[%s2299_s11 + $0x2c0] sm:$0xff]  ;;  %539 = vst [vmem:[%s2304_s10 + $0x150] sm:$0xff] %v538_v48  ;;  %541 = vst [vmem:[%s2304_s10 + $0x158] sm:$0xff] %v540_v49  ;;  %v544_v51 = vld [vmem:[%s2299_s11 + $0x2d0] sm:$0xff] }
  0x4e   : > { %543 = vst [vmem:[%s2304_s10 + $0x160] sm:$0xff] %v542_v50  ;;  %v546_v52 = vld [vmem:[%s2299_s11 + $0x2e0] sm:$0xff]  ;;  %v548_v53 = vld [vmem:[%s2299_s11 + $0x2f0] sm:$0xff]  ;;  %545 = vst [vmem:[%s2304_s10 + $0x168] sm:$0xff] %v544_v51 }
  0x4f   : > { %547 = vst [vmem:[%s2304_s10 + $0x170] sm:$0xff] %v546_v52  ;;  %549 = vst [vmem:[%s2304_s10 + $0x178] sm:$0xff] %v548_v53  ;;  %v550_v54 = vld [vmem:[%s2299_s11 + $0x300] sm:$0xff]  ;;  %v552_v55 = vld [vmem:[%s2299_s11 + $0x310] sm:$0xff] }
  0x50   : > { %v554_v56 = vld [vmem:[%s2299_s11 + $0x320] sm:$0xff]  ;;  %551 = vst [vmem:[%s2304_s10 + $0x180] sm:$0xff] %v550_v54  ;;  %553 = vst [vmem:[%s2304_s10 + $0x188] sm:$0xff] %v552_v55  ;;  %v556_v57 = vld [vmem:[%s2299_s11 + $0x330] sm:$0xff] }
  0x51   : > { %555 = vst [vmem:[%s2304_s10 + $0x190] sm:$0xff] %v554_v56  ;;  %v558_v58 = vld [vmem:[%s2299_s11 + $0x340] sm:$0xff]  ;;  %v560_v59 = vld [vmem:[%s2299_s11 + $0x350] sm:$0xff]  ;;  %557 = vst [vmem:[%s2304_s10 + $0x198] sm:$0xff] %v556_v57 }
  0x52   : > { %559 = vst [vmem:[%s2304_s10 + $0x1a0] sm:$0xff] %v558_v58  ;;  %561 = vst [vmem:[%s2304_s10 + $0x1a8] sm:$0xff] %v560_v59  ;;  %v562_v60 = vld [vmem:[%s2299_s11 + $0x360] sm:$0xff]  ;;  %v564_v61 = vld [vmem:[%s2299_s11 + $0x370] sm:$0xff] }
  0x53   : > { %v566_v62 = vld [vmem:[%s2299_s11 + $0x380] sm:$0xff]  ;;  %563 = vst [vmem:[%s2304_s10 + $0x1b0] sm:$0xff] %v562_v60  ;;  %565 = vst [vmem:[%s2304_s10 + $0x1b8] sm:$0xff] %v564_v61  ;;  %v568_v63 = vld [vmem:[%s2299_s11 + $0x390] sm:$0xff] }
  0x54   : > { %567 = vst [vmem:[%s2304_s10 + $0x1c0] sm:$0xff] %v566_v62  ;;  %v570_v0 = vld [vmem:[%s2299_s11 + $0x3a0] sm:$0xff]  ;;  %v572_v1 = vld [vmem:[%s2299_s11 + $0x3b0] sm:$0xff]  ;;  %569 = vst [vmem:[%s2304_s10 + $0x1c8] sm:$0xff] %v568_v63 }
  0x55   : > { %571 = vst [vmem:[%s2304_s10 + $0x1d0] sm:$0xff] %v570_v0  ;;  %573 = vst [vmem:[%s2304_s10 + $0x1d8] sm:$0xff] %v572_v1  ;;  %v574_v2 = vld [vmem:[%s2299_s11 + $0x3c0] sm:$0xff]  ;;  %v576_v3 = vld [vmem:[%s2299_s11 + $0x3d0] sm:$0xff] }
  0x56   : > { %v578_v4 = vld [vmem:[%s2299_s11 + $0x3e0] sm:$0xff]  ;;  %575 = vst [vmem:[%s2304_s10 + $0x1e0] sm:$0xff] %v574_v2  ;;  %577 = vst [vmem:[%s2304_s10 + $0x1e8] sm:$0xff] %v576_v3  ;;  %v580_v5 = vld [vmem:[%s2299_s11 + $0x3f0] sm:$0xff] }
  0x57   : > { %579 = vst [vmem:[%s2304_s10 + $0x1f0] sm:$0xff] %v578_v4  ;;  %v582_v6 = vld [vmem:[%s2299_s11 + $0x400] sm:$0xff]  ;;  %v584_v7 = vld [vmem:[%s2299_s11 + $0x410] sm:$0xff]  ;;  %581 = vst [vmem:[%s2304_s10 + $0x1f8] sm:$0xff] %v580_v5 }
  0x58   : > { %583 = vst [vmem:[%s2304_s10 + $0x200] sm:$0xff] %v582_v6  ;;  %585 = vst [vmem:[%s2304_s10 + $0x208] sm:$0xff] %v584_v7  ;;  %v586_v8 = vld [vmem:[%s2299_s11 + $0x420] sm:$0xff]  ;;  %v588_v9 = vld [vmem:[%s2299_s11 + $0x430] sm:$0xff] }
  0x59   : > { %v590_v10 = vld [vmem:[%s2299_s11 + $0x440] sm:$0xff]  ;;  %587 = vst [vmem:[%s2304_s10 + $0x210] sm:$0xff] %v586_v8  ;;  %589 = vst [vmem:[%s2304_s10 + $0x218] sm:$0xff] %v588_v9  ;;  %v592_v11 = vld [vmem:[%s2299_s11 + $0x450] sm:$0xff] }
  0x5a   : > { %591 = vst [vmem:[%s2304_s10 + $0x220] sm:$0xff] %v590_v10  ;;  %v594_v12 = vld [vmem:[%s2299_s11 + $0x460] sm:$0xff]  ;;  %v596_v13 = vld [vmem:[%s2299_s11 + $0x470] sm:$0xff]  ;;  %593 = vst [vmem:[%s2304_s10 + $0x228] sm:$0xff] %v592_v11 }
  0x5b   : > { %595 = vst [vmem:[%s2304_s10 + $0x230] sm:$0xff] %v594_v12  ;;  %597 = vst [vmem:[%s2304_s10 + $0x238] sm:$0xff] %v596_v13  ;;  %v598_v14 = vld [vmem:[%s2299_s11 + $0x480] sm:$0xff]  ;;  %v600_v15 = vld [vmem:[%s2299_s11 + $0x490] sm:$0xff] }
  0x5c   : > { %v602_v16 = vld [vmem:[%s2299_s11 + $0x4a0] sm:$0xff]  ;;  %599 = vst [vmem:[%s2304_s10 + $0x240] sm:$0xff] %v598_v14  ;;  %601 = vst [vmem:[%s2304_s10 + $0x248] sm:$0xff] %v600_v15  ;;  %v604_v17 = vld [vmem:[%s2299_s11 + $0x4b0] sm:$0xff] }
  0x5d   : > { %603 = vst [vmem:[%s2304_s10 + $0x250] sm:$0xff] %v602_v16  ;;  %v606_v18 = vld [vmem:[%s2299_s11 + $0x4c0] sm:$0xff]  ;;  %v608_v19 = vld [vmem:[%s2299_s11 + $0x4d0] sm:$0xff]  ;;  %605 = vst [vmem:[%s2304_s10 + $0x258] sm:$0xff] %v604_v17 }
  0x5e   : > { %607 = vst [vmem:[%s2304_s10 + $0x260] sm:$0xff] %v606_v18  ;;  %609 = vst [vmem:[%s2304_s10 + $0x268] sm:$0xff] %v608_v19  ;;  %v610_v20 = vld [vmem:[%s2299_s11 + $0x4e0] sm:$0xff]  ;;  %v612_v21 = vld [vmem:[%s2299_s11 + $0x4f0] sm:$0xff] }
  0x5f   : > { %v614_v22 = vld [vmem:[%s2299_s11 + $0x500] sm:$0xff]  ;;  %611 = vst [vmem:[%s2304_s10 + $0x270] sm:$0xff] %v610_v20  ;;  %613 = vst [vmem:[%s2304_s10 + $0x278] sm:$0xff] %v612_v21  ;;  %v616_v23 = vld [vmem:[%s2299_s11 + $0x510] sm:$0xff] }
  0x60   : > { %615 = vst [vmem:[%s2304_s10 + $0x280] sm:$0xff] %v614_v22  ;;  %v618_v24 = vld [vmem:[%s2299_s11 + $0x520] sm:$0xff]  ;;  %v620_v25 = vld [vmem:[%s2299_s11 + $0x530] sm:$0xff]  ;;  %617 = vst [vmem:[%s2304_s10 + $0x288] sm:$0xff] %v616_v23 }
  0x61   : > { %619 = vst [vmem:[%s2304_s10 + $0x290] sm:$0xff] %v618_v24  ;;  %621 = vst [vmem:[%s2304_s10 + $0x298] sm:$0xff] %v620_v25  ;;  %v622_v26 = vld [vmem:[%s2299_s11 + $0x540] sm:$0xff]  ;;  %v624_v27 = vld [vmem:[%s2299_s11 + $0x550] sm:$0xff] }
  0x62   : > { %v626_v28 = vld [vmem:[%s2299_s11 + $0x560] sm:$0xff]  ;;  %623 = vst [vmem:[%s2304_s10 + $0x2a0] sm:$0xff] %v622_v26  ;;  %625 = vst [vmem:[%s2304_s10 + $0x2a8] sm:$0xff] %v624_v27  ;;  %v628_v29 = vld [vmem:[%s2299_s11 + $0x570] sm:$0xff] }
  0x63   : > { %627 = vst [vmem:[%s2304_s10 + $0x2b0] sm:$0xff] %v626_v28  ;;  %v630_v30 = vld [vmem:[%s2299_s11 + $0x580] sm:$0xff]  ;;  %v632_v31 = vld [vmem:[%s2299_s11 + $0x590] sm:$0xff]  ;;  %629 = vst [vmem:[%s2304_s10 + $0x2b8] sm:$0xff] %v628_v29 }
  0x64   : > { %631 = vst [vmem:[%s2304_s10 + $0x2c0] sm:$0xff] %v630_v30  ;;  %633 = vst [vmem:[%s2304_s10 + $0x2c8] sm:$0xff] %v632_v31  ;;  %v634_v32 = vld [vmem:[%s2299_s11 + $0x5a0] sm:$0xff]  ;;  %v636_v33 = vld [vmem:[%s2299_s11 + $0x5b0] sm:$0xff] }
  0x65   : > { %v638_v34 = vld [vmem:[%s2299_s11 + $0x5c0] sm:$0xff]  ;;  %635 = vst [vmem:[%s2304_s10 + $0x2d0] sm:$0xff] %v634_v32  ;;  %637 = vst [vmem:[%s2304_s10 + $0x2d8] sm:$0xff] %v636_v33  ;;  %v640_v35 = vld [vmem:[%s2299_s11 + $0x5d0] sm:$0xff] }
  0x66   : > { %639 = vst [vmem:[%s2304_s10 + $0x2e0] sm:$0xff] %v638_v34  ;;  %v642_v36 = vld [vmem:[%s2299_s11 + $0x5e0] sm:$0xff]  ;;  %v644_v37 = vld [vmem:[%s2299_s11 + $0x5f0] sm:$0xff]  ;;  %641 = vst [vmem:[%s2304_s10 + $0x2e8] sm:$0xff] %v640_v35 }
  0x67   : > { %643 = vst [vmem:[%s2304_s10 + $0x2f0] sm:$0xff] %v642_v36  ;;  %645 = vst [vmem:[%s2304_s10 + $0x2f8] sm:$0xff] %v644_v37 }
  0x68 PF: > { %p1701_p0 = scmp.ge.s32.totalorder %s2157_s25, 1  ;;  %p666_p1 = scmp.lt.s32.totalorder %s2157_s25, 7 }
  0x6a   : > { %p667_p2 = pnand %p1701_p0, %p666_p1 }
  0x6b   : > { %s673_s0 = sand.u32 (!%p667_p2), 1, %s2133_s19   ;;  %s680_s28 = sand.u32 (!%p667_p2), 1, %s2125_s17  }
  0x6c   : > { %670 = sbr.rel (%p667_p2) target bundleno = 493 (0x1ed), region = 89  ;;  %s713_s5 = sand.u32 (!%p667_p2), 1, %s2117_s15  }
  0x6d   : > { %s1827_s26 = smul.u32 (!%p667_p2), 48, %s673_s0  ;;  %s1702_s30 = sshll.u32 (!%p667_p2), %s713_s5, 5 }
  0x6e   : > { %s1828_s29 = smul.u32 (!%p667_p2), 768, %s680_s28  ;;  %s1703_s8 = sshll.u32 (!%p667_p2), %s2145_s22, 1 }
  0x6f   : > { %p721_p3 = scmp.lt.s32.totalorder (!%p667_p2), %s1703_s8, 3  ;;  %s2511_s19 = scalar_lea.vmem (!%p667_p2), [#allocation2], %s1827_s26 }
  0x70   : > { %s2513_s17 = scalar_lea.vmem (!%p667_p2), [#allocation3], %s1828_s29  ;;  %s2515_s15 = scalar_lea.vmem (!%p667_p2), [#allocation4], %s1702_s30 }
  0x71   : > { %p1705_p4 = scmp.ne.s32.totalorder (!%p667_p2), %s2141_s21, 0 }
  0x73   : > { %s2729_s8 = smov (!%p721_p3, %s1703_s8), 3  ;;  %735 = sbr.rel (%p1705_p4) target bundleno = 122 (0x7a), region = 101 }
  0x74   : > { %s723_s11 = scalar_lea.vmem %s2696_s2, %s2729_s8  ;;  %s728_s27 = scalar_lea.vmem %s2697_s3, %s2729_s8  ;;  %v2159_v38 = vmov (!%p1705_p4), 0.0  }
  0x75   : > { %736 = vst [vmem:[%s2515_s15] sm:$0xff] (!%p1705_p4), %v2159_v38  ;;  %737 = vst [vmem:[%s2515_s15 + $0x8] sm:$0xff] (!%p1705_p4), %v2159_v38 }
  0x76   : > { %738 = vst [vmem:[%s2515_s15 + $0x10] sm:$0xff] (!%p1705_p4), %v2159_v38  ;;  %739 = vst [vmem:[%s2515_s15 + $0x18] sm:$0xff] (!%p1705_p4), %v2159_v38 }
  0x7a PF: > { %v1918_v39 = vld [vmem:[%s2513_s17 + $0x104] ss:$8 sps:$4 sm:$0xff]   ;;  %v1920_v40 = vld [vmem:[%s2513_s17 + $0x100] ss:$8 sps:$4 sm:$0xff]   ;;  %v1921_v41 = vld [vmem:[%s2513_s17 + $0x114] ss:$8 sps:$4 sm:$0xff]  }
  0x7b   : > { %1399 = vmatprep.subr.bf16.mxu0 %v1918_v39  ;;  %v1923_v42 = vld [vmem:[%s2513_s17 + $0x110] ss:$8 sps:$4 sm:$0xff]   ;;  %v1924_v43 = vld [vmem:[%s2513_s17 + $0x124] ss:$8 sps:$4 sm:$0xff]   ;;  %v1926_v44 = vld [vmem:[%s2513_s17 + $0x120] ss:$8 sps:$4 sm:$0xff]  }
  0x7c   : > { %1400 = vmatpush1.bf16.msra.mxu0 %v1920_v40  ;;  %v1927_v45 = vld [vmem:[%s2513_s17 + $0x134] ss:$8 sps:$4 sm:$0xff]   ;;  %v1929_v46 = vld [vmem:[%s2513_s17 + $0x130] ss:$8 sps:$4 sm:$0xff]   ;;  %v1930_v47 = vld [vmem:[%s2513_s17 + $0x144] ss:$8 sps:$4 sm:$0xff]  }
  0x7d   : > { %1401 = vmatprep.subr.bf16.mxu0 %v1921_v41  ;;  %v1932_v48 = vld [vmem:[%s2513_s17 + $0x140] ss:$8 sps:$4 sm:$0xff]   ;;  %v1933_v49 = vld [vmem:[%s2513_s17 + $0x154] ss:$8 sps:$4 sm:$0xff]   ;;  %v1935_v50 = vld [vmem:[%s2513_s17 + $0x150] ss:$8 sps:$4 sm:$0xff]  }
  0x7e   : > { %v1936_v51 = vld [vmem:[%s2513_s17 + $0x164] ss:$8 sps:$4 sm:$0xff]   ;;  %v1968_v53 = vld [vmem:[%s2513_s17] ss:$8 sps:$4 sm:$0xff]   ;;  %v1939_v56 = vld [vmem:[%s2513_s17 + $0x174] ss:$8 sps:$4 sm:$0xff]  }
  0x7f   : > { %v1965_v52 = vld [vmem:[%s2513_s17 + $0x4] ss:$8 sps:$4 sm:$0xff]   ;;  %v1938_v54 = vld [vmem:[%s2513_s17 + $0x160] ss:$8 sps:$4 sm:$0xff]   ;;  %v1975_v57 = vld [vmem:[%s2513_s17 + $0x14] ss:$8 sps:$4 sm:$0xff]  }
  0x80   : > { %1402 = vmatpush1.bf16.msra.mxu0 %v1923_v42  ;;  %1356 = vmatprep.subr.bf16.mxu1 %v1965_v52  ;;  %v1971_v55 = vld [vmem:[%s2511_s19 + $0xc] ss:$24 sps:$4 sm:$0xff]   ;;  %v1977_v58 = vld [vmem:[%s2513_s17 + $0x10] ss:$8 sps:$4 sm:$0xff]   ;;  %v1983_v62 = vld [vmem:[%s2513_s17 + $0x20] ss:$8 sps:$4 sm:$0xff]  }
  0x81   : > { %1403 = vmatprep.subr.bf16.mxu0 %v1924_v43  ;;  %1357 = vmatpush1.bf16.msra.mxu1 %v1968_v53  ;;  %v1941_v59 = vld [vmem:[%s2513_s17 + $0x170] ss:$8 sps:$4 sm:$0xff]   ;;  %v1942_v60 = vld [vmem:[%s2513_s17 + $0x184] ss:$8 sps:$4 sm:$0xff]   ;;  %v1944_v63 = vld [vmem:[%s2513_s17 + $0x180] ss:$8 sps:$4 sm:$0xff]  }
  0x82   : > { %1431 = vmatprep.mubr.bf16.mxu0 %v1971_v55  ;;  %1358 = vmatprep.subr.bf16.mxu1 %v1975_v57  ;;  %v1981_v61 = vld [vmem:[%s2513_s17 + $0x24] ss:$8 sps:$4 sm:$0xff]   ;;  %v1987_v0 = vld [vmem:[%s2513_s17 + $0x34] ss:$8 sps:$4 sm:$0xff]   ;;  %v1989_v2 = vld [vmem:[%s2513_s17 + $0x30] ss:$8 sps:$4 sm:$0xff]  }
  0x83   : > { %v1945_v1 = vld [vmem:[%s2513_s17 + $0x194] ss:$8 sps:$4 sm:$0xff]   ;;  %v1993_v3 = vld [vmem:[%s2513_s17 + $0x44] ss:$8 sps:$4 sm:$0xff]   ;;  %v1947_v4 = vld [vmem:[%s2513_s17 + $0x190] ss:$8 sps:$4 sm:$0xff]  }
  0x84   : > { %1404 = vmatpush1.bf16.msra.mxu0 %v1926_v44  ;;  %v1948_v5 = vld [vmem:[%s2513_s17 + $0x1a4] ss:$8 sps:$4 sm:$0xff]   ;;  %v1995_v6 = vld [vmem:[%s2513_s17 + $0x40] ss:$8 sps:$4 sm:$0xff]   ;;  %v1999_v7 = vld [vmem:[%s2513_s17 + $0x54] ss:$8 sps:$4 sm:$0xff]  }
  0x85   : > { %1405 = vmatprep.subr.bf16.mxu0 %v1927_v45  ;;  %1359 = vmatpush1.bf16.msra.mxu1 %v1977_v58  ;;  %v1950_v8 = vld [vmem:[%s2513_s17 + $0x1a0] ss:$8 sps:$4 sm:$0xff]   ;;  %v1951_v9 = vld [vmem:[%s2513_s17 + $0x1b4] ss:$8 sps:$4 sm:$0xff]   ;;  %v2001_v10 = vld [vmem:[%s2513_s17 + $0x50] ss:$8 sps:$4 sm:$0xff]  }
  0x86   : > { %1360 = vmatprep.subr.bf16.mxu1 %v1981_v61  ;;  %v2005_v11 = vld [vmem:[%s2513_s17 + $0x64] ss:$8 sps:$4 sm:$0xff]   ;;  %v1953_v12 = vld [vmem:[%s2513_s17 + $0x1b0] ss:$8 sps:$4 sm:$0xff]   ;;  %v2007_v14 = vld [vmem:[%s2513_s17 + $0x60] ss:$8 sps:$4 sm:$0xff]  }
  0x87   : > { %v1954_v13 = vld [vmem:[%s2513_s17 + $0x1c4] ss:$8 sps:$4 sm:$0xff]   ;;  %v2011_v15 = vld [vmem:[%s2513_s17 + $0x74] ss:$8 sps:$4 sm:$0xff]   ;;  %v1956_v16 = vld [vmem:[%s2513_s17 + $0x1c0] ss:$8 sps:$4 sm:$0xff]  }
  0x88   : > { %1406 = vmatpush1.bf16.msra.mxu0 %v1929_v46  ;;  %v1957_v17 = vld [vmem:[%s2513_s17 + $0x1d4] ss:$8 sps:$4 sm:$0xff]   ;;  %v2013_v18 = vld [vmem:[%s2513_s17 + $0x70] ss:$8 sps:$4 sm:$0xff]   ;;  %v2017_v19 = vld [vmem:[%s2513_s17 + $0x84] ss:$8 sps:$4 sm:$0xff]  }
  0x89   : > { %1407 = vmatprep.subr.bf16.mxu0 %v1930_v47  ;;  %1361 = vmatpush1.bf16.msra.mxu1 %v1983_v62  ;;  %v1959_v20 = vld [vmem:[%s2513_s17 + $0x1d0] ss:$8 sps:$4 sm:$0xff]   ;;  %v1960_v21 = vld [vmem:[%s2513_s17 + $0x1e4] ss:$8 sps:$4 sm:$0xff]   ;;  %v2019_v22 = vld [vmem:[%s2513_s17 + $0x80] ss:$8 sps:$4 sm:$0xff]  }
  0x8a   : > { %1362 = vmatprep.subr.bf16.mxu1 %v1987_v0  ;;  %v2023_v23 = vld [vmem:[%s2513_s17 + $0x94] ss:$8 sps:$4 sm:$0xff]   ;;  %v1962_v24 = vld [vmem:[%s2513_s17 + $0x1e0] ss:$8 sps:$4 sm:$0xff]   ;;  %v2025_v26 = vld [vmem:[%s2513_s17 + $0x90] ss:$8 sps:$4 sm:$0xff]  }
  0x8b   : > { %v1963_v25 = vld [vmem:[%s2513_s17 + $0x1f4] ss:$8 sps:$4 sm:$0xff]   ;;  %v2029_v27 = vld [vmem:[%s2513_s17 + $0xa4] ss:$8 sps:$4 sm:$0xff]   ;;  %v1967_v28 = vld [vmem:[%s2513_s17 + $0x1f0] ss:$8 sps:$4 sm:$0xff]  }
  0x8c   : > { %1408 = vmatpush1.bf16.msra.mxu0 %v1932_v48  ;;  %v1974_v29 = vld [vmem:[%s2513_s17 + $0x204] ss:$8 sps:$4 sm:$0xff]   ;;  %v2031_v30 = vld [vmem:[%s2513_s17 + $0xa0] ss:$8 sps:$4 sm:$0xff]   ;;  %v2035_v32 = vld [vmem:[%s2513_s17 + $0xb4] ss:$8 sps:$4 sm:$0xff]  }
  0x8d   : > { %1409 = vmatprep.subr.bf16.mxu0 %v1933_v49  ;;  %1363 = vmatpush1.bf16.msra.mxu1 %v1989_v2  ;;  %v1969_v31 = vld [vmem:[%s2511_s19 + $0x8] ss:$24 sps:$4 sm:$0xff]   ;;  %v1980_v34 = vld [vmem:[%s2513_s17 + $0x214] ss:$8 sps:$4 sm:$0xff]   ;;  %v2041_v37 = vld [vmem:[%s2513_s17 + $0xc4] ss:$8 sps:$4 sm:$0xff]  }
  0x8e   : > { %1364 = vmatprep.subr.bf16.mxu1 %v1993_v3  ;;  %v1972_v33 = vld [vmem:[%s2513_s17 + $0x200] ss:$8 sps:$4 sm:$0xff]   ;;  %v2037_v35 = vld [vmem:[%s2513_s17 + $0xb0] ss:$8 sps:$4 sm:$0xff]   ;;  %v2064_v36 = vld [vmem:[%s2511_s19 + $0x4] ss:$24 sps:$4 sm:$0xff]  }
  0x8f   : > { %v1978_v38 = vld [vmem:[%s2513_s17 + $0x210] ss:$8 sps:$4 sm:$0xff]   ;;  %1388 = vmatprep.mubr.bf16.mxu1 %v2064_v36  ;;  %v2070_v39 = vld [vmem:[%s2511_s19 + $0x14] ss:$24 sps:$4 sm:$0xff]   ;;  %v2043_v41 = vld [vmem:[%s2513_s17 + $0xc0] ss:$8 sps:$4 sm:$0xff]  }
  0x90   : > { %1410 = vmatpush1.bf16.msra.mxu0 %v1935_v50  ;;  %v1986_v40 = vld [vmem:[%s2513_s17 + $0x224] ss:$8 sps:$4 sm:$0xff]   ;;  %v2047_v42 = vld [vmem:[%s2513_s17 + $0xd4] ss:$8 sps:$4 sm:$0xff]   ;;  %v1984_v43 = vld [vmem:[%s2513_s17 + $0x220] ss:$8 sps:$4 sm:$0xff]  }
  0x91   : > { %1411 = vmatprep.subr.bf16.mxu0 %v1936_v51  ;;  %1365 = vmatpush1.bf16.msra.mxu1 %v1995_v6  ;;  %v1992_v44 = vld [vmem:[%s2513_s17 + $0x234] ss:$8 sps:$4 sm:$0xff]   ;;  %v2049_v45 = vld [vmem:[%s2513_s17 + $0xd0] ss:$8 sps:$4 sm:$0xff]   ;;  %v2053_v46 = vld [vmem:[%s2513_s17 + $0xe4] ss:$8 sps:$4 sm:$0xff]  }
  0x92   : > { %1366 = vmatprep.subr.bf16.mxu1 %v1999_v7  ;;  %v1990_v47 = vld [vmem:[%s2513_s17 + $0x230] ss:$8 sps:$4 sm:$0xff]   ;;  %v1998_v48 = vld [vmem:[%s2513_s17 + $0x244] ss:$8 sps:$4 sm:$0xff]   ;;  %v2055_v49 = vld [vmem:[%s2513_s17 + $0xe0] ss:$8 sps:$4 sm:$0xff]  }
  0x93   : > { %v2059_v50 = vld [vmem:[%s2513_s17 + $0xf4] ss:$8 sps:$4 sm:$0xff]   ;;  %v1996_v51 = vld [vmem:[%s2513_s17 + $0x240] ss:$8 sps:$4 sm:$0xff]   ;;  %v2061_v53 = vld [vmem:[%s2513_s17 + $0xf0] ss:$8 sps:$4 sm:$0xff]  }
  0x94   : > { %1412 = vmatpush1.bf16.msra.mxu0 %v1938_v54  ;;  %v2004_v52 = vld [vmem:[%s2513_s17 + $0x254] ss:$8 sps:$4 sm:$0xff]   ;;  %v2002_v54 = vld [vmem:[%s2513_s17 + $0x250] ss:$8 sps:$4 sm:$0xff]   ;;  %v2010_v55 = vld [vmem:[%s2513_s17 + $0x264] ss:$8 sps:$4 sm:$0xff]  }
  0x95   : > { %1413 = vmatprep.subr.bf16.mxu0 %v1939_v56  ;;  %1367 = vmatpush1.bf16.msra.mxu1 %v2001_v10  ;;  %v2062_v56 = vld [vmem:[%s2511_s19] ss:$24 sps:$4 sm:$0xff]   ;;  %v2016_v58 = vld [vmem:[%s2513_s17 + $0x274] ss:$8 sps:$4 sm:$0xff]   ;;  %v2034_v0 = vld [vmem:[%s2513_s17 + $0x2a4] ss:$8 sps:$4 sm:$0xff]  }
  0x96   : > { %1368 = vmatprep.subr.bf16.mxu1 %v2005_v11  ;;  %v2008_v57 = vld [vmem:[%s2513_s17 + $0x260] ss:$8 sps:$4 sm:$0xff]   ;;  %v2028_v62 = vld [vmem:[%s2513_s17 + $0x294] ss:$8 sps:$4 sm:$0xff]   ;;  %v2038_v3 = vld [vmem:[%s2513_s17 + $0x2b0] ss:$8 sps:$4 sm:$0xff]  }
  0x97   : > { %v2020_v61 = vld [vmem:[%s2513_s17 + $0x280] ss:$8 sps:$4 sm:$0xff]   ;;  %v2040_v2 = vld [vmem:[%s2513_s17 + $0x2b4] ss:$8 sps:$4 sm:$0xff]   ;;  %v2050_v7 = vld [vmem:[%s2513_s17 + $0x2d0] ss:$8 sps:$4 sm:$0xff]  }
  0x98   : > { %1414 = vmatpush1.bf16.msra.mxu0 %v1941_v59  ;;  %v2014_v59 = vld [vmem:[%s2513_s17 + $0x270] ss:$8 sps:$4 sm:$0xff]   ;;  %v2052_v6 = vld [vmem:[%s2513_s17 + $0x2d4] ss:$8 sps:$4 sm:$0xff]   ;;  %p1808_p5 = scmp.ne.s32.totalorder %s2141_s21, 2 }
  0x99   : > { %1415 = vmatprep.subr.bf16.mxu0 %v1942_v60  ;;  %1369 = vmatpush1.bf16.msra.mxu1 %v2007_v14  ;;  %v2022_v60 = vld [vmem:[%s2513_s17 + $0x284] ss:$8 sps:$4 sm:$0xff]   ;;  %v2067_v10 = vld [vmem:[%s2513_s17 + $0x2f4] ss:$8 sps:$4 sm:$0xff]   ;;  %v2065_v11 = vld [vmem:[%s2513_s17 + $0x2f0] ss:$8 sps:$4 sm:$0xff]  }
  0x9a   : > { %1370 = vmatprep.subr.bf16.mxu1 %v2011_v15  ;;  %v1517_v36 = vld [vmem:[%s728_s27] sm:$0x3] (!%p1808_p5) }
  0x9c   : > { %1416 = vmatpush1.bf16.msra.mxu0 %v1944_v63  ;;  %v2026_v63 = vld [vmem:[%s2513_s17 + $0x290] ss:$8 sps:$4 sm:$0xff]  }
  0x9d   : > { %1417 = vmatprep.subr.bf16.mxu0 %v1945_v1  ;;  %1371 = vmatpush1.bf16.msra.mxu1 %v2013_v18  ;;  %v2032_v1 = vld [vmem:[%s2513_s17 + $0x2a0] ss:$8 sps:$4 sm:$0xff]  }
  0x9e   : > { %1372 = vmatprep.subr.bf16.mxu1 %v2017_v19 }
  0xa0   : > { %1418 = vmatpush1.bf16.msra.mxu0 %v1947_v4  ;;  %v2046_v4 = vld [vmem:[%s2513_s17 + $0x2c4] ss:$8 sps:$4 sm:$0xff]  }
  0xa1   : > { %1419 = vmatprep.subr.bf16.mxu0 %v1948_v5  ;;  %1373 = vmatpush1.bf16.msra.mxu1 %v2019_v22  ;;  %v2044_v5 = vld [vmem:[%s2513_s17 + $0x2c0] ss:$8 sps:$4 sm:$0xff]  }
  0xa2   : > { %1374 = vmatprep.subr.bf16.mxu1 %v2023_v23  ;;  %v742_v23 = vld [vmem:[%s2515_s15 + $0x10] sm:$0xff] }
  0xa4   : > { %1420 = vmatpush1.bf16.msra.mxu0 %v1950_v8  ;;  %v2058_v8 = vld [vmem:[%s2513_s17 + $0x2e4] ss:$8 sps:$4 sm:$0xff]  }
  0xa5   : > { %1421 = vmatprep.subr.bf16.mxu0 %v1951_v9  ;;  %1375 = vmatpush1.bf16.msra.mxu1 %v2025_v26  ;;  %v2056_v9 = vld [vmem:[%s2513_s17 + $0x2e0] ss:$8 sps:$4 sm:$0xff]  }
  0xa6   : > { %1376 = vmatprep.subr.bf16.mxu1 %v2029_v27  ;;  %v743_v27 = vld [vmem:[%s2515_s15 + $0x18] sm:$0xff] }
  0xa8   : > { %1422 = vmatpush1.bf16.msra.mxu0 %v1953_v12  ;;  %v2068_v12 = vld [vmem:[%s2511_s19 + $0x10] ss:$24 sps:$4 sm:$0xff]  }
  0xa9   : > { %1423 = vmatprep.subr.bf16.mxu0 %v1954_v13  ;;  %1377 = vmatpush1.bf16.msra.mxu1 %v2031_v30 }
  0xaa   : > { %1378 = vmatprep.subr.bf16.mxu1 %v2035_v32 }
  0xac   : > { %1424 = vmatpush1.bf16.msra.mxu0 %v1956_v16 }
  0xad   : > { %1425 = vmatprep.subr.bf16.mxu0 %v1957_v17  ;;  %1379 = vmatpush1.bf16.msra.mxu1 %v2037_v35  ;;  %v740_v17 = vld [vmem:[%s2515_s15] sm:$0xff] }
  0xae   : > { %1380 = vmatprep.subr.bf16.mxu1 %v2041_v37  ;;  %v1501_v35 = vld [vmem:[%s723_s11] sm:$0x3] (!%p1808_p5) }
  0xb0   : > { %1426 = vmatpush1.bf16.msra.mxu0 %v1959_v20  ;;  %v741_v20 = vld [vmem:[%s2515_s15 + $0x8] sm:$0xff] }
  0xb1   : > { %1427 = vmatprep.subr.bf16.mxu0 %v1960_v21  ;;  %1381 = vmatpush1.bf16.msra.mxu1 %v2043_v41 }
  0xb2   : > { %1382 = vmatprep.subr.bf16.mxu1 %v2047_v42 }
  0xb4   : > { %1428 = vmatpush1.bf16.msra.mxu0 %v1962_v24 }
  0xb5   : > { %1429 = vmatprep.subr.bf16.mxu0 %v1963_v25  ;;  %1383 = vmatpush1.bf16.msra.mxu1 %v2049_v45 }
  0xb6   : > { %1384 = vmatprep.subr.bf16.mxu1 %v2053_v46 }
  0xb8   : > { %1430 = vmatpush1.bf16.msra.mxu0 %v1967_v28 }
  0xb9   : > { %1442 = vmatprep.subr.bf16.mxu0 %v1974_v29  ;;  %1385 = vmatpush1.bf16.msra.mxu1 %v2055_v49 }
  0xba   : > { %1386 = vmatprep.subr.bf16.mxu1 %v2059_v50 }
  0xbb   : > { %1432 = vmatmul.mubr.bf16.vlgmr.msra.gmra.mrb[0].mxu0 %v1969_v31 }
  0xbc   : > { %1443 = vmatpush1.bf16.msra.mxu0 %v1972_v33  ;;  %1474 = vmatprep.mubr.bf16.mxu0 %v2070_v39  ;;  %v1503_v33 = vlaneseq (!%p1808_p5) }
  0xbd   : > { %1444 = vmatprep.subr.bf16.mxu0 %v1980_v34  ;;  %1387 = vmatpush1.bf16.msra.mxu1 %v2061_v53 }
  0xbe   : > { %v1504_v34 = vshrl.u32 (!%p1808_p5), %v1503_v33, 7 }
  0xc0   : > { %1445 = vmatpush1.bf16.msra.mxu0 %v1978_v38  ;;  %1389 = vmatmul.mubr.bf16.vlgmr.msra.gmra.mrb[0].mxu1 %v2062_v56  ;;  %v1505_v38 = vsub.s32 (!%p1808_p5), 0, %v1504_v34  ;;  %v1509_v39 = vsub.s32 (!%p1808_p5), 1, %v1504_v34 }
  0xc1   : > { %1446 = vmatprep.subr.bf16.mxu0 %v1986_v40 }
  0xc2   : > { %v1510_v45 = vrot.slane (!%p1808_p5), %v1501_v35, %v1509_v39  ;;  %v1526_v46 = vrot.slane (!%p1808_p5), %v1517_v36, %v1509_v39 }
  0xc4   : > { %1447 = vmatpush1.bf16.msra.mxu0 %v1984_v43  ;;  %v1506_v43 = vrot.slane (!%p1808_p5), %v1501_v35, %v1505_v38 }
  0xc5   : > { %1448 = vmatprep.subr.bf16.mxu0 %v1992_v44  ;;  %v1522_v44 = vrot.slane (!%p1808_p5), %v1517_v36, %v1505_v38 }
  0xc8   : > { %1449 = vmatpush1.bf16.msra.mxu0 %v1990_v47 }
  0xc9   : > { %1450 = vmatprep.subr.bf16.mxu0 %v1998_v48 }
  0xcc   : > { %1451 = vmatpush1.bf16.msra.mxu0 %v1996_v51 }
  0xcd   : > { %1452 = vmatprep.subr.bf16.mxu0 %v2004_v52 }
  0xd0   : > { %1453 = vmatpush1.bf16.msra.mxu0 %v2002_v54 }
  0xd1   : > { %1454 = vmatprep.subr.bf16.mxu0 %v2010_v55 }
  0xd4   : > { %1455 = vmatpush1.bf16.msra.mxu0 %v2008_v57 }
  0xd5   : > { %1456 = vmatprep.subr.bf16.mxu0 %v2016_v58 }
  0xd8   : > { %1457 = vmatpush1.bf16.msra.mxu0 %v2014_v59 }
  0xd9   : > { %1458 = vmatprep.subr.bf16.mxu0 %v2022_v60 }
  0xdc   : > { %1459 = vmatpush1.bf16.msra.mxu0 %v2020_v61 }
  0xdd   : > { %1460 = vmatprep.subr.bf16.mxu0 %v2028_v62 }
  0xe0   : > { %1461 = vmatpush1.bf16.msra.mxu0 %v2026_v63 }
  0xe1   : > { %1462 = vmatprep.subr.bf16.mxu0 %v2034_v0 }
  0xe4   : > { %1463 = vmatpush1.bf16.msra.mxu0 %v2032_v1 }
  0xe5   : > { %1464 = vmatprep.subr.bf16.mxu0 %v2040_v2 }
  0xe8   : > { %1465 = vmatpush1.bf16.msra.mxu0 %v2038_v3 }
  0xe9   : > { %1466 = vmatprep.subr.bf16.mxu0 %v2046_v4 }
  0xec   : > { %1467 = vmatpush1.bf16.msra.mxu0 %v2044_v5 }
  0xed   : > { %1468 = vmatprep.subr.bf16.mxu0 %v2052_v6 }
  0xf0   : > { %1469 = vmatpush1.bf16.msra.mxu0 %v2050_v7 }
  0xf1   : > { %1470 = vmatprep.subr.bf16.mxu0 %v2058_v8 }
  0xf4   : > { %1471 = vmatpush1.bf16.msra.mxu0 %v2056_v9 }
  0xf5   : > { %1472 = vmatprep.subr.bf16.mxu0 %v2067_v10 }
  0xf8   : > { %1473 = vmatpush1.bf16.msra.mxu0 %v2065_v11 }
  0xfb   : > { %1475 = vmatmul.mubr.bf16.vlgmr.msra.gmra.mrb[0].mxu0 %v2068_v12 }
 0x193   : > { %v1390_v13 = vpop.f32.mrb[0].mxu1 }
 0x194   : > { %v1392_v14 = vpop.f32.mrb[1].mxu1 }
 0x195   : > { %v1394_v15 = vpop.f32.mrb[2].mxu1 }
 0x196   : > { %v1396_v16 = vpop.f32.mrb[3].mxu1 }
 0x1ce   : > { %v1476_v18 = vpop.f32.mrb[0].mxu0 }
 0x1cf   : > { %v1817_v19 = vadd.f32 %v1476_v18, %v1390_v13  ;;  %v1478_v21 = vpop.f32.mrb[1].mxu0 }
 0x1d0   : > { %v1818_v22 = vadd.f32 %v1478_v21, %v1392_v14  ;;  %v1480_v24 = vpop.f32.mrb[2].mxu0  ;;  %1496 = sbr.rel (%p1808_p5) target bundleno = 485 (0x1e5), region = 105 }
 0x1d1   : > { %v1485_v25 = vadd.f32 %v1817_v19, %v740_v17  ;;  %v1819_v26 = vadd.f32 %v1480_v24, %v1394_v15  ;;  %v1482_v28 = vpop.f32.mrb[3].mxu0 }
 0x1d2   : > { %v1486_v29 = vadd.f32 %v1818_v22, %v741_v20  ;;  %v1820_v30 = vadd.f32 %v1482_v28, %v1396_v16 }
 0x1d3   : > { %1489 = vst [vmem:[%s2515_s15] sm:$0xff] %v1485_v25  ;;  %v1487_v31 = vadd.f32 %v1819_v26, %v742_v23 }
 0x1d4   : > { %1490 = vst [vmem:[%s2515_s15 + $0x8] sm:$0xff] %v1486_v29  ;;  %v1488_v32 = vadd.f32 %v1820_v30, %v743_v27 }
 0x1d5   : > { %1491 = vst [vmem:[%s2515_s15 + $0x10] sm:$0xff] %v1487_v31 }
 0x1d6   : > { %1492 = vst [vmem:[%s2515_s15 + $0x18] sm:$0xff] %v1488_v32 }
 0x1da   : > { %v1497_v37 = vld [vmem:[%s2515_s15] sm:$0xff] }
 0x1db   : > { %v1498_v40 = vld [vmem:[%s2515_s15 + $0x8] sm:$0xff]  ;;  %v1513_v47 = vmul.f32 %v1506_v43, %v1497_v37 }
 0x1dc   : > { %v1499_v41 = vld [vmem:[%s2515_s15 + $0x10] sm:$0xff]  ;;  %v1514_v48 = vmul.f32 %v1510_v45, %v1498_v40 }
 0x1dd   : > { %v1500_v42 = vld [vmem:[%s2515_s15 + $0x18] sm:$0xff]  ;;  %v1515_v49 = vmul.f32 %v1506_v43, %v1499_v41  ;;  %v1529_v51 = vadd.f32 %v1522_v44, %v1513_v47 }
 0x1de   : > { %v1516_v50 = vmul.f32 %v1510_v45, %v1500_v42  ;;  %v1530_v52 = vadd.f32 %v1526_v46, %v1514_v48 }
 0x1df   : > { %v1531_v53 = vadd.f32 %v1522_v44, %v1515_v49  ;;  %v1533_v55 = vmax.f32 %v1529_v51, 0.0 }
 0x1e0   : > { %v1532_v54 = vadd.f32 %v1526_v46, %v1516_v50  ;;  %v1534_v56 = vmax.f32 %v1530_v52, 0.0 }
 0x1e1   : > { %v1535_v57 = vmax.f32 %v1531_v53, 0.0  ;;  %1537 = vst [vmem:[%s2515_s15] sm:$0xff] %v1533_v55 }
 0x1e2   : > { %v1536_v58 = vmax.f32 %v1532_v54, 0.0  ;;  %1538 = vst [vmem:[%s2515_s15 + $0x8] sm:$0xff] %v1534_v56 }
 0x1e3   : > { %1539 = vst [vmem:[%s2515_s15 + $0x10] sm:$0xff] %v1535_v57 }
 0x1e4   : > { %1540 = vst [vmem:[%s2515_s15 + $0x18] sm:$0xff] %v1536_v58 }
 0x1e5 PF: > { %1547 = sbr.rel (!%p2279_p12) target bundleno = 493 (0x1ed), region = 109  ;;  %s1816_s21 = sshll.u32 (%p2279_p12), %s2145_s22, 4 }
 0x1e6   : > { %s1553_s29 = scalar_lea.vmem (%p2279_p12), %s2698_s4, %s1816_s21 }
 0x1e8   : > { %v1566_v59 = vld [vmem:[%s2515_s15] sm:$0xff] (%p2279_p12) }
 0x1e9   : > { %v1568_v60 = vld [vmem:[%s2515_s15 + $0x8] sm:$0xff] (%p2279_p12)  ;;  %1567 = vst [vmem:[%s1553_s29] sm:$0xff] (%p2279_p12), %v1566_v59 }
 0x1ea   : > { %v1570_v61 = vld [vmem:[%s2515_s15 + $0x10] sm:$0xff] (%p2279_p12)  ;;  %1569 = vst [vmem:[%s1553_s29 + $0x8] sm:$0xff] (%p2279_p12), %v1568_v60 }
 0x1eb   : > { %v1572_v62 = vld [vmem:[%s2515_s15 + $0x18] sm:$0xff] (%p2279_p12)  ;;  %1571 = vst [vmem:[%s1553_s29 + $0x20] sm:$0xff] (%p2279_p12), %v1570_v61 }
 0x1ec   : > { %1573 = vst [vmem:[%s1553_s29 + $0x28] sm:$0xff] %v1572_v62 }
 0x1ed PF: > { %s14_s25 = sadd.s32 1, %s2157_s25   ;;  %s2710_s14 = sld [smem:[#allocation5_spill]] }
 0x1ee   : > { %p11_p6 = scmp.ge.s32.totalorder %s14_s25, 8   ;;  %s2711_s30 = sld [smem:[#allocation6_spill]] }
 0x1ef   : > { %s2712_s15 = smov %s2121_s16  ;;  %s2713_s16 = smov %s2277_s13 }
 0x1f0   : > { %s2714_s17 = smov %s2129_s18  ;;  %s2715_s18 = smov %s2274_s12 }
 0x1f1   : > { %s2716_s19 = smov %s2137_s20  ;;  %s2717_s20 = smov %s2260_s7 }
 0x1f2   : > { %s2718_s21 = smov %s2149_s23  ;;  %s2719_s22 = smov %s2153_s24 }
 0x1f3   : > { %s2720_s23 = smov %s2710_s14  ;;  %13 = sbr.rel (!%p11_p6) target bundleno = 9 (0x9), region = 177 }
 0x1f4   : > { %s2721_s24 = smov %s2711_s30 }

// kernel: _lambda_.39
= control target key start
LH: loop header
LB: loop body
LE: loop exit
PB: predicated region body
PF: predicated region fallthrough
CT: control target
= control target key end

     0   :  { %s1130_s15 = smov 0   ;;  %s1132_s16 = smov 0   ;;  %s1321_s0 = inlined_call_operand.vmem [shape: bf16[16,256], index: 0, kind: input, shape index: {}]   ;;  %s1322_s1 = inlined_call_operand.vmem [shape: bf16[256,512], index: 1, kind: input, shape index: {}]   ;;  %s1323_s2 = inlined_call_operand.vmem [shape: f32[1,512], index: 2, kind: input, shape index: {}]   ;;  %s1324_s3 = inlined_call_operand.vmem [shape: f32[1,512], index: 3, kind: input, shape index: {}]   ;;  %s1325_s4 = inlined_call_operand.vmem [shape: f32[16,512], index: 4, kind: output, shape index: {}]  }
   0x1   :  { %s1134_s17 = smov 0   ;;  %s1136_s18 = smov 0  }
   0x2   :  { %s1138_s19 = smov 0  }
   0x3 LB: > { %s29_s20 = sadd.s32 1, %s1099_s18  ;;  %s919_s21 = sadd.s32 4294967295, %s1103_s19   ;;  %s1103_s19 = sphi %s1138_s19, %s14_s19   ;;  %s1099_s18 = sphi %s1136_s18, %s1330_s18   ;;  %s1095_s17 = sphi %s1134_s17, %s1329_s17   ;;  %s1091_s16 = sphi %s1132_s16, %s1328_s16   ;;  %s1087_s15 = sphi %s1130_s15, %s1327_s15  }
   0x4   : > { %p31_p0 = scmp.ge.s32.totalorder %s29_s20, 2  ;;  %p77_p1 = scmp.ne.s32.totalorder %s1091_s16, %s1087_s15 }
   0x5   : > { %p78_p2 = scmp.eq.s32.totalorder %s1103_s19, 0  ;;  %p161_p4 = scmp.eq.s32.totalorder %s919_s21, 1 }
   0x6   : > { %s1332_s20 = smov (%p31_p0, %s29_s20), 0  ;;  %s70_s23 = sadd.s32 1, %s1091_s16 }
   0x7   : > { %p79_p3 = por %p78_p2, %p77_p1  ;;  %s66_s22 = ssub.s32 %s1099_s18, %s1332_s20 }
   0x8   : > { %p68_p5 = scmp.eq.s32.totalorder %s66_s22, 0  ;;  %p1165_p6 = por %p161_p4, %p77_p1 }
   0x9   : > { %p923_p7 = scmp.ge.s32.totalorder %s1103_s19, 2 }
   0xa   : > { %s1170_s25 = scalar_select %p68_p5, %s1091_s16, %s70_s23  }
   0xb   : > { %198 = sbr.rel (%p923_p7) target bundleno = 38 (0x26), region = 20 }
  0x12   : > { %201 = sbr.rel (!%p79_p3) target bundleno = 38 (0x26), region = 24  ;;  %s203_s26 = sand.u32 (%p79_p3), 1, %s1091_s16  }
  0x13   : > { %s971_s27 = sshll.u32 (%p79_p3), %s1099_s18, 3  ;;  %s924_s28 = sshll.u32 (%p79_p3), %s203_s26, 8 }
  0x14   : > { %s1178_s5 = scalar_lea.vmem (%p79_p3), %s1322_s1, %s971_s27  ;;  %s1183_s6 = scalar_lea.vmem (%p79_p3), [#allocation2], %s924_s28 }
  0x15   : > { %v301_v0 = vld [vmem:[%s1178_s5] sm:$0xff] (%p79_p3)  ;;  %v303_v1 = vld [vmem:[%s1178_s5 + $0x10] sm:$0xff] (%p79_p3) }
  0x16   : > { %v305_v2 = vld [vmem:[%s1178_s5 + $0x20] sm:$0xff] (%p79_p3)  ;;  %302 = vst [vmem:[%s1183_s6] sm:$0xff] (%p79_p3), %v301_v0  ;;  %304 = vst [vmem:[%s1183_s6 + $0x8] sm:$0xff] (%p79_p3), %v303_v1  ;;  %v307_v3 = vld [vmem:[%s1178_s5 + $0x30] sm:$0xff] (%p79_p3) }
  0x17   : > { %306 = vst [vmem:[%s1183_s6 + $0x10] sm:$0xff] (%p79_p3), %v305_v2  ;;  %v309_v4 = vld [vmem:[%s1178_s5 + $0x40] sm:$0xff] (%p79_p3)  ;;  %v311_v5 = vld [vmem:[%s1178_s5 + $0x50] sm:$0xff] (%p79_p3)  ;;  %308 = vst [vmem:[%s1183_s6 + $0x18] sm:$0xff] (%p79_p3), %v307_v3 }
  0x18   : > { %310 = vst [vmem:[%s1183_s6 + $0x20] sm:$0xff] (%p79_p3), %v309_v4  ;;  %312 = vst [vmem:[%s1183_s6 + $0x28] sm:$0xff] (%p79_p3), %v311_v5  ;;  %v313_v6 = vld [vmem:[%s1178_s5 + $0x60] sm:$0xff] (%p79_p3)  ;;  %v315_v7 = vld [vmem:[%s1178_s5 + $0x70] sm:$0xff] (%p79_p3) }
  0x19   : > { %v317_v8 = vld [vmem:[%s1178_s5 + $0x80] sm:$0xff]  ;;  %314 = vst [vmem:[%s1183_s6 + $0x30] sm:$0xff] %v313_v6  ;;  %316 = vst [vmem:[%s1183_s6 + $0x38] sm:$0xff] %v315_v7  ;;  %v319_v9 = vld [vmem:[%s1178_s5 + $0x90] sm:$0xff] }
  0x1a   : > { %318 = vst [vmem:[%s1183_s6 + $0x40] sm:$0xff] %v317_v8  ;;  %v321_v10 = vld [vmem:[%s1178_s5 + $0xa0] sm:$0xff]  ;;  %v323_v11 = vld [vmem:[%s1178_s5 + $0xb0] sm:$0xff]  ;;  %320 = vst [vmem:[%s1183_s6 + $0x48] sm:$0xff] %v319_v9 }
  0x1b   : > { %322 = vst [vmem:[%s1183_s6 + $0x50] sm:$0xff] %v321_v10  ;;  %324 = vst [vmem:[%s1183_s6 + $0x58] sm:$0xff] %v323_v11  ;;  %v325_v12 = vld [vmem:[%s1178_s5 + $0xc0] sm:$0xff]  ;;  %v327_v13 = vld [vmem:[%s1178_s5 + $0xd0] sm:$0xff] }
  0x1c   : > { %v329_v14 = vld [vmem:[%s1178_s5 + $0xe0] sm:$0xff]  ;;  %326 = vst [vmem:[%s1183_s6 + $0x60] sm:$0xff] %v325_v12  ;;  %328 = vst [vmem:[%s1183_s6 + $0x68] sm:$0xff] %v327_v13  ;;  %v331_v15 = vld [vmem:[%s1178_s5 + $0xf0] sm:$0xff] }
  0x1d   : > { %330 = vst [vmem:[%s1183_s6 + $0x70] sm:$0xff] %v329_v14  ;;  %v333_v16 = vld [vmem:[%s1178_s5 + $0x100] sm:$0xff]  ;;  %v335_v17 = vld [vmem:[%s1178_s5 + $0x110] sm:$0xff]  ;;  %332 = vst [vmem:[%s1183_s6 + $0x78] sm:$0xff] %v331_v15 }
  0x1e   : > { %334 = vst [vmem:[%s1183_s6 + $0x80] sm:$0xff] %v333_v16  ;;  %336 = vst [vmem:[%s1183_s6 + $0x88] sm:$0xff] %v335_v17  ;;  %v337_v18 = vld [vmem:[%s1178_s5 + $0x120] sm:$0xff]  ;;  %v339_v19 = vld [vmem:[%s1178_s5 + $0x130] sm:$0xff] }
  0x1f   : > { %v341_v20 = vld [vmem:[%s1178_s5 + $0x140] sm:$0xff]  ;;  %338 = vst [vmem:[%s1183_s6 + $0x90] sm:$0xff] %v337_v18  ;;  %340 = vst [vmem:[%s1183_s6 + $0x98] sm:$0xff] %v339_v19  ;;  %v343_v21 = vld [vmem:[%s1178_s5 + $0x150] sm:$0xff] }
  0x20   : > { %342 = vst [vmem:[%s1183_s6 + $0xa0] sm:$0xff] %v341_v20  ;;  %v345_v22 = vld [vmem:[%s1178_s5 + $0x160] sm:$0xff]  ;;  %v347_v23 = vld [vmem:[%s1178_s5 + $0x170] sm:$0xff]  ;;  %344 = vst [vmem:[%s1183_s6 + $0xa8] sm:$0xff] %v343_v21 }
  0x21   : > { %346 = vst [vmem:[%s1183_s6 + $0xb0] sm:$0xff] %v345_v22  ;;  %348 = vst [vmem:[%s1183_s6 + $0xb8] sm:$0xff] %v347_v23  ;;  %v349_v24 = vld [vmem:[%s1178_s5 + $0x180] sm:$0xff]  ;;  %v351_v25 = vld [vmem:[%s1178_s5 + $0x190] sm:$0xff] }
  0x22   : > { %v353_v26 = vld [vmem:[%s1178_s5 + $0x1a0] sm:$0xff]  ;;  %350 = vst [vmem:[%s1183_s6 + $0xc0] sm:$0xff] %v349_v24  ;;  %352 = vst [vmem:[%s1183_s6 + $0xc8] sm:$0xff] %v351_v25  ;;  %v355_v27 = vld [vmem:[%s1178_s5 + $0x1b0] sm:$0xff] }
  0x23   : > { %354 = vst [vmem:[%s1183_s6 + $0xd0] sm:$0xff] %v353_v26  ;;  %v357_v28 = vld [vmem:[%s1178_s5 + $0x1c0] sm:$0xff]  ;;  %v359_v29 = vld [vmem:[%s1178_s5 + $0x1d0] sm:$0xff]  ;;  %356 = vst [vmem:[%s1183_s6 + $0xd8] sm:$0xff] %v355_v27 }
  0x24   : > { %358 = vst [vmem:[%s1183_s6 + $0xe0] sm:$0xff] %v357_v28  ;;  %360 = vst [vmem:[%s1183_s6 + $0xe8] sm:$0xff] %v359_v29  ;;  %v361_v30 = vld [vmem:[%s1178_s5 + $0x1e0] sm:$0xff]  ;;  %v363_v31 = vld [vmem:[%s1178_s5 + $0x1f0] sm:$0xff] }
  0x25   : > { %362 = vst [vmem:[%s1183_s6 + $0xf0] sm:$0xff] %v361_v30  ;;  %364 = vst [vmem:[%s1183_s6 + $0xf8] sm:$0xff] %v363_v31 }
  0x26 PF: > { %p927_p8 = scmp.ge.s32.totalorder %s1103_s19, 1  ;;  %p385_p9 = scmp.lt.s32.totalorder %s1103_s19, 3 }
  0x28   : > { %p386_p10 = pnand %p927_p8, %p385_p9 }
  0x29   : > { %s392_s7 = sand.u32 (!%p386_p10), 1, %s1087_s15   ;;  %v1064_v32 = vld [vmem:[%s1321_s0 + $0x4] ss:$8 sps:$4 sm:$0xff] (!%p386_p10)   ;;  %v1062_v1 = vld [vmem:[%s1321_s0] ss:$8 sps:$4 sm:$0xff] (!%p386_p10)   ;;  %s930_s14 = sshll.u32 (!%p386_p10), %s1095_s17, 1  ;;  %v736_v2 = vlaneseq (!%p386_p10) }
  0x2a   : > { %389 = sbr.rel (%p386_p10) target bundleno = 337 (0x151), region = 70  ;;  %s928_s8 = sshll.u32 (!%p386_p10), %s392_s7, 8  ;;  %708 = vmatprep.mubr.bf16.mxu0 (!%p386_p10), %v1064_v32 }
  0x2b   : > { %s1254_s11 = scalar_lea.vmem (!%p386_p10), [#allocation2], %s928_s8  ;;  %p449_p11 = scmp.lt.s32.totalorder (!%p386_p10), %s930_s14, 3  ;;  %v737_v3 = vshrl.u32 (!%p386_p10), %v736_v2, 7 }
  0x2c   : > { %v1014_v33 = vld [vmem:[%s1254_s11 + $0x4] ss:$8 sps:$4 sm:$0xff] (!%p386_p10)   ;;  %v1016_v34 = vld [vmem:[%s1254_s11] ss:$8 sps:$4 sm:$0xff] (!%p386_p10)   ;;  %v1017_v35 = vld [vmem:[%s1254_s11 + $0x14] ss:$8 sps:$4 sm:$0xff] (!%p386_p10)  }
  0x2d   : > { %676 = vmatprep.subr.bf16.mxu0 (!%p386_p10), %v1014_v33  ;;  %v1019_v36 = vld [vmem:[%s1254_s11 + $0x10] ss:$8 sps:$4 sm:$0xff] (!%p386_p10)   ;;  %v1020_v37 = vld [vmem:[%s1254_s11 + $0x24] ss:$8 sps:$4 sm:$0xff] (!%p386_p10)   ;;  %v1022_v38 = vld [vmem:[%s1254_s11 + $0x20] ss:$8 sps:$4 sm:$0xff] (!%p386_p10)  }
  0x2e   : > { %677 = vmatpush1.bf16.msra.mxu0 (!%p386_p10), %v1016_v34  ;;  %v1023_v39 = vld [vmem:[%s1254_s11 + $0x34] ss:$8 sps:$4 sm:$0xff] (!%p386_p10)   ;;  %v1025_v40 = vld [vmem:[%s1254_s11 + $0x30] ss:$8 sps:$4 sm:$0xff] (!%p386_p10)   ;;  %v1026_v41 = vld [vmem:[%s1254_s11 + $0x44] ss:$8 sps:$4 sm:$0xff] (!%p386_p10)  }
  0x2f   : > { %678 = vmatprep.subr.bf16.mxu0 (!%p386_p10), %v1017_v35  ;;  %v1028_v42 = vld [vmem:[%s1254_s11 + $0x40] ss:$8 sps:$4 sm:$0xff] (!%p386_p10)   ;;  %v1029_v43 = vld [vmem:[%s1254_s11 + $0x54] ss:$8 sps:$4 sm:$0xff] (!%p386_p10)   ;;  %v1031_v44 = vld [vmem:[%s1254_s11 + $0x50] ss:$8 sps:$4 sm:$0xff] (!%p386_p10)  }
  0x30   : > { %v1032_v45 = vld [vmem:[%s1254_s11 + $0x64] ss:$8 sps:$4 sm:$0xff] (!%p386_p10)   ;;  %v1034_v46 = vld [vmem:[%s1254_s11 + $0x60] ss:$8 sps:$4 sm:$0xff] (!%p386_p10)   ;;  %v1035_v47 = vld [vmem:[%s1254_s11 + $0x74] ss:$8 sps:$4 sm:$0xff] (!%p386_p10)  }
  0x31   : > { %v1037_v48 = vld [vmem:[%s1254_s11 + $0x70] ss:$8 sps:$4 sm:$0xff]   ;;  %v1038_v49 = vld [vmem:[%s1254_s11 + $0x84] ss:$8 sps:$4 sm:$0xff]   ;;  %v1040_v50 = vld [vmem:[%s1254_s11 + $0x80] ss:$8 sps:$4 sm:$0xff]  }
  0x32   : > { %679 = vmatpush1.bf16.msra.mxu0 %v1019_v36  ;;  %v1041_v51 = vld [vmem:[%s1254_s11 + $0x94] ss:$8 sps:$4 sm:$0xff]   ;;  %v1043_v52 = vld [vmem:[%s1254_s11 + $0x90] ss:$8 sps:$4 sm:$0xff]   ;;  %v1044_v53 = vld [vmem:[%s1254_s11 + $0xa4] ss:$8 sps:$4 sm:$0xff]  }
  0x33   : > { %680 = vmatprep.subr.bf16.mxu0 %v1020_v37  ;;  %v1046_v54 = vld [vmem:[%s1254_s11 + $0xa0] ss:$8 sps:$4 sm:$0xff]   ;;  %v1047_v55 = vld [vmem:[%s1254_s11 + $0xb4] ss:$8 sps:$4 sm:$0xff]   ;;  %v1049_v56 = vld [vmem:[%s1254_s11 + $0xb0] ss:$8 sps:$4 sm:$0xff]  }
  0x34   : > { %v1050_v57 = vld [vmem:[%s1254_s11 + $0xc4] ss:$8 sps:$4 sm:$0xff]   ;;  %v1052_v58 = vld [vmem:[%s1254_s11 + $0xc0] ss:$8 sps:$4 sm:$0xff]   ;;  %v1053_v59 = vld [vmem:[%s1254_s11 + $0xd4] ss:$8 sps:$4 sm:$0xff]  }
  0x35   : > { %v1055_v60 = vld [vmem:[%s1254_s11 + $0xd0] ss:$8 sps:$4 sm:$0xff]   ;;  %v1056_v61 = vld [vmem:[%s1254_s11 + $0xe4] ss:$8 sps:$4 sm:$0xff]   ;;  %v1058_v62 = vld [vmem:[%s1254_s11 + $0xe0] ss:$8 sps:$4 sm:$0xff]  }
  0x36   : > { %681 = vmatpush1.bf16.msra.mxu0 %v1022_v38  ;;  %v1059_v63 = vld [vmem:[%s1254_s11 + $0xf4] ss:$8 sps:$4 sm:$0xff]   ;;  %v1061_v0 = vld [vmem:[%s1254_s11 + $0xf0] ss:$8 sps:$4 sm:$0xff]   ;;  %s1334_s14 = smov (!%p449_p11, %s930_s14), 3  ;;  %v738_v4 = vsub.s32 0, %v737_v3 }
  0x37   : > { %682 = vmatprep.subr.bf16.mxu0 %v1023_v39  ;;  %s451_s23 = scalar_lea.vmem %s1323_s2, %s1334_s14  ;;  %s456_s28 = scalar_lea.vmem %s1324_s3, %s1334_s14  ;;  %v742_v6 = vsub.s32 1, %v737_v3 }
  0x38   : > { %v734_v5 = vld [vmem:[%s451_s23] sm:$0x3]  ;;  %s929_s29 = sshll.u32 %s392_s7, 5  ;;  %s972_s15 = sshll.u32 (%p1165_p6), %s1095_s17, 4 }
  0x39   : > { %v750_v7 = vld [vmem:[%s456_s28] sm:$0x3]  ;;  %v739_v8 = vrot.slane %v734_v5, %v738_v4  ;;  %v743_v10 = vrot.slane %v734_v5, %v742_v6  ;;  %s433_s30 = scalar_lea.vmem [#allocation3], %s929_s29  ;;  %s782_s7 = scalar_lea.vmem (%p1165_p6), %s1325_s4, %s972_s15 }
  0x3a   : > { %683 = vmatpush1.bf16.msra.mxu0 %v1025_v40  ;;  %v755_v11 = vrot.slane %v750_v7, %v738_v4  ;;  %v759_v13 = vrot.slane %v750_v7, %v742_v6 }
  0x3b   : > { %684 = vmatprep.subr.bf16.mxu0 %v1026_v41 }
  0x3e   : > { %685 = vmatpush1.bf16.msra.mxu0 %v1028_v42 }
  0x3f   : > { %686 = vmatprep.subr.bf16.mxu0 %v1029_v43 }
  0x42   : > { %687 = vmatpush1.bf16.msra.mxu0 %v1031_v44 }
  0x43   : > { %688 = vmatprep.subr.bf16.mxu0 %v1032_v45 }
  0x46   : > { %689 = vmatpush1.bf16.msra.mxu0 %v1034_v46 }
  0x47   : > { %690 = vmatprep.subr.bf16.mxu0 %v1035_v47 }
  0x4a   : > { %691 = vmatpush1.bf16.msra.mxu0 %v1037_v48 }
  0x4b   : > { %692 = vmatprep.subr.bf16.mxu0 %v1038_v49 }
  0x4e   : > { %693 = vmatpush1.bf16.msra.mxu0 %v1040_v50 }
  0x4f   : > { %694 = vmatprep.subr.bf16.mxu0 %v1041_v51 }
  0x52   : > { %695 = vmatpush1.bf16.msra.mxu0 %v1043_v52 }
  0x53   : > { %696 = vmatprep.subr.bf16.mxu0 %v1044_v53 }
  0x56   : > { %697 = vmatpush1.bf16.msra.mxu0 %v1046_v54 }
  0x57   : > { %698 = vmatprep.subr.bf16.mxu0 %v1047_v55 }
  0x5a   : > { %699 = vmatpush1.bf16.msra.mxu0 %v1049_v56 }
  0x5b   : > { %700 = vmatprep.subr.bf16.mxu0 %v1050_v57 }
  0x5e   : > { %701 = vmatpush1.bf16.msra.mxu0 %v1052_v58 }
  0x5f   : > { %702 = vmatprep.subr.bf16.mxu0 %v1053_v59 }
  0x62   : > { %703 = vmatpush1.bf16.msra.mxu0 %v1055_v60 }
  0x63   : > { %704 = vmatprep.subr.bf16.mxu0 %v1056_v61 }
  0x66   : > { %705 = vmatpush1.bf16.msra.mxu0 %v1058_v62 }
  0x67   : > { %706 = vmatprep.subr.bf16.mxu0 %v1059_v63 }
  0x6a   : > { %707 = vmatpush1.bf16.msra.mxu0 %v1061_v0 }
  0x6d   : > { %709 = vmatmul.mubr.bf16.vlgmr.msra.gmra.mrb[0].mxu0 %v1062_v1 }
 0x140   : > { %v710_v9 = vpop.f32.mrb[0].mxu0 }
 0x141   : > { %v712_v12 = vpop.f32.mrb[1].mxu0  ;;  %v746_v15 = vmul.f32 %v739_v8, %v710_v9 }
 0x142   : > { %v714_v14 = vpop.f32.mrb[2].mxu0  ;;  %v747_v17 = vmul.f32 %v743_v10, %v712_v12  ;;  %776 = sbr.rel (!%p1165_p6) target bundleno = 337 (0x151), region = 86 }
 0x143   : > { %v716_v16 = vpop.f32.mrb[3].mxu0  ;;  %v762_v18 = vadd.f32 %v755_v11, %v746_v15  ;;  %v748_v19 = vmul.f32 %v739_v8, %v714_v14 }
 0x144   : > { %v763_v20 = vadd.f32 %v759_v13, %v747_v17  ;;  %v749_v21 = vmul.f32 %v743_v10, %v716_v16 }
 0x145   : > { %766 = vst [vmem:[%s433_s30] sm:$0xff] %v762_v18  ;;  %v764_v22 = vadd.f32 %v755_v11, %v748_v19 }
 0x146   : > { %767 = vst [vmem:[%s433_s30 + $0x8] sm:$0xff] %v763_v20  ;;  %v765_v23 = vadd.f32 %v759_v13, %v749_v21 }
 0x147   : > { %768 = vst [vmem:[%s433_s30 + $0x10] sm:$0xff] %v764_v22 }
 0x148   : > { %769 = vst [vmem:[%s433_s30 + $0x18] sm:$0xff] %v765_v23 }
 0x14c   : > { %v795_v24 = vld [vmem:[%s433_s30] sm:$0xff] }
 0x14d   : > { %v797_v25 = vld [vmem:[%s433_s30 + $0x8] sm:$0xff]  ;;  %796 = vst [vmem:[%s782_s7] sm:$0xff] %v795_v24 }
 0x14e   : > { %v799_v26 = vld [vmem:[%s433_s30 + $0x10] sm:$0xff]  ;;  %798 = vst [vmem:[%s782_s7 + $0x8] sm:$0xff] %v797_v25 }
 0x14f   : > { %v801_v27 = vld [vmem:[%s433_s30 + $0x18] sm:$0xff]  ;;  %800 = vst [vmem:[%s782_s7 + $0x20] sm:$0xff] %v799_v26 }
 0x150   : > { %802 = vst [vmem:[%s782_s7 + $0x28] sm:$0xff] %v801_v27 }
 0x151 PF: > { %s14_s19 = sadd.s32 1, %s1103_s19   ;;  %s1327_s15 = smov %s1091_s16 }
 0x152   : > { %p11_p12 = scmp.ge.s32.totalorder %s14_s19, 4   ;;  %s1328_s16 = smov %s1170_s25 }
 0x153   : > { %s1329_s17 = smov %s1099_s18  ;;  %s1330_s18 = smov %s1332_s20 }
 0x154   :  { %13 = sbr.rel (!%p11_p12) target bundleno = 3 (0x3), region = 149 }

// kernel: _lambda_.41
= control target key start
LH: loop header
LB: loop body
LE: loop exit
PB: predicated region body
PF: predicated region fallthrough
CT: control target
= control target key end

     0   :  { %s2836_s0 = inlined_call_operand.vmem [shape: bf16[16,4608], index: 0, kind: input, shape index: {}]   ;;  %s2837_s1 = inlined_call_operand.vmem [shape: bf16[4608,512], index: 1, kind: input, shape index: {}]   ;;  %s2838_s2 = inlined_call_operand.vmem [shape: f32[1,512], index: 2, kind: input, shape index: {}]   ;;  %s2839_s3 = inlined_call_operand.vmem [shape: f32[1,512], index: 3, kind: input, shape index: {}]   ;;  %s2840_s4 = inlined_call_operand.vmem [shape: f32[16,512], index: 4, kind: input, shape index: {}]   ;;  %s2841_s5 = inlined_call_operand.vmem [shape: f32[16,512], index: 5, kind: output, shape index: {}]  }
   0x1   :  { %2844 = sst [smem:[#allocation9_spill]] %s2836_s0 }
   0x2   :  { %2845 = sst [smem:[#allocation10_spill]] %s2837_s1 }
   0x3   :  { %s2304_s18 = smov 0   ;;  %s2306_s19 = smov 0  }
   0x4   :  { %s2308_s20 = smov 0   ;;  %s2310_s21 = smov 0  }
   0x5   :  { %s2312_s22 = smov 0   ;;  %s2314_s23 = smov 0  }
   0x6   :  { %s2316_s24 = smov 0   ;;  %s2318_s25 = smov 0  }
   0x7   :  { %s2320_s26 = smov 0   ;;  %s2322_s27 = smov 0  }
   0x8   :  { %s2324_s28 = smov 0  }
   0x9 LB: > { %s1802_s29 = sadd.s32 4294967295, %s2271_s28   ;;  %s27_s30 = sadd.s32 1, %s2263_s26  ;;  %s2271_s28 = sphi %s2324_s28, %s15_s28   ;;  %s2267_s27 = sphi %s2322_s27, %s2867_s27   ;;  %s2263_s26 = sphi %s2320_s26, %s2866_s26   ;;  %s2259_s25 = sphi %s2318_s25, %s2865_s25   ;;  %s2255_s24 = sphi %s2316_s24, %s2864_s24   ;;  %s2251_s23 = sphi %s2314_s23, %s2863_s23   ;;  %s2247_s22 = sphi %s2312_s22, %s2862_s22   ;;  %s2243_s21 = sphi %s2310_s21, %s2861_s21   ;;  %s2239_s20 = sphi %s2308_s20, %s2860_s20   ;;  %s2235_s19 = sphi %s2306_s19, %s2859_s19   ;;  %s2231_s18 = sphi %s2304_s18, %s2858_s18  }
   0xa   : > { %p28_p0 = scmp.ge.s32.totalorder %s27_s30, 6  ;;  %s30_s6 = sadd.s32 1, %s2267_s27 }
   0xb   : > { %s43_s7 = sadd.s32 1, %s2251_s23  ;;  %p50_p1 = scmp.ne.s32.totalorder %s2251_s23, %s2247_s22 }
   0xc   : > { %s2869_s30 = smov (%p28_p0, %s27_s30), 0  ;;  %s2871_s6 = smov (!%p28_p0, %s30_s6), %s2267_s27 }
   0xd   : > { %2846 = sst [smem:[#allocation6_spill]] %s2869_s30  ;;  %s39_s8 = ssub.s32 %s2263_s26, %s2869_s30 }
   0xe   : > { %p51_p2 = scmp.eq.s32.totalorder %s2271_s28, 0  ;;  %p32_p3 = scmp.ge.s32.totalorder %s2871_s6, 2 }
   0xf   : > { %p41_p4 = scmp.eq.s32.totalorder %s39_s8, 0  ;;  %s71_s10 = sadd.s32 1, %s2243_s21 }
  0x10   : > { %p2373_p5 = por %p51_p2, %p50_p1  ;;  %s2873_s6 = smov (%p32_p3, %s2871_s6), 0 }
  0x11   : > { %2848 = sst [smem:[#allocation7_spill]] %s2873_s6  ;;  %s67_s12 = ssub.s32 %s2267_s27, %s2873_s6 }
  0x12   : > { %s2381_s11 = scalar_select %p41_p4, %s2251_s23, %s43_s7  }
  0x13   : > { %p78_p6 = scmp.ne.s32.totalorder %s2243_s21, %s2239_s20  ;;  %s68_s13 = sor.u32 %s67_s12, %s39_s8 }
  0x14   : > { %2849 = sst [smem:[#allocation8_spill]] %s2381_s11  ;;  %p149_p7 = scmp.eq.s32.totalorder %s67_s12, 0 }
  0x15   : > { %p69_p8 = scmp.eq.s32.totalorder %s68_s13, 0  ;;  %p2389_p9 = por %p78_p6, %p51_p2 }
  0x16   : > { %s151_s15 = sadd.s32 1, %s2235_s19  ;;  %p158_p10 = scmp.ne.s32.totalorder %s2235_s19, %s2231_s18 }
  0x17   : > { %s2397_s16 = scalar_select %p69_p8, %s2243_s21, %s71_s10  }
  0x18   : > { %s2400_s17 = scalar_select %p149_p7, %s2235_s19, %s151_s15  }
  0x19   : > { %p2404_p11 = por %p158_p10, %p51_p2  ;;  %p190_p12 = scmp.eq.s32.totalorder %s1802_s29, 11 }
  0x1a   : > { %p1805_p0 = scmp.ge.s32.totalorder %s2271_s28, 12 }
  0x1b   : > { %p2408_p13 = por %p190_p12, %p158_p10 }
  0x1c   : > { %212 = sbr.rel (%p1805_p0) target bundleno = 112 (0x70), region = 16 }
  0x23   : > { %215 = sbr.rel (!%p2373_p5) target bundleno = 47 (0x2f), region = 20  ;;  %s217_s10 = sand.u32 (%p2373_p5), 1, %s2251_s23  }
  0x24   : > { %s1927_s12 = smul.u32 (%p2373_p5), 24, %s2263_s26  ;;  %s2853_s0 = sld [smem:[#allocation9_spill]] (%p2373_p5) }
  0x25   : > { %s1939_s13 = smul.u32 (%p2373_p5), 48, %s217_s10 }
  0x27   : > { %s219_s29 = scalar_lea.vmem (%p2373_p5), [#allocation2], %s1939_s13 }
  0x2a   : > { %s225_s30 = scalar_lea.vmem %s2853_s0, %s1927_s12 }
  0x2b   : > { %v238_v0 = vld [vmem:[%s225_s30] sm:$0xff]  ;;  %v240_v1 = vld [vmem:[%s225_s30 + $0x8] sm:$0xff]  ;;  %v242_v2 = vld [vmem:[%s225_s30 + $0x10] sm:$0xff] }
  0x2c   : > { %239 = vst [vmem:[%s219_s29] sm:$0xff] %v238_v0  ;;  %241 = vst [vmem:[%s219_s29 + $0x8] sm:$0xff] %v240_v1  ;;  %v244_v3 = vld [vmem:[%s225_s30 + $0x90] sm:$0xff]  ;;  %v246_v4 = vld [vmem:[%s225_s30 + $0x98] sm:$0xff] }
  0x2d   : > { %243 = vst [vmem:[%s219_s29 + $0x10] sm:$0xff] %v242_v2  ;;  %v248_v5 = vld [vmem:[%s225_s30 + $0xa0] sm:$0xff]  ;;  %245 = vst [vmem:[%s219_s29 + $0x18] sm:$0xff] %v244_v3 }
  0x2e   : > { %247 = vst [vmem:[%s219_s29 + $0x20] sm:$0xff] %v246_v4  ;;  %249 = vst [vmem:[%s219_s29 + $0x28] sm:$0xff] %v248_v5 }
  0x2f PF: > { %255 = sbr.rel (!%p2389_p9) target bundleno = 105 (0x69), region = 43  ;;  %s257_s6 = sand.u32 (%p2389_p9), 1, %s2243_s21  }
  0x30   : > { %s1940_s9 = smul.u32 (%p2389_p9), 768, %s257_s6  ;;  %s1807_s10 = sshll.u32 (%p2389_p9), %s2267_s27, 1 }
  0x31   : > { %s1928_s12 = smul.u32 (%p2389_p9), 384, %s2263_s26  ;;  %s2854_s1 = sld [smem:[#allocation10_spill]] (%p2389_p9) }
  0x32   : > { %s2433_s14 = scalar_lea.vmem (%p2389_p9), [#allocation3], %s1940_s9 }
  0x33   : > { %s263_s13 = sadd.s32 (%p2389_p9), %s1928_s12, %s1807_s10 }
  0x34   : > { %s1809_s15 = sshll.u32 (%p2389_p9), %s263_s13, 2 }
  0x37   : > { %s2428_s30 = scalar_lea.vmem %s2854_s1, %s1809_s15 }
  0x38   : > { %v483_v6 = vld [vmem:[%s2428_s30] sm:$0xff]  ;;  %v485_v7 = vld [vmem:[%s2428_s30 + $0x10] sm:$0xff] }
  0x39   : > { %v487_v8 = vld [vmem:[%s2428_s30 + $0x20] sm:$0xff]  ;;  %484 = vst [vmem:[%s2433_s14] sm:$0xff] %v483_v6  ;;  %486 = vst [vmem:[%s2433_s14 + $0x8] sm:$0xff] %v485_v7  ;;  %v489_v9 = vld [vmem:[%s2428_s30 + $0x30] sm:$0xff] }
  0x3a   : > { %488 = vst [vmem:[%s2433_s14 + $0x10] sm:$0xff] %v487_v8  ;;  %v491_v10 = vld [vmem:[%s2428_s30 + $0x40] sm:$0xff]  ;;  %v493_v11 = vld [vmem:[%s2428_s30 + $0x50] sm:$0xff]  ;;  %490 = vst [vmem:[%s2433_s14 + $0x18] sm:$0xff] %v489_v9 }
  0x3b   : > { %492 = vst [vmem:[%s2433_s14 + $0x20] sm:$0xff] %v491_v10  ;;  %494 = vst [vmem:[%s2433_s14 + $0x28] sm:$0xff] %v493_v11  ;;  %v495_v12 = vld [vmem:[%s2428_s30 + $0x60] sm:$0xff]  ;;  %v497_v13 = vld [vmem:[%s2428_s30 + $0x70] sm:$0xff] }
  0x3c   : > { %v499_v14 = vld [vmem:[%s2428_s30 + $0x80] sm:$0xff]  ;;  %496 = vst [vmem:[%s2433_s14 + $0x30] sm:$0xff] %v495_v12  ;;  %498 = vst [vmem:[%s2433_s14 + $0x38] sm:$0xff] %v497_v13  ;;  %v501_v15 = vld [vmem:[%s2428_s30 + $0x90] sm:$0xff] }
  0x3d   : > { %500 = vst [vmem:[%s2433_s14 + $0x40] sm:$0xff] %v499_v14  ;;  %v503_v16 = vld [vmem:[%s2428_s30 + $0xa0] sm:$0xff]  ;;  %v505_v17 = vld [vmem:[%s2428_s30 + $0xb0] sm:$0xff]  ;;  %502 = vst [vmem:[%s2433_s14 + $0x48] sm:$0xff] %v501_v15 }
  0x3e   : > { %504 = vst [vmem:[%s2433_s14 + $0x50] sm:$0xff] %v503_v16  ;;  %506 = vst [vmem:[%s2433_s14 + $0x58] sm:$0xff] %v505_v17  ;;  %v507_v18 = vld [vmem:[%s2428_s30 + $0xc0] sm:$0xff]  ;;  %v509_v19 = vld [vmem:[%s2428_s30 + $0xd0] sm:$0xff] }
  0x3f   : > { %v511_v20 = vld [vmem:[%s2428_s30 + $0xe0] sm:$0xff]  ;;  %508 = vst [vmem:[%s2433_s14 + $0x60] sm:$0xff] %v507_v18  ;;  %510 = vst [vmem:[%s2433_s14 + $0x68] sm:$0xff] %v509_v19  ;;  %v513_v21 = vld [vmem:[%s2428_s30 + $0xf0] sm:$0xff] }
  0x40   : > { %512 = vst [vmem:[%s2433_s14 + $0x70] sm:$0xff] %v511_v20  ;;  %v515_v22 = vld [vmem:[%s2428_s30 + $0x100] sm:$0xff]  ;;  %v517_v23 = vld [vmem:[%s2428_s30 + $0x110] sm:$0xff]  ;;  %514 = vst [vmem:[%s2433_s14 + $0x78] sm:$0xff] %v513_v21 }
  0x41   : > { %516 = vst [vmem:[%s2433_s14 + $0x80] sm:$0xff] %v515_v22  ;;  %518 = vst [vmem:[%s2433_s14 + $0x88] sm:$0xff] %v517_v23  ;;  %v519_v24 = vld [vmem:[%s2428_s30 + $0x120] sm:$0xff]  ;;  %v521_v25 = vld [vmem:[%s2428_s30 + $0x130] sm:$0xff] }
  0x42   : > { %v523_v26 = vld [vmem:[%s2428_s30 + $0x140] sm:$0xff]  ;;  %520 = vst [vmem:[%s2433_s14 + $0x90] sm:$0xff] %v519_v24  ;;  %522 = vst [vmem:[%s2433_s14 + $0x98] sm:$0xff] %v521_v25  ;;  %v525_v27 = vld [vmem:[%s2428_s30 + $0x150] sm:$0xff] }
  0x43   : > { %524 = vst [vmem:[%s2433_s14 + $0xa0] sm:$0xff] %v523_v26  ;;  %v527_v28 = vld [vmem:[%s2428_s30 + $0x160] sm:$0xff]  ;;  %v529_v29 = vld [vmem:[%s2428_s30 + $0x170] sm:$0xff]  ;;  %526 = vst [vmem:[%s2433_s14 + $0xa8] sm:$0xff] %v525_v27 }
  0x44   : > { %528 = vst [vmem:[%s2433_s14 + $0xb0] sm:$0xff] %v527_v28  ;;  %530 = vst [vmem:[%s2433_s14 + $0xb8] sm:$0xff] %v529_v29  ;;  %v531_v30 = vld [vmem:[%s2428_s30 + $0x180] sm:$0xff]  ;;  %v533_v31 = vld [vmem:[%s2428_s30 + $0x190] sm:$0xff] }
  0x45   : > { %v535_v32 = vld [vmem:[%s2428_s30 + $0x1a0] sm:$0xff]  ;;  %532 = vst [vmem:[%s2433_s14 + $0xc0] sm:$0xff] %v531_v30  ;;  %534 = vst [vmem:[%s2433_s14 + $0xc8] sm:$0xff] %v533_v31  ;;  %v537_v33 = vld [vmem:[%s2428_s30 + $0x1b0] sm:$0xff] }
  0x46   : > { %536 = vst [vmem:[%s2433_s14 + $0xd0] sm:$0xff] %v535_v32  ;;  %v539_v34 = vld [vmem:[%s2428_s30 + $0x1c0] sm:$0xff]  ;;  %v541_v35 = vld [vmem:[%s2428_s30 + $0x1d0] sm:$0xff]  ;;  %538 = vst [vmem:[%s2433_s14 + $0xd8] sm:$0xff] %v537_v33 }
  0x47   : > { %540 = vst [vmem:[%s2433_s14 + $0xe0] sm:$0xff] %v539_v34  ;;  %542 = vst [vmem:[%s2433_s14 + $0xe8] sm:$0xff] %v541_v35  ;;  %v543_v36 = vld [vmem:[%s2428_s30 + $0x1e0] sm:$0xff]  ;;  %v545_v37 = vld [vmem:[%s2428_s30 + $0x1f0] sm:$0xff] }
  0x48   : > { %v547_v38 = vld [vmem:[%s2428_s30 + $0x200] sm:$0xff]  ;;  %544 = vst [vmem:[%s2433_s14 + $0xf0] sm:$0xff] %v543_v36  ;;  %546 = vst [vmem:[%s2433_s14 + $0xf8] sm:$0xff] %v545_v37  ;;  %v549_v39 = vld [vmem:[%s2428_s30 + $0x210] sm:$0xff] }
  0x49   : > { %548 = vst [vmem:[%s2433_s14 + $0x100] sm:$0xff] %v547_v38  ;;  %v551_v40 = vld [vmem:[%s2428_s30 + $0x220] sm:$0xff]  ;;  %v553_v41 = vld [vmem:[%s2428_s30 + $0x230] sm:$0xff]  ;;  %550 = vst [vmem:[%s2433_s14 + $0x108] sm:$0xff] %v549_v39 }
  0x4a   : > { %552 = vst [vmem:[%s2433_s14 + $0x110] sm:$0xff] %v551_v40  ;;  %554 = vst [vmem:[%s2433_s14 + $0x118] sm:$0xff] %v553_v41  ;;  %v555_v42 = vld [vmem:[%s2428_s30 + $0x240] sm:$0xff]  ;;  %v557_v43 = vld [vmem:[%s2428_s30 + $0x250] sm:$0xff] }
  0x4b   : > { %v559_v44 = vld [vmem:[%s2428_s30 + $0x260] sm:$0xff]  ;;  %556 = vst [vmem:[%s2433_s14 + $0x120] sm:$0xff] %v555_v42  ;;  %558 = vst [vmem:[%s2433_s14 + $0x128] sm:$0xff] %v557_v43  ;;  %v561_v45 = vld [vmem:[%s2428_s30 + $0x270] sm:$0xff] }
  0x4c   : > { %560 = vst [vmem:[%s2433_s14 + $0x130] sm:$0xff] %v559_v44  ;;  %v563_v46 = vld [vmem:[%s2428_s30 + $0x280] sm:$0xff]  ;;  %v565_v47 = vld [vmem:[%s2428_s30 + $0x290] sm:$0xff]  ;;  %562 = vst [vmem:[%s2433_s14 + $0x138] sm:$0xff] %v561_v45 }
  0x4d   : > { %564 = vst [vmem:[%s2433_s14 + $0x140] sm:$0xff] %v563_v46  ;;  %566 = vst [vmem:[%s2433_s14 + $0x148] sm:$0xff] %v565_v47  ;;  %v567_v48 = vld [vmem:[%s2428_s30 + $0x2a0] sm:$0xff]  ;;  %v569_v49 = vld [vmem:[%s2428_s30 + $0x2b0] sm:$0xff] }
  0x4e   : > { %v571_v50 = vld [vmem:[%s2428_s30 + $0x2c0] sm:$0xff]  ;;  %568 = vst [vmem:[%s2433_s14 + $0x150] sm:$0xff] %v567_v48  ;;  %570 = vst [vmem:[%s2433_s14 + $0x158] sm:$0xff] %v569_v49  ;;  %v573_v51 = vld [vmem:[%s2428_s30 + $0x2d0] sm:$0xff] }
  0x4f   : > { %572 = vst [vmem:[%s2433_s14 + $0x160] sm:$0xff] %v571_v50  ;;  %v575_v52 = vld [vmem:[%s2428_s30 + $0x2e0] sm:$0xff]  ;;  %v577_v53 = vld [vmem:[%s2428_s30 + $0x2f0] sm:$0xff]  ;;  %574 = vst [vmem:[%s2433_s14 + $0x168] sm:$0xff] %v573_v51 }
  0x50   : > { %576 = vst [vmem:[%s2433_s14 + $0x170] sm:$0xff] %v575_v52  ;;  %578 = vst [vmem:[%s2433_s14 + $0x178] sm:$0xff] %v577_v53  ;;  %v579_v54 = vld [vmem:[%s2428_s30 + $0x300] sm:$0xff]  ;;  %v581_v55 = vld [vmem:[%s2428_s30 + $0x310] sm:$0xff] }
  0x51   : > { %v583_v56 = vld [vmem:[%s2428_s30 + $0x320] sm:$0xff]  ;;  %580 = vst [vmem:[%s2433_s14 + $0x180] sm:$0xff] %v579_v54  ;;  %582 = vst [vmem:[%s2433_s14 + $0x188] sm:$0xff] %v581_v55  ;;  %v585_v57 = vld [vmem:[%s2428_s30 + $0x330] sm:$0xff] }
  0x52   : > { %584 = vst [vmem:[%s2433_s14 + $0x190] sm:$0xff] %v583_v56  ;;  %v587_v58 = vld [vmem:[%s2428_s30 + $0x340] sm:$0xff]  ;;  %v589_v59 = vld [vmem:[%s2428_s30 + $0x350] sm:$0xff]  ;;  %586 = vst [vmem:[%s2433_s14 + $0x198] sm:$0xff] %v585_v57 }
  0x53   : > { %588 = vst [vmem:[%s2433_s14 + $0x1a0] sm:$0xff] %v587_v58  ;;  %590 = vst [vmem:[%s2433_s14 + $0x1a8] sm:$0xff] %v589_v59  ;;  %v591_v60 = vld [vmem:[%s2428_s30 + $0x360] sm:$0xff]  ;;  %v593_v61 = vld [vmem:[%s2428_s30 + $0x370] sm:$0xff] }
  0x54   : > { %v595_v62 = vld [vmem:[%s2428_s30 + $0x380] sm:$0xff]  ;;  %592 = vst [vmem:[%s2433_s14 + $0x1b0] sm:$0xff] %v591_v60  ;;  %594 = vst [vmem:[%s2433_s14 + $0x1b8] sm:$0xff] %v593_v61  ;;  %v597_v63 = vld [vmem:[%s2428_s30 + $0x390] sm:$0xff] }
  0x55   : > { %596 = vst [vmem:[%s2433_s14 + $0x1c0] sm:$0xff] %v595_v62  ;;  %v599_v0 = vld [vmem:[%s2428_s30 + $0x3a0] sm:$0xff]  ;;  %v601_v1 = vld [vmem:[%s2428_s30 + $0x3b0] sm:$0xff]  ;;  %598 = vst [vmem:[%s2433_s14 + $0x1c8] sm:$0xff] %v597_v63 }
  0x56   : > { %600 = vst [vmem:[%s2433_s14 + $0x1d0] sm:$0xff] %v599_v0  ;;  %602 = vst [vmem:[%s2433_s14 + $0x1d8] sm:$0xff] %v601_v1  ;;  %v603_v2 = vld [vmem:[%s2428_s30 + $0x3c0] sm:$0xff]  ;;  %v605_v3 = vld [vmem:[%s2428_s30 + $0x3d0] sm:$0xff] }
  0x57   : > { %v607_v4 = vld [vmem:[%s2428_s30 + $0x3e0] sm:$0xff]  ;;  %604 = vst [vmem:[%s2433_s14 + $0x1e0] sm:$0xff] %v603_v2  ;;  %606 = vst [vmem:[%s2433_s14 + $0x1e8] sm:$0xff] %v605_v3  ;;  %v609_v5 = vld [vmem:[%s2428_s30 + $0x3f0] sm:$0xff] }
  0x58   : > { %608 = vst [vmem:[%s2433_s14 + $0x1f0] sm:$0xff] %v607_v4  ;;  %v611_v6 = vld [vmem:[%s2428_s30 + $0x400] sm:$0xff]  ;;  %v613_v7 = vld [vmem:[%s2428_s30 + $0x410] sm:$0xff]  ;;  %610 = vst [vmem:[%s2433_s14 + $0x1f8] sm:$0xff] %v609_v5 }
  0x59   : > { %612 = vst [vmem:[%s2433_s14 + $0x200] sm:$0xff] %v611_v6  ;;  %614 = vst [vmem:[%s2433_s14 + $0x208] sm:$0xff] %v613_v7  ;;  %v615_v8 = vld [vmem:[%s2428_s30 + $0x420] sm:$0xff]  ;;  %v617_v9 = vld [vmem:[%s2428_s30 + $0x430] sm:$0xff] }
  0x5a   : > { %v619_v10 = vld [vmem:[%s2428_s30 + $0x440] sm:$0xff]  ;;  %616 = vst [vmem:[%s2433_s14 + $0x210] sm:$0xff] %v615_v8  ;;  %618 = vst [vmem:[%s2433_s14 + $0x218] sm:$0xff] %v617_v9  ;;  %v621_v11 = vld [vmem:[%s2428_s30 + $0x450] sm:$0xff] }
  0x5b   : > { %620 = vst [vmem:[%s2433_s14 + $0x220] sm:$0xff] %v619_v10  ;;  %v623_v12 = vld [vmem:[%s2428_s30 + $0x460] sm:$0xff]  ;;  %v625_v13 = vld [vmem:[%s2428_s30 + $0x470] sm:$0xff]  ;;  %622 = vst [vmem:[%s2433_s14 + $0x228] sm:$0xff] %v621_v11 }
  0x5c   : > { %624 = vst [vmem:[%s2433_s14 + $0x230] sm:$0xff] %v623_v12  ;;  %626 = vst [vmem:[%s2433_s14 + $0x238] sm:$0xff] %v625_v13  ;;  %v627_v14 = vld [vmem:[%s2428_s30 + $0x480] sm:$0xff]  ;;  %v629_v15 = vld [vmem:[%s2428_s30 + $0x490] sm:$0xff] }
  0x5d   : > { %v631_v16 = vld [vmem:[%s2428_s30 + $0x4a0] sm:$0xff]  ;;  %628 = vst [vmem:[%s2433_s14 + $0x240] sm:$0xff] %v627_v14  ;;  %630 = vst [vmem:[%s2433_s14 + $0x248] sm:$0xff] %v629_v15  ;;  %v633_v17 = vld [vmem:[%s2428_s30 + $0x4b0] sm:$0xff] }
  0x5e   : > { %632 = vst [vmem:[%s2433_s14 + $0x250] sm:$0xff] %v631_v16  ;;  %v635_v18 = vld [vmem:[%s2428_s30 + $0x4c0] sm:$0xff]  ;;  %v637_v19 = vld [vmem:[%s2428_s30 + $0x4d0] sm:$0xff]  ;;  %634 = vst [vmem:[%s2433_s14 + $0x258] sm:$0xff] %v633_v17 }
  0x5f   : > { %636 = vst [vmem:[%s2433_s14 + $0x260] sm:$0xff] %v635_v18  ;;  %638 = vst [vmem:[%s2433_s14 + $0x268] sm:$0xff] %v637_v19  ;;  %v639_v20 = vld [vmem:[%s2428_s30 + $0x4e0] sm:$0xff]  ;;  %v641_v21 = vld [vmem:[%s2428_s30 + $0x4f0] sm:$0xff] }
  0x60   : > { %v643_v22 = vld [vmem:[%s2428_s30 + $0x500] sm:$0xff]  ;;  %640 = vst [vmem:[%s2433_s14 + $0x270] sm:$0xff] %v639_v20  ;;  %642 = vst [vmem:[%s2433_s14 + $0x278] sm:$0xff] %v641_v21  ;;  %v645_v23 = vld [vmem:[%s2428_s30 + $0x510] sm:$0xff] }
  0x61   : > { %644 = vst [vmem:[%s2433_s14 + $0x280] sm:$0xff] %v643_v22  ;;  %v647_v24 = vld [vmem:[%s2428_s30 + $0x520] sm:$0xff]  ;;  %v649_v25 = vld [vmem:[%s2428_s30 + $0x530] sm:$0xff]  ;;  %646 = vst [vmem:[%s2433_s14 + $0x288] sm:$0xff] %v645_v23 }
  0x62   : > { %648 = vst [vmem:[%s2433_s14 + $0x290] sm:$0xff] %v647_v24  ;;  %650 = vst [vmem:[%s2433_s14 + $0x298] sm:$0xff] %v649_v25  ;;  %v651_v26 = vld [vmem:[%s2428_s30 + $0x540] sm:$0xff]  ;;  %v653_v27 = vld [vmem:[%s2428_s30 + $0x550] sm:$0xff] }
  0x63   : > { %v655_v28 = vld [vmem:[%s2428_s30 + $0x560] sm:$0xff]  ;;  %652 = vst [vmem:[%s2433_s14 + $0x2a0] sm:$0xff] %v651_v26  ;;  %654 = vst [vmem:[%s2433_s14 + $0x2a8] sm:$0xff] %v653_v27  ;;  %v657_v29 = vld [vmem:[%s2428_s30 + $0x570] sm:$0xff] }
  0x64   : > { %656 = vst [vmem:[%s2433_s14 + $0x2b0] sm:$0xff] %v655_v28  ;;  %v659_v30 = vld [vmem:[%s2428_s30 + $0x580] sm:$0xff]  ;;  %v661_v31 = vld [vmem:[%s2428_s30 + $0x590] sm:$0xff]  ;;  %658 = vst [vmem:[%s2433_s14 + $0x2b8] sm:$0xff] %v657_v29 }
  0x65   : > { %660 = vst [vmem:[%s2433_s14 + $0x2c0] sm:$0xff] %v659_v30  ;;  %662 = vst [vmem:[%s2433_s14 + $0x2c8] sm:$0xff] %v661_v31  ;;  %v663_v32 = vld [vmem:[%s2428_s30 + $0x5a0] sm:$0xff]  ;;  %v665_v33 = vld [vmem:[%s2428_s30 + $0x5b0] sm:$0xff] }
  0x66   : > { %v667_v34 = vld [vmem:[%s2428_s30 + $0x5c0] sm:$0xff]  ;;  %664 = vst [vmem:[%s2433_s14 + $0x2d0] sm:$0xff] %v663_v32  ;;  %666 = vst [vmem:[%s2433_s14 + $0x2d8] sm:$0xff] %v665_v33  ;;  %v669_v35 = vld [vmem:[%s2428_s30 + $0x5d0] sm:$0xff] }
  0x67   : > { %668 = vst [vmem:[%s2433_s14 + $0x2e0] sm:$0xff] %v667_v34  ;;  %v671_v36 = vld [vmem:[%s2428_s30 + $0x5e0] sm:$0xff]  ;;  %v673_v37 = vld [vmem:[%s2428_s30 + $0x5f0] sm:$0xff]  ;;  %670 = vst [vmem:[%s2433_s14 + $0x2e8] sm:$0xff] %v669_v35 }
  0x68   : > { %672 = vst [vmem:[%s2433_s14 + $0x2f0] sm:$0xff] %v671_v36  ;;  %674 = vst [vmem:[%s2433_s14 + $0x2f8] sm:$0xff] %v673_v37 }
  0x69 PF: > { %696 = sbr.rel (!%p2404_p11) target bundleno = 112 (0x70), region = 89  ;;  %s698_s0 = sand.u32 (%p2404_p11), 1, %s2235_s19  }
  0x6a   : > { %s1929_s11 = sshll.u32 (%p2404_p11), %s2267_s27, 4  ;;  %s1810_s29 = sshll.u32 (%p2404_p11), %s698_s0, 5 }
  0x6b   : > { %s706_s10 = scalar_lea.vmem (%p2404_p11), %s2840_s4, %s1929_s11  ;;  %s700_s12 = scalar_lea.vmem (%p2404_p11), [#allocation4], %s1810_s29 }
  0x6c   : > { %v719_v38 = vld [vmem:[%s706_s10] sm:$0xff] (%p2404_p11)  ;;  %v721_v39 = vld [vmem:[%s706_s10 + $0x8] sm:$0xff] (%p2404_p11) }
  0x6d   : > { %v723_v40 = vld [vmem:[%s706_s10 + $0x20] sm:$0xff] (%p2404_p11)  ;;  %720 = vst [vmem:[%s700_s12] sm:$0xff] (%p2404_p11), %v719_v38  ;;  %722 = vst [vmem:[%s700_s12 + $0x8] sm:$0xff] (%p2404_p11), %v721_v39  ;;  %v725_v41 = vld [vmem:[%s706_s10 + $0x28] sm:$0xff] (%p2404_p11) }
  0x6e   : > { %724 = vst [vmem:[%s700_s12 + $0x10] sm:$0xff] (%p2404_p11), %v723_v40  ;;  %726 = vst [vmem:[%s700_s12 + $0x18] sm:$0xff] (%p2404_p11), %v725_v41 }
  0x70 PF: > { %p1813_p1 = scmp.ge.s32.totalorder %s2271_s28, 1  ;;  %p731_p2 = scmp.lt.s32.totalorder %s2271_s28, 13 }
  0x72   : > { %p732_p3 = pnand %p1813_p1, %p731_p2 }
  0x73   : > { %s738_s7 = sand.u32 (!%p732_p3), 1, %s2247_s22   ;;  %s745_s13 = sand.u32 (!%p732_p3), 1, %s2239_s20  }
  0x74   : > { %735 = sbr.rel (%p732_p3) target bundleno = 503 (0x1f7), region = 112  ;;  %s752_s30 = sand.u32 (!%p732_p3), 1, %s2231_s18  }
  0x75   : > { %s1941_s15 = smul.u32 (!%p732_p3), 48, %s738_s7  ;;  %s1814_s0 = sshll.u32 (!%p732_p3), %s752_s30, 5 }
  0x76   : > { %s1942_s14 = smul.u32 (!%p732_p3), 768, %s745_s13  ;;  %s1816_s11 = sshll.u32 (!%p732_p3), %s2259_s25, 1 }
  0x77   : > { %p799_p4 = scmp.lt.s32.totalorder (!%p732_p3), %s1816_s11, 3  ;;  %s2647_s22 = scalar_lea.vmem (!%p732_p3), [#allocation2], %s1941_s15 }
  0x78   : > { %s2649_s20 = scalar_lea.vmem (!%p732_p3), [#allocation3], %s1942_s14  ;;  %s2651_s18 = scalar_lea.vmem (!%p732_p3), [#allocation4], %s1814_s0 }
  0x79   : > { %s2653_s7 = scalar_lea.vmem (!%p732_p3), [#allocation5], %s1814_s0  ;;  %p1818_p5 = scmp.ne.s32.totalorder (!%p732_p3), %s2255_s24, 0 }
  0x7b   : > { %s2875_s11 = smov (!%p799_p4, %s1816_s11), 3  ;;  %815 = sbr.rel (%p1818_p5) target bundleno = 130 (0x82), region = 128 }
  0x7c   : > { %s801_s9 = scalar_lea.vmem %s2838_s2, %s2875_s11  ;;  %s806_s1 = scalar_lea.vmem %s2839_s3, %s2875_s11  ;;  %v2273_v42 = vmov (!%p1818_p5), 0.0  }
  0x7d   : > { %816 = vst [vmem:[%s2653_s7] sm:$0xff] (!%p1818_p5), %v2273_v42  ;;  %817 = vst [vmem:[%s2653_s7 + $0x8] sm:$0xff] (!%p1818_p5), %v2273_v42 }
  0x7e   : > { %818 = vst [vmem:[%s2653_s7 + $0x10] sm:$0xff] (!%p1818_p5), %v2273_v42  ;;  %819 = vst [vmem:[%s2653_s7 + $0x18] sm:$0xff] (!%p1818_p5), %v2273_v42 }
  0x82 PF: > { %v2032_v43 = vld [vmem:[%s2649_s20 + $0x104] ss:$8 sps:$4 sm:$0xff]   ;;  %v2034_v44 = vld [vmem:[%s2649_s20 + $0x100] ss:$8 sps:$4 sm:$0xff]   ;;  %v2035_v45 = vld [vmem:[%s2649_s20 + $0x114] ss:$8 sps:$4 sm:$0xff]  }
  0x83   : > { %1479 = vmatprep.subr.bf16.mxu0 %v2032_v43  ;;  %v2037_v46 = vld [vmem:[%s2649_s20 + $0x110] ss:$8 sps:$4 sm:$0xff]   ;;  %v2038_v47 = vld [vmem:[%s2649_s20 + $0x124] ss:$8 sps:$4 sm:$0xff]   ;;  %v2040_v48 = vld [vmem:[%s2649_s20 + $0x120] ss:$8 sps:$4 sm:$0xff]  }
  0x84   : > { %1480 = vmatpush1.bf16.msra.mxu0 %v2034_v44  ;;  %v2041_v49 = vld [vmem:[%s2649_s20 + $0x134] ss:$8 sps:$4 sm:$0xff]   ;;  %v2043_v50 = vld [vmem:[%s2649_s20 + $0x130] ss:$8 sps:$4 sm:$0xff]   ;;  %v2044_v51 = vld [vmem:[%s2649_s20 + $0x144] ss:$8 sps:$4 sm:$0xff]  }
  0x85   : > { %1481 = vmatprep.subr.bf16.mxu0 %v2035_v45  ;;  %v2046_v52 = vld [vmem:[%s2649_s20 + $0x140] ss:$8 sps:$4 sm:$0xff]   ;;  %v2047_v53 = vld [vmem:[%s2649_s20 + $0x154] ss:$8 sps:$4 sm:$0xff]   ;;  %v2049_v54 = vld [vmem:[%s2649_s20 + $0x150] ss:$8 sps:$4 sm:$0xff]  }
  0x86   : > { %v2050_v55 = vld [vmem:[%s2649_s20 + $0x164] ss:$8 sps:$4 sm:$0xff]   ;;  %v2082_v57 = vld [vmem:[%s2649_s20] ss:$8 sps:$4 sm:$0xff]   ;;  %v2053_v60 = vld [vmem:[%s2649_s20 + $0x174] ss:$8 sps:$4 sm:$0xff]  }
  0x87   : > { %v2079_v56 = vld [vmem:[%s2649_s20 + $0x4] ss:$8 sps:$4 sm:$0xff]   ;;  %v2052_v58 = vld [vmem:[%s2649_s20 + $0x160] ss:$8 sps:$4 sm:$0xff]   ;;  %v2089_v61 = vld [vmem:[%s2649_s20 + $0x14] ss:$8 sps:$4 sm:$0xff]  }
  0x88   : > { %1482 = vmatpush1.bf16.msra.mxu0 %v2037_v46  ;;  %1436 = vmatprep.subr.bf16.mxu1 %v2079_v56  ;;  %v2085_v59 = vld [vmem:[%s2647_s22 + $0xc] ss:$24 sps:$4 sm:$0xff]   ;;  %v2091_v62 = vld [vmem:[%s2649_s20 + $0x10] ss:$8 sps:$4 sm:$0xff]   ;;  %v2097_v2 = vld [vmem:[%s2649_s20 + $0x20] ss:$8 sps:$4 sm:$0xff]  }
  0x89   : > { %1483 = vmatprep.subr.bf16.mxu0 %v2038_v47  ;;  %1437 = vmatpush1.bf16.msra.mxu1 %v2082_v57  ;;  %v2055_v63 = vld [vmem:[%s2649_s20 + $0x170] ss:$8 sps:$4 sm:$0xff]   ;;  %v2056_v0 = vld [vmem:[%s2649_s20 + $0x184] ss:$8 sps:$4 sm:$0xff]   ;;  %v2058_v3 = vld [vmem:[%s2649_s20 + $0x180] ss:$8 sps:$4 sm:$0xff]  }
  0x8a   : > { %1511 = vmatprep.mubr.bf16.mxu0 %v2085_v59  ;;  %1438 = vmatprep.subr.bf16.mxu1 %v2089_v61  ;;  %v2095_v1 = vld [vmem:[%s2649_s20 + $0x24] ss:$8 sps:$4 sm:$0xff]   ;;  %v2101_v4 = vld [vmem:[%s2649_s20 + $0x34] ss:$8 sps:$4 sm:$0xff]   ;;  %v2103_v6 = vld [vmem:[%s2649_s20 + $0x30] ss:$8 sps:$4 sm:$0xff]  }
  0x8b   : > { %v2059_v5 = vld [vmem:[%s2649_s20 + $0x194] ss:$8 sps:$4 sm:$0xff]   ;;  %v2107_v7 = vld [vmem:[%s2649_s20 + $0x44] ss:$8 sps:$4 sm:$0xff]   ;;  %v2061_v8 = vld [vmem:[%s2649_s20 + $0x190] ss:$8 sps:$4 sm:$0xff]  }
  0x8c   : > { %1484 = vmatpush1.bf16.msra.mxu0 %v2040_v48  ;;  %v2062_v9 = vld [vmem:[%s2649_s20 + $0x1a4] ss:$8 sps:$4 sm:$0xff]   ;;  %v2109_v10 = vld [vmem:[%s2649_s20 + $0x40] ss:$8 sps:$4 sm:$0xff]   ;;  %v2113_v11 = vld [vmem:[%s2649_s20 + $0x54] ss:$8 sps:$4 sm:$0xff]  }
  0x8d   : > { %1485 = vmatprep.subr.bf16.mxu0 %v2041_v49  ;;  %1439 = vmatpush1.bf16.msra.mxu1 %v2091_v62  ;;  %v2064_v12 = vld [vmem:[%s2649_s20 + $0x1a0] ss:$8 sps:$4 sm:$0xff]   ;;  %v2065_v13 = vld [vmem:[%s2649_s20 + $0x1b4] ss:$8 sps:$4 sm:$0xff]   ;;  %v2115_v14 = vld [vmem:[%s2649_s20 + $0x50] ss:$8 sps:$4 sm:$0xff]  }
  0x8e   : > { %1440 = vmatprep.subr.bf16.mxu1 %v2095_v1  ;;  %v2119_v15 = vld [vmem:[%s2649_s20 + $0x64] ss:$8 sps:$4 sm:$0xff]   ;;  %v2067_v16 = vld [vmem:[%s2649_s20 + $0x1b0] ss:$8 sps:$4 sm:$0xff]   ;;  %v2121_v18 = vld [vmem:[%s2649_s20 + $0x60] ss:$8 sps:$4 sm:$0xff]  }
  0x8f   : > { %v2068_v17 = vld [vmem:[%s2649_s20 + $0x1c4] ss:$8 sps:$4 sm:$0xff]   ;;  %v2125_v19 = vld [vmem:[%s2649_s20 + $0x74] ss:$8 sps:$4 sm:$0xff]   ;;  %v2070_v20 = vld [vmem:[%s2649_s20 + $0x1c0] ss:$8 sps:$4 sm:$0xff]  }
  0x90   : > { %1486 = vmatpush1.bf16.msra.mxu0 %v2043_v50  ;;  %v2071_v21 = vld [vmem:[%s2649_s20 + $0x1d4] ss:$8 sps:$4 sm:$0xff]   ;;  %v2127_v22 = vld [vmem:[%s2649_s20 + $0x70] ss:$8 sps:$4 sm:$0xff]   ;;  %v2131_v23 = vld [vmem:[%s2649_s20 + $0x84] ss:$8 sps:$4 sm:$0xff]  }
  0x91   : > { %1487 = vmatprep.subr.bf16.mxu0 %v2044_v51  ;;  %1441 = vmatpush1.bf16.msra.mxu1 %v2097_v2  ;;  %v2073_v24 = vld [vmem:[%s2649_s20 + $0x1d0] ss:$8 sps:$4 sm:$0xff]   ;;  %v2074_v25 = vld [vmem:[%s2649_s20 + $0x1e4] ss:$8 sps:$4 sm:$0xff]   ;;  %v2133_v26 = vld [vmem:[%s2649_s20 + $0x80] ss:$8 sps:$4 sm:$0xff]  }
  0x92   : > { %1442 = vmatprep.subr.bf16.mxu1 %v2101_v4  ;;  %v2137_v27 = vld [vmem:[%s2649_s20 + $0x94] ss:$8 sps:$4 sm:$0xff]   ;;  %v2076_v28 = vld [vmem:[%s2649_s20 + $0x1e0] ss:$8 sps:$4 sm:$0xff]   ;;  %v2139_v30 = vld [vmem:[%s2649_s20 + $0x90] ss:$8 sps:$4 sm:$0xff]  }
  0x93   : > { %v2077_v29 = vld [vmem:[%s2649_s20 + $0x1f4] ss:$8 sps:$4 sm:$0xff]   ;;  %v2143_v31 = vld [vmem:[%s2649_s20 + $0xa4] ss:$8 sps:$4 sm:$0xff]   ;;  %v2081_v32 = vld [vmem:[%s2649_s20 + $0x1f0] ss:$8 sps:$4 sm:$0xff]  }
  0x94   : > { %1488 = vmatpush1.bf16.msra.mxu0 %v2046_v52  ;;  %v2088_v33 = vld [vmem:[%s2649_s20 + $0x204] ss:$8 sps:$4 sm:$0xff]   ;;  %v2145_v34 = vld [vmem:[%s2649_s20 + $0xa0] ss:$8 sps:$4 sm:$0xff]   ;;  %v2149_v36 = vld [vmem:[%s2649_s20 + $0xb4] ss:$8 sps:$4 sm:$0xff]  }
  0x95   : > { %1489 = vmatprep.subr.bf16.mxu0 %v2047_v53  ;;  %1443 = vmatpush1.bf16.msra.mxu1 %v2103_v6  ;;  %v2083_v35 = vld [vmem:[%s2647_s22 + $0x8] ss:$24 sps:$4 sm:$0xff]   ;;  %v2094_v38 = vld [vmem:[%s2649_s20 + $0x214] ss:$8 sps:$4 sm:$0xff]   ;;  %v2155_v41 = vld [vmem:[%s2649_s20 + $0xc4] ss:$8 sps:$4 sm:$0xff]  }
  0x96   : > { %1444 = vmatprep.subr.bf16.mxu1 %v2107_v7  ;;  %v2086_v37 = vld [vmem:[%s2649_s20 + $0x200] ss:$8 sps:$4 sm:$0xff]   ;;  %v2151_v39 = vld [vmem:[%s2649_s20 + $0xb0] ss:$8 sps:$4 sm:$0xff]   ;;  %v2178_v40 = vld [vmem:[%s2647_s22 + $0x4] ss:$24 sps:$4 sm:$0xff]  }
  0x97   : > { %v2092_v42 = vld [vmem:[%s2649_s20 + $0x210] ss:$8 sps:$4 sm:$0xff]   ;;  %1468 = vmatprep.mubr.bf16.mxu1 %v2178_v40  ;;  %v2184_v43 = vld [vmem:[%s2647_s22 + $0x14] ss:$24 sps:$4 sm:$0xff]   ;;  %v2157_v45 = vld [vmem:[%s2649_s20 + $0xc0] ss:$8 sps:$4 sm:$0xff]  }
  0x98   : > { %1490 = vmatpush1.bf16.msra.mxu0 %v2049_v54  ;;  %v2100_v44 = vld [vmem:[%s2649_s20 + $0x224] ss:$8 sps:$4 sm:$0xff]   ;;  %v2161_v46 = vld [vmem:[%s2649_s20 + $0xd4] ss:$8 sps:$4 sm:$0xff]   ;;  %v2098_v47 = vld [vmem:[%s2649_s20 + $0x220] ss:$8 sps:$4 sm:$0xff]  }
  0x99   : > { %1491 = vmatprep.subr.bf16.mxu0 %v2050_v55  ;;  %1445 = vmatpush1.bf16.msra.mxu1 %v2109_v10  ;;  %v2106_v48 = vld [vmem:[%s2649_s20 + $0x234] ss:$8 sps:$4 sm:$0xff]   ;;  %v2163_v49 = vld [vmem:[%s2649_s20 + $0xd0] ss:$8 sps:$4 sm:$0xff]   ;;  %v2167_v50 = vld [vmem:[%s2649_s20 + $0xe4] ss:$8 sps:$4 sm:$0xff]  }
  0x9a   : > { %1446 = vmatprep.subr.bf16.mxu1 %v2113_v11  ;;  %v2104_v51 = vld [vmem:[%s2649_s20 + $0x230] ss:$8 sps:$4 sm:$0xff]   ;;  %v2112_v52 = vld [vmem:[%s2649_s20 + $0x244] ss:$8 sps:$4 sm:$0xff]   ;;  %v2169_v53 = vld [vmem:[%s2649_s20 + $0xe0] ss:$8 sps:$4 sm:$0xff]  }
  0x9b   : > { %v2173_v54 = vld [vmem:[%s2649_s20 + $0xf4] ss:$8 sps:$4 sm:$0xff]   ;;  %v2110_v55 = vld [vmem:[%s2649_s20 + $0x240] ss:$8 sps:$4 sm:$0xff]   ;;  %v2175_v57 = vld [vmem:[%s2649_s20 + $0xf0] ss:$8 sps:$4 sm:$0xff]  }
  0x9c   : > { %1492 = vmatpush1.bf16.msra.mxu0 %v2052_v58  ;;  %v2118_v56 = vld [vmem:[%s2649_s20 + $0x254] ss:$8 sps:$4 sm:$0xff]   ;;  %v2116_v58 = vld [vmem:[%s2649_s20 + $0x250] ss:$8 sps:$4 sm:$0xff]   ;;  %v2124_v59 = vld [vmem:[%s2649_s20 + $0x264] ss:$8 sps:$4 sm:$0xff]  }
  0x9d   : > { %1493 = vmatprep.subr.bf16.mxu0 %v2053_v60  ;;  %1447 = vmatpush1.bf16.msra.mxu1 %v2115_v14  ;;  %v2176_v60 = vld [vmem:[%s2647_s22] ss:$24 sps:$4 sm:$0xff]   ;;  %v2130_v62 = vld [vmem:[%s2649_s20 + $0x274] ss:$8 sps:$4 sm:$0xff]   ;;  %v2148_v4 = vld [vmem:[%s2649_s20 + $0x2a4] ss:$8 sps:$4 sm:$0xff]  }
  0x9e   : > { %1448 = vmatprep.subr.bf16.mxu1 %v2119_v15  ;;  %v2122_v61 = vld [vmem:[%s2649_s20 + $0x260] ss:$8 sps:$4 sm:$0xff]   ;;  %v2142_v2 = vld [vmem:[%s2649_s20 + $0x294] ss:$8 sps:$4 sm:$0xff]   ;;  %v2152_v7 = vld [vmem:[%s2649_s20 + $0x2b0] ss:$8 sps:$4 sm:$0xff]  }
  0x9f   : > { %v2134_v1 = vld [vmem:[%s2649_s20 + $0x280] ss:$8 sps:$4 sm:$0xff]   ;;  %v2154_v6 = vld [vmem:[%s2649_s20 + $0x2b4] ss:$8 sps:$4 sm:$0xff]   ;;  %v2164_v11 = vld [vmem:[%s2649_s20 + $0x2d0] ss:$8 sps:$4 sm:$0xff]  }
  0xa0   : > { %1494 = vmatpush1.bf16.msra.mxu0 %v2055_v63  ;;  %v2128_v63 = vld [vmem:[%s2649_s20 + $0x270] ss:$8 sps:$4 sm:$0xff]   ;;  %v2166_v10 = vld [vmem:[%s2649_s20 + $0x2d4] ss:$8 sps:$4 sm:$0xff]   ;;  %p1921_p6 = scmp.ne.s32.totalorder %s2255_s24, 5 }
  0xa1   : > { %1495 = vmatprep.subr.bf16.mxu0 %v2056_v0  ;;  %1449 = vmatpush1.bf16.msra.mxu1 %v2121_v18  ;;  %v2136_v0 = vld [vmem:[%s2649_s20 + $0x284] ss:$8 sps:$4 sm:$0xff]   ;;  %v2181_v14 = vld [vmem:[%s2649_s20 + $0x2f4] ss:$8 sps:$4 sm:$0xff]   ;;  %v2179_v15 = vld [vmem:[%s2649_s20 + $0x2f0] ss:$8 sps:$4 sm:$0xff]  }
  0xa2   : > { %1450 = vmatprep.subr.bf16.mxu1 %v2125_v19  ;;  %v1597_v40 = vld [vmem:[%s806_s1] sm:$0x3] (!%p1921_p6) }
  0xa4   : > { %1496 = vmatpush1.bf16.msra.mxu0 %v2058_v3  ;;  %v2140_v3 = vld [vmem:[%s2649_s20 + $0x290] ss:$8 sps:$4 sm:$0xff]  }
  0xa5   : > { %1497 = vmatprep.subr.bf16.mxu0 %v2059_v5  ;;  %1451 = vmatpush1.bf16.msra.mxu1 %v2127_v22  ;;  %v2146_v5 = vld [vmem:[%s2649_s20 + $0x2a0] ss:$8 sps:$4 sm:$0xff]  }
  0xa6   : > { %1452 = vmatprep.subr.bf16.mxu1 %v2131_v23 }
  0xa8   : > { %1498 = vmatpush1.bf16.msra.mxu0 %v2061_v8  ;;  %v2160_v8 = vld [vmem:[%s2649_s20 + $0x2c4] ss:$8 sps:$4 sm:$0xff]  }
  0xa9   : > { %1499 = vmatprep.subr.bf16.mxu0 %v2062_v9  ;;  %1453 = vmatpush1.bf16.msra.mxu1 %v2133_v26  ;;  %v2158_v9 = vld [vmem:[%s2649_s20 + $0x2c0] ss:$8 sps:$4 sm:$0xff]  }
  0xaa   : > { %1454 = vmatprep.subr.bf16.mxu1 %v2137_v27  ;;  %v822_v27 = vld [vmem:[%s2653_s7 + $0x10] sm:$0xff] }
  0xac   : > { %1500 = vmatpush1.bf16.msra.mxu0 %v2064_v12  ;;  %v2172_v12 = vld [vmem:[%s2649_s20 + $0x2e4] ss:$8 sps:$4 sm:$0xff]  }
  0xad   : > { %1501 = vmatprep.subr.bf16.mxu0 %v2065_v13  ;;  %1455 = vmatpush1.bf16.msra.mxu1 %v2139_v30  ;;  %v2170_v13 = vld [vmem:[%s2649_s20 + $0x2e0] ss:$8 sps:$4 sm:$0xff]  }
  0xae   : > { %1456 = vmatprep.subr.bf16.mxu1 %v2143_v31  ;;  %v823_v31 = vld [vmem:[%s2653_s7 + $0x18] sm:$0xff] }
  0xb0   : > { %1502 = vmatpush1.bf16.msra.mxu0 %v2067_v16  ;;  %v2182_v16 = vld [vmem:[%s2647_s22 + $0x10] ss:$24 sps:$4 sm:$0xff]  }
  0xb1   : > { %1503 = vmatprep.subr.bf16.mxu0 %v2068_v17  ;;  %1457 = vmatpush1.bf16.msra.mxu1 %v2145_v34 }
  0xb2   : > { %1458 = vmatprep.subr.bf16.mxu1 %v2149_v36 }
  0xb4   : > { %1504 = vmatpush1.bf16.msra.mxu0 %v2070_v20 }
  0xb5   : > { %1505 = vmatprep.subr.bf16.mxu0 %v2071_v21  ;;  %1459 = vmatpush1.bf16.msra.mxu1 %v2151_v39  ;;  %v820_v21 = vld [vmem:[%s2653_s7] sm:$0xff] }
  0xb6   : > { %1460 = vmatprep.subr.bf16.mxu1 %v2155_v41  ;;  %v1581_v39 = vld [vmem:[%s801_s9] sm:$0x3] (!%p1921_p6) }
  0xb8   : > { %1506 = vmatpush1.bf16.msra.mxu0 %v2073_v24  ;;  %v821_v24 = vld [vmem:[%s2653_s7 + $0x8] sm:$0xff] }
  0xb9   : > { %1507 = vmatprep.subr.bf16.mxu0 %v2074_v25  ;;  %1461 = vmatpush1.bf16.msra.mxu1 %v2157_v45 }
  0xba   : > { %1462 = vmatprep.subr.bf16.mxu1 %v2161_v46 }
  0xbc   : > { %1508 = vmatpush1.bf16.msra.mxu0 %v2076_v28 }
  0xbd   : > { %1509 = vmatprep.subr.bf16.mxu0 %v2077_v29  ;;  %1463 = vmatpush1.bf16.msra.mxu1 %v2163_v49 }
  0xbe   : > { %1464 = vmatprep.subr.bf16.mxu1 %v2167_v50 }
  0xc0   : > { %1510 = vmatpush1.bf16.msra.mxu0 %v2081_v32 }
  0xc1   : > { %1522 = vmatprep.subr.bf16.mxu0 %v2088_v33  ;;  %1465 = vmatpush1.bf16.msra.mxu1 %v2169_v53 }
  0xc2   : > { %1466 = vmatprep.subr.bf16.mxu1 %v2173_v54 }
  0xc3   : > { %1512 = vmatmul.mubr.bf16.vlgmr.msra.gmra.mrb[0].mxu0 %v2083_v35 }
  0xc4   : > { %1523 = vmatpush1.bf16.msra.mxu0 %v2086_v37  ;;  %1554 = vmatprep.mubr.bf16.mxu0 %v2184_v43  ;;  %v1583_v37 = vlaneseq (!%p1921_p6) }
  0xc5   : > { %1524 = vmatprep.subr.bf16.mxu0 %v2094_v38  ;;  %1467 = vmatpush1.bf16.msra.mxu1 %v2175_v57  ;;  %v1615_v57 = vld [vmem:[%s2651_s18 + $0x10] sm:$0xff] (!%p1921_p6) }
  0xc6   : > { %v1584_v38 = vshrl.u32 (!%p1921_p6), %v1583_v37, 7 }
  0xc8   : > { %1525 = vmatpush1.bf16.msra.mxu0 %v2092_v42  ;;  %1469 = vmatmul.mubr.bf16.vlgmr.msra.gmra.mrb[0].mxu1 %v2176_v60  ;;  %v1585_v42 = vsub.s32 (!%p1921_p6), 0, %v1584_v38  ;;  %v1589_v43 = vsub.s32 (!%p1921_p6), 1, %v1584_v38 }
  0xc9   : > { %1526 = vmatprep.subr.bf16.mxu0 %v2100_v44 }
  0xca   : > { %v1590_v49 = vrot.slane (!%p1921_p6), %v1581_v39, %v1589_v43  ;;  %v1606_v50 = vrot.slane (!%p1921_p6), %v1597_v40, %v1589_v43 }
  0xcc   : > { %1527 = vmatpush1.bf16.msra.mxu0 %v2098_v47  ;;  %v1586_v47 = vrot.slane (!%p1921_p6), %v1581_v39, %v1585_v42 }
  0xcd   : > { %1528 = vmatprep.subr.bf16.mxu0 %v2106_v48  ;;  %v1602_v48 = vrot.slane (!%p1921_p6), %v1597_v40, %v1585_v42 }
  0xd0   : > { %1529 = vmatpush1.bf16.msra.mxu0 %v2104_v51 }
  0xd1   : > { %1530 = vmatprep.subr.bf16.mxu0 %v2112_v52  ;;  %v1613_v52 = vld [vmem:[%s2651_s18] sm:$0xff] (!%p1921_p6) }
  0xd4   : > { %1531 = vmatpush1.bf16.msra.mxu0 %v2110_v55 }
  0xd5   : > { %1532 = vmatprep.subr.bf16.mxu0 %v2118_v56  ;;  %v1614_v56 = vld [vmem:[%s2651_s18 + $0x8] sm:$0xff] (!%p1921_p6) }
  0xd8   : > { %1533 = vmatpush1.bf16.msra.mxu0 %v2116_v58  ;;  %v1616_v58 = vld [vmem:[%s2651_s18 + $0x18] sm:$0xff] (!%p1921_p6) }
  0xd9   : > { %1534 = vmatprep.subr.bf16.mxu0 %v2124_v59 }
  0xdc   : > { %1535 = vmatpush1.bf16.msra.mxu0 %v2122_v61 }
  0xdd   : > { %1536 = vmatprep.subr.bf16.mxu0 %v2130_v62 }
  0xe0   : > { %1537 = vmatpush1.bf16.msra.mxu0 %v2128_v63 }
  0xe1   : > { %1538 = vmatprep.subr.bf16.mxu0 %v2136_v0 }
  0xe4   : > { %1539 = vmatpush1.bf16.msra.mxu0 %v2134_v1 }
  0xe5   : > { %1540 = vmatprep.subr.bf16.mxu0 %v2142_v2 }
  0xe8   : > { %1541 = vmatpush1.bf16.msra.mxu0 %v2140_v3 }
  0xe9   : > { %1542 = vmatprep.subr.bf16.mxu0 %v2148_v4 }
  0xec   : > { %1543 = vmatpush1.bf16.msra.mxu0 %v2146_v5 }
  0xed   : > { %1544 = vmatprep.subr.bf16.mxu0 %v2154_v6 }
  0xf0   : > { %1545 = vmatpush1.bf16.msra.mxu0 %v2152_v7 }
  0xf1   : > { %1546 = vmatprep.subr.bf16.mxu0 %v2160_v8 }
  0xf4   : > { %1547 = vmatpush1.bf16.msra.mxu0 %v2158_v9 }
  0xf5   : > { %1548 = vmatprep.subr.bf16.mxu0 %v2166_v10 }
  0xf8   : > { %1549 = vmatpush1.bf16.msra.mxu0 %v2164_v11 }
  0xf9   : > { %1550 = vmatprep.subr.bf16.mxu0 %v2172_v12 }
  0xfc   : > { %1551 = vmatpush1.bf16.msra.mxu0 %v2170_v13 }
  0xfd   : > { %1552 = vmatprep.subr.bf16.mxu0 %v2181_v14 }
 0x100   : > { %1553 = vmatpush1.bf16.msra.mxu0 %v2179_v15 }
 0x103   : > { %1555 = vmatmul.mubr.bf16.vlgmr.msra.gmra.mrb[0].mxu0 %v2182_v16 }
 0x19b   : > { %v1470_v17 = vpop.f32.mrb[0].mxu1 }
 0x19c   : > { %v1472_v18 = vpop.f32.mrb[1].mxu1 }
 0x19d   : > { %v1474_v19 = vpop.f32.mrb[2].mxu1 }
 0x19e   : > { %v1476_v20 = vpop.f32.mrb[3].mxu1 }
 0x1d6   : > { %v1556_v22 = vpop.f32.mrb[0].mxu0 }
 0x1d7   : > { %v1931_v23 = vadd.f32 %v1556_v22, %v1470_v17  ;;  %v1558_v25 = vpop.f32.mrb[1].mxu0 }
 0x1d8   : > { %v1932_v26 = vadd.f32 %v1558_v25, %v1472_v18  ;;  %v1560_v28 = vpop.f32.mrb[2].mxu0  ;;  %1576 = sbr.rel (%p1921_p6) target bundleno = 495 (0x1ef), region = 132 }
 0x1d9   : > { %v1565_v29 = vadd.f32 %v1931_v23, %v820_v21  ;;  %v1933_v30 = vadd.f32 %v1560_v28, %v1474_v19  ;;  %v1562_v32 = vpop.f32.mrb[3].mxu0 }
 0x1da   : > { %v1566_v33 = vadd.f32 %v1932_v26, %v821_v24  ;;  %v1934_v34 = vadd.f32 %v1562_v32, %v1476_v20 }
 0x1db   : > { %1569 = vst [vmem:[%s2653_s7] sm:$0xff] %v1565_v29  ;;  %v1567_v35 = vadd.f32 %v1933_v30, %v822_v27 }
 0x1dc   : > { %1570 = vst [vmem:[%s2653_s7 + $0x8] sm:$0xff] %v1566_v33  ;;  %v1568_v36 = vadd.f32 %v1934_v34, %v823_v31 }
 0x1dd   : > { %1571 = vst [vmem:[%s2653_s7 + $0x10] sm:$0xff] %v1567_v35 }
 0x1de   : > { %1572 = vst [vmem:[%s2653_s7 + $0x18] sm:$0xff] %v1568_v36 }
 0x1e2   : > { %v1577_v41 = vld [vmem:[%s2653_s7] sm:$0xff] }
 0x1e3   : > { %v1578_v44 = vld [vmem:[%s2653_s7 + $0x8] sm:$0xff]  ;;  %v1593_v51 = vmul.f32 %v1586_v47, %v1577_v41 }
 0x1e4   : > { %v1579_v45 = vld [vmem:[%s2653_s7 + $0x10] sm:$0xff]  ;;  %v1594_v53 = vmul.f32 %v1590_v49, %v1578_v44 }
 0x1e5   : > { %v1580_v46 = vld [vmem:[%s2653_s7 + $0x18] sm:$0xff]  ;;  %v1595_v54 = vmul.f32 %v1586_v47, %v1579_v45  ;;  %v1609_v59 = vadd.f32 %v1602_v48, %v1593_v51 }
 0x1e6   : > { %v1596_v55 = vmul.f32 %v1590_v49, %v1580_v46  ;;  %v1610_v60 = vadd.f32 %v1606_v50, %v1594_v53 }
 0x1e7   : > { %v1611_v61 = vadd.f32 %v1602_v48, %v1595_v54  ;;  %v1617_v63 = vadd.f32 %v1613_v52, %v1609_v59 }
 0x1e8   : > { %v1612_v62 = vadd.f32 %v1606_v50, %v1596_v55  ;;  %v1618_v0 = vadd.f32 %v1614_v56, %v1610_v60 }
 0x1e9   : > { %v1619_v1 = vadd.f32 %v1615_v57, %v1611_v61  ;;  %v1621_v3 = vmax.f32 %v1617_v63, 0.0 }
 0x1ea   : > { %v1620_v2 = vadd.f32 %v1616_v58, %v1612_v62  ;;  %v1622_v4 = vmax.f32 %v1618_v0, 0.0 }
 0x1eb   : > { %v1623_v5 = vmax.f32 %v1619_v1, 0.0  ;;  %1625 = vst [vmem:[%s2653_s7] sm:$0xff] %v1621_v3 }
 0x1ec   : > { %v1624_v6 = vmax.f32 %v1620_v2, 0.0  ;;  %1626 = vst [vmem:[%s2653_s7 + $0x8] sm:$0xff] %v1622_v4 }
 0x1ed   : > { %1627 = vst [vmem:[%s2653_s7 + $0x10] sm:$0xff] %v1623_v5 }
 0x1ee   : > { %1628 = vst [vmem:[%s2653_s7 + $0x18] sm:$0xff] %v1624_v6 }
 0x1ef PF: > { %1635 = sbr.rel (!%p2408_p13) target bundleno = 503 (0x1f7), region = 136  ;;  %s1930_s1 = sshll.u32 (%p2408_p13), %s2259_s25, 4 }
 0x1f0   : > { %s1641_s11 = scalar_lea.vmem (%p2408_p13), %s2841_s5, %s1930_s1 }
 0x1f2   : > { %v1654_v7 = vld [vmem:[%s2653_s7] sm:$0xff] (%p2408_p13) }
 0x1f3   : > { %v1656_v8 = vld [vmem:[%s2653_s7 + $0x8] sm:$0xff] (%p2408_p13)  ;;  %1655 = vst [vmem:[%s1641_s11] sm:$0xff] (%p2408_p13), %v1654_v7 }
 0x1f4   : > { %v1658_v9 = vld [vmem:[%s2653_s7 + $0x10] sm:$0xff] (%p2408_p13)  ;;  %1657 = vst [vmem:[%s1641_s11 + $0x8] sm:$0xff] (%p2408_p13), %v1656_v8 }
 0x1f5   : > { %v1660_v10 = vld [vmem:[%s2653_s7 + $0x18] sm:$0xff] (%p2408_p13)  ;;  %1659 = vst [vmem:[%s1641_s11 + $0x20] sm:$0xff] (%p2408_p13), %v1658_v9 }
 0x1f6   : > { %1661 = vst [vmem:[%s1641_s11 + $0x28] sm:$0xff] %v1660_v10 }
 0x1f7 PF: > { %s15_s28 = sadd.s32 1, %s2271_s28   ;;  %s2855_s25 = sld [smem:[#allocation8_spill]] }
 0x1f8   : > { %p12_p7 = scmp.ge.s32.totalorder %s15_s28, 14   ;;  %s2856_s8 = sld [smem:[#allocation6_spill]] }
 0x1f9   : > { %s2857_s29 = sld [smem:[#allocation7_spill]]  ;;  %s2858_s18 = smov %s2235_s19 }
 0x1fa   : > { %s2859_s19 = smov %s2400_s17  ;;  %s2860_s20 = smov %s2243_s21 }
 0x1fb   : > { %s2861_s21 = smov %s2397_s16  ;;  %s2862_s22 = smov %s2251_s23 }
 0x1fc   : > { %s2864_s24 = smov %s2263_s26  ;;  %14 = sbr.rel (!%p12_p7) target bundleno = 9 (0x9), region = 212 }
 0x1fd   : > { %s2863_s23 = smov %s2855_s25  ;;  %s2865_s25 = smov %s2267_s27 }
 0x1fe   : > { %s2866_s26 = smov %s2856_s8 }
 0x1ff   : > { %s2867_s27 = smov %s2857_s29 }

// kernel: _lambda_.42
= control target key start
LH: loop header
LB: loop body
LE: loop exit
PB: predicated region body
PF: predicated region fallthrough
CT: control target
= control target key end

     0   :  { %s2694_s0 = inlined_call_operand.vmem [shape: bf16[16,4608], index: 0, kind: input, shape index: {}]   ;;  %s2695_s1 = inlined_call_operand.vmem [shape: bf16[4608,512], index: 1, kind: input, shape index: {}]   ;;  %s2696_s2 = inlined_call_operand.vmem [shape: f32[1,512], index: 2, kind: input, shape index: {}]   ;;  %s2697_s3 = inlined_call_operand.vmem [shape: f32[1,512], index: 3, kind: input, shape index: {}]   ;;  %s2698_s4 = inlined_call_operand.vmem [shape: f32[16,512], index: 4, kind: output, shape index: {}]  }
   0x1   :  { %2701 = sst [smem:[#allocation7_spill]] %s2694_s0 }
   0x2   :  { %2702 = sst [smem:[#allocation8_spill]] %s2695_s1 }
   0x3   :  { %s2185_s15 = smov 0   ;;  %s2187_s16 = smov 0  }
   0x4   :  { %s2189_s17 = smov 0   ;;  %s2191_s18 = smov 0  }
   0x5   :  { %s2193_s19 = smov 0   ;;  %s2195_s20 = smov 0  }
   0x6   :  { %s2197_s21 = smov 0   ;;  %s2199_s22 = smov 0  }
   0x7   :  { %s2201_s23 = smov 0   ;;  %s2203_s24 = smov 0  }
   0x8   :  { %s2205_s25 = smov 0  }
   0x9 LB: > { %s1693_s26 = sadd.s32 4294967295, %s2157_s25   ;;  %s26_s27 = sadd.s32 1, %s2149_s23  ;;  %s2157_s25 = sphi %s2205_s25, %s14_s25   ;;  %s2153_s24 = sphi %s2203_s24, %s2721_s24   ;;  %s2149_s23 = sphi %s2201_s23, %s2720_s23   ;;  %s2145_s22 = sphi %s2199_s22, %s2719_s22   ;;  %s2141_s21 = sphi %s2197_s21, %s2718_s21   ;;  %s2137_s20 = sphi %s2195_s20, %s2717_s20   ;;  %s2133_s19 = sphi %s2193_s19, %s2716_s19   ;;  %s2129_s18 = sphi %s2191_s18, %s2715_s18   ;;  %s2125_s17 = sphi %s2189_s17, %s2714_s17   ;;  %s2121_s16 = sphi %s2187_s16, %s2713_s16   ;;  %s2117_s15 = sphi %s2185_s15, %s2712_s15  }
   0xa   : > { %p27_p0 = scmp.ge.s32.totalorder %s26_s27, 6  ;;  %s29_s28 = sadd.s32 1, %s2153_s24 }
   0xb   : > { %s42_s29 = sadd.s32 1, %s2137_s20  ;;  %p49_p1 = scmp.ne.s32.totalorder %s2137_s20, %s2133_s19 }
   0xc   : > { %s2723_s27 = smov (%p27_p0, %s26_s27), 0  ;;  %s2725_s28 = smov (!%p27_p0, %s29_s28), %s2153_s24 }
   0xd   : > { %2703 = sst [smem:[#allocation5_spill]] %s2723_s27  ;;  %s38_s30 = ssub.s32 %s2149_s23, %s2723_s27 }
   0xe   : > { %p50_p2 = scmp.eq.s32.totalorder %s2157_s25, 0  ;;  %p31_p3 = scmp.ge.s32.totalorder %s2725_s28, 2 }
   0xf   : > { %p40_p4 = scmp.eq.s32.totalorder %s38_s30, 0  ;;  %s70_s6 = sadd.s32 1, %s2129_s18 }
  0x10   : > { %p2252_p5 = por %p50_p2, %p49_p1  ;;  %s2727_s28 = smov (%p31_p3, %s2725_s28), 0 }
  0x11   : > { %2705 = sst [smem:[#allocation6_spill]] %s2727_s28  ;;  %s66_s8 = ssub.s32 %s2153_s24, %s2727_s28 }
  0x12   : > { %s2260_s7 = scalar_select %p40_p4, %s2137_s20, %s42_s29  }
  0x13   : > { %p77_p6 = scmp.ne.s32.totalorder %s2129_s18, %s2125_s17  ;;  %s67_s9 = sor.u32 %s66_s8, %s38_s30 }
  0x14   : > { %p148_p7 = scmp.eq.s32.totalorder %s66_s8, 0  ;;  %p68_p8 = scmp.eq.s32.totalorder %s67_s9, 0 }
  0x15   : > { %p2266_p9 = por %p77_p6, %p50_p2  ;;  %s150_s11 = sadd.s32 1, %s2121_s16 }
  0x16   : > { %p160_p10 = scmp.ne.s32.totalorder %s2121_s16, %s2117_s15  ;;  %p161_p11 = scmp.eq.s32.totalorder %s1693_s26, 11 }
  0x17   : > { %s2274_s12 = scalar_select %p68_p8, %s2129_s18, %s70_s6  }
  0x18   : > { %s2277_s13 = scalar_select %p148_p7, %s2121_s16, %s150_s11  }
  0x19   : > { %p2279_p12 = por %p161_p11, %p160_p10  ;;  %p1696_p13 = scmp.ge.s32.totalorder %s2157_s25, 12 }
  0x1b   : > { %183 = sbr.rel (%p1696_p13) target bundleno = 104 (0x68), region = 16 }
  0x22   : > { %186 = sbr.rel (!%p2252_p5) target bundleno = 46 (0x2e), region = 20  ;;  %s188_s29 = sand.u32 (%p2252_p5), 1, %s2137_s20  }
  0x23   : > { %s1814_s30 = smul.u32 (%p2252_p5), 24, %s2149_s23  ;;  %s2708_s0 = sld [smem:[#allocation7_spill]] (%p2252_p5) }
  0x24   : > { %s1825_s8 = smul.u32 (%p2252_p5), 48, %s188_s29 }
  0x26   : > { %s190_s26 = scalar_lea.vmem (%p2252_p5), [#allocation2], %s1825_s8 }
  0x29   : > { %s196_s11 = scalar_lea.vmem %s2708_s0, %s1814_s30 }
  0x2a   : > { %v209_v0 = vld [vmem:[%s196_s11] sm:$0xff]  ;;  %v211_v1 = vld [vmem:[%s196_s11 + $0x8] sm:$0xff]  ;;  %v213_v2 = vld [vmem:[%s196_s11 + $0x10] sm:$0xff] }
  0x2b   : > { %210 = vst [vmem:[%s190_s26] sm:$0xff] %v209_v0  ;;  %212 = vst [vmem:[%s190_s26 + $0x8] sm:$0xff] %v211_v1  ;;  %v215_v3 = vld [vmem:[%s196_s11 + $0x90] sm:$0xff]  ;;  %v217_v4 = vld [vmem:[%s196_s11 + $0x98] sm:$0xff] }
  0x2c   : > { %214 = vst [vmem:[%s190_s26 + $0x10] sm:$0xff] %v213_v2  ;;  %v219_v5 = vld [vmem:[%s196_s11 + $0xa0] sm:$0xff]  ;;  %216 = vst [vmem:[%s190_s26 + $0x18] sm:$0xff] %v215_v3 }
  0x2d   : > { %218 = vst [vmem:[%s190_s26 + $0x20] sm:$0xff] %v217_v4  ;;  %220 = vst [vmem:[%s190_s26 + $0x28] sm:$0xff] %v219_v5 }
  0x2e PF: > { %226 = sbr.rel (!%p2266_p9) target bundleno = 104 (0x68), region = 43  ;;  %s228_s5 = sand.u32 (%p2266_p9), 1, %s2129_s18  }
  0x2f   : > { %s1826_s29 = smul.u32 (%p2266_p9), 768, %s228_s5  ;;  %s1698_s30 = sshll.u32 (%p2266_p9), %s2153_s24, 1 }
  0x30   : > { %s1815_s8 = smul.u32 (%p2266_p9), 384, %s2149_s23  ;;  %s2709_s1 = sld [smem:[#allocation8_spill]] (%p2266_p9) }
  0x31   : > { %s2304_s10 = scalar_lea.vmem (%p2266_p9), [#allocation3], %s1826_s29 }
  0x32   : > { %s234_s6 = sadd.s32 (%p2266_p9), %s1815_s8, %s1698_s30 }
  0x33   : > { %s1700_s9 = sshll.u32 (%p2266_p9), %s234_s6, 2 }
  0x36   : > { %s2299_s11 = scalar_lea.vmem %s2709_s1, %s1700_s9 }
  0x37   : > { %v454_v6 = vld [vmem:[%s2299_s11] sm:$0xff]  ;;  %v456_v7 = vld [vmem:[%s2299_s11 + $0x10] sm:$0xff] }
  0x38   : > { %v458_v8 = vld [vmem:[%s2299_s11 + $0x20] sm:$0xff]  ;;  %455 = vst [vmem:[%s2304_s10] sm:$0xff] %v454_v6  ;;  %457 = vst [vmem:[%s2304_s10 + $0x8] sm:$0xff] %v456_v7  ;;  %v460_v9 = vld [vmem:[%s2299_s11 + $0x30] sm:$0xff] }
  0x39   : > { %459 = vst [vmem:[%s2304_s10 + $0x10] sm:$0xff] %v458_v8  ;;  %v462_v10 = vld [vmem:[%s2299_s11 + $0x40] sm:$0xff]  ;;  %v464_v11 = vld [vmem:[%s2299_s11 + $0x50] sm:$0xff]  ;;  %461 = vst [vmem:[%s2304_s10 + $0x18] sm:$0xff] %v460_v9 }
  0x3a   : > { %463 = vst [vmem:[%s2304_s10 + $0x20] sm:$0xff] %v462_v10  ;;  %465 = vst [vmem:[%s2304_s10 + $0x28] sm:$0xff] %v464_v11  ;;  %v466_v12 = vld [vmem:[%s2299_s11 + $0x60] sm:$0xff]  ;;  %v468_v13 = vld [vmem:[%s2299_s11 + $0x70] sm:$0xff] }
  0x3b   : > { %v470_v14 = vld [vmem:[%s2299_s11 + $0x80] sm:$0xff]  ;;  %467 = vst [vmem:[%s2304_s10 + $0x30] sm:$0xff] %v466_v12  ;;  %469 = vst [vmem:[%s2304_s10 + $0x38] sm:$0xff] %v468_v13  ;;  %v472_v15 = vld [vmem:[%s2299_s11 + $0x90] sm:$0xff] }
  0x3c   : > { %471 = vst [vmem:[%s2304_s10 + $0x40] sm:$0xff] %v470_v14  ;;  %v474_v16 = vld [vmem:[%s2299_s11 + $0xa0] sm:$0xff]  ;;  %v476_v17 = vld [vmem:[%s2299_s11 + $0xb0] sm:$0xff]  ;;  %473 = vst [vmem:[%s2304_s10 + $0x48] sm:$0xff] %v472_v15 }
  0x3d   : > { %475 = vst [vmem:[%s2304_s10 + $0x50] sm:$0xff] %v474_v16  ;;  %477 = vst [vmem:[%s2304_s10 + $0x58] sm:$0xff] %v476_v17  ;;  %v478_v18 = vld [vmem:[%s2299_s11 + $0xc0] sm:$0xff]  ;;  %v480_v19 = vld [vmem:[%s2299_s11 + $0xd0] sm:$0xff] }
  0x3e   : > { %v482_v20 = vld [vmem:[%s2299_s11 + $0xe0] sm:$0xff]  ;;  %479 = vst [vmem:[%s2304_s10 + $0x60] sm:$0xff] %v478_v18  ;;  %481 = vst [vmem:[%s2304_s10 + $0x68] sm:$0xff] %v480_v19  ;;  %v484_v21 = vld [vmem:[%s2299_s11 + $0xf0] sm:$0xff] }
  0x3f   : > { %483 = vst [vmem:[%s2304_s10 + $0x70] sm:$0xff] %v482_v20  ;;  %v486_v22 = vld [vmem:[%s2299_s11 + $0x100] sm:$0xff]  ;;  %v488_v23 = vld [vmem:[%s2299_s11 + $0x110] sm:$0xff]  ;;  %485 = vst [vmem:[%s2304_s10 + $0x78] sm:$0xff] %v484_v21 }
  0x40   : > { %487 = vst [vmem:[%s2304_s10 + $0x80] sm:$0xff] %v486_v22  ;;  %489 = vst [vmem:[%s2304_s10 + $0x88] sm:$0xff] %v488_v23  ;;  %v490_v24 = vld [vmem:[%s2299_s11 + $0x120] sm:$0xff]  ;;  %v492_v25 = vld [vmem:[%s2299_s11 + $0x130] sm:$0xff] }
  0x41   : > { %v494_v26 = vld [vmem:[%s2299_s11 + $0x140] sm:$0xff]  ;;  %491 = vst [vmem:[%s2304_s10 + $0x90] sm:$0xff] %v490_v24  ;;  %493 = vst [vmem:[%s2304_s10 + $0x98] sm:$0xff] %v492_v25  ;;  %v496_v27 = vld [vmem:[%s2299_s11 + $0x150] sm:$0xff] }
  0x42   : > { %495 = vst [vmem:[%s2304_s10 + $0xa0] sm:$0xff] %v494_v26  ;;  %v498_v28 = vld [vmem:[%s2299_s11 + $0x160] sm:$0xff]  ;;  %v500_v29 = vld [vmem:[%s2299_s11 + $0x170] sm:$0xff]  ;;  %497 = vst [vmem:[%s2304_s10 + $0xa8] sm:$0xff] %v496_v27 }
  0x43   : > { %499 = vst [vmem:[%s2304_s10 + $0xb0] sm:$0xff] %v498_v28  ;;  %501 = vst [vmem:[%s2304_s10 + $0xb8] sm:$0xff] %v500_v29  ;;  %v502_v30 = vld [vmem:[%s2299_s11 + $0x180] sm:$0xff]  ;;  %v504_v31 = vld [vmem:[%s2299_s11 + $0x190] sm:$0xff] }
  0x44   : > { %v506_v32 = vld [vmem:[%s2299_s11 + $0x1a0] sm:$0xff]  ;;  %503 = vst [vmem:[%s2304_s10 + $0xc0] sm:$0xff] %v502_v30  ;;  %505 = vst [vmem:[%s2304_s10 + $0xc8] sm:$0xff] %v504_v31  ;;  %v508_v33 = vld [vmem:[%s2299_s11 + $0x1b0] sm:$0xff] }
  0x45   : > { %507 = vst [vmem:[%s2304_s10 + $0xd0] sm:$0xff] %v506_v32  ;;  %v510_v34 = vld [vmem:[%s2299_s11 + $0x1c0] sm:$0xff]  ;;  %v512_v35 = vld [vmem:[%s2299_s11 + $0x1d0] sm:$0xff]  ;;  %509 = vst [vmem:[%s2304_s10 + $0xd8] sm:$0xff] %v508_v33 }
  0x46   : > { %511 = vst [vmem:[%s2304_s10 + $0xe0] sm:$0xff] %v510_v34  ;;  %513 = vst [vmem:[%s2304_s10 + $0xe8] sm:$0xff] %v512_v35  ;;  %v514_v36 = vld [vmem:[%s2299_s11 + $0x1e0] sm:$0xff]  ;;  %v516_v37 = vld [vmem:[%s2299_s11 + $0x1f0] sm:$0xff] }
  0x47   : > { %v518_v38 = vld [vmem:[%s2299_s11 + $0x200] sm:$0xff]  ;;  %515 = vst [vmem:[%s2304_s10 + $0xf0] sm:$0xff] %v514_v36  ;;  %517 = vst [vmem:[%s2304_s10 + $0xf8] sm:$0xff] %v516_v37  ;;  %v520_v39 = vld [vmem:[%s2299_s11 + $0x210] sm:$0xff] }
  0x48   : > { %519 = vst [vmem:[%s2304_s10 + $0x100] sm:$0xff] %v518_v38  ;;  %v522_v40 = vld [vmem:[%s2299_s11 + $0x220] sm:$0xff]  ;;  %v524_v41 = vld [vmem:[%s2299_s11 + $0x230] sm:$0xff]  ;;  %521 = vst [vmem:[%s2304_s10 + $0x108] sm:$0xff] %v520_v39 }
  0x49   : > { %523 = vst [vmem:[%s2304_s10 + $0x110] sm:$0xff] %v522_v40  ;;  %525 = vst [vmem:[%s2304_s10 + $0x118] sm:$0xff] %v524_v41  ;;  %v526_v42 = vld [vmem:[%s2299_s11 + $0x240] sm:$0xff]  ;;  %v528_v43 = vld [vmem:[%s2299_s11 + $0x250] sm:$0xff] }
  0x4a   : > { %v530_v44 = vld [vmem:[%s2299_s11 + $0x260] sm:$0xff]  ;;  %527 = vst [vmem:[%s2304_s10 + $0x120] sm:$0xff] %v526_v42  ;;  %529 = vst [vmem:[%s2304_s10 + $0x128] sm:$0xff] %v528_v43  ;;  %v532_v45 = vld [vmem:[%s2299_s11 + $0x270] sm:$0xff] }
  0x4b   : > { %531 = vst [vmem:[%s2304_s10 + $0x130] sm:$0xff] %v530_v44  ;;  %v534_v46 = vld [vmem:[%s2299_s11 + $0x280] sm:$0xff]  ;;  %v536_v47 = vld [vmem:[%s2299_s11 + $0x290] sm:$0xff]  ;;  %533 = vst [vmem:[%s2304_s10 + $0x138] sm:$0xff] %v532_v45 }
  0x4c   : > { %535 = vst [vmem:[%s2304_s10 + $0x140] sm:$0xff] %v534_v46  ;;  %537 = vst [vmem:[%s2304_s10 + $0x148] sm:$0xff] %v536_v47  ;;  %v538_v48 = vld [vmem:[%s2299_s11 + $0x2a0] sm:$0xff]  ;;  %v540_v49 = vld [vmem:[%s2299_s11 + $0x2b0] sm:$0xff] }
  0x4d   : > { %v542_v50 = vld [vmem:[%s2299_s11 + $0x2c0] sm:$0xff]  ;;  %539 = vst [vmem:[%s2304_s10 + $0x150] sm:$0xff] %v538_v48  ;;  %541 = vst [vmem:[%s2304_s10 + $0x158] sm:$0xff] %v540_v49  ;;  %v544_v51 = vld [vmem:[%s2299_s11 + $0x2d0] sm:$0xff] }
  0x4e   : > { %543 = vst [vmem:[%s2304_s10 + $0x160] sm:$0xff] %v542_v50  ;;  %v546_v52 = vld [vmem:[%s2299_s11 + $0x2e0] sm:$0xff]  ;;  %v548_v53 = vld [vmem:[%s2299_s11 + $0x2f0] sm:$0xff]  ;;  %545 = vst [vmem:[%s2304_s10 + $0x168] sm:$0xff] %v544_v51 }
  0x4f   : > { %547 = vst [vmem:[%s2304_s10 + $0x170] sm:$0xff] %v546_v52  ;;  %549 = vst [vmem:[%s2304_s10 + $0x178] sm:$0xff] %v548_v53  ;;  %v550_v54 = vld [vmem:[%s2299_s11 + $0x300] sm:$0xff]  ;;  %v552_v55 = vld [vmem:[%s2299_s11 + $0x310] sm:$0xff] }
  0x50   : > { %v554_v56 = vld [vmem:[%s2299_s11 + $0x320] sm:$0xff]  ;;  %551 = vst [vmem:[%s2304_s10 + $0x180] sm:$0xff] %v550_v54  ;;  %553 = vst [vmem:[%s2304_s10 + $0x188] sm:$0xff] %v552_v55  ;;  %v556_v57 = vld [vmem:[%s2299_s11 + $0x330] sm:$0xff] }
  0x51   : > { %555 = vst [vmem:[%s2304_s10 + $0x190] sm:$0xff] %v554_v56  ;;  %v558_v58 = vld [vmem:[%s2299_s11 + $0x340] sm:$0xff]  ;;  %v560_v59 = vld [vmem:[%s2299_s11 + $0x350] sm:$0xff]  ;;  %557 = vst [vmem:[%s2304_s10 + $0x198] sm:$0xff] %v556_v57 }
  0x52   : > { %559 = vst [vmem:[%s2304_s10 + $0x1a0] sm:$0xff] %v558_v58  ;;  %561 = vst [vmem:[%s2304_s10 + $0x1a8] sm:$0xff] %v560_v59  ;;  %v562_v60 = vld [vmem:[%s2299_s11 + $0x360] sm:$0xff]  ;;  %v564_v61 = vld [vmem:[%s2299_s11 + $0x370] sm:$0xff] }
  0x53   : > { %v566_v62 = vld [vmem:[%s2299_s11 + $0x380] sm:$0xff]  ;;  %563 = vst [vmem:[%s2304_s10 + $0x1b0] sm:$0xff] %v562_v60  ;;  %565 = vst [vmem:[%s2304_s10 + $0x1b8] sm:$0xff] %v564_v61  ;;  %v568_v63 = vld [vmem:[%s2299_s11 + $0x390] sm:$0xff] }
  0x54   : > { %567 = vst [vmem:[%s2304_s10 + $0x1c0] sm:$0xff] %v566_v62  ;;  %v570_v0 = vld [vmem:[%s2299_s11 + $0x3a0] sm:$0xff]  ;;  %v572_v1 = vld [vmem:[%s2299_s11 + $0x3b0] sm:$0xff]  ;;  %569 = vst [vmem:[%s2304_s10 + $0x1c8] sm:$0xff] %v568_v63 }
  0x55   : > { %571 = vst [vmem:[%s2304_s10 + $0x1d0] sm:$0xff] %v570_v0  ;;  %573 = vst [vmem:[%s2304_s10 + $0x1d8] sm:$0xff] %v572_v1  ;;  %v574_v2 = vld [vmem:[%s2299_s11 + $0x3c0] sm:$0xff]  ;;  %v576_v3 = vld [vmem:[%s2299_s11 + $0x3d0] sm:$0xff] }
  0x56   : > { %v578_v4 = vld [vmem:[%s2299_s11 + $0x3e0] sm:$0xff]  ;;  %575 = vst [vmem:[%s2304_s10 + $0x1e0] sm:$0xff] %v574_v2  ;;  %577 = vst [vmem:[%s2304_s10 + $0x1e8] sm:$0xff] %v576_v3  ;;  %v580_v5 = vld [vmem:[%s2299_s11 + $0x3f0] sm:$0xff] }
  0x57   : > { %579 = vst [vmem:[%s2304_s10 + $0x1f0] sm:$0xff] %v578_v4  ;;  %v582_v6 = vld [vmem:[%s2299_s11 + $0x400] sm:$0xff]  ;;  %v584_v7 = vld [vmem:[%s2299_s11 + $0x410] sm:$0xff]  ;;  %581 = vst [vmem:[%s2304_s10 + $0x1f8] sm:$0xff] %v580_v5 }
  0x58   : > { %583 = vst [vmem:[%s2304_s10 + $0x200] sm:$0xff] %v582_v6  ;;  %585 = vst [vmem:[%s2304_s10 + $0x208] sm:$0xff] %v584_v7  ;;  %v586_v8 = vld [vmem:[%s2299_s11 + $0x420] sm:$0xff]  ;;  %v588_v9 = vld [vmem:[%s2299_s11 + $0x430] sm:$0xff] }
  0x59   : > { %v590_v10 = vld [vmem:[%s2299_s11 + $0x440] sm:$0xff]  ;;  %587 = vst [vmem:[%s2304_s10 + $0x210] sm:$0xff] %v586_v8  ;;  %589 = vst [vmem:[%s2304_s10 + $0x218] sm:$0xff] %v588_v9  ;;  %v592_v11 = vld [vmem:[%s2299_s11 + $0x450] sm:$0xff] }
  0x5a   : > { %591 = vst [vmem:[%s2304_s10 + $0x220] sm:$0xff] %v590_v10  ;;  %v594_v12 = vld [vmem:[%s2299_s11 + $0x460] sm:$0xff]  ;;  %v596_v13 = vld [vmem:[%s2299_s11 + $0x470] sm:$0xff]  ;;  %593 = vst [vmem:[%s2304_s10 + $0x228] sm:$0xff] %v592_v11 }
  0x5b   : > { %595 = vst [vmem:[%s2304_s10 + $0x230] sm:$0xff] %v594_v12  ;;  %597 = vst [vmem:[%s2304_s10 + $0x238] sm:$0xff] %v596_v13  ;;  %v598_v14 = vld [vmem:[%s2299_s11 + $0x480] sm:$0xff]  ;;  %v600_v15 = vld [vmem:[%s2299_s11 + $0x490] sm:$0xff] }
  0x5c   : > { %v602_v16 = vld [vmem:[%s2299_s11 + $0x4a0] sm:$0xff]  ;;  %599 = vst [vmem:[%s2304_s10 + $0x240] sm:$0xff] %v598_v14  ;;  %601 = vst [vmem:[%s2304_s10 + $0x248] sm:$0xff] %v600_v15  ;;  %v604_v17 = vld [vmem:[%s2299_s11 + $0x4b0] sm:$0xff] }
  0x5d   : > { %603 = vst [vmem:[%s2304_s10 + $0x250] sm:$0xff] %v602_v16  ;;  %v606_v18 = vld [vmem:[%s2299_s11 + $0x4c0] sm:$0xff]  ;;  %v608_v19 = vld [vmem:[%s2299_s11 + $0x4d0] sm:$0xff]  ;;  %605 = vst [vmem:[%s2304_s10 + $0x258] sm:$0xff] %v604_v17 }
  0x5e   : > { %607 = vst [vmem:[%s2304_s10 + $0x260] sm:$0xff] %v606_v18  ;;  %609 = vst [vmem:[%s2304_s10 + $0x268] sm:$0xff] %v608_v19  ;;  %v610_v20 = vld [vmem:[%s2299_s11 + $0x4e0] sm:$0xff]  ;;  %v612_v21 = vld [vmem:[%s2299_s11 + $0x4f0] sm:$0xff] }
  0x5f   : > { %v614_v22 = vld [vmem:[%s2299_s11 + $0x500] sm:$0xff]  ;;  %611 = vst [vmem:[%s2304_s10 + $0x270] sm:$0xff] %v610_v20  ;;  %613 = vst [vmem:[%s2304_s10 + $0x278] sm:$0xff] %v612_v21  ;;  %v616_v23 = vld [vmem:[%s2299_s11 + $0x510] sm:$0xff] }
  0x60   : > { %615 = vst [vmem:[%s2304_s10 + $0x280] sm:$0xff] %v614_v22  ;;  %v618_v24 = vld [vmem:[%s2299_s11 + $0x520] sm:$0xff]  ;;  %v620_v25 = vld [vmem:[%s2299_s11 + $0x530] sm:$0xff]  ;;  %617 = vst [vmem:[%s2304_s10 + $0x288] sm:$0xff] %v616_v23 }
  0x61   : > { %619 = vst [vmem:[%s2304_s10 + $0x290] sm:$0xff] %v618_v24  ;;  %621 = vst [vmem:[%s2304_s10 + $0x298] sm:$0xff] %v620_v25  ;;  %v622_v26 = vld [vmem:[%s2299_s11 + $0x540] sm:$0xff]  ;;  %v624_v27 = vld [vmem:[%s2299_s11 + $0x550] sm:$0xff] }
  0x62   : > { %v626_v28 = vld [vmem:[%s2299_s11 + $0x560] sm:$0xff]  ;;  %623 = vst [vmem:[%s2304_s10 + $0x2a0] sm:$0xff] %v622_v26  ;;  %625 = vst [vmem:[%s2304_s10 + $0x2a8] sm:$0xff] %v624_v27  ;;  %v628_v29 = vld [vmem:[%s2299_s11 + $0x570] sm:$0xff] }
  0x63   : > { %627 = vst [vmem:[%s2304_s10 + $0x2b0] sm:$0xff] %v626_v28  ;;  %v630_v30 = vld [vmem:[%s2299_s11 + $0x580] sm:$0xff]  ;;  %v632_v31 = vld [vmem:[%s2299_s11 + $0x590] sm:$0xff]  ;;  %629 = vst [vmem:[%s2304_s10 + $0x2b8] sm:$0xff] %v628_v29 }
  0x64   : > { %631 = vst [vmem:[%s2304_s10 + $0x2c0] sm:$0xff] %v630_v30  ;;  %633 = vst [vmem:[%s2304_s10 + $0x2c8] sm:$0xff] %v632_v31  ;;  %v634_v32 = vld [vmem:[%s2299_s11 + $0x5a0] sm:$0xff]  ;;  %v636_v33 = vld [vmem:[%s2299_s11 + $0x5b0] sm:$0xff] }
  0x65   : > { %v638_v34 = vld [vmem:[%s2299_s11 + $0x5c0] sm:$0xff]  ;;  %635 = vst [vmem:[%s2304_s10 + $0x2d0] sm:$0xff] %v634_v32  ;;  %637 = vst [vmem:[%s2304_s10 + $0x2d8] sm:$0xff] %v636_v33  ;;  %v640_v35 = vld [vmem:[%s2299_s11 + $0x5d0] sm:$0xff] }
  0x66   : > { %639 = vst [vmem:[%s2304_s10 + $0x2e0] sm:$0xff] %v638_v34  ;;  %v642_v36 = vld [vmem:[%s2299_s11 + $0x5e0] sm:$0xff]  ;;  %v644_v37 = vld [vmem:[%s2299_s11 + $0x5f0] sm:$0xff]  ;;  %641 = vst [vmem:[%s2304_s10 + $0x2e8] sm:$0xff] %v640_v35 }
  0x67   : > { %643 = vst [vmem:[%s2304_s10 + $0x2f0] sm:$0xff] %v642_v36  ;;  %645 = vst [vmem:[%s2304_s10 + $0x2f8] sm:$0xff] %v644_v37 }
  0x68 PF: > { %p1701_p0 = scmp.ge.s32.totalorder %s2157_s25, 1  ;;  %p666_p1 = scmp.lt.s32.totalorder %s2157_s25, 13 }
  0x6a   : > { %p667_p2 = pnand %p1701_p0, %p666_p1 }
  0x6b   : > { %s673_s0 = sand.u32 (!%p667_p2), 1, %s2133_s19   ;;  %s680_s28 = sand.u32 (!%p667_p2), 1, %s2125_s17  }
  0x6c   : > { %670 = sbr.rel (%p667_p2) target bundleno = 493 (0x1ed), region = 89  ;;  %s713_s5 = sand.u32 (!%p667_p2), 1, %s2117_s15  }
  0x6d   : > { %s1827_s26 = smul.u32 (!%p667_p2), 48, %s673_s0  ;;  %s1702_s30 = sshll.u32 (!%p667_p2), %s713_s5, 5 }
  0x6e   : > { %s1828_s29 = smul.u32 (!%p667_p2), 768, %s680_s28  ;;  %s1703_s8 = sshll.u32 (!%p667_p2), %s2145_s22, 1 }
  0x6f   : > { %p721_p3 = scmp.lt.s32.totalorder (!%p667_p2), %s1703_s8, 3  ;;  %s2511_s19 = scalar_lea.vmem (!%p667_p2), [#allocation2], %s1827_s26 }
  0x70   : > { %s2513_s17 = scalar_lea.vmem (!%p667_p2), [#allocation3], %s1828_s29  ;;  %s2515_s15 = scalar_lea.vmem (!%p667_p2), [#allocation4], %s1702_s30 }
  0x71   : > { %p1705_p4 = scmp.ne.s32.totalorder (!%p667_p2), %s2141_s21, 0 }
  0x73   : > { %s2729_s8 = smov (!%p721_p3, %s1703_s8), 3  ;;  %735 = sbr.rel (%p1705_p4) target bundleno = 122 (0x7a), region = 101 }
  0x74   : > { %s723_s11 = scalar_lea.vmem %s2696_s2, %s2729_s8  ;;  %s728_s27 = scalar_lea.vmem %s2697_s3, %s2729_s8  ;;  %v2159_v38 = vmov (!%p1705_p4), 0.0  }
  0x75   : > { %736 = vst [vmem:[%s2515_s15] sm:$0xff] (!%p1705_p4), %v2159_v38  ;;  %737 = vst [vmem:[%s2515_s15 + $0x8] sm:$0xff] (!%p1705_p4), %v2159_v38 }
  0x76   : > { %738 = vst [vmem:[%s2515_s15 + $0x10] sm:$0xff] (!%p1705_p4), %v2159_v38  ;;  %739 = vst [vmem:[%s2515_s15 + $0x18] sm:$0xff] (!%p1705_p4), %v2159_v38 }
  0x7a PF: > { %v1918_v39 = vld [vmem:[%s2513_s17 + $0x104] ss:$8 sps:$4 sm:$0xff]   ;;  %v1920_v40 = vld [vmem:[%s2513_s17 + $0x100] ss:$8 sps:$4 sm:$0xff]   ;;  %v1921_v41 = vld [vmem:[%s2513_s17 + $0x114] ss:$8 sps:$4 sm:$0xff]  }
  0x7b   : > { %1399 = vmatprep.subr.bf16.mxu0 %v1918_v39  ;;  %v1923_v42 = vld [vmem:[%s2513_s17 + $0x110] ss:$8 sps:$4 sm:$0xff]   ;;  %v1924_v43 = vld [vmem:[%s2513_s17 + $0x124] ss:$8 sps:$4 sm:$0xff]   ;;  %v1926_v44 = vld [vmem:[%s2513_s17 + $0x120] ss:$8 sps:$4 sm:$0xff]  }
  0x7c   : > { %1400 = vmatpush1.bf16.msra.mxu0 %v1920_v40  ;;  %v1927_v45 = vld [vmem:[%s2513_s17 + $0x134] ss:$8 sps:$4 sm:$0xff]   ;;  %v1929_v46 = vld [vmem:[%s2513_s17 + $0x130] ss:$8 sps:$4 sm:$0xff]   ;;  %v1930_v47 = vld [vmem:[%s2513_s17 + $0x144] ss:$8 sps:$4 sm:$0xff]  }
  0x7d   : > { %1401 = vmatprep.subr.bf16.mxu0 %v1921_v41  ;;  %v1932_v48 = vld [vmem:[%s2513_s17 + $0x140] ss:$8 sps:$4 sm:$0xff]   ;;  %v1933_v49 = vld [vmem:[%s2513_s17 + $0x154] ss:$8 sps:$4 sm:$0xff]   ;;  %v1935_v50 = vld [vmem:[%s2513_s17 + $0x150] ss:$8 sps:$4 sm:$0xff]  }
  0x7e   : > { %v1936_v51 = vld [vmem:[%s2513_s17 + $0x164] ss:$8 sps:$4 sm:$0xff]   ;;  %v1968_v53 = vld [vmem:[%s2513_s17] ss:$8 sps:$4 sm:$0xff]   ;;  %v1939_v56 = vld [vmem:[%s2513_s17 + $0x174] ss:$8 sps:$4 sm:$0xff]  }
  0x7f   : > { %v1965_v52 = vld [vmem:[%s2513_s17 + $0x4] ss:$8 sps:$4 sm:$0xff]   ;;  %v1938_v54 = vld [vmem:[%s2513_s17 + $0x160] ss:$8 sps:$4 sm:$0xff]   ;;  %v1975_v57 = vld [vmem:[%s2513_s17 + $0x14] ss:$8 sps:$4 sm:$0xff]  }
  0x80   : > { %1402 = vmatpush1.bf16.msra.mxu0 %v1923_v42  ;;  %1356 = vmatprep.subr.bf16.mxu1 %v1965_v52  ;;  %v1971_v55 = vld [vmem:[%s2511_s19 + $0xc] ss:$24 sps:$4 sm:$0xff]   ;;  %v1977_v58 = vld [vmem:[%s2513_s17 + $0x10] ss:$8 sps:$4 sm:$0xff]   ;;  %v1983_v62 = vld [vmem:[%s2513_s17 + $0x20] ss:$8 sps:$4 sm:$0xff]  }
  0x81   : > { %1403 = vmatprep.subr.bf16.mxu0 %v1924_v43  ;;  %1357 = vmatpush1.bf16.msra.mxu1 %v1968_v53  ;;  %v1941_v59 = vld [vmem:[%s2513_s17 + $0x170] ss:$8 sps:$4 sm:$0xff]   ;;  %v1942_v60 = vld [vmem:[%s2513_s17 + $0x184] ss:$8 sps:$4 sm:$0xff]   ;;  %v1944_v63 = vld [vmem:[%s2513_s17 + $0x180] ss:$8 sps:$4 sm:$0xff]  }
  0x82   : > { %1431 = vmatprep.mubr.bf16.mxu0 %v1971_v55  ;;  %1358 = vmatprep.subr.bf16.mxu1 %v1975_v57  ;;  %v1981_v61 = vld [vmem:[%s2513_s17 + $0x24] ss:$8 sps:$4 sm:$0xff]   ;;  %v1987_v0 = vld [vmem:[%s2513_s17 + $0x34] ss:$8 sps:$4 sm:$0xff]   ;;  %v1989_v2 = vld [vmem:[%s2513_s17 + $0x30] ss:$8 sps:$4 sm:$0xff]  }
  0x83   : > { %v1945_v1 = vld [vmem:[%s2513_s17 + $0x194] ss:$8 sps:$4 sm:$0xff]   ;;  %v1993_v3 = vld [vmem:[%s2513_s17 + $0x44] ss:$8 sps:$4 sm:$0xff]   ;;  %v1947_v4 = vld [vmem:[%s2513_s17 + $0x190] ss:$8 sps:$4 sm:$0xff]  }
  0x84   : > { %1404 = vmatpush1.bf16.msra.mxu0 %v1926_v44  ;;  %v1948_v5 = vld [vmem:[%s2513_s17 + $0x1a4] ss:$8 sps:$4 sm:$0xff]   ;;  %v1995_v6 = vld [vmem:[%s2513_s17 + $0x40] ss:$8 sps:$4 sm:$0xff]   ;;  %v1999_v7 = vld [vmem:[%s2513_s17 + $0x54] ss:$8 sps:$4 sm:$0xff]  }
  0x85   : > { %1405 = vmatprep.subr.bf16.mxu0 %v1927_v45  ;;  %1359 = vmatpush1.bf16.msra.mxu1 %v1977_v58  ;;  %v1950_v8 = vld [vmem:[%s2513_s17 + $0x1a0] ss:$8 sps:$4 sm:$0xff]   ;;  %v1951_v9 = vld [vmem:[%s2513_s17 + $0x1b4] ss:$8 sps:$4 sm:$0xff]   ;;  %v2001_v10 = vld [vmem:[%s2513_s17 + $0x50] ss:$8 sps:$4 sm:$0xff]  }
  0x86   : > { %1360 = vmatprep.subr.bf16.mxu1 %v1981_v61  ;;  %v2005_v11 = vld [vmem:[%s2513_s17 + $0x64] ss:$8 sps:$4 sm:$0xff]   ;;  %v1953_v12 = vld [vmem:[%s2513_s17 + $0x1b0] ss:$8 sps:$4 sm:$0xff]   ;;  %v2007_v14 = vld [vmem:[%s2513_s17 + $0x60] ss:$8 sps:$4 sm:$0xff]  }
  0x87   : > { %v1954_v13 = vld [vmem:[%s2513_s17 + $0x1c4] ss:$8 sps:$4 sm:$0xff]   ;;  %v2011_v15 = vld [vmem:[%s2513_s17 + $0x74] ss:$8 sps:$4 sm:$0xff]   ;;  %v1956_v16 = vld [vmem:[%s2513_s17 + $0x1c0] ss:$8 sps:$4 sm:$0xff]  }
  0x88   : > { %1406 = vmatpush1.bf16.msra.mxu0 %v1929_v46  ;;  %v1957_v17 = vld [vmem:[%s2513_s17 + $0x1d4] ss:$8 sps:$4 sm:$0xff]   ;;  %v2013_v18 = vld [vmem:[%s2513_s17 + $0x70] ss:$8 sps:$4 sm:$0xff]   ;;  %v2017_v19 = vld [vmem:[%s2513_s17 + $0x84] ss:$8 sps:$4 sm:$0xff]  }
  0x89   : > { %1407 = vmatprep.subr.bf16.mxu0 %v1930_v47  ;;  %1361 = vmatpush1.bf16.msra.mxu1 %v1983_v62  ;;  %v1959_v20 = vld [vmem:[%s2513_s17 + $0x1d0] ss:$8 sps:$4 sm:$0xff]   ;;  %v1960_v21 = vld [vmem:[%s2513_s17 + $0x1e4] ss:$8 sps:$4 sm:$0xff]   ;;  %v2019_v22 = vld [vmem:[%s2513_s17 + $0x80] ss:$8 sps:$4 sm:$0xff]  }
  0x8a   : > { %1362 = vmatprep.subr.bf16.mxu1 %v1987_v0  ;;  %v2023_v23 = vld [vmem:[%s2513_s17 + $0x94] ss:$8 sps:$4 sm:$0xff]   ;;  %v1962_v24 = vld [vmem:[%s2513_s17 + $0x1e0] ss:$8 sps:$4 sm:$0xff]   ;;  %v2025_v26 = vld [vmem:[%s2513_s17 + $0x90] ss:$8 sps:$4 sm:$0xff]  }
  0x8b   : > { %v1963_v25 = vld [vmem:[%s2513_s17 + $0x1f4] ss:$8 sps:$4 sm:$0xff]   ;;  %v2029_v27 = vld [vmem:[%s2513_s17 + $0xa4] ss:$8 sps:$4 sm:$0xff]   ;;  %v1967_v28 = vld [vmem:[%s2513_s17 + $0x1f0] ss:$8 sps:$4 sm:$0xff]  }
  0x8c   : > { %1408 = vmatpush1.bf16.msra.mxu0 %v1932_v48  ;;  %v1974_v29 = vld [vmem:[%s2513_s17 + $0x204] ss:$8 sps:$4 sm:$0xff]   ;;  %v2031_v30 = vld [vmem:[%s2513_s17 + $0xa0] ss:$8 sps:$4 sm:$0xff]   ;;  %v2035_v32 = vld [vmem:[%s2513_s17 + $0xb4] ss:$8 sps:$4 sm:$0xff]  }
  0x8d   : > { %1409 = vmatprep.subr.bf16.mxu0 %v1933_v49  ;;  %1363 = vmatpush1.bf16.msra.mxu1 %v1989_v2  ;;  %v1969_v31 = vld [vmem:[%s2511_s19 + $0x8] ss:$24 sps:$4 sm:$0xff]   ;;  %v1980_v34 = vld [vmem:[%s2513_s17 + $0x214] ss:$8 sps:$4 sm:$0xff]   ;;  %v2041_v37 = vld [vmem:[%s2513_s17 + $0xc4] ss:$8 sps:$4 sm:$0xff]  }
  0x8e   : > { %1364 = vmatprep.subr.bf16.mxu1 %v1993_v3  ;;  %v1972_v33 = vld [vmem:[%s2513_s17 + $0x200] ss:$8 sps:$4 sm:$0xff]   ;;  %v2037_v35 = vld [vmem:[%s2513_s17 + $0xb0] ss:$8 sps:$4 sm:$0xff]   ;;  %v2064_v36 = vld [vmem:[%s2511_s19 + $0x4] ss:$24 sps:$4 sm:$0xff]  }
  0x8f   : > { %v1978_v38 = vld [vmem:[%s2513_s17 + $0x210] ss:$8 sps:$4 sm:$0xff]   ;;  %1388 = vmatprep.mubr.bf16.mxu1 %v2064_v36  ;;  %v2070_v39 = vld [vmem:[%s2511_s19 + $0x14] ss:$24 sps:$4 sm:$0xff]   ;;  %v2043_v41 = vld [vmem:[%s2513_s17 + $0xc0] ss:$8 sps:$4 sm:$0xff]  }
  0x90   : > { %1410 = vmatpush1.bf16.msra.mxu0 %v1935_v50  ;;  %v1986_v40 = vld [vmem:[%s2513_s17 + $0x224] ss:$8 sps:$4 sm:$0xff]   ;;  %v2047_v42 = vld [vmem:[%s2513_s17 + $0xd4] ss:$8 sps:$4 sm:$0xff]   ;;  %v1984_v43 = vld [vmem:[%s2513_s17 + $0x220] ss:$8 sps:$4 sm:$0xff]  }
  0x91   : > { %1411 = vmatprep.subr.bf16.mxu0 %v1936_v51  ;;  %1365 = vmatpush1.bf16.msra.mxu1 %v1995_v6  ;;  %v1992_v44 = vld [vmem:[%s2513_s17 + $0x234] ss:$8 sps:$4 sm:$0xff]   ;;  %v2049_v45 = vld [vmem:[%s2513_s17 + $0xd0] ss:$8 sps:$4 sm:$0xff]   ;;  %v2053_v46 = vld [vmem:[%s2513_s17 + $0xe4] ss:$8 sps:$4 sm:$0xff]  }
  0x92   : > { %1366 = vmatprep.subr.bf16.mxu1 %v1999_v7  ;;  %v1990_v47 = vld [vmem:[%s2513_s17 + $0x230] ss:$8 sps:$4 sm:$0xff]   ;;  %v1998_v48 = vld [vmem:[%s2513_s17 + $0x244] ss:$8 sps:$4 sm:$0xff]   ;;  %v2055_v49 = vld [vmem:[%s2513_s17 + $0xe0] ss:$8 sps:$4 sm:$0xff]  }
  0x93   : > { %v2059_v50 = vld [vmem:[%s2513_s17 + $0xf4] ss:$8 sps:$4 sm:$0xff]   ;;  %v1996_v51 = vld [vmem:[%s2513_s17 + $0x240] ss:$8 sps:$4 sm:$0xff]   ;;  %v2061_v53 = vld [vmem:[%s2513_s17 + $0xf0] ss:$8 sps:$4 sm:$0xff]  }
  0x94   : > { %1412 = vmatpush1.bf16.msra.mxu0 %v1938_v54  ;;  %v2004_v52 = vld [vmem:[%s2513_s17 + $0x254] ss:$8 sps:$4 sm:$0xff]   ;;  %v2002_v54 = vld [vmem:[%s2513_s17 + $0x250] ss:$8 sps:$4 sm:$0xff]   ;;  %v2010_v55 = vld [vmem:[%s2513_s17 + $0x264] ss:$8 sps:$4 sm:$0xff]  }
  0x95   : > { %1413 = vmatprep.subr.bf16.mxu0 %v1939_v56  ;;  %1367 = vmatpush1.bf16.msra.mxu1 %v2001_v10  ;;  %v2062_v56 = vld [vmem:[%s2511_s19] ss:$24 sps:$4 sm:$0xff]   ;;  %v2016_v58 = vld [vmem:[%s2513_s17 + $0x274] ss:$8 sps:$4 sm:$0xff]   ;;  %v2034_v0 = vld [vmem:[%s2513_s17 + $0x2a4] ss:$8 sps:$4 sm:$0xff]  }
  0x96   : > { %1368 = vmatprep.subr.bf16.mxu1 %v2005_v11  ;;  %v2008_v57 = vld [vmem:[%s2513_s17 + $0x260] ss:$8 sps:$4 sm:$0xff]   ;;  %v2028_v62 = vld [vmem:[%s2513_s17 + $0x294] ss:$8 sps:$4 sm:$0xff]   ;;  %v2038_v3 = vld [vmem:[%s2513_s17 + $0x2b0] ss:$8 sps:$4 sm:$0xff]  }
  0x97   : > { %v2020_v61 = vld [vmem:[%s2513_s17 + $0x280] ss:$8 sps:$4 sm:$0xff]   ;;  %v2040_v2 = vld [vmem:[%s2513_s17 + $0x2b4] ss:$8 sps:$4 sm:$0xff]   ;;  %v2050_v7 = vld [vmem:[%s2513_s17 + $0x2d0] ss:$8 sps:$4 sm:$0xff]  }
  0x98   : > { %1414 = vmatpush1.bf16.msra.mxu0 %v1941_v59  ;;  %v2014_v59 = vld [vmem:[%s2513_s17 + $0x270] ss:$8 sps:$4 sm:$0xff]   ;;  %v2052_v6 = vld [vmem:[%s2513_s17 + $0x2d4] ss:$8 sps:$4 sm:$0xff]   ;;  %p1808_p5 = scmp.ne.s32.totalorder %s2141_s21, 5 }
  0x99   : > { %1415 = vmatprep.subr.bf16.mxu0 %v1942_v60  ;;  %1369 = vmatpush1.bf16.msra.mxu1 %v2007_v14  ;;  %v2022_v60 = vld [vmem:[%s2513_s17 + $0x284] ss:$8 sps:$4 sm:$0xff]   ;;  %v2067_v10 = vld [vmem:[%s2513_s17 + $0x2f4] ss:$8 sps:$4 sm:$0xff]   ;;  %v2065_v11 = vld [vmem:[%s2513_s17 + $0x2f0] ss:$8 sps:$4 sm:$0xff]  }
  0x9a   : > { %1370 = vmatprep.subr.bf16.mxu1 %v2011_v15  ;;  %v1517_v36 = vld [vmem:[%s728_s27] sm:$0x3] (!%p1808_p5) }
  0x9c   : > { %1416 = vmatpush1.bf16.msra.mxu0 %v1944_v63  ;;  %v2026_v63 = vld [vmem:[%s2513_s17 + $0x290] ss:$8 sps:$4 sm:$0xff]  }
  0x9d   : > { %1417 = vmatprep.subr.bf16.mxu0 %v1945_v1  ;;  %1371 = vmatpush1.bf16.msra.mxu1 %v2013_v18  ;;  %v2032_v1 = vld [vmem:[%s2513_s17 + $0x2a0] ss:$8 sps:$4 sm:$0xff]  }
  0x9e   : > { %1372 = vmatprep.subr.bf16.mxu1 %v2017_v19 }
  0xa0   : > { %1418 = vmatpush1.bf16.msra.mxu0 %v1947_v4  ;;  %v2046_v4 = vld [vmem:[%s2513_s17 + $0x2c4] ss:$8 sps:$4 sm:$0xff]  }
  0xa1   : > { %1419 = vmatprep.subr.bf16.mxu0 %v1948_v5  ;;  %1373 = vmatpush1.bf16.msra.mxu1 %v2019_v22  ;;  %v2044_v5 = vld [vmem:[%s2513_s17 + $0x2c0] ss:$8 sps:$4 sm:$0xff]  }
  0xa2   : > { %1374 = vmatprep.subr.bf16.mxu1 %v2023_v23  ;;  %v742_v23 = vld [vmem:[%s2515_s15 + $0x10] sm:$0xff] }
  0xa4   : > { %1420 = vmatpush1.bf16.msra.mxu0 %v1950_v8  ;;  %v2058_v8 = vld [vmem:[%s2513_s17 + $0x2e4] ss:$8 sps:$4 sm:$0xff]  }
  0xa5   : > { %1421 = vmatprep.subr.bf16.mxu0 %v1951_v9  ;;  %1375 = vmatpush1.bf16.msra.mxu1 %v2025_v26  ;;  %v2056_v9 = vld [vmem:[%s2513_s17 + $0x2e0] ss:$8 sps:$4 sm:$0xff]  }
  0xa6   : > { %1376 = vmatprep.subr.bf16.mxu1 %v2029_v27  ;;  %v743_v27 = vld [vmem:[%s2515_s15 + $0x18] sm:$0xff] }
  0xa8   : > { %1422 = vmatpush1.bf16.msra.mxu0 %v1953_v12  ;;  %v2068_v12 = vld [vmem:[%s2511_s19 + $0x10] ss:$24 sps:$4 sm:$0xff]  }
  0xa9   : > { %1423 = vmatprep.subr.bf16.mxu0 %v1954_v13  ;;  %1377 = vmatpush1.bf16.msra.mxu1 %v2031_v30 }
  0xaa   : > { %1378 = vmatprep.subr.bf16.mxu1 %v2035_v32 }
  0xac   : > { %1424 = vmatpush1.bf16.msra.mxu0 %v1956_v16 }
  0xad   : > { %1425 = vmatprep.subr.bf16.mxu0 %v1957_v17  ;;  %1379 = vmatpush1.bf16.msra.mxu1 %v2037_v35  ;;  %v740_v17 = vld [vmem:[%s2515_s15] sm:$0xff] }
  0xae   : > { %1380 = vmatprep.subr.bf16.mxu1 %v2041_v37  ;;  %v1501_v35 = vld [vmem:[%s723_s11] sm:$0x3] (!%p1808_p5) }
  0xb0   : > { %1426 = vmatpush1.bf16.msra.mxu0 %v1959_v20  ;;  %v741_v20 = vld [vmem:[%s2515_s15 + $0x8] sm:$0xff] }
  0xb1   : > { %1427 = vmatprep.subr.bf16.mxu0 %v1960_v21  ;;  %1381 = vmatpush1.bf16.msra.mxu1 %v2043_v41 }
  0xb2   : > { %1382 = vmatprep.subr.bf16.mxu1 %v2047_v42 }
  0xb4   : > { %1428 = vmatpush1.bf16.msra.mxu0 %v1962_v24 }
  0xb5   : > { %1429 = vmatprep.subr.bf16.mxu0 %v1963_v25  ;;  %1383 = vmatpush1.bf16.msra.mxu1 %v2049_v45 }
  0xb6   : > { %1384 = vmatprep.subr.bf16.mxu1 %v2053_v46 }
  0xb8   : > { %1430 = vmatpush1.bf16.msra.mxu0 %v1967_v28 }
  0xb9   : > { %1442 = vmatprep.subr.bf16.mxu0 %v1974_v29  ;;  %1385 = vmatpush1.bf16.msra.mxu1 %v2055_v49 }
  0xba   : > { %1386 = vmatprep.subr.bf16.mxu1 %v2059_v50 }
  0xbb   : > { %1432 = vmatmul.mubr.bf16.vlgmr.msra.gmra.mrb[0].mxu0 %v1969_v31 }
  0xbc   : > { %1443 = vmatpush1.bf16.msra.mxu0 %v1972_v33  ;;  %1474 = vmatprep.mubr.bf16.mxu0 %v2070_v39  ;;  %v1503_v33 = vlaneseq (!%p1808_p5) }
  0xbd   : > { %1444 = vmatprep.subr.bf16.mxu0 %v1980_v34  ;;  %1387 = vmatpush1.bf16.msra.mxu1 %v2061_v53 }
  0xbe   : > { %v1504_v34 = vshrl.u32 (!%p1808_p5), %v1503_v33, 7 }
  0xc0   : > { %1445 = vmatpush1.bf16.msra.mxu0 %v1978_v38  ;;  %1389 = vmatmul.mubr.bf16.vlgmr.msra.gmra.mrb[0].mxu1 %v2062_v56  ;;  %v1505_v38 = vsub.s32 (!%p1808_p5), 0, %v1504_v34  ;;  %v1509_v39 = vsub.s32 (!%p1808_p5), 1, %v1504_v34 }
  0xc1   : > { %1446 = vmatprep.subr.bf16.mxu0 %v1986_v40 }
  0xc2   : > { %v1510_v45 = vrot.slane (!%p1808_p5), %v1501_v35, %v1509_v39  ;;  %v1526_v46 = vrot.slane (!%p1808_p5), %v1517_v36, %v1509_v39 }
  0xc4   : > { %1447 = vmatpush1.bf16.msra.mxu0 %v1984_v43  ;;  %v1506_v43 = vrot.slane (!%p1808_p5), %v1501_v35, %v1505_v38 }
  0xc5   : > { %1448 = vmatprep.subr.bf16.mxu0 %v1992_v44  ;;  %v1522_v44 = vrot.slane (!%p1808_p5), %v1517_v36, %v1505_v38 }
  0xc8   : > { %1449 = vmatpush1.bf16.msra.mxu0 %v1990_v47 }
  0xc9   : > { %1450 = vmatprep.subr.bf16.mxu0 %v1998_v48 }
  0xcc   : > { %1451 = vmatpush1.bf16.msra.mxu0 %v1996_v51 }
  0xcd   : > { %1452 = vmatprep.subr.bf16.mxu0 %v2004_v52 }
  0xd0   : > { %1453 = vmatpush1.bf16.msra.mxu0 %v2002_v54 }
  0xd1   : > { %1454 = vmatprep.subr.bf16.mxu0 %v2010_v55 }
  0xd4   : > { %1455 = vmatpush1.bf16.msra.mxu0 %v2008_v57 }
  0xd5   : > { %1456 = vmatprep.subr.bf16.mxu0 %v2016_v58 }
  0xd8   : > { %1457 = vmatpush1.bf16.msra.mxu0 %v2014_v59 }
  0xd9   : > { %1458 = vmatprep.subr.bf16.mxu0 %v2022_v60 }
  0xdc   : > { %1459 = vmatpush1.bf16.msra.mxu0 %v2020_v61 }
  0xdd   : > { %1460 = vmatprep.subr.bf16.mxu0 %v2028_v62 }
  0xe0   : > { %1461 = vmatpush1.bf16.msra.mxu0 %v2026_v63 }
  0xe1   : > { %1462 = vmatprep.subr.bf16.mxu0 %v2034_v0 }
  0xe4   : > { %1463 = vmatpush1.bf16.msra.mxu0 %v2032_v1 }
  0xe5   : > { %1464 = vmatprep.subr.bf16.mxu0 %v2040_v2 }
  0xe8   : > { %1465 = vmatpush1.bf16.msra.mxu0 %v2038_v3 }
  0xe9   : > { %1466 = vmatprep.subr.bf16.mxu0 %v2046_v4 }
  0xec   : > { %1467 = vmatpush1.bf16.msra.mxu0 %v2044_v5 }
  0xed   : > { %1468 = vmatprep.subr.bf16.mxu0 %v2052_v6 }
  0xf0   : > { %1469 = vmatpush1.bf16.msra.mxu0 %v2050_v7 }
  0xf1   : > { %1470 = vmatprep.subr.bf16.mxu0 %v2058_v8 }
  0xf4   : > { %1471 = vmatpush1.bf16.msra.mxu0 %v2056_v9 }
  0xf5   : > { %1472 = vmatprep.subr.bf16.mxu0 %v2067_v10 }
  0xf8   : > { %1473 = vmatpush1.bf16.msra.mxu0 %v2065_v11 }
  0xfb   : > { %1475 = vmatmul.mubr.bf16.vlgmr.msra.gmra.mrb[0].mxu0 %v2068_v12 }
 0x193   : > { %v1390_v13 = vpop.f32.mrb[0].mxu1 }
 0x194   : > { %v1392_v14 = vpop.f32.mrb[1].mxu1 }
 0x195   : > { %v1394_v15 = vpop.f32.mrb[2].mxu1 }
 0x196   : > { %v1396_v16 = vpop.f32.mrb[3].mxu1 }
 0x1ce   : > { %v1476_v18 = vpop.f32.mrb[0].mxu0 }
 0x1cf   : > { %v1817_v19 = vadd.f32 %v1476_v18, %v1390_v13  ;;  %v1478_v21 = vpop.f32.mrb[1].mxu0 }
 0x1d0   : > { %v1818_v22 = vadd.f32 %v1478_v21, %v1392_v14  ;;  %v1480_v24 = vpop.f32.mrb[2].mxu0  ;;  %1496 = sbr.rel (%p1808_p5) target bundleno = 485 (0x1e5), region = 105 }
 0x1d1   : > { %v1485_v25 = vadd.f32 %v1817_v19, %v740_v17  ;;  %v1819_v26 = vadd.f32 %v1480_v24, %v1394_v15  ;;  %v1482_v28 = vpop.f32.mrb[3].mxu0 }
 0x1d2   : > { %v1486_v29 = vadd.f32 %v1818_v22, %v741_v20  ;;  %v1820_v30 = vadd.f32 %v1482_v28, %v1396_v16 }
 0x1d3   : > { %1489 = vst [vmem:[%s2515_s15] sm:$0xff] %v1485_v25  ;;  %v1487_v31 = vadd.f32 %v1819_v26, %v742_v23 }
 0x1d4   : > { %1490 = vst [vmem:[%s2515_s15 + $0x8] sm:$0xff] %v1486_v29  ;;  %v1488_v32 = vadd.f32 %v1820_v30, %v743_v27 }
 0x1d5   : > { %1491 = vst [vmem:[%s2515_s15 + $0x10] sm:$0xff] %v1487_v31 }
 0x1d6   : > { %1492 = vst [vmem:[%s2515_s15 + $0x18] sm:$0xff] %v1488_v32 }
 0x1da   : > { %v1497_v37 = vld [vmem:[%s2515_s15] sm:$0xff] }
 0x1db   : > { %v1498_v40 = vld [vmem:[%s2515_s15 + $0x8] sm:$0xff]  ;;  %v1513_v47 = vmul.f32 %v1506_v43, %v1497_v37 }
 0x1dc   : > { %v1499_v41 = vld [vmem:[%s2515_s15 + $0x10] sm:$0xff]  ;;  %v1514_v48 = vmul.f32 %v1510_v45, %v1498_v40 }
 0x1dd   : > { %v1500_v42 = vld [vmem:[%s2515_s15 + $0x18] sm:$0xff]  ;;  %v1515_v49 = vmul.f32 %v1506_v43, %v1499_v41  ;;  %v1529_v51 = vadd.f32 %v1522_v44, %v1513_v47 }
 0x1de   : > { %v1516_v50 = vmul.f32 %v1510_v45, %v1500_v42  ;;  %v1530_v52 = vadd.f32 %v1526_v46, %v1514_v48 }
 0x1df   : > { %v1531_v53 = vadd.f32 %v1522_v44, %v1515_v49  ;;  %v1533_v55 = vmax.f32 %v1529_v51, 0.0 }
 0x1e0   : > { %v1532_v54 = vadd.f32 %v1526_v46, %v1516_v50  ;;  %v1534_v56 = vmax.f32 %v1530_v52, 0.0 }
 0x1e1   : > { %v1535_v57 = vmax.f32 %v1531_v53, 0.0  ;;  %1537 = vst [vmem:[%s2515_s15] sm:$0xff] %v1533_v55 }
 0x1e2   : > { %v1536_v58 = vmax.f32 %v1532_v54, 0.0  ;;  %1538 = vst [vmem:[%s2515_s15 + $0x8] sm:$0xff] %v1534_v56 }
 0x1e3   : > { %1539 = vst [vmem:[%s2515_s15 + $0x10] sm:$0xff] %v1535_v57 }
 0x1e4   : > { %1540 = vst [vmem:[%s2515_s15 + $0x18] sm:$0xff] %v1536_v58 }
 0x1e5 PF: > { %1547 = sbr.rel (!%p2279_p12) target bundleno = 493 (0x1ed), region = 109  ;;  %s1816_s21 = sshll.u32 (%p2279_p12), %s2145_s22, 4 }
 0x1e6   : > { %s1553_s29 = scalar_lea.vmem (%p2279_p12), %s2698_s4, %s1816_s21 }
 0x1e8   : > { %v1566_v59 = vld [vmem:[%s2515_s15] sm:$0xff] (%p2279_p12) }
 0x1e9   : > { %v1568_v60 = vld [vmem:[%s2515_s15 + $0x8] sm:$0xff] (%p2279_p12)  ;;  %1567 = vst [vmem:[%s1553_s29] sm:$0xff] (%p2279_p12), %v1566_v59 }
 0x1ea   : > { %v1570_v61 = vld [vmem:[%s2515_s15 + $0x10] sm:$0xff] (%p2279_p12)  ;;  %1569 = vst [vmem:[%s1553_s29 + $0x8] sm:$0xff] (%p2279_p12), %v1568_v60 }
 0x1eb   : > { %v1572_v62 = vld [vmem:[%s2515_s15 + $0x18] sm:$0xff] (%p2279_p12)  ;;  %1571 = vst [vmem:[%s1553_s29 + $0x20] sm:$0xff] (%p2279_p12), %v1570_v61 }
 0x1ec   : > { %1573 = vst [vmem:[%s1553_s29 + $0x28] sm:$0xff] %v1572_v62 }
 0x1ed PF: > { %s14_s25 = sadd.s32 1, %s2157_s25   ;;  %s2710_s14 = sld [smem:[#allocation5_spill]] }
 0x1ee   : > { %p11_p6 = scmp.ge.s32.totalorder %s14_s25, 14   ;;  %s2711_s30 = sld [smem:[#allocation6_spill]] }
 0x1ef   : > { %s2712_s15 = smov %s2121_s16  ;;  %s2713_s16 = smov %s2277_s13 }
 0x1f0   : > { %s2714_s17 = smov %s2129_s18  ;;  %s2715_s18 = smov %s2274_s12 }
 0x1f1   : > { %s2716_s19 = smov %s2137_s20  ;;  %s2717_s20 = smov %s2260_s7 }
 0x1f2   : > { %s2718_s21 = smov %s2149_s23  ;;  %s2719_s22 = smov %s2153_s24 }
 0x1f3   : > { %s2720_s23 = smov %s2710_s14  ;;  %13 = sbr.rel (!%p11_p6) target bundleno = 9 (0x9), region = 177 }
 0x1f4   : > { %s2721_s24 = smov %s2711_s30 }

// kernel: _lambda_.44
= control target key start
LH: loop header
LB: loop body
LE: loop exit
PB: predicated region body
PF: predicated region fallthrough
CT: control target
= control target key end

     0   :  { %s46_s0 = inlined_call_operand.vmem [shape: f32[2,1,512], index: 0, kind: input, shape index: {}]   ;;  %s47_s1 = inlined_call_operand.vmem [shape: f32[2,512], index: 1, kind: output, shape index: {}]  }
   0x1   :  { %v29_v0 = vld [vmem:[%s46_s0] sm:$0xff]  }
   0x2   :  { %28 = vst.sshfl [vmem:[%s47_s1] sm:$0xff pattern:$0x75316420] %v29_v0 }

// kernel: _lambda_.45
= control target key start
LH: loop header
LB: loop body
LE: loop exit
PB: predicated region body
PF: predicated region fallthrough
CT: control target
= control target key end

     0   :  { %s1598_s15 = smov 0   ;;  %s1600_s16 = smov 0   ;;  %s1891_s0 = inlined_call_operand.vmem [shape: bf16[16,512], index: 0, kind: input, shape index: {}]   ;;  %s1892_s1 = inlined_call_operand.vmem [shape: bf16[512,512], index: 1, kind: input, shape index: {}]   ;;  %s1893_s2 = inlined_call_operand.vmem [shape: f32[1,512], index: 2, kind: input, shape index: {}]   ;;  %s1894_s3 = inlined_call_operand.vmem [shape: f32[1,512], index: 3, kind: input, shape index: {}]   ;;  %s1895_s4 = inlined_call_operand.vmem [shape: f32[16,512], index: 4, kind: output, shape index: {}]  }
   0x1   :  { %s1602_s17 = smov 0   ;;  %s1604_s18 = smov 0  }
   0x2   :  { %s1606_s19 = smov 0  }
   0x3 LB: > { %s29_s20 = sadd.s32 1, %s1567_s18  ;;  %s1298_s21 = sadd.s32 4294967295, %s1571_s19   ;;  %s1571_s19 = sphi %s1606_s19, %s14_s19   ;;  %s1567_s18 = sphi %s1604_s18, %s1900_s18   ;;  %s1563_s17 = sphi %s1602_s17, %s1899_s17   ;;  %s1559_s16 = sphi %s1600_s16, %s1898_s16   ;;  %s1555_s15 = sphi %s1598_s15, %s1897_s15  }
   0x4   : > { %p31_p0 = scmp.ge.s32.totalorder %s29_s20, 2  ;;  %p77_p1 = scmp.ne.s32.totalorder %s1559_s16, %s1555_s15 }
   0x5   : > { %p78_p2 = scmp.eq.s32.totalorder %s1571_s19, 0  ;;  %p161_p4 = scmp.eq.s32.totalorder %s1298_s21, 1 }
   0x6   : > { %s1902_s20 = smov (%p31_p0, %s29_s20), 0  ;;  %s70_s23 = sadd.s32 1, %s1559_s16 }
   0x7   : > { %p79_p3 = por %p78_p2, %p77_p1  ;;  %s66_s22 = ssub.s32 %s1567_s18, %s1902_s20 }
   0x8   : > { %p68_p5 = scmp.eq.s32.totalorder %s66_s22, 0  ;;  %p1633_p6 = por %p161_p4, %p77_p1 }
   0x9   : > { %p1302_p7 = scmp.ge.s32.totalorder %s1571_s19, 2 }
   0xa   : > { %s1638_s25 = scalar_select %p68_p5, %s1559_s16, %s70_s23  }
   0xb   : > { %198 = sbr.rel (%p1302_p7) target bundleno = 54 (0x36), region = 20 }
  0x12   : > { %201 = sbr.rel (!%p79_p3) target bundleno = 54 (0x36), region = 24  ;;  %s203_s26 = sand.u32 (%p79_p3), 1, %s1559_s16  }
  0x13   : > { %s1384_s27 = sshll.u32 (%p79_p3), %s1567_s18, 3  ;;  %s1303_s28 = sshll.u32 (%p79_p3), %s203_s26, 9 }
  0x14   : > { %s1646_s5 = scalar_lea.vmem (%p79_p3), %s1892_s1, %s1384_s27  ;;  %s1651_s6 = scalar_lea.vmem (%p79_p3), [#allocation2], %s1303_s28 }
  0x15   : > { %v365_v0 = vld [vmem:[%s1646_s5] sm:$0xff] (%p79_p3)  ;;  %v367_v1 = vld [vmem:[%s1646_s5 + $0x10] sm:$0xff] (%p79_p3) }
  0x16   : > { %v369_v2 = vld [vmem:[%s1646_s5 + $0x20] sm:$0xff] (%p79_p3)  ;;  %366 = vst [vmem:[%s1651_s6] sm:$0xff] (%p79_p3), %v365_v0  ;;  %368 = vst [vmem:[%s1651_s6 + $0x8] sm:$0xff] (%p79_p3), %v367_v1  ;;  %v371_v3 = vld [vmem:[%s1646_s5 + $0x30] sm:$0xff] (%p79_p3) }
  0x17   : > { %370 = vst [vmem:[%s1651_s6 + $0x10] sm:$0xff] (%p79_p3), %v369_v2  ;;  %v373_v4 = vld [vmem:[%s1646_s5 + $0x40] sm:$0xff] (%p79_p3)  ;;  %v375_v5 = vld [vmem:[%s1646_s5 + $0x50] sm:$0xff] (%p79_p3)  ;;  %372 = vst [vmem:[%s1651_s6 + $0x18] sm:$0xff] (%p79_p3), %v371_v3 }
  0x18   : > { %374 = vst [vmem:[%s1651_s6 + $0x20] sm:$0xff] (%p79_p3), %v373_v4  ;;  %376 = vst [vmem:[%s1651_s6 + $0x28] sm:$0xff] (%p79_p3), %v375_v5  ;;  %v377_v6 = vld [vmem:[%s1646_s5 + $0x60] sm:$0xff] (%p79_p3)  ;;  %v379_v7 = vld [vmem:[%s1646_s5 + $0x70] sm:$0xff] (%p79_p3) }
  0x19   : > { %v381_v8 = vld [vmem:[%s1646_s5 + $0x80] sm:$0xff]  ;;  %378 = vst [vmem:[%s1651_s6 + $0x30] sm:$0xff] %v377_v6  ;;  %380 = vst [vmem:[%s1651_s6 + $0x38] sm:$0xff] %v379_v7  ;;  %v383_v9 = vld [vmem:[%s1646_s5 + $0x90] sm:$0xff] }
  0x1a   : > { %382 = vst [vmem:[%s1651_s6 + $0x40] sm:$0xff] %v381_v8  ;;  %v385_v10 = vld [vmem:[%s1646_s5 + $0xa0] sm:$0xff]  ;;  %v387_v11 = vld [vmem:[%s1646_s5 + $0xb0] sm:$0xff]  ;;  %384 = vst [vmem:[%s1651_s6 + $0x48] sm:$0xff] %v383_v9 }
  0x1b   : > { %386 = vst [vmem:[%s1651_s6 + $0x50] sm:$0xff] %v385_v10  ;;  %388 = vst [vmem:[%s1651_s6 + $0x58] sm:$0xff] %v387_v11  ;;  %v389_v12 = vld [vmem:[%s1646_s5 + $0xc0] sm:$0xff]  ;;  %v391_v13 = vld [vmem:[%s1646_s5 + $0xd0] sm:$0xff] }
  0x1c   : > { %v393_v14 = vld [vmem:[%s1646_s5 + $0xe0] sm:$0xff]  ;;  %390 = vst [vmem:[%s1651_s6 + $0x60] sm:$0xff] %v389_v12  ;;  %392 = vst [vmem:[%s1651_s6 + $0x68] sm:$0xff] %v391_v13  ;;  %v395_v15 = vld [vmem:[%s1646_s5 + $0xf0] sm:$0xff] }
  0x1d   : > { %394 = vst [vmem:[%s1651_s6 + $0x70] sm:$0xff] %v393_v14  ;;  %v397_v16 = vld [vmem:[%s1646_s5 + $0x100] sm:$0xff]  ;;  %v399_v17 = vld [vmem:[%s1646_s5 + $0x110] sm:$0xff]  ;;  %396 = vst [vmem:[%s1651_s6 + $0x78] sm:$0xff] %v395_v15 }
  0x1e   : > { %398 = vst [vmem:[%s1651_s6 + $0x80] sm:$0xff] %v397_v16  ;;  %400 = vst [vmem:[%s1651_s6 + $0x88] sm:$0xff] %v399_v17  ;;  %v401_v18 = vld [vmem:[%s1646_s5 + $0x120] sm:$0xff]  ;;  %v403_v19 = vld [vmem:[%s1646_s5 + $0x130] sm:$0xff] }
  0x1f   : > { %v405_v20 = vld [vmem:[%s1646_s5 + $0x140] sm:$0xff]  ;;  %402 = vst [vmem:[%s1651_s6 + $0x90] sm:$0xff] %v401_v18  ;;  %404 = vst [vmem:[%s1651_s6 + $0x98] sm:$0xff] %v403_v19  ;;  %v407_v21 = vld [vmem:[%s1646_s5 + $0x150] sm:$0xff] }
  0x20   : > { %406 = vst [vmem:[%s1651_s6 + $0xa0] sm:$0xff] %v405_v20  ;;  %v409_v22 = vld [vmem:[%s1646_s5 + $0x160] sm:$0xff]  ;;  %v411_v23 = vld [vmem:[%s1646_s5 + $0x170] sm:$0xff]  ;;  %408 = vst [vmem:[%s1651_s6 + $0xa8] sm:$0xff] %v407_v21 }
  0x21   : > { %410 = vst [vmem:[%s1651_s6 + $0xb0] sm:$0xff] %v409_v22  ;;  %412 = vst [vmem:[%s1651_s6 + $0xb8] sm:$0xff] %v411_v23  ;;  %v413_v24 = vld [vmem:[%s1646_s5 + $0x180] sm:$0xff]  ;;  %v415_v25 = vld [vmem:[%s1646_s5 + $0x190] sm:$0xff] }
  0x22   : > { %v417_v26 = vld [vmem:[%s1646_s5 + $0x1a0] sm:$0xff]  ;;  %414 = vst [vmem:[%s1651_s6 + $0xc0] sm:$0xff] %v413_v24  ;;  %416 = vst [vmem:[%s1651_s6 + $0xc8] sm:$0xff] %v415_v25  ;;  %v419_v27 = vld [vmem:[%s1646_s5 + $0x1b0] sm:$0xff] }
  0x23   : > { %418 = vst [vmem:[%s1651_s6 + $0xd0] sm:$0xff] %v417_v26  ;;  %v421_v28 = vld [vmem:[%s1646_s5 + $0x1c0] sm:$0xff]  ;;  %v423_v29 = vld [vmem:[%s1646_s5 + $0x1d0] sm:$0xff]  ;;  %420 = vst [vmem:[%s1651_s6 + $0xd8] sm:$0xff] %v419_v27 }
  0x24   : > { %422 = vst [vmem:[%s1651_s6 + $0xe0] sm:$0xff] %v421_v28  ;;  %424 = vst [vmem:[%s1651_s6 + $0xe8] sm:$0xff] %v423_v29  ;;  %v425_v30 = vld [vmem:[%s1646_s5 + $0x1e0] sm:$0xff]  ;;  %v427_v31 = vld [vmem:[%s1646_s5 + $0x1f0] sm:$0xff] }
  0x25   : > { %v429_v32 = vld [vmem:[%s1646_s5 + $0x200] sm:$0xff]  ;;  %426 = vst [vmem:[%s1651_s6 + $0xf0] sm:$0xff] %v425_v30  ;;  %428 = vst [vmem:[%s1651_s6 + $0xf8] sm:$0xff] %v427_v31  ;;  %v431_v33 = vld [vmem:[%s1646_s5 + $0x210] sm:$0xff] }
  0x26   : > { %430 = vst [vmem:[%s1651_s6 + $0x100] sm:$0xff] %v429_v32  ;;  %v433_v34 = vld [vmem:[%s1646_s5 + $0x220] sm:$0xff]  ;;  %v435_v35 = vld [vmem:[%s1646_s5 + $0x230] sm:$0xff]  ;;  %432 = vst [vmem:[%s1651_s6 + $0x108] sm:$0xff] %v431_v33 }
  0x27   : > { %434 = vst [vmem:[%s1651_s6 + $0x110] sm:$0xff] %v433_v34  ;;  %436 = vst [vmem:[%s1651_s6 + $0x118] sm:$0xff] %v435_v35  ;;  %v437_v36 = vld [vmem:[%s1646_s5 + $0x240] sm:$0xff]  ;;  %v439_v37 = vld [vmem:[%s1646_s5 + $0x250] sm:$0xff] }
  0x28   : > { %v441_v38 = vld [vmem:[%s1646_s5 + $0x260] sm:$0xff]  ;;  %438 = vst [vmem:[%s1651_s6 + $0x120] sm:$0xff] %v437_v36  ;;  %440 = vst [vmem:[%s1651_s6 + $0x128] sm:$0xff] %v439_v37  ;;  %v443_v39 = vld [vmem:[%s1646_s5 + $0x270] sm:$0xff] }
  0x29   : > { %442 = vst [vmem:[%s1651_s6 + $0x130] sm:$0xff] %v441_v38  ;;  %v445_v40 = vld [vmem:[%s1646_s5 + $0x280] sm:$0xff]  ;;  %v447_v41 = vld [vmem:[%s1646_s5 + $0x290] sm:$0xff]  ;;  %444 = vst [vmem:[%s1651_s6 + $0x138] sm:$0xff] %v443_v39 }
  0x2a   : > { %446 = vst [vmem:[%s1651_s6 + $0x140] sm:$0xff] %v445_v40  ;;  %448 = vst [vmem:[%s1651_s6 + $0x148] sm:$0xff] %v447_v41  ;;  %v449_v42 = vld [vmem:[%s1646_s5 + $0x2a0] sm:$0xff]  ;;  %v451_v43 = vld [vmem:[%s1646_s5 + $0x2b0] sm:$0xff] }
  0x2b   : > { %v453_v44 = vld [vmem:[%s1646_s5 + $0x2c0] sm:$0xff]  ;;  %450 = vst [vmem:[%s1651_s6 + $0x150] sm:$0xff] %v449_v42  ;;  %452 = vst [vmem:[%s1651_s6 + $0x158] sm:$0xff] %v451_v43  ;;  %v455_v45 = vld [vmem:[%s1646_s5 + $0x2d0] sm:$0xff] }
  0x2c   : > { %454 = vst [vmem:[%s1651_s6 + $0x160] sm:$0xff] %v453_v44  ;;  %v457_v46 = vld [vmem:[%s1646_s5 + $0x2e0] sm:$0xff]  ;;  %v459_v47 = vld [vmem:[%s1646_s5 + $0x2f0] sm:$0xff]  ;;  %456 = vst [vmem:[%s1651_s6 + $0x168] sm:$0xff] %v455_v45 }
  0x2d   : > { %458 = vst [vmem:[%s1651_s6 + $0x170] sm:$0xff] %v457_v46  ;;  %460 = vst [vmem:[%s1651_s6 + $0x178] sm:$0xff] %v459_v47  ;;  %v461_v48 = vld [vmem:[%s1646_s5 + $0x300] sm:$0xff]  ;;  %v463_v49 = vld [vmem:[%s1646_s5 + $0x310] sm:$0xff] }
  0x2e   : > { %v465_v50 = vld [vmem:[%s1646_s5 + $0x320] sm:$0xff]  ;;  %462 = vst [vmem:[%s1651_s6 + $0x180] sm:$0xff] %v461_v48  ;;  %464 = vst [vmem:[%s1651_s6 + $0x188] sm:$0xff] %v463_v49  ;;  %v467_v51 = vld [vmem:[%s1646_s5 + $0x330] sm:$0xff] }
  0x2f   : > { %466 = vst [vmem:[%s1651_s6 + $0x190] sm:$0xff] %v465_v50  ;;  %v469_v52 = vld [vmem:[%s1646_s5 + $0x340] sm:$0xff]  ;;  %v471_v53 = vld [vmem:[%s1646_s5 + $0x350] sm:$0xff]  ;;  %468 = vst [vmem:[%s1651_s6 + $0x198] sm:$0xff] %v467_v51 }
  0x30   : > { %470 = vst [vmem:[%s1651_s6 + $0x1a0] sm:$0xff] %v469_v52  ;;  %472 = vst [vmem:[%s1651_s6 + $0x1a8] sm:$0xff] %v471_v53  ;;  %v473_v54 = vld [vmem:[%s1646_s5 + $0x360] sm:$0xff]  ;;  %v475_v55 = vld [vmem:[%s1646_s5 + $0x370] sm:$0xff] }
  0x31   : > { %v477_v56 = vld [vmem:[%s1646_s5 + $0x380] sm:$0xff]  ;;  %474 = vst [vmem:[%s1651_s6 + $0x1b0] sm:$0xff] %v473_v54  ;;  %476 = vst [vmem:[%s1651_s6 + $0x1b8] sm:$0xff] %v475_v55  ;;  %v479_v57 = vld [vmem:[%s1646_s5 + $0x390] sm:$0xff] }
  0x32   : > { %478 = vst [vmem:[%s1651_s6 + $0x1c0] sm:$0xff] %v477_v56  ;;  %v481_v58 = vld [vmem:[%s1646_s5 + $0x3a0] sm:$0xff]  ;;  %v483_v59 = vld [vmem:[%s1646_s5 + $0x3b0] sm:$0xff]  ;;  %480 = vst [vmem:[%s1651_s6 + $0x1c8] sm:$0xff] %v479_v57 }
  0x33   : > { %482 = vst [vmem:[%s1651_s6 + $0x1d0] sm:$0xff] %v481_v58  ;;  %484 = vst [vmem:[%s1651_s6 + $0x1d8] sm:$0xff] %v483_v59  ;;  %v485_v60 = vld [vmem:[%s1646_s5 + $0x3c0] sm:$0xff]  ;;  %v487_v61 = vld [vmem:[%s1646_s5 + $0x3d0] sm:$0xff] }
  0x34   : > { %v489_v62 = vld [vmem:[%s1646_s5 + $0x3e0] sm:$0xff]  ;;  %486 = vst [vmem:[%s1651_s6 + $0x1e0] sm:$0xff] %v485_v60  ;;  %488 = vst [vmem:[%s1651_s6 + $0x1e8] sm:$0xff] %v487_v61  ;;  %v491_v63 = vld [vmem:[%s1646_s5 + $0x3f0] sm:$0xff] }
  0x35   : > { %490 = vst [vmem:[%s1651_s6 + $0x1f0] sm:$0xff] %v489_v62  ;;  %492 = vst [vmem:[%s1651_s6 + $0x1f8] sm:$0xff] %v491_v63 }
  0x36 PF: > { %p1306_p8 = scmp.ge.s32.totalorder %s1571_s19, 1  ;;  %p513_p9 = scmp.lt.s32.totalorder %s1571_s19, 3 }
  0x38   : > { %p514_p10 = pnand %p1306_p8, %p513_p9 }
  0x39   : > { %s520_s7 = sand.u32 (!%p514_p10), 1, %s1555_s15   ;;  %v1529_v0 = vld [vmem:[%s1891_s0 + $0x4] ss:$16 sps:$4 sm:$0xff] (!%p514_p10)   ;;  %v1532_v1 = vld [vmem:[%s1891_s0 + $0xc] ss:$16 sps:$4 sm:$0xff] (!%p514_p10)   ;;  %s1309_s26 = sshll.u32 (!%p514_p10), %s1563_s17, 1 }
  0x3a   : > { %517 = sbr.rel (%p514_p10) target bundleno = 358 (0x166), region = 70  ;;  %s1307_s8 = sshll.u32 (!%p514_p10), %s520_s7, 9  ;;  %1040 = vmatprep.mubr.bf16.mxu1 (!%p514_p10), %v1529_v0  ;;  %1083 = vmatprep.mubr.bf16.mxu0 (!%p514_p10), %v1532_v1 }
  0x3b   : > { %s1789_s13 = scalar_lea.vmem (!%p514_p10), [#allocation2], %s1307_s8  ;;  %p577_p11 = scmp.lt.s32.totalorder (!%p514_p10), %s1309_s26, 3 }
  0x3c   : > { %v1431_v2 = vld [vmem:[%s1789_s13 + $0x4] ss:$8 sps:$4 sm:$0xff] (!%p514_p10)   ;;  %v1435_v4 = vld [vmem:[%s1789_s13] ss:$8 sps:$4 sm:$0xff] (!%p514_p10)   ;;  %v1437_v6 = vld [vmem:[%s1789_s13 + $0x14] ss:$8 sps:$4 sm:$0xff] (!%p514_p10)  }
  0x3d   : > { %v1433_v3 = vld [vmem:[%s1789_s13 + $0x104] ss:$8 sps:$4 sm:$0xff] (!%p514_p10)   ;;  %1008 = vmatprep.subr.bf16.mxu1 (!%p514_p10), %v1431_v2  ;;  %v1436_v5 = vld [vmem:[%s1789_s13 + $0x100] ss:$8 sps:$4 sm:$0xff] (!%p514_p10)   ;;  %v1439_v7 = vld [vmem:[%s1789_s13 + $0x114] ss:$8 sps:$4 sm:$0xff] (!%p514_p10)  }
  0x3e   : > { %1051 = vmatprep.subr.bf16.mxu0 (!%p514_p10), %v1433_v3  ;;  %1009 = vmatpush1.bf16.msra.mxu1 (!%p514_p10), %v1435_v4  ;;  %v1441_v8 = vld [vmem:[%s1789_s13 + $0x10] ss:$8 sps:$4 sm:$0xff] (!%p514_p10)   ;;  %v1443_v10 = vld [vmem:[%s1789_s13 + $0x24] ss:$8 sps:$4 sm:$0xff] (!%p514_p10)   ;;  %v1447_v12 = vld [vmem:[%s1789_s13 + $0x20] ss:$8 sps:$4 sm:$0xff] (!%p514_p10)   ;;  %v1111_v4 = vlaneseq (!%p514_p10) }
  0x3f   : > { %1052 = vmatpush1.bf16.msra.mxu0 (!%p514_p10), %v1436_v5  ;;  %1010 = vmatprep.subr.bf16.mxu1 (!%p514_p10), %v1437_v6  ;;  %v1442_v9 = vld [vmem:[%s1789_s13 + $0x110] ss:$8 sps:$4 sm:$0xff] (!%p514_p10)   ;;  %v1445_v11 = vld [vmem:[%s1789_s13 + $0x124] ss:$8 sps:$4 sm:$0xff] (!%p514_p10)   ;;  %v1448_v13 = vld [vmem:[%s1789_s13 + $0x120] ss:$8 sps:$4 sm:$0xff] (!%p514_p10)  }
  0x40   : > { %1053 = vmatprep.subr.bf16.mxu0 (!%p514_p10), %v1439_v7  ;;  %v1449_v14 = vld [vmem:[%s1789_s13 + $0x34] ss:$8 sps:$4 sm:$0xff] (!%p514_p10)   ;;  %v1453_v16 = vld [vmem:[%s1789_s13 + $0x30] ss:$8 sps:$4 sm:$0xff] (!%p514_p10)   ;;  %v1455_v18 = vld [vmem:[%s1789_s13 + $0x44] ss:$8 sps:$4 sm:$0xff] (!%p514_p10)  }
  0x41   : > { %v1451_v15 = vld [vmem:[%s1789_s13 + $0x134] ss:$8 sps:$4 sm:$0xff]   ;;  %v1454_v17 = vld [vmem:[%s1789_s13 + $0x130] ss:$8 sps:$4 sm:$0xff]   ;;  %v1457_v19 = vld [vmem:[%s1789_s13 + $0x144] ss:$8 sps:$4 sm:$0xff]  }
  0x42   : > { %1011 = vmatpush1.bf16.msra.mxu1 %v1441_v8  ;;  %v1459_v20 = vld [vmem:[%s1789_s13 + $0x40] ss:$8 sps:$4 sm:$0xff]   ;;  %v1461_v22 = vld [vmem:[%s1789_s13 + $0x54] ss:$8 sps:$4 sm:$0xff]   ;;  %v1465_v24 = vld [vmem:[%s1789_s13 + $0x50] ss:$8 sps:$4 sm:$0xff]  }
  0x43   : > { %1054 = vmatpush1.bf16.msra.mxu0 %v1442_v9  ;;  %1012 = vmatprep.subr.bf16.mxu1 %v1443_v10  ;;  %v1460_v21 = vld [vmem:[%s1789_s13 + $0x140] ss:$8 sps:$4 sm:$0xff]   ;;  %v1463_v23 = vld [vmem:[%s1789_s13 + $0x154] ss:$8 sps:$4 sm:$0xff]   ;;  %v1466_v25 = vld [vmem:[%s1789_s13 + $0x150] ss:$8 sps:$4 sm:$0xff]  }
  0x44   : > { %1055 = vmatprep.subr.bf16.mxu0 %v1445_v11  ;;  %v1467_v26 = vld [vmem:[%s1789_s13 + $0x64] ss:$8 sps:$4 sm:$0xff]   ;;  %v1471_v28 = vld [vmem:[%s1789_s13 + $0x60] ss:$8 sps:$4 sm:$0xff]   ;;  %v1473_v30 = vld [vmem:[%s1789_s13 + $0x74] ss:$8 sps:$4 sm:$0xff]  }
  0x45   : > { %v1469_v27 = vld [vmem:[%s1789_s13 + $0x164] ss:$8 sps:$4 sm:$0xff]   ;;  %v1472_v29 = vld [vmem:[%s1789_s13 + $0x160] ss:$8 sps:$4 sm:$0xff]   ;;  %v1475_v31 = vld [vmem:[%s1789_s13 + $0x174] ss:$8 sps:$4 sm:$0xff]  }
  0x46   : > { %1013 = vmatpush1.bf16.msra.mxu1 %v1447_v12  ;;  %v1477_v32 = vld [vmem:[%s1789_s13 + $0x70] ss:$8 sps:$4 sm:$0xff]   ;;  %v1479_v34 = vld [vmem:[%s1789_s13 + $0x84] ss:$8 sps:$4 sm:$0xff]   ;;  %v1483_v36 = vld [vmem:[%s1789_s13 + $0x80] ss:$8 sps:$4 sm:$0xff]  }
  0x47   : > { %1056 = vmatpush1.bf16.msra.mxu0 %v1448_v13  ;;  %1014 = vmatprep.subr.bf16.mxu1 %v1449_v14  ;;  %v1478_v33 = vld [vmem:[%s1789_s13 + $0x170] ss:$8 sps:$4 sm:$0xff]   ;;  %v1481_v35 = vld [vmem:[%s1789_s13 + $0x184] ss:$8 sps:$4 sm:$0xff]   ;;  %v1484_v37 = vld [vmem:[%s1789_s13 + $0x180] ss:$8 sps:$4 sm:$0xff]  }
  0x48   : > { %1057 = vmatprep.subr.bf16.mxu0 %v1451_v15  ;;  %v1485_v38 = vld [vmem:[%s1789_s13 + $0x94] ss:$8 sps:$4 sm:$0xff]   ;;  %v1489_v40 = vld [vmem:[%s1789_s13 + $0x90] ss:$8 sps:$4 sm:$0xff]   ;;  %v1491_v42 = vld [vmem:[%s1789_s13 + $0xa4] ss:$8 sps:$4 sm:$0xff]  }
  0x49   : > { %v1487_v39 = vld [vmem:[%s1789_s13 + $0x194] ss:$8 sps:$4 sm:$0xff]   ;;  %v1490_v41 = vld [vmem:[%s1789_s13 + $0x190] ss:$8 sps:$4 sm:$0xff]   ;;  %v1493_v43 = vld [vmem:[%s1789_s13 + $0x1a4] ss:$8 sps:$4 sm:$0xff]  }
  0x4a   : > { %1015 = vmatpush1.bf16.msra.mxu1 %v1453_v16  ;;  %v1495_v44 = vld [vmem:[%s1789_s13 + $0xa0] ss:$8 sps:$4 sm:$0xff]   ;;  %v1497_v46 = vld [vmem:[%s1789_s13 + $0xb4] ss:$8 sps:$4 sm:$0xff]   ;;  %v1501_v48 = vld [vmem:[%s1789_s13 + $0xb0] ss:$8 sps:$4 sm:$0xff]  }
  0x4b   : > { %1058 = vmatpush1.bf16.msra.mxu0 %v1454_v17  ;;  %1016 = vmatprep.subr.bf16.mxu1 %v1455_v18  ;;  %v1496_v45 = vld [vmem:[%s1789_s13 + $0x1a0] ss:$8 sps:$4 sm:$0xff]   ;;  %v1499_v47 = vld [vmem:[%s1789_s13 + $0x1b4] ss:$8 sps:$4 sm:$0xff]   ;;  %v1502_v49 = vld [vmem:[%s1789_s13 + $0x1b0] ss:$8 sps:$4 sm:$0xff]  }
  0x4c   : > { %1059 = vmatprep.subr.bf16.mxu0 %v1457_v19  ;;  %v1503_v50 = vld [vmem:[%s1789_s13 + $0xc4] ss:$8 sps:$4 sm:$0xff]   ;;  %v1507_v52 = vld [vmem:[%s1789_s13 + $0xc0] ss:$8 sps:$4 sm:$0xff]   ;;  %v1509_v54 = vld [vmem:[%s1789_s13 + $0xd4] ss:$8 sps:$4 sm:$0xff]  }
  0x4d   : > { %v1505_v51 = vld [vmem:[%s1789_s13 + $0x1c4] ss:$8 sps:$4 sm:$0xff]   ;;  %v1508_v53 = vld [vmem:[%s1789_s13 + $0x1c0] ss:$8 sps:$4 sm:$0xff]   ;;  %v1511_v55 = vld [vmem:[%s1789_s13 + $0x1d4] ss:$8 sps:$4 sm:$0xff]  }
  0x4e   : > { %1017 = vmatpush1.bf16.msra.mxu1 %v1459_v20  ;;  %v1513_v56 = vld [vmem:[%s1789_s13 + $0xd0] ss:$8 sps:$4 sm:$0xff]   ;;  %v1515_v58 = vld [vmem:[%s1789_s13 + $0xe4] ss:$8 sps:$4 sm:$0xff]   ;;  %v1519_v60 = vld [vmem:[%s1789_s13 + $0xe0] ss:$8 sps:$4 sm:$0xff]  }
  0x4f   : > { %1060 = vmatpush1.bf16.msra.mxu0 %v1460_v21  ;;  %1018 = vmatprep.subr.bf16.mxu1 %v1461_v22  ;;  %v1514_v57 = vld [vmem:[%s1789_s13 + $0x1d0] ss:$8 sps:$4 sm:$0xff]   ;;  %v1517_v59 = vld [vmem:[%s1789_s13 + $0x1e4] ss:$8 sps:$4 sm:$0xff]   ;;  %v1520_v61 = vld [vmem:[%s1789_s13 + $0x1e0] ss:$8 sps:$4 sm:$0xff]  }
  0x50   : > { %1061 = vmatprep.subr.bf16.mxu0 %v1463_v23  ;;  %v1521_v62 = vld [vmem:[%s1789_s13 + $0xf4] ss:$8 sps:$4 sm:$0xff]   ;;  %v1525_v0 = vld [vmem:[%s1789_s13 + $0xf0] ss:$8 sps:$4 sm:$0xff]   ;;  %s1904_s26 = smov (!%p577_p11, %s1309_s26), 3  ;;  %v1112_v5 = vshrl.u32 %v1111_v4, 7 }
  0x51   : > { %v1523_v63 = vld [vmem:[%s1789_s13 + $0x1f4] ss:$8 sps:$4 sm:$0xff]   ;;  %v1526_v1 = vld [vmem:[%s1789_s13 + $0x1f0] ss:$8 sps:$4 sm:$0xff]   ;;  %s579_s29 = scalar_lea.vmem %s1893_s2, %s1904_s26  ;;  %s584_s6 = scalar_lea.vmem %s1894_s3, %s1904_s26 }
  0x52   : > { %1019 = vmatpush1.bf16.msra.mxu1 %v1465_v24  ;;  %v1527_v2 = vld [vmem:[%s1891_s0] ss:$16 sps:$4 sm:$0xff]   ;;  %v1530_v3 = vld [vmem:[%s1891_s0 + $0x8] ss:$16 sps:$4 sm:$0xff]   ;;  %v1113_v6 = vsub.s32 0, %v1112_v5  ;;  %v1117_v8 = vsub.s32 1, %v1112_v5 }
  0x53   : > { %1062 = vmatpush1.bf16.msra.mxu0 %v1466_v25  ;;  %1020 = vmatprep.subr.bf16.mxu1 %v1467_v26  ;;  %v1109_v7 = vld [vmem:[%s579_s29] sm:$0x3]  ;;  %s1308_s8 = sshll.u32 %s520_s7, 5  ;;  %s1385_s15 = sshll.u32 (%p1633_p6), %s1563_s17, 4 }
  0x54   : > { %1063 = vmatprep.subr.bf16.mxu0 %v1469_v27  ;;  %v1125_v11 = vld [vmem:[%s584_s6] sm:$0x3]  ;;  %v1114_v13 = vrot.slane %v1109_v7, %v1113_v6  ;;  %v1118_v17 = vrot.slane %v1109_v7, %v1117_v8  ;;  %s561_s9 = scalar_lea.vmem [#allocation3], %s1308_s8  ;;  %s1161_s11 = scalar_lea.vmem (%p1633_p6), %s1895_s4, %s1385_s15 }
  0x55   : > { %v1130_v20 = vrot.slane %v1125_v11, %v1113_v6  ;;  %v1134_v24 = vrot.slane %v1125_v11, %v1117_v8 }
  0x56   : > { %1021 = vmatpush1.bf16.msra.mxu1 %v1471_v28 }
  0x57   : > { %1064 = vmatpush1.bf16.msra.mxu0 %v1472_v29  ;;  %1022 = vmatprep.subr.bf16.mxu1 %v1473_v30 }
  0x58   : > { %1065 = vmatprep.subr.bf16.mxu0 %v1475_v31 }
  0x5a   : > { %1023 = vmatpush1.bf16.msra.mxu1 %v1477_v32 }
  0x5b   : > { %1066 = vmatpush1.bf16.msra.mxu0 %v1478_v33  ;;  %1024 = vmatprep.subr.bf16.mxu1 %v1479_v34 }
  0x5c   : > { %1067 = vmatprep.subr.bf16.mxu0 %v1481_v35 }
  0x5e   : > { %1025 = vmatpush1.bf16.msra.mxu1 %v1483_v36 }
  0x5f   : > { %1068 = vmatpush1.bf16.msra.mxu0 %v1484_v37  ;;  %1026 = vmatprep.subr.bf16.mxu1 %v1485_v38 }
  0x60   : > { %1069 = vmatprep.subr.bf16.mxu0 %v1487_v39 }
  0x62   : > { %1027 = vmatpush1.bf16.msra.mxu1 %v1489_v40 }
  0x63   : > { %1070 = vmatpush1.bf16.msra.mxu0 %v1490_v41  ;;  %1028 = vmatprep.subr.bf16.mxu1 %v1491_v42 }
  0x64   : > { %1071 = vmatprep.subr.bf16.mxu0 %v1493_v43 }
  0x66   : > { %1029 = vmatpush1.bf16.msra.mxu1 %v1495_v44 }
  0x67   : > { %1072 = vmatpush1.bf16.msra.mxu0 %v1496_v45  ;;  %1030 = vmatprep.subr.bf16.mxu1 %v1497_v46 }
  0x68   : > { %1073 = vmatprep.subr.bf16.mxu0 %v1499_v47 }
  0x6a   : > { %1031 = vmatpush1.bf16.msra.mxu1 %v1501_v48 }
  0x6b   : > { %1074 = vmatpush1.bf16.msra.mxu0 %v1502_v49  ;;  %1032 = vmatprep.subr.bf16.mxu1 %v1503_v50 }
  0x6c   : > { %1075 = vmatprep.subr.bf16.mxu0 %v1505_v51 }
  0x6e   : > { %1033 = vmatpush1.bf16.msra.mxu1 %v1507_v52 }
  0x6f   : > { %1076 = vmatpush1.bf16.msra.mxu0 %v1508_v53  ;;  %1034 = vmatprep.subr.bf16.mxu1 %v1509_v54 }
  0x70   : > { %1077 = vmatprep.subr.bf16.mxu0 %v1511_v55 }
  0x72   : > { %1035 = vmatpush1.bf16.msra.mxu1 %v1513_v56 }
  0x73   : > { %1078 = vmatpush1.bf16.msra.mxu0 %v1514_v57  ;;  %1036 = vmatprep.subr.bf16.mxu1 %v1515_v58 }
  0x74   : > { %1079 = vmatprep.subr.bf16.mxu0 %v1517_v59 }
  0x76   : > { %1037 = vmatpush1.bf16.msra.mxu1 %v1519_v60 }
  0x77   : > { %1080 = vmatpush1.bf16.msra.mxu0 %v1520_v61  ;;  %1038 = vmatprep.subr.bf16.mxu1 %v1521_v62 }
  0x78   : > { %1081 = vmatprep.subr.bf16.mxu0 %v1523_v63 }
  0x7a   : > { %1039 = vmatpush1.bf16.msra.mxu1 %v1525_v0 }
  0x7b   : > { %1082 = vmatpush1.bf16.msra.mxu0 %v1526_v1 }
  0x7d   : > { %1041 = vmatmul.mubr.bf16.vlgmr.msra.gmra.mrb[0].mxu1 %v1527_v2 }
  0x7e   : > { %1084 = vmatmul.mubr.bf16.vlgmr.msra.gmra.mrb[0].mxu0 %v1530_v3 }
 0x150   : > { %v1042_v9 = vpop.f32.mrb[0].mxu1 }
 0x151   : > { %v1085_v10 = vpop.f32.mrb[0].mxu0  ;;  %v1044_v14 = vpop.f32.mrb[1].mxu1 }
 0x152   : > { %v1086_v12 = vadd.f32 %v1085_v10, %v1042_v9  ;;  %v1087_v15 = vpop.f32.mrb[1].mxu0  ;;  %v1046_v18 = vpop.f32.mrb[2].mxu1 }
 0x153   : > { %v1088_v16 = vadd.f32 %v1087_v15, %v1044_v14  ;;  %v1089_v19 = vpop.f32.mrb[2].mxu0  ;;  %v1048_v22 = vpop.f32.mrb[3].mxu1 }
 0x154   : > { %v1090_v21 = vadd.f32 %v1089_v19, %v1046_v18  ;;  %v1091_v23 = vpop.f32.mrb[3].mxu0  ;;  %v1121_v26 = vmul.f32 %v1114_v13, %v1086_v12 }
 0x155   : > { %v1092_v25 = vadd.f32 %v1091_v23, %v1048_v22  ;;  %v1122_v27 = vmul.f32 %v1118_v17, %v1088_v16 }
 0x156   : > { %v1137_v28 = vadd.f32 %v1130_v20, %v1121_v26  ;;  %v1123_v29 = vmul.f32 %v1114_v13, %v1090_v21 }
 0x157   : > { %v1138_v30 = vadd.f32 %v1134_v24, %v1122_v27  ;;  %v1124_v31 = vmul.f32 %v1118_v17, %v1092_v25  ;;  %1155 = sbr.rel (!%p1633_p6) target bundleno = 358 (0x166), region = 86 }
 0x158   : > { %v1141_v32 = vmax.f32 %v1137_v28, 0.0  ;;  %v1139_v33 = vadd.f32 %v1130_v20, %v1123_v29 }
 0x159   : > { %v1142_v34 = vmax.f32 %v1138_v30, 0.0  ;;  %v1140_v35 = vadd.f32 %v1134_v24, %v1124_v31 }
 0x15a   : > { %1145 = vst [vmem:[%s561_s9] sm:$0xff] %v1141_v32  ;;  %v1143_v36 = vmax.f32 %v1139_v33, 0.0 }
 0x15b   : > { %1146 = vst [vmem:[%s561_s9 + $0x8] sm:$0xff] %v1142_v34  ;;  %v1144_v37 = vmax.f32 %v1140_v35, 0.0 }
 0x15c   : > { %1147 = vst [vmem:[%s561_s9 + $0x10] sm:$0xff] %v1143_v36 }
 0x15d   : > { %1148 = vst [vmem:[%s561_s9 + $0x18] sm:$0xff] %v1144_v37 }
 0x161   : > { %v1174_v38 = vld [vmem:[%s561_s9] sm:$0xff] }
 0x162   : > { %v1176_v39 = vld [vmem:[%s561_s9 + $0x8] sm:$0xff]  ;;  %1175 = vst [vmem:[%s1161_s11] sm:$0xff] %v1174_v38 }
 0x163   : > { %v1178_v40 = vld [vmem:[%s561_s9 + $0x10] sm:$0xff]  ;;  %1177 = vst [vmem:[%s1161_s11 + $0x8] sm:$0xff] %v1176_v39 }
 0x164   : > { %v1180_v41 = vld [vmem:[%s561_s9 + $0x18] sm:$0xff]  ;;  %1179 = vst [vmem:[%s1161_s11 + $0x20] sm:$0xff] %v1178_v40 }
 0x165   : > { %1181 = vst [vmem:[%s1161_s11 + $0x28] sm:$0xff] %v1180_v41 }
 0x166 PF: > { %s14_s19 = sadd.s32 1, %s1571_s19   ;;  %s1897_s15 = smov %s1559_s16 }
 0x167   : > { %p11_p12 = scmp.ge.s32.totalorder %s14_s19, 4   ;;  %s1898_s16 = smov %s1638_s25 }
 0x168   : > { %s1899_s17 = smov %s1567_s18  ;;  %s1900_s18 = smov %s1902_s20 }
 0x169   :  { %13 = sbr.rel (!%p11_p12) target bundleno = 3 (0x3), region = 149 }

// kernel: _lambda_.46
= control target key start
LH: loop header
LB: loop body
LE: loop exit
PB: predicated region body
PF: predicated region fallthrough
CT: control target
= control target key end

     0   :  { %s689_s1 = inlined_call_operand.vmem [shape: bf16[512,128], index: 1, kind: input, shape index: {}]   ;;  %s690_s0 = inlined_call_operand.vmem [shape: bf16[16,512], index: 0, kind: input, shape index: {}]   ;;  %s691_s2 = inlined_call_operand.vmem [shape: f32[1,128], index: 2, kind: input, shape index: {}]   ;;  %s692_s3 = inlined_call_operand.vmem [shape: f32[1,128], index: 3, kind: input, shape index: {}]   ;;  %s693_s4 = inlined_call_operand.vmem [shape: f32[16,128], index: 4, kind: output, shape index: {}]  }
   0x1   :  { %v506_v0 = vld [vmem:[%s689_s1 + $0x40] sm:$0xff]   ;;  %v510_v4 = vld [vmem:[%s689_s1 + $0x48] sm:$0xff]   ;;  %v514_v8 = vld [vmem:[%s689_s1 + $0x50] sm:$0xff]  }
   0x2   :  { %v507_v1 = vld [vmem:[%s689_s1 + $0xc0] sm:$0xff]   ;;  %461 = vmatprep.subr.bf16.mxu0 %v506_v0  ;;  %v511_v5 = vld [vmem:[%s689_s1 + $0xc8] sm:$0xff]   ;;  %v515_v9 = vld [vmem:[%s689_s1 + $0xd0] sm:$0xff]  }
   0x3   :  { %v508_v2 = vld [vmem:[%s689_s1] sm:$0xff]   ;;  %483 = vmatprep.subr.bf16.mxu1 %v507_v1  ;;  %v512_v6 = vld [vmem:[%s689_s1 + $0x8] sm:$0xff]   ;;  %v516_v10 = vld [vmem:[%s689_s1 + $0x10] sm:$0xff]  }
   0x4   :  { %v509_v3 = vld [vmem:[%s689_s1 + $0x80] sm:$0xff]   ;;  %462 = vmatpush3.bf16.msra.mxu0 %v508_v2  ;;  %v513_v7 = vld [vmem:[%s689_s1 + $0x88] sm:$0xff]   ;;  %v517_v11 = vld [vmem:[%s689_s1 + $0x90] sm:$0xff]  }
   0x5   :  { %484 = vmatpush3.bf16.msra.mxu1 %v509_v3  ;;  %463 = vmatprep.subr.bf16.mxu0 %v510_v4  ;;  %v518_v12 = vld [vmem:[%s689_s1 + $0x58] sm:$0xff]   ;;  %v522_v16 = vld [vmem:[%s689_s1 + $0x60] sm:$0xff]   ;;  %v526_v20 = vld [vmem:[%s689_s1 + $0x68] sm:$0xff]  }
   0x6   :  { %485 = vmatprep.subr.bf16.mxu1 %v511_v5  ;;  %v519_v13 = vld [vmem:[%s689_s1 + $0xd8] sm:$0xff]   ;;  %v523_v17 = vld [vmem:[%s689_s1 + $0xe0] sm:$0xff]   ;;  %v527_v21 = vld [vmem:[%s689_s1 + $0xe8] sm:$0xff]  }
   0x7   :  { %v520_v14 = vld [vmem:[%s689_s1 + $0x18] sm:$0xff]   ;;  %v524_v18 = vld [vmem:[%s689_s1 + $0x20] sm:$0xff]   ;;  %v528_v22 = vld [vmem:[%s689_s1 + $0x28] sm:$0xff]  }
   0x8   :  { %464 = vmatpush3.bf16.msra.mxu0 %v512_v6  ;;  %v521_v15 = vld [vmem:[%s689_s1 + $0x98] sm:$0xff]   ;;  %v525_v19 = vld [vmem:[%s689_s1 + $0xa0] sm:$0xff]   ;;  %v529_v23 = vld [vmem:[%s689_s1 + $0xa8] sm:$0xff]  }
   0x9   :  { %486 = vmatpush3.bf16.msra.mxu1 %v513_v7  ;;  %465 = vmatprep.subr.bf16.mxu0 %v514_v8  ;;  %v530_v24 = vld [vmem:[%s689_s1 + $0x70] sm:$0xff]   ;;  %v534_v28 = vld [vmem:[%s689_s1 + $0x78] sm:$0xff]   ;;  %v459_v49 = vld [vmem:[%s691_s2] ss:$0 sm:$0xff] }
   0xa   :  { %487 = vmatprep.subr.bf16.mxu1 %v515_v9  ;;  %v531_v25 = vld [vmem:[%s689_s1 + $0xf0] sm:$0xff]   ;;  %v535_v29 = vld [vmem:[%s689_s1 + $0xf8] sm:$0xff]   ;;  %v460_v51 = vld [vmem:[%s692_s3] ss:$0 sm:$0xff] }
   0xb   :  { %v532_v26 = vld [vmem:[%s689_s1 + $0x30] sm:$0xff]   ;;  %v536_v30 = vld [vmem:[%s689_s1 + $0x38] sm:$0xff]  }
   0xc   :  { %466 = vmatpush3.bf16.msra.mxu0 %v516_v10  ;;  %v533_v27 = vld [vmem:[%s689_s1 + $0xb0] sm:$0xff]   ;;  %v537_v31 = vld [vmem:[%s689_s1 + $0xb8] sm:$0xff]  }
   0xd   :  { %488 = vmatpush3.bf16.msra.mxu1 %v517_v11  ;;  %467 = vmatprep.subr.bf16.mxu0 %v518_v12  ;;  %v538_v32 = vld [vmem:[%s690_s0] ss:$16 sps:$4 sm:$0xff]   ;;  %v540_v33 = vld [vmem:[%s690_s0 + $0x4] ss:$16 sps:$4 sm:$0xff]   ;;  %v541_v34 = vld [vmem:[%s690_s0 + $0x8] ss:$16 sps:$4 sm:$0xff]  }
   0xe   :  { %489 = vmatprep.subr.bf16.mxu1 %v519_v13  ;;  %v543_v35 = vld [vmem:[%s690_s0 + $0xc] ss:$16 sps:$4 sm:$0xff]   ;;  %338 = vmatprep.mubr.bf16.mxu0 %v540_v33 }
   0xf   :  { %379 = vmatprep.mubr.bf16.mxu1 %v543_v35 }
  0x10   :  { %468 = vmatpush3.bf16.msra.mxu0 %v520_v14 }
  0x11   :  { %490 = vmatpush3.bf16.msra.mxu1 %v521_v15  ;;  %469 = vmatprep.subr.bf16.mxu0 %v522_v16 }
  0x12   :  { %491 = vmatprep.subr.bf16.mxu1 %v523_v17 }
  0x14   :  { %470 = vmatpush3.bf16.msra.mxu0 %v524_v18 }
  0x15   :  { %492 = vmatpush3.bf16.msra.mxu1 %v525_v19  ;;  %471 = vmatprep.subr.bf16.mxu0 %v526_v20 }
  0x16   :  { %493 = vmatprep.subr.bf16.mxu1 %v527_v21 }
  0x18   :  { %472 = vmatpush3.bf16.msra.mxu0 %v528_v22 }
  0x19   :  { %494 = vmatpush3.bf16.msra.mxu1 %v529_v23  ;;  %473 = vmatprep.subr.bf16.mxu0 %v530_v24 }
  0x1a   :  { %495 = vmatprep.subr.bf16.mxu1 %v531_v25 }
  0x1c   :  { %474 = vmatpush3.bf16.msra.mxu0 %v532_v26 }
  0x1d   :  { %496 = vmatpush3.bf16.msra.mxu1 %v533_v27  ;;  %475 = vmatprep.subr.bf16.mxu0 %v534_v28 }
  0x1e   :  { %497 = vmatprep.subr.bf16.mxu1 %v535_v29 }
  0x20   :  { %476 = vmatpush3.bf16.msra.mxu0 %v536_v30 }
  0x21   :  { %498 = vmatpush3.bf16.msra.mxu1 %v537_v31 }
  0x23   :  { %339 = vmatmul.mubr.bf16.vlgmr.msra.gmra.mrb[0].mxu0 %v538_v32 }
  0x24   :  { %380 = vmatmul.mubr.bf16.vlgmr.msra.gmra.mrb[0].mxu1 %v541_v34 }
  0xf6   :  { %v477_v36 = vpop.f32.mrb[0].mxu0 }
  0xf7   :  { %v499_v37 = vpop.f32.mrb[0].mxu1  ;;  %v478_v38 = vpop.f32.mrb[1].mxu0 }
  0xf8   :  { %v479_v39 = vadd.f32 %v478_v38, %v477_v36  ;;  %v500_v40 = vpop.f32.mrb[1].mxu1  ;;  %v480_v41 = vpop.f32.mrb[2].mxu0 }
  0xf9   :  { %v501_v42 = vadd.f32 %v500_v40, %v499_v37  ;;  %v502_v43 = vpop.f32.mrb[2].mxu1  ;;  %v481_v44 = vpop.f32.mrb[3].mxu0 }
  0xfa   :  { %v482_v45 = vadd.f32 %v481_v44, %v480_v41  ;;  %v503_v46 = vpop.f32.mrb[3].mxu1 }
  0xfb   :  { %v382_v47 = vadd.f32 %v501_v42, %v479_v39  ;;  %v504_v48 = vadd.f32 %v503_v46, %v502_v43 }
  0xfd   :  { %v385_v50 = vadd.f32 %v504_v48, %v482_v45  ;;  %v404_v52 = vmul.f32 %v459_v49, %v382_v47 }
  0xff   :  { %v413_v53 = vadd.f32 %v460_v51, %v404_v52  ;;  %v405_v54 = vmul.f32 %v459_v49, %v385_v50 }
 0x101   :  { %v415_v55 = vmax.f32 %v413_v53, 0.0  ;;  %v414_v56 = vadd.f32 %v460_v51, %v405_v54 }
 0x103   :  { %417 = vst [vmem:[%s693_s4] sm:$0xff] %v415_v55  ;;  %v416_v57 = vmax.f32 %v414_v56, 0.0 }
 0x105   :  { %418 = vst [vmem:[%s693_s4 + $0x8] sm:$0xff] %v416_v57 }

// kernel: _lambda_.47
= control target key start
LH: loop header
LB: loop body
LE: loop exit
PB: predicated region body
PF: predicated region fallthrough
CT: control target
= control target key end

     0   :  { %v223_v0 = vmov 0.0   ;;  %vm224_vm0 = vmmov 0   ;;  %s289_s1 = inlined_call_operand.vmem [shape: bf16[128,128], index: 1, kind: input, shape index: {}]   ;;  %s290_s0 = inlined_call_operand.vmem [shape: bf16[16,128], index: 0, kind: input, shape index: {}]   ;;  %s291_s2 = inlined_call_operand.vmem [shape: f32[1,128], index: 2, kind: input, shape index: {}]   ;;  %s292_s3 = inlined_call_operand.vmem [shape: f32[1,128], index: 3, kind: input, shape index: {}]   ;;  %s293_s4 = inlined_call_operand.vmem [shape: f32[16,128], index: 4, kind: output, shape index: {}]  }
   0x1   :  { %192 = vmatprep.subr.bf16.mxu0 %v223_v0  ;;  %v214_v1 = vld [vmem:[%s289_s1] sm:$0xff]   ;;  %208 = vmatprep.mubr.msk.bf16.mxu0 %vm224_vm0, %v223_v0  ;;  %v215_v2 = vld [vmem:[%s289_s1 + $0x8] sm:$0xff]   ;;  %v216_v3 = vld [vmem:[%s289_s1 + $0x10] sm:$0xff]  }
   0x2   :  { %193 = vmatpush3.bf16.msra.mxu0 %v214_v1  ;;  %v217_v4 = vld [vmem:[%s289_s1 + $0x18] sm:$0xff]   ;;  %v218_v5 = vld [vmem:[%s289_s1 + $0x20] sm:$0xff]   ;;  %v219_v6 = vld [vmem:[%s289_s1 + $0x28] sm:$0xff]  }
   0x3   :  { %194 = vmatprep.subr.bf16.mxu0 %v223_v0  ;;  %v220_v7 = vld [vmem:[%s289_s1 + $0x30] sm:$0xff]   ;;  %v221_v8 = vld [vmem:[%s289_s1 + $0x38] sm:$0xff]   ;;  %v222_v9 = vld [vmem:[%s290_s0] sm:$0xff]  }
   0x4   :  { %v181_v11 = vld [vmem:[%s291_s2] ss:$0 sm:$0xff] }
   0x5   :  { %v182_v13 = vld [vmem:[%s292_s3] ss:$0 sm:$0xff] }
   0x6   :  { %195 = vmatpush3.bf16.msra.mxu0 %v215_v2 }
   0x7   :  { %196 = vmatprep.subr.bf16.mxu0 %v223_v0 }
   0xa   :  { %197 = vmatpush3.bf16.msra.mxu0 %v216_v3 }
   0xb   :  { %198 = vmatprep.subr.bf16.mxu0 %v223_v0 }
   0xe   :  { %199 = vmatpush3.bf16.msra.mxu0 %v217_v4 }
   0xf   :  { %200 = vmatprep.subr.bf16.mxu0 %v223_v0 }
  0x12   :  { %201 = vmatpush3.bf16.msra.mxu0 %v218_v5 }
  0x13   :  { %202 = vmatprep.subr.bf16.mxu0 %v223_v0 }
  0x16   :  { %203 = vmatpush3.bf16.msra.mxu0 %v219_v6 }
  0x17   :  { %204 = vmatprep.subr.bf16.mxu0 %v223_v0 }
  0x1a   :  { %205 = vmatpush3.bf16.msra.mxu0 %v220_v7 }
  0x1b   :  { %206 = vmatprep.subr.bf16.mxu0 %v223_v0 }
  0x1e   :  { %207 = vmatpush3.bf16.msra.mxu0 %v221_v8 }
  0x21   :  { %209 = vmatmul.mubr.bf16.vlgmr.msra.gmra.mrb[0].mxu0 %v222_v9 }
  0xf4   :  { %v132_v10 = vpop.f32.mrb[0].mxu0 }
  0xf5   :  { %v210_v12 = vpop.f32.mrb[1].mxu0  ;;  %v155_v15 = vmul.f32 %v181_v11, %v132_v10 }
  0xf6   :  { %v135_v14 = vpop.f32.mrb[2].mxu0 }
  0xf7   :  { %v211_v16 = vpop.f32.mrb[3].mxu0  ;;  %v164_v17 = vadd.f32 %v182_v13, %v155_v15  ;;  %v156_v18 = vmul.f32 %v181_v11, %v135_v14 }
  0xf9   :  { %166 = vst [vmem:[%s293_s4] sm:$0xff] %v164_v17  ;;  %v165_v19 = vadd.f32 %v182_v13, %v156_v18 }
  0xfb   :  { %167 = vst [vmem:[%s293_s4 + $0x8] sm:$0xff] %v165_v19 }

</bundles_post_ra>
